<compile_context>
chip_gen: v7x
topology: tpu7x:2x2x1
jax: 0.10.0
libtpu: 0.0.40
codegen_flags: <defaults>
</compile_context>

<pallas_src>
import functools

import numpy as np

import jax
import jax.numpy as jnp
from jax import lax
from jax.experimental import pallas as pl
from jax.experimental.pallas import tpu as pltpu


# ----------------------------- in-kernel math helpers -----------------------------

def _relu6(x):
    return jnp.clip(x, 0.0, 6.0)


def _instance_norm_rows(x, g, b, eps=1e-5):
    # x: (rows, P) where each row is one (image, channel) pair; reduce over lanes only,
    # so the statistics are per-image / per-channel exactly like nn.InstanceNorm2d
    # (biased variance, eps=1e-5). g, b: (rows, 1).
    mean = jnp.mean(x, axis=1, keepdims=True)
    var = jnp.mean(jnp.square(x - mean), axis=1, keepdims=True)
    return (x - mean) * lax.rsqrt(var + eps) * g + b


def _roll_cache(x):
    """Memoised cyclic shift along the flat spatial (lane) axis.

    get(d) returns an array whose element at flat position p holds x[..., p + d]
    (cyclically); one XLU lane rotation per distinct d.
    """
    size = x.shape[-1]
    cache = {0: x}

    def get(d):
        if d not in cache:
            cache[d] = pltpu.roll(x, (-d) % size, axis=x.ndim - 1)
        return cache[d]

    return get


def _shift_reflect(get, d, idx, size, period):
    """Value at coordinate (idx + d) along one spatial axis with reflection padding.

    `get`    : _roll_cache over the flat (rows, H*W) layout
    `idx`    : (1, H*W) int32 coordinate of every flat position along this axis
    `size`   : length of this axis
    `period` : flat-index stride of a unit step along this axis (1 for W, W for H)
    """
    if d == 0:
        return get(0)
    out = get(d * period)
    if d < 0:
        # positions with idx == j would read idx + d < 0 -> reflect to -(idx + d)
        for j in range(-d):
            out = jnp.where(idx == j, get((-2 * j - d) * period), out)
    else:
        # positions with idx == size-1-j would read >= size -> reflect to 2(size-1)-(idx+d)
        for j in range(d):
            out = jnp.where(idx == size - 1 - j, get((2 * j - d) * period), out)
    return out


# --------------------------------- Pallas kernel ----------------------------------

def _bottleneck_kernel(x_ref, aux_ref, w1_ref, g1_ref, b1_ref, wdw_ref,
                       g2_ref, b2_ref, w3_ref, g3_ref, b3_ref, o_ref,
                       *, k, h2_len, w2_len, residual):
    f32 = jnp.float32
    pad = k // 2

    x = x_ref[...]                       # (N*Cin, P_lo)  f32
    hh = aux_ref[0:1, :]                 # (1, P_hi) int32: row index  h2
    ww = aux_ref[1:2, :]                 # (1, P_hi) int32: col index  w2
    tgt = aux_ref[2:3, :]                # (1, P_hi) int32: low-res flat source index
    p_lo = x.shape[1]
    p_hi = tgt.shape[1]

    # ---- stage 1: 1x1 conv (block-diagonal over batch, VPU broadcast-FMA)
    #      + InstanceNorm + relu6, computed at LOW resolution (commutes with upsample).
    w1 = w1_ref[...]                                     # (N*C1, N*Cin)
    h1 = jnp.zeros((w1.shape[0], p_lo), f32)
    for j in range(x.shape[0]):
        h1 = h1 + w1[:, j:j + 1] * x[j:j + 1, :]
    h1 = _relu6(_instance_norm_rows(h1, g1_ref[...], b1_ref[...]))

    # ---- fused nearest-neighbour upsample: exact 0/1 selection matmul on the MXU.
    if p_hi != p_lo:
        sel = jnp.where(
            lax.broadcasted_iota(jnp.int32, (p_lo, p_hi), 0) == tgt, 1.0, 0.0)
        h1u = jnp.dot(h1, sel, preferred_element_type=f32,
                      precision=jax.lax.Precision.HIGHEST)
    else:
        sel = None
        h1u = h1                                          # no upsample configured

    # ---- stage 2: reflection pad + depthwise conv via lane rolls + edge fixups,
    #      then InstanceNorm + relu6.  Taps are hoisted (single VMEM load).
    wdw = wdw_ref[...]                                    # (N*C1, k*k)
    acc = jnp.zeros_like(h1u)
    get_x = _roll_cache(h1u)
    for dw in range(k):
        col = _shift_reflect(get_x, dw - pad, ww, w2_len, 1)      # shift in W
        get_c = _roll_cache(col)
        for dh in range(k):
            v = _shift_reflect(get_c, dh - pad, hh, h2_len, w2_len)  # shift in H
            i = dh * k + dw
            acc = acc + wdw[:, i:i + 1] * v
    h2 = _relu6(_instance_norm_rows(acc, g2_ref[...], b2_ref[...]))

    # ---- stage 3: 1x1 conv (block-diagonal, VPU) + InstanceNorm.
    w3 = w3_ref[...]                                      # (N*Cout, N*C1)
    h3 = jnp.zeros((w3.shape[0], p_hi), f32)
    for j in range(h2.shape[0]):
        h3 = h3 + w3[:, j:j + 1] * h2[j:j + 1, :]
    h3 = _instance_norm_rows(h3, g3_ref[...], b3_ref[...])

    if residual:                                          # static: stride==1 and Cin==Cout
        x_up = x if sel is None else jnp.dot(x, sel, preferred_element_type=f32,
                                             precision=jax.lax.Precision.HIGHEST)
        h3 = h3 + x_up

    # final ReLU from UpsampleConv.forward; fully lane-/sublane-aligned store.
    o_ref[...] = jnp.maximum(h3, 0.0).astype(o_ref.dtype)


# ------------------------------------ wrapper --------------------------------------

def upsample_conv(x_nchw, params, *, kernel_size, stride, upsample):
    if stride != 1 or kernel_size % 2 != 1:
        # TODO(synk): stride=2 / even-kernel depthwise path not implemented in the
        # flat roll-based formulation (needs an extra output-subsampling step).
        raise NotImplementedError("only stride=1 with an odd kernel_size is supported")

    N, Cin, H, W = x_nchw.shape
    C1 = params["w1"].shape[1]            # = t * Cin (t == 1 for this module)
    Cout = params["w3"].shape[1]
    up = int(upsample) if upsample else 1
    H2, W2 = H * up, W * up
    P_lo, P_hi = H * W, H2 * W2
    residual = (stride == 1 and Cin == Cout)
    f32 = jnp.float32

    # ---- static index helpers (host-side numpy; tiny)
    hh, ww = np.meshgrid(np.arange(H2), np.arange(W2), indexing="ij")
    tgt = (hh // up) * W + (ww // up)
    aux = jnp.asarray(
        np.stack([hh.ravel(), ww.ravel(), tgt.ravel()]).astype(np.int32))  # (3, P_hi)

    # ---- fold the batch into the row (sublane) axis: block-diagonal 1x1 weights,
    #      per-(image,channel) affine params and depthwise taps.  (Pure param prep.)
    eye = jnp.eye(N, dtype=f32)
    w1_bd = jnp.kron(eye, params["w1"].T.astype(f32))          # (N*C1,  N*Cin)
    w3_bd = jnp.kron(eye, params["w3"].T.astype(f32))          # (N*Cout, N*C1)
    wdw_rows = jnp.tile(params["wdw"].T.astype(f32), (N, 1))   # (N*C1, k*k)

    def _rows(v, c):                                           # (1, c) -> (N*c, 1)
        return jnp.tile(v.reshape(-1).astype(f32), N).reshape(N * c, 1)

    g1, b1 = _rows(params["g1"], C1), _rows(params["b1"], C1)
    g2, b2 = _rows(params["g2"], C1), _rows(params["b2"], C1)
    g3, b3 = _rows(params["g3"], Cout), _rows(params["b3"], Cout)

    # NCHW -> (N*C, H*W) is a free, contiguous reshape (no transpose, no extra HBM op).
    x_flat = x_nchw.reshape(N * Cin, P_lo).astype(f32)

    kernel = functools.partial(_bottleneck_kernel, k=kernel_size,
                               h2_len=H2, w2_len=W2, residual=residual)

    args = (x_flat, aux, w1_bd, g1, b1, wdw_rows, g2, b2, w3_bd, g3, b3)
    in_specs = [pl.BlockSpec(a.shape, lambda i, nd=a.ndim: (0,) * nd) for a in args]

    # Single grid step: the whole (tiny) batch is resident in VMEM; batch parallelism
    # lives on the sublane axis.  (For large N, shard rows over a 'parallel' grid axis
    # so v7x's two TensorCores both get work.)
    out_flat = pl.pallas_call(
        kernel,
        out_shape=jax.ShapeDtypeStruct((N * Cout, P_hi), f32),
        grid_spec=pltpu.PrefetchScalarGridSpec(
            num_scalar_prefetch=0,
            grid=(1,),
            in_specs=in_specs,
            out_specs=pl.BlockSpec((N * Cout, P_hi), lambda i: (0, 0)),
        ),
        compiler_params=pltpu.CompilerParams(
            dimension_semantics=("arbitrary",)),
    )(*args)

    return out_flat.reshape(N, Cout, H2, W2)                   # free reshape -> NCHW


# ------------------------------- pure-JAX reference --------------------------------

def reference(x_nchw, params, *, kernel_size, stride, upsample):
    k, pad = kernel_size, kernel_size // 2

    def inorm(x2d, g, b, eps=1e-5):
        mean = jnp.mean(x2d, axis=0, keepdims=True)
        var = jnp.mean(jnp.square(x2d - mean), axis=0, keepdims=True)
        return (x2d - mean) * lax.rsqrt(var + eps) * g + b

    x = jnp.transpose(x_nchw, (0, 2, 3, 1)).astype(jnp.float32)
    if upsample:
        x = jnp.repeat(jnp.repeat(x, upsample, axis=1), upsample, axis=2)
    Cout = params["w3"].shape[1]

    def one(img):
        H, W, Cin = img.shape
        h = jnp.dot(img.reshape(H * W, Cin), params["w1"], precision="highest")
        h = jnp.clip(inorm(h, params["g1"], params["b1"]), 0.0, 6.0)
        C1 = h.shape[1]
        hp = jnp.pad(h.reshape(H, W, C1), ((pad, pad), (pad, pad), (0, 0)),
                     mode="reflect")
        Ho = (H + 2 * pad - k) // stride + 1
        Wo = (W + 2 * pad - k) // stride + 1
        acc = jnp.zeros((Ho, Wo, C1), jnp.float32)
        for dh in range(k):
            for dw in range(k):
                sl = hp[dh:dh + (Ho - 1) * stride + 1:stride,
                        dw:dw + (Wo - 1) * stride + 1:stride, :]
                acc = acc + sl * params["wdw"][dh * k + dw].reshape(1, 1, C1)
        h2 = jnp.clip(inorm(acc.reshape(Ho * Wo, C1), params["g2"], params["b2"]),
                      0.0, 6.0)
        h3 = jnp.dot(h2, params["w3"], precision="highest")
        h3 = inorm(h3, params["g3"], params["b3"])
        if stride == 1 and Cin == Cout:
            h3 = h3 + img.reshape(H * W, Cin)
        return jnp.maximum(h3, 0.0).reshape(Ho, Wo, Cout)

    return jnp.transpose(jax.vmap(one)(x), (0, 3, 1, 2))


# --------------------------------------- main ---------------------------------------

if __name__ == "__main__":
    N, Cin, H, W = 2, 4, 16, 16
    Cout, ksize, stride, ups = 8, 3, 1, 2        # non-residual Bottleneck config

    key = jax.random.PRNGKey(0)
    keys = jax.random.split(key, 10)
    x = jax.random.normal(keys[0], (N, Cin, H, W), jnp.float32)
    params = {
        # conv1 weight (torch: (C1, Cin, 1, 1)) stored as a (Cin_in, C1_out) matrix
        "w1": 0.3 * jax.random.normal(keys[1], (Cin, Cin), jnp.float32),
        "g1": 1.0 + 0.1 * jax.random.normal(keys[2], (1, Cin), jnp.float32),
        "b1": 0.05 * jax.random.normal(keys[3], (1, Cin), jnp.float32),
        # depthwise conv weight (torch: (C1, 1, k, k)) flattened to (k*k, C1)
        "wdw": 0.3 * jax.random.normal(keys[4], (ksize * ksize, Cin), jnp.float32),
        "g2": 1.0 + 0.1 * jax.random.normal(keys[5], (1, Cin), jnp.float32),
        "b2": 0.05 * jax.random.normal(keys[6], (1, Cin), jnp.float32),
        # conv3 weight (torch: (Cout, C1, 1, 1)) stored as (C1_in, Cout_out)
        "w3": 0.3 * jax.random.normal(keys[7], (Cin, Cout), jnp.float32),
        "g3": 1.0 + 0.1 * jax.random.normal(keys[8], (1, Cout), jnp.float32),
        "b3": 0.05 * jax.random.normal(keys[9], (1, Cout), jnp.float32),
    }

    out = upsample_conv(x, params, kernel_size=ksize, stride=stride, upsample=ups)
    out = jax.block_until_ready(out)

    ref = reference(x, params, kernel_size=ksize, stride=stride, upsample=ups)
    assert out.shape == ref.shape == (N, Cout, ups * H, ups * W), out.shape
    err = float(jnp.max(jnp.abs(out - ref)))
    assert jnp.allclose(out, ref, rtol=1e-3, atol=1e-3), err

    print("KERNEL_OK")
</pallas_src>

<mosaic_0001>
module attributes {stable_mosaic.version = 11 : i64} {
  func.func @_bottleneck_kernel(%arg0: i32, %arg1: memref<8x256xf32, #tpu.memory_space<vmem>>, %arg2: memref<3x1024xi32, #tpu.memory_space<vmem>>, %arg3: memref<8x8xf32, #tpu.memory_space<vmem>>, %arg4: memref<8x1xf32, #tpu.memory_space<vmem>>, %arg5: memref<8x1xf32, #tpu.memory_space<vmem>>, %arg6: memref<8x9xf32, #tpu.memory_space<vmem>>, %arg7: memref<8x1xf32, #tpu.memory_space<vmem>>, %arg8: memref<8x1xf32, #tpu.memory_space<vmem>>, %arg9: memref<16x8xf32, #tpu.memory_space<vmem>>, %arg10: memref<16x1xf32, #tpu.memory_space<vmem>>, %arg11: memref<16x1xf32, #tpu.memory_space<vmem>>, %arg12: memref<16x1024xf32, #tpu.memory_space<vmem>>) attributes {dimension_semantics = [#tpu.dimension_semantics<arbitrary>], iteration_bounds = array<i64: 1>, scalar_prefetch = 0 : i64, scratch_operands = 0 : i64, tpu.core_type = #tpu.core_type<tc>, window_params = [{pipeline_mode = #tpu.pipeline_mode<synchronous>, transform_indices = @transform_0, window_bounds = array<i64: 8, 256>}, {pipeline_mode = #tpu.pipeline_mode<synchronous>, transform_indices = @transform_1, window_bounds = array<i64: 3, 1024>}, {pipeline_mode = #tpu.pipeline_mode<synchronous>, transform_indices = @transform_2, window_bounds = array<i64: 8, 8>}, {pipeline_mode = #tpu.pipeline_mode<synchronous>, transform_indices = @transform_3, window_bounds = array<i64: 8, 1>}, {pipeline_mode = #tpu.pipeline_mode<synchronous>, transform_indices = @transform_4, window_bounds = array<i64: 8, 1>}, {pipeline_mode = #tpu.pipeline_mode<synchronous>, transform_indices = @transform_5, window_bounds = array<i64: 8, 9>}, {pipeline_mode = #tpu.pipeline_mode<synchronous>, transform_indices = @transform_6, window_bounds = array<i64: 8, 1>}, {pipeline_mode = #tpu.pipeline_mode<synchronous>, transform_indices = @transform_7, window_bounds = array<i64: 8, 1>}, {pipeline_mode = #tpu.pipeline_mode<synchronous>, transform_indices = @transform_8, window_bounds = array<i64: 16, 8>}, {pipeline_mode = #tpu.pipeline_mode<synchronous>, transform_indices = @transform_9, window_bounds = array<i64: 16, 1>}, {pipeline_mode = #tpu.pipeline_mode<synchronous>, transform_indices = @transform_10, window_bounds = array<i64: 16, 1>}, {pipeline_mode = #tpu.pipeline_mode<synchronous>, transform_indices = @transform_11, window_bounds = array<i64: 16, 1024>}]} {
    %c0 = arith.constant 0 : index
    %c0_0 = arith.constant 0 : index
    %0 = vector.load %arg1[%c0, %c0_0] : memref<8x256xf32, #tpu.memory_space<vmem>>, vector<8x256xf32>
    %c0_1 = arith.constant 0 : index
    %c0_2 = arith.constant 0 : index
    %1 = vector.load %arg2[%c0_1, %c0_2] : memref<3x1024xi32, #tpu.memory_space<vmem>>, vector<1x1024xi32>
    %c1 = arith.constant 1 : index
    %c0_3 = arith.constant 0 : index
    %2 = vector.load %arg2[%c1, %c0_3] : memref<3x1024xi32, #tpu.memory_space<vmem>>, vector<1x1024xi32>
    %c2 = arith.constant 2 : index
    %c0_4 = arith.constant 0 : index
    %3 = vector.load %arg2[%c2, %c0_4] : memref<3x1024xi32, #tpu.memory_space<vmem>>, vector<1x1024xi32>
    %c0_5 = arith.constant 0 : index
    %c0_6 = arith.constant 0 : index
    %4 = vector.load %arg3[%c0_5, %c0_6] : memref<8x8xf32, #tpu.memory_space<vmem>>, vector<8x8xf32>
    %cst = arith.constant 0.000000e+00 : f32
    %5 = vector.broadcast %cst : f32 to vector<8x256xf32>
    %6 = vector.extract_strided_slice %4 {offsets = [0, 0], sizes = [8, 1], strides = [1, 1]} : vector<8x8xf32> to vector<8x1xf32>
    %7 = vector.extract_strided_slice %0 {offsets = [0, 0], sizes = [1, 256], strides = [1, 1]} : vector<8x256xf32> to vector<1x256xf32>
    %8 = vector.broadcast %6 : vector<8x1xf32> to vector<8x256xf32>
    %9 = vector.broadcast %7 : vector<1x256xf32> to vector<8x256xf32>
    %10 = arith.mulf %8, %9 : vector<8x256xf32>
    %11 = arith.addf %5, %10 : vector<8x256xf32>
    %12 = vector.extract_strided_slice %4 {offsets = [0, 1], sizes = [8, 1], strides = [1, 1]} : vector<8x8xf32> to vector<8x1xf32>
    %13 = vector.extract_strided_slice %0 {offsets = [1, 0], sizes = [1, 256], strides = [1, 1]} : vector<8x256xf32> to vector<1x256xf32>
    %14 = vector.broadcast %12 : vector<8x1xf32> to vector<8x256xf32>
    %15 = vector.broadcast %13 : vector<1x256xf32> to vector<8x256xf32>
    %16 = arith.mulf %14, %15 : vector<8x256xf32>
    %17 = arith.addf %11, %16 : vector<8x256xf32>
    %18 = vector.extract_strided_slice %4 {offsets = [0, 2], sizes = [8, 1], strides = [1, 1]} : vector<8x8xf32> to vector<8x1xf32>
    %19 = vector.extract_strided_slice %0 {offsets = [2, 0], sizes = [1, 256], strides = [1, 1]} : vector<8x256xf32> to vector<1x256xf32>
    %20 = vector.broadcast %18 : vector<8x1xf32> to vector<8x256xf32>
    %21 = vector.broadcast %19 : vector<1x256xf32> to vector<8x256xf32>
    %22 = arith.mulf %20, %21 : vector<8x256xf32>
    %23 = arith.addf %17, %22 : vector<8x256xf32>
    %24 = vector.extract_strided_slice %4 {offsets = [0, 3], sizes = [8, 1], strides = [1, 1]} : vector<8x8xf32> to vector<8x1xf32>
    %25 = vector.extract_strided_slice %0 {offsets = [3, 0], sizes = [1, 256], strides = [1, 1]} : vector<8x256xf32> to vector<1x256xf32>
    %26 = vector.broadcast %24 : vector<8x1xf32> to vector<8x256xf32>
    %27 = vector.broadcast %25 : vector<1x256xf32> to vector<8x256xf32>
    %28 = arith.mulf %26, %27 : vector<8x256xf32>
    %29 = arith.addf %23, %28 : vector<8x256xf32>
    %30 = vector.extract_strided_slice %4 {offsets = [0, 4], sizes = [8, 1], strides = [1, 1]} : vector<8x8xf32> to vector<8x1xf32>
    %31 = vector.extract_strided_slice %0 {offsets = [4, 0], sizes = [1, 256], strides = [1, 1]} : vector<8x256xf32> to vector<1x256xf32>
    %32 = vector.broadcast %30 : vector<8x1xf32> to vector<8x256xf32>
    %33 = vector.broadcast %31 : vector<1x256xf32> to vector<8x256xf32>
    %34 = arith.mulf %32, %33 : vector<8x256xf32>
    %35 = arith.addf %29, %34 : vector<8x256xf32>
    %36 = vector.extract_strided_slice %4 {offsets = [0, 5], sizes = [8, 1], strides = [1, 1]} : vector<8x8xf32> to vector<8x1xf32>
    %37 = vector.extract_strided_slice %0 {offsets = [5, 0], sizes = [1, 256], strides = [1, 1]} : vector<8x256xf32> to vector<1x256xf32>
    %38 = vector.broadcast %36 : vector<8x1xf32> to vector<8x256xf32>
    %39 = vector.broadcast %37 : vector<1x256xf32> to vector<8x256xf32>
    %40 = arith.mulf %38, %39 : vector<8x256xf32>
    %41 = arith.addf %35, %40 : vector<8x256xf32>
    %42 = vector.extract_strided_slice %4 {offsets = [0, 6], sizes = [8, 1], strides = [1, 1]} : vector<8x8xf32> to vector<8x1xf32>
    %43 = vector.extract_strided_slice %0 {offsets = [6, 0], sizes = [1, 256], strides = [1, 1]} : vector<8x256xf32> to vector<1x256xf32>
    %44 = vector.broadcast %42 : vector<8x1xf32> to vector<8x256xf32>
    %45 = vector.broadcast %43 : vector<1x256xf32> to vector<8x256xf32>
    %46 = arith.mulf %44, %45 : vector<8x256xf32>
    %47 = arith.addf %41, %46 : vector<8x256xf32>
    %48 = vector.extract_strided_slice %4 {offsets = [0, 7], sizes = [8, 1], strides = [1, 1]} : vector<8x8xf32> to vector<8x1xf32>
    %49 = vector.extract_strided_slice %0 {offsets = [7, 0], sizes = [1, 256], strides = [1, 1]} : vector<8x256xf32> to vector<1x256xf32>
    %50 = vector.broadcast %48 : vector<8x1xf32> to vector<8x256xf32>
    %51 = vector.broadcast %49 : vector<1x256xf32> to vector<8x256xf32>
    %52 = arith.mulf %50, %51 : vector<8x256xf32>
    %53 = arith.addf %47, %52 : vector<8x256xf32>
    %c0_7 = arith.constant 0 : index
    %c0_8 = arith.constant 0 : index
    %54 = vector.load %arg4[%c0_7, %c0_8] : memref<8x1xf32, #tpu.memory_space<vmem>>, vector<8x1xf32>
    %c0_9 = arith.constant 0 : index
    %c0_10 = arith.constant 0 : index
    %55 = vector.load %arg5[%c0_9, %c0_10] : memref<8x1xf32, #tpu.memory_space<vmem>>, vector<8x1xf32>
    %cst_11 = arith.constant dense<0.000000e+00> : vector<8xf32>
    %56 = vector.multi_reduction <add>, %53, %cst_11 [1] : vector<8x256xf32> to vector<8xf32>
    %57 = vector.shape_cast %56 : vector<8xf32> to vector<8x1xf32>
    %cst_12 = arith.constant 2.560000e+02 : f32
    %58 = vector.broadcast %cst_12 : f32 to vector<8x1xf32>
    %59 = arith.divf %57, %58 : vector<8x1xf32>
    %60 = vector.broadcast %59 : vector<8x1xf32> to vector<8x256xf32>
    %61 = arith.subf %53, %60 : vector<8x256xf32>
    %62 = arith.mulf %61, %61 : vector<8x256xf32>
    %cst_13 = arith.constant dense<0.000000e+00> : vector<8xf32>
    %63 = vector.multi_reduction <add>, %62, %cst_13 [1] : vector<8x256xf32> to vector<8xf32>
    %64 = vector.shape_cast %63 : vector<8xf32> to vector<8x1xf32>
    %cst_14 = arith.constant 2.560000e+02 : f32
    %65 = vector.broadcast %cst_14 : f32 to vector<8x1xf32>
    %66 = arith.divf %64, %65 : vector<8x1xf32>
    %67 = vector.broadcast %59 : vector<8x1xf32> to vector<8x256xf32>
    %68 = arith.subf %53, %67 : vector<8x256xf32>
    %cst_15 = arith.constant 9.99999974E-6 : f32
    %69 = vector.broadcast %cst_15 : f32 to vector<8x1xf32>
    %70 = arith.addf %66, %69 : vector<8x1xf32>
    %71 = math.rsqrt %70 : vector<8x1xf32>
    %72 = vector.broadcast %71 : vector<8x1xf32> to vector<8x256xf32>
    %73 = arith.mulf %68, %72 : vector<8x256xf32>
    %74 = vector.broadcast %54 : vector<8x1xf32> to vector<8x256xf32>
    %75 = arith.mulf %73, %74 : vector<8x256xf32>
    %76 = vector.broadcast %55 : vector<8x1xf32> to vector<8x256xf32>
    %77 = arith.addf %75, %76 : vector<8x256xf32>
    %cst_16 = arith.constant 0.000000e+00 : f32
    %cst_17 = arith.constant 6.000000e+00 : f32
    %78 = vector.broadcast %cst_16 : f32 to vector<8x256xf32>
    %79 = arith.maximumf %78, %77 : vector<8x256xf32>
    %80 = vector.broadcast %cst_17 : f32 to vector<8x256xf32>
    %81 = arith.minimumf %80, %79 : vector<8x256xf32>
    %82 = tpu.iota {dimensions = array<i32: 0>} : vector<256x1024xi32>
    %83 = vector.broadcast %3 : vector<1x1024xi32> to vector<256x1024xi32>
    %84 = arith.cmpi eq, %82, %83 : vector<256x1024xi32>
    %cst_18 = arith.constant 1.000000e+00 : f32
    %cst_19 = arith.constant 0.000000e+00 : f32
    %85 = vector.broadcast %cst_18 : f32 to vector<256x1024xf32>
    %86 = vector.broadcast %cst_19 : f32 to vector<256x1024xf32>
    %87 = arith.select %84, %85, %86 : vector<256x1024xi1>, vector<256x1024xf32>
    %cst_20 = arith.constant dense<0.000000e+00> : vector<8x1024xf32>
    %88 = tpu.matmul %81, %87, %cst_20 {dimension_numbers = #tpu.dot_dimension_numbers<[1], [0], [0], [1], [0, 0, 1, 1], [], []>, precision = #tpu.contract_precision<fp32>} : vector<8x256xf32>, vector<256x1024xf32>, vector<8x1024xf32> -> vector<8x1024xf32>
    %c0_21 = arith.constant 0 : index
    %c0_22 = arith.constant 0 : index
    %89 = vector.load %arg6[%c0_21, %c0_22] : memref<8x9xf32, #tpu.memory_space<vmem>>, vector<8x9xf32>
    %cst_23 = arith.constant 0.000000e+00 : f32
    %90 = vector.broadcast %cst_23 : f32 to vector<8x1024xf32>
    %c1_i32 = arith.constant 1 : i32
    %91 = tpu.dynamic_rotate %88 by %c1_i32 dim 1 : vector<8x1024xf32>, i32 -> vector<8x1024xf32>
    %c0_i32 = arith.constant 0 : i32
    %92 = vector.broadcast %c0_i32 : i32 to vector<1x1024xi32>
    %93 = arith.cmpi eq, %2, %92 : vector<1x1024xi32>
    %c1023_i32 = arith.constant 1023 : i32
    %94 = tpu.dynamic_rotate %88 by %c1023_i32 dim 1 : vector<8x1024xf32>, i32 -> vector<8x1024xf32>
    %95 = vector.shape_cast %93 : vector<1x1024xi1> to vector<1x1024xi1>
    %96 = vector.broadcast %95 : vector<1x1024xi1> to vector<8x1024xi1>
    %97 = arith.select %96, %94, %91 : vector<8x1024xi1>, vector<8x1024xf32>
    %c32_i32 = arith.constant 32 : i32
    %98 = tpu.dynamic_rotate %97 by %c32_i32 dim 1 : vector<8x1024xf32>, i32 -> vector<8x1024xf32>
    %c0_i32_24 = arith.constant 0 : i32
    %99 = vector.broadcast %c0_i32_24 : i32 to vector<1x1024xi32>
    %100 = arith.cmpi eq, %1, %99 : vector<1x1024xi32>
    %c992_i32 = arith.constant 992 : i32
    %101 = tpu.dynamic_rotate %97 by %c992_i32 dim 1 : vector<8x1024xf32>, i32 -> vector<8x1024xf32>
    %102 = vector.shape_cast %100 : vector<1x1024xi1> to vector<1x1024xi1>
    %103 = vector.broadcast %102 : vector<1x1024xi1> to vector<8x1024xi1>
    %104 = arith.select %103, %101, %98 : vector<8x1024xi1>, vector<8x1024xf32>
    %105 = vector.extract_strided_slice %89 {offsets = [0, 0], sizes = [8, 1], strides = [1, 1]} : vector<8x9xf32> to vector<8x1xf32>
    %106 = vector.broadcast %105 : vector<8x1xf32> to vector<8x1024xf32>
    %107 = arith.mulf %106, %104 : vector<8x1024xf32>
    %108 = arith.addf %90, %107 : vector<8x1024xf32>
    %109 = vector.extract_strided_slice %89 {offsets = [0, 3], sizes = [8, 1], strides = [1, 1]} : vector<8x9xf32> to vector<8x1xf32>
    %110 = vector.broadcast %109 : vector<8x1xf32> to vector<8x1024xf32>
    %111 = arith.mulf %110, %97 : vector<8x1024xf32>
    %112 = arith.addf %108, %111 : vector<8x1024xf32>
    %c31_i32 = arith.constant 31 : i32
    %113 = vector.broadcast %c31_i32 : i32 to vector<1x1024xi32>
    %114 = arith.cmpi eq, %1, %113 : vector<1x1024xi32>
    %115 = vector.shape_cast %114 : vector<1x1024xi1> to vector<1x1024xi1>
    %116 = vector.broadcast %115 : vector<1x1024xi1> to vector<8x1024xi1>
    %117 = arith.select %116, %98, %101 : vector<8x1024xi1>, vector<8x1024xf32>
    %118 = vector.extract_strided_slice %89 {offsets = [0, 6], sizes = [8, 1], strides = [1, 1]} : vector<8x9xf32> to vector<8x1xf32>
    %119 = vector.broadcast %118 : vector<8x1xf32> to vector<8x1024xf32>
    %120 = arith.mulf %119, %117 : vector<8x1024xf32>
    %121 = arith.addf %112, %120 : vector<8x1024xf32>
    %c32_i32_25 = arith.constant 32 : i32
    %122 = tpu.dynamic_rotate %88 by %c32_i32_25 dim 1 : vector<8x1024xf32>, i32 -> vector<8x1024xf32>
    %c0_i32_26 = arith.constant 0 : i32
    %123 = vector.broadcast %c0_i32_26 : i32 to vector<1x1024xi32>
    %124 = arith.cmpi eq, %1, %123 : vector<1x1024xi32>
    %c992_i32_27 = arith.constant 992 : i32
    %125 = tpu.dynamic_rotate %88 by %c992_i32_27 dim 1 : vector<8x1024xf32>, i32 -> vector<8x1024xf32>
    %126 = vector.shape_cast %124 : vector<1x1024xi1> to vector<1x1024xi1>
    %127 = vector.broadcast %126 : vector<1x1024xi1> to vector<8x1024xi1>
    %128 = arith.select %127, %125, %122 : vector<8x1024xi1>, vector<8x1024xf32>
    %129 = vector.extract_strided_slice %89 {offsets = [0, 1], sizes = [8, 1], strides = [1, 1]} : vector<8x9xf32> to vector<8x1xf32>
    %130 = vector.broadcast %129 : vector<8x1xf32> to vector<8x1024xf32>
    %131 = arith.mulf %130, %128 : vector<8x1024xf32>
    %132 = arith.addf %121, %131 : vector<8x1024xf32>
    %133 = vector.extract_strided_slice %89 {offsets = [0, 4], sizes = [8, 1], strides = [1, 1]} : vector<8x9xf32> to vector<8x1xf32>
    %134 = vector.broadcast %133 : vector<8x1xf32> to vector<8x1024xf32>
    %135 = arith.mulf %134, %88 : vector<8x1024xf32>
    %136 = arith.addf %132, %135 : vector<8x1024xf32>
    %c31_i32_28 = arith.constant 31 : i32
    %137 = vector.broadcast %c31_i32_28 : i32 to vector<1x1024xi32>
    %138 = arith.cmpi eq, %1, %137 : vector<1x1024xi32>
    %139 = vector.shape_cast %138 : vector<1x1024xi1> to vector<1x1024xi1>
    %140 = vector.broadcast %139 : vector<1x1024xi1> to vector<8x1024xi1>
    %141 = arith.select %140, %122, %125 : vector<8x1024xi1>, vector<8x1024xf32>
    %142 = vector.extract_strided_slice %89 {offsets = [0, 7], sizes = [8, 1], strides = [1, 1]} : vector<8x9xf32> to vector<8x1xf32>
    %143 = vector.broadcast %142 : vector<8x1xf32> to vector<8x1024xf32>
    %144 = arith.mulf %143, %141 : vector<8x1024xf32>
    %145 = arith.addf %136, %144 : vector<8x1024xf32>
    %c31_i32_29 = arith.constant 31 : i32
    %146 = vector.broadcast %c31_i32_29 : i32 to vector<1x1024xi32>
    %147 = arith.cmpi eq, %2, %146 : vector<1x1024xi32>
    %148 = vector.shape_cast %147 : vector<1x1024xi1> to vector<1x1024xi1>
    %149 = vector.broadcast %148 : vector<1x1024xi1> to vector<8x1024xi1>
    %150 = arith.select %149, %91, %94 : vector<8x1024xi1>, vector<8x1024xf32>
    %c32_i32_30 = arith.constant 32 : i32
    %151 = tpu.dynamic_rotate %150 by %c32_i32_30 dim 1 : vector<8x1024xf32>, i32 -> vector<8x1024xf32>
    %c0_i32_31 = arith.constant 0 : i32
    %152 = vector.broadcast %c0_i32_31 : i32 to vector<1x1024xi32>
    %153 = arith.cmpi eq, %1, %152 : vector<1x1024xi32>
    %c992_i32_32 = arith.constant 992 : i32
    %154 = tpu.dynamic_rotate %150 by %c992_i32_32 dim 1 : vector<8x1024xf32>, i32 -> vector<8x1024xf32>
    %155 = vector.shape_cast %153 : vector<1x1024xi1> to vector<1x1024xi1>
    %156 = vector.broadcast %155 : vector<1x1024xi1> to vector<8x1024xi1>
    %157 = arith.select %156, %154, %151 : vector<8x1024xi1>, vector<8x1024xf32>
    %158 = vector.extract_strided_slice %89 {offsets = [0, 2], sizes = [8, 1], strides = [1, 1]} : vector<8x9xf32> to vector<8x1xf32>
    %159 = vector.broadcast %158 : vector<8x1xf32> to vector<8x1024xf32>
    %160 = arith.mulf %159, %157 : vector<8x1024xf32>
    %161 = arith.addf %145, %160 : vector<8x1024xf32>
    %162 = vector.extract_strided_slice %89 {offsets = [0, 5], sizes = [8, 1], strides = [1, 1]} : vector<8x9xf32> to vector<8x1xf32>
    %163 = vector.broadcast %162 : vector<8x1xf32> to vector<8x1024xf32>
    %164 = arith.mulf %163, %150 : vector<8x1024xf32>
    %165 = arith.addf %161, %164 : vector<8x1024xf32>
    %c31_i32_33 = arith.constant 31 : i32
    %166 = vector.broadcast %c31_i32_33 : i32 to vector<1x1024xi32>
    %167 = arith.cmpi eq, %1, %166 : vector<1x1024xi32>
    %168 = vector.shape_cast %167 : vector<1x1024xi1> to vector<1x1024xi1>
    %169 = vector.broadcast %168 : vector<1x1024xi1> to vector<8x1024xi1>
    %170 = arith.select %169, %151, %154 : vector<8x1024xi1>, vector<8x1024xf32>
    %171 = vector.extract_strided_slice %89 {offsets = [0, 8], sizes = [8, 1], strides = [1, 1]} : vector<8x9xf32> to vector<8x1xf32>
    %172 = vector.broadcast %171 : vector<8x1xf32> to vector<8x1024xf32>
    %173 = arith.mulf %172, %170 : vector<8x1024xf32>
    %174 = arith.addf %165, %173 : vector<8x1024xf32>
    %c0_34 = arith.constant 0 : index
    %c0_35 = arith.constant 0 : index
    %175 = vector.load %arg7[%c0_34, %c0_35] : memref<8x1xf32, #tpu.memory_space<vmem>>, vector<8x1xf32>
    %c0_36 = arith.constant 0 : index
    %c0_37 = arith.constant 0 : index
    %176 = vector.load %arg8[%c0_36, %c0_37] : memref<8x1xf32, #tpu.memory_space<vmem>>, vector<8x1xf32>
    %cst_38 = arith.constant dense<0.000000e+00> : vector<8xf32>
    %177 = vector.multi_reduction <add>, %174, %cst_38 [1] : vector<8x1024xf32> to vector<8xf32>
    %178 = vector.shape_cast %177 : vector<8xf32> to vector<8x1xf32>
    %cst_39 = arith.constant 1.024000e+03 : f32
    %179 = vector.broadcast %cst_39 : f32 to vector<8x1xf32>
    %180 = arith.divf %178, %179 : vector<8x1xf32>
    %181 = vector.broadcast %180 : vector<8x1xf32> to vector<8x1024xf32>
    %182 = arith.subf %174, %181 : vector<8x1024xf32>
    %183 = arith.mulf %182, %182 : vector<8x1024xf32>
    %cst_40 = arith.constant dense<0.000000e+00> : vector<8xf32>
    %184 = vector.multi_reduction <add>, %183, %cst_40 [1] : vector<8x1024xf32> to vector<8xf32>
    %185 = vector.shape_cast %184 : vector<8xf32> to vector<8x1xf32>
    %cst_41 = arith.constant 1.024000e+03 : f32
    %186 = vector.broadcast %cst_41 : f32 to vector<8x1xf32>
    %187 = arith.divf %185, %186 : vector<8x1xf32>
    %188 = vector.broadcast %180 : vector<8x1xf32> to vector<8x1024xf32>
    %189 = arith.subf %174, %188 : vector<8x1024xf32>
    %cst_42 = arith.constant 9.99999974E-6 : f32
    %190 = vector.broadcast %cst_42 : f32 to vector<8x1xf32>
    %191 = arith.addf %187, %190 : vector<8x1xf32>
    %192 = math.rsqrt %191 : vector<8x1xf32>
    %193 = vector.broadcast %192 : vector<8x1xf32> to vector<8x1024xf32>
    %194 = arith.mulf %189, %193 : vector<8x1024xf32>
    %195 = vector.broadcast %175 : vector<8x1xf32> to vector<8x1024xf32>
    %196 = arith.mulf %194, %195 : vector<8x1024xf32>
    %197 = vector.broadcast %176 : vector<8x1xf32> to vector<8x1024xf32>
    %198 = arith.addf %196, %197 : vector<8x1024xf32>
    %cst_43 = arith.constant 0.000000e+00 : f32
    %cst_44 = arith.constant 6.000000e+00 : f32
    %199 = vector.broadcast %cst_43 : f32 to vector<8x1024xf32>
    %200 = arith.maximumf %199, %198 : vector<8x1024xf32>
    %201 = vector.broadcast %cst_44 : f32 to vector<8x1024xf32>
    %202 = arith.minimumf %201, %200 : vector<8x1024xf32>
    %c0_45 = arith.constant 0 : index
    %c0_46 = arith.constant 0 : index
    %203 = vector.load %arg9[%c0_45, %c0_46] : memref<16x8xf32, #tpu.memory_space<vmem>>, vector<16x8xf32>
    %cst_47 = arith.constant 0.000000e+00 : f32
    %204 = vector.broadcast %cst_47 : f32 to vector<16x1024xf32>
    %205 = vector.extract_strided_slice %203 {offsets = [0, 0], sizes = [16, 1], strides = [1, 1]} : vector<16x8xf32> to vector<16x1xf32>
    %206 = vector.extract_strided_slice %202 {offsets = [0, 0], sizes = [1, 1024], strides = [1, 1]} : vector<8x1024xf32> to vector<1x1024xf32>
    %207 = vector.broadcast %205 : vector<16x1xf32> to vector<16x1024xf32>
    %208 = vector.broadcast %206 : vector<1x1024xf32> to vector<16x1024xf32>
    %209 = arith.mulf %207, %208 : vector<16x1024xf32>
    %210 = arith.addf %204, %209 : vector<16x1024xf32>
    %211 = vector.extract_strided_slice %203 {offsets = [0, 1], sizes = [16, 1], strides = [1, 1]} : vector<16x8xf32> to vector<16x1xf32>
    %212 = vector.extract_strided_slice %202 {offsets = [1, 0], sizes = [1, 1024], strides = [1, 1]} : vector<8x1024xf32> to vector<1x1024xf32>
    %213 = vector.broadcast %211 : vector<16x1xf32> to vector<16x1024xf32>
    %214 = vector.broadcast %212 : vector<1x1024xf32> to vector<16x1024xf32>
    %215 = arith.mulf %213, %214 : vector<16x1024xf32>
    %216 = arith.addf %210, %215 : vector<16x1024xf32>
    %217 = vector.extract_strided_slice %203 {offsets = [0, 2], sizes = [16, 1], strides = [1, 1]} : vector<16x8xf32> to vector<16x1xf32>
    %218 = vector.extract_strided_slice %202 {offsets = [2, 0], sizes = [1, 1024], strides = [1, 1]} : vector<8x1024xf32> to vector<1x1024xf32>
    %219 = vector.broadcast %217 : vector<16x1xf32> to vector<16x1024xf32>
    %220 = vector.broadcast %218 : vector<1x1024xf32> to vector<16x1024xf32>
    %221 = arith.mulf %219, %220 : vector<16x1024xf32>
    %222 = arith.addf %216, %221 : vector<16x1024xf32>
    %223 = vector.extract_strided_slice %203 {offsets = [0, 3], sizes = [16, 1], strides = [1, 1]} : vector<16x8xf32> to vector<16x1xf32>
    %224 = vector.extract_strided_slice %202 {offsets = [3, 0], sizes = [1, 1024], strides = [1, 1]} : vector<8x1024xf32> to vector<1x1024xf32>
    %225 = vector.broadcast %223 : vector<16x1xf32> to vector<16x1024xf32>
    %226 = vector.broadcast %224 : vector<1x1024xf32> to vector<16x1024xf32>
    %227 = arith.mulf %225, %226 : vector<16x1024xf32>
    %228 = arith.addf %222, %227 : vector<16x1024xf32>
    %229 = vector.extract_strided_slice %203 {offsets = [0, 4], sizes = [16, 1], strides = [1, 1]} : vector<16x8xf32> to vector<16x1xf32>
    %230 = vector.extract_strided_slice %202 {offsets = [4, 0], sizes = [1, 1024], strides = [1, 1]} : vector<8x1024xf32> to vector<1x1024xf32>
    %231 = vector.broadcast %229 : vector<16x1xf32> to vector<16x1024xf32>
    %232 = vector.broadcast %230 : vector<1x1024xf32> to vector<16x1024xf32>
    %233 = arith.mulf %231, %232 : vector<16x1024xf32>
    %234 = arith.addf %228, %233 : vector<16x1024xf32>
    %235 = vector.extract_strided_slice %203 {offsets = [0, 5], sizes = [16, 1], strides = [1, 1]} : vector<16x8xf32> to vector<16x1xf32>
    %236 = vector.extract_strided_slice %202 {offsets = [5, 0], sizes = [1, 1024], strides = [1, 1]} : vector<8x1024xf32> to vector<1x1024xf32>
    %237 = vector.broadcast %235 : vector<16x1xf32> to vector<16x1024xf32>
    %238 = vector.broadcast %236 : vector<1x1024xf32> to vector<16x1024xf32>
    %239 = arith.mulf %237, %238 : vector<16x1024xf32>
    %240 = arith.addf %234, %239 : vector<16x1024xf32>
    %241 = vector.extract_strided_slice %203 {offsets = [0, 6], sizes = [16, 1], strides = [1, 1]} : vector<16x8xf32> to vector<16x1xf32>
    %242 = vector.extract_strided_slice %202 {offsets = [6, 0], sizes = [1, 1024], strides = [1, 1]} : vector<8x1024xf32> to vector<1x1024xf32>
    %243 = vector.broadcast %241 : vector<16x1xf32> to vector<16x1024xf32>
    %244 = vector.broadcast %242 : vector<1x1024xf32> to vector<16x1024xf32>
    %245 = arith.mulf %243, %244 : vector<16x1024xf32>
    %246 = arith.addf %240, %245 : vector<16x1024xf32>
    %247 = vector.extract_strided_slice %203 {offsets = [0, 7], sizes = [16, 1], strides = [1, 1]} : vector<16x8xf32> to vector<16x1xf32>
    %248 = vector.extract_strided_slice %202 {offsets = [7, 0], sizes = [1, 1024], strides = [1, 1]} : vector<8x1024xf32> to vector<1x1024xf32>
    %249 = vector.broadcast %247 : vector<16x1xf32> to vector<16x1024xf32>
    %250 = vector.broadcast %248 : vector<1x1024xf32> to vector<16x1024xf32>
    %251 = arith.mulf %249, %250 : vector<16x1024xf32>
    %252 = arith.addf %246, %251 : vector<16x1024xf32>
    %c0_48 = arith.constant 0 : index
    %c0_49 = arith.constant 0 : index
    %253 = vector.load %arg10[%c0_48, %c0_49] : memref<16x1xf32, #tpu.memory_space<vmem>>, vector<16x1xf32>
    %c0_50 = arith.constant 0 : index
    %c0_51 = arith.constant 0 : index
    %254 = vector.load %arg11[%c0_50, %c0_51] : memref<16x1xf32, #tpu.memory_space<vmem>>, vector<16x1xf32>
    %cst_52 = arith.constant dense<0.000000e+00> : vector<16xf32>
    %255 = vector.multi_reduction <add>, %252, %cst_52 [1] : vector<16x1024xf32> to vector<16xf32>
    %256 = vector.shape_cast %255 : vector<16xf32> to vector<16x1xf32>
    %cst_53 = arith.constant 1.024000e+03 : f32
    %257 = vector.broadcast %cst_53 : f32 to vector<16x1xf32>
    %258 = arith.divf %256, %257 : vector<16x1xf32>
    %259 = vector.broadcast %258 : vector<16x1xf32> to vector<16x1024xf32>
    %260 = arith.subf %252, %259 : vector<16x1024xf32>
    %261 = arith.mulf %260, %260 : vector<16x1024xf32>
    %cst_54 = arith.constant dense<0.000000e+00> : vector<16xf32>
    %262 = vector.multi_reduction <add>, %261, %cst_54 [1] : vector<16x1024xf32> to vector<16xf32>
    %263 = vector.shape_cast %262 : vector<16xf32> to vector<16x1xf32>
    %cst_55 = arith.constant 1.024000e+03 : f32
    %264 = vector.broadcast %cst_55 : f32 to vector<16x1xf32>
    %265 = arith.divf %263, %264 : vector<16x1xf32>
    %266 = vector.broadcast %258 : vector<16x1xf32> to vector<16x1024xf32>
    %267 = arith.subf %252, %266 : vector<16x1024xf32>
    %cst_56 = arith.constant 9.99999974E-6 : f32
    %268 = vector.broadcast %cst_56 : f32 to vector<16x1xf32>
    %269 = arith.addf %265, %268 : vector<16x1xf32>
    %270 = math.rsqrt %269 : vector<16x1xf32>
    %271 = vector.broadcast %270 : vector<16x1xf32> to vector<16x1024xf32>
    %272 = arith.mulf %267, %271 : vector<16x1024xf32>
    %273 = vector.broadcast %253 : vector<16x1xf32> to vector<16x1024xf32>
    %274 = arith.mulf %272, %273 : vector<16x1024xf32>
    %275 = vector.broadcast %254 : vector<16x1xf32> to vector<16x1024xf32>
    %276 = arith.addf %274, %275 : vector<16x1024xf32>
    %cst_57 = arith.constant 0.000000e+00 : f32
    %277 = vector.broadcast %cst_57 : f32 to vector<16x1024xf32>
    %278 = arith.maximumf %276, %277 : vector<16x1024xf32>
    %c0_58 = arith.constant 0 : index
    %c0_59 = arith.constant 0 : index
    %279 = vector.load %arg12[%c0_58, %c0_59] : memref<16x1024xf32, #tpu.memory_space<vmem>>, vector<16x1024xf32>
    tpu.vector_store %arg12[%c0_58, %c0_59], %278 {strides = array<i32>} : memref<16x1024xf32, #tpu.memory_space<vmem>>, vector<16x1024xf32>,
    return
  }
  func.func @transform_0(%arg0: i32) -> (i32, i32) {
    %c0_i32 = arith.constant 0 : i32
    %c0_i32_0 = arith.constant 0 : i32
    %c0_i32_1 = arith.constant 0 : i32
    return %c0_i32, %c0_i32_0 : i32, i32
  }
  func.func @transform_1(%arg0: i32) -> (i32, i32) {
    %c0_i32 = arith.constant 0 : i32
    %c0_i32_0 = arith.constant 0 : i32
    %c0_i32_1 = arith.constant 0 : i32
    return %c0_i32, %c0_i32_0 : i32, i32
  }
  func.func @transform_2(%arg0: i32) -> (i32, i32) {
    %c0_i32 = arith.constant 0 : i32
    %c0_i32_0 = arith.constant 0 : i32
    %c0_i32_1 = arith.constant 0 : i32
    return %c0_i32, %c0_i32_0 : i32, i32
  }
  func.func @transform_3(%arg0: i32) -> (i32, i32) {
    %c0_i32 = arith.constant 0 : i32
    %c0_i32_0 = arith.constant 0 : i32
    %c0_i32_1 = arith.constant 0 : i32
    return %c0_i32, %c0_i32_0 : i32, i32
  }
  func.func @transform_4(%arg0: i32) -> (i32, i32) {
    %c0_i32 = arith.constant 0 : i32
    %c0_i32_0 = arith.constant 0 : i32
    %c0_i32_1 = arith.constant 0 : i32
    return %c0_i32, %c0_i32_0 : i32, i32
  }
  func.func @transform_5(%arg0: i32) -> (i32, i32) {
    %c0_i32 = arith.constant 0 : i32
    %c0_i32_0 = arith.constant 0 : i32
    %c0_i32_1 = arith.constant 0 : i32
    return %c0_i32, %c0_i32_0 : i32, i32
  }
  func.func @transform_6(%arg0: i32) -> (i32, i32) {
    %c0_i32 = arith.constant 0 : i32
    %c0_i32_0 = arith.constant 0 : i32
    %c0_i32_1 = arith.constant 0 : i32
    return %c0_i32, %c0_i32_0 : i32, i32
  }
  func.func @transform_7(%arg0: i32) -> (i32, i32) {
    %c0_i32 = arith.constant 0 : i32
    %c0_i32_0 = arith.constant 0 : i32
    %c0_i32_1 = arith.constant 0 : i32
    return %c0_i32, %c0_i32_0 : i32, i32
  }
  func.func @transform_8(%arg0: i32) -> (i32, i32) {
    %c0_i32 = arith.constant 0 : i32
    %c0_i32_0 = arith.constant 0 : i32
    %c0_i32_1 = arith.constant 0 : i32
    return %c0_i32, %c0_i32_0 : i32, i32
  }
  func.func @transform_9(%arg0: i32) -> (i32, i32) {
    %c0_i32 = arith.constant 0 : i32
    %c0_i32_0 = arith.constant 0 : i32
    %c0_i32_1 = arith.constant 0 : i32
    return %c0_i32, %c0_i32_0 : i32, i32
  }
  func.func @transform_10(%arg0: i32) -> (i32, i32) {
    %c0_i32 = arith.constant 0 : i32
    %c0_i32_0 = arith.constant 0 : i32
    %c0_i32_1 = arith.constant 0 : i32
    return %c0_i32, %c0_i32_0 : i32, i32
  }
  func.func @transform_11(%arg0: i32) -> (i32, i32) {
    %c0_i32 = arith.constant 0 : i32
    %c0_i32_0 = arith.constant 0 : i32
    %c0_i32_1 = arith.constant 0 : i32
    return %c0_i32, %c0_i32_0 : i32, i32
  }
}

</mosaic_0001>

<bundles_post_ra>
// kernel: tpu_custom_call.1
= control target key start
LH: loop header
LB: loop body
LE: loop exit
PB: predicated region body
PF: predicated region fallthrough
CT: control target
= control target key end

     0   :  { %v17377_v1 = vmov 2   ;;  %v17370_v2 = vmov 0   ;;  %s17271_s0 = inlined_call_operand.vmem [shape: f32[8,256], index: 0, kind: input, shape index: {}]   ;;  %s17272_s1 = inlined_call_operand.vmem [shape: s32[3,1024], index: 1, kind: input, shape index: {}]   ;;  %s17273_s2 = inlined_call_operand.vmem [shape: f32[8,8], index: 2, kind: input, shape index: {}]   ;;  %s17274_s3 = inlined_call_operand.vmem [shape: f32[8,1], index: 3, kind: input, shape index: {}]   ;;  %s17275_s4 = inlined_call_operand.vmem [shape: f32[8,1], index: 4, kind: input, shape index: {}]   ;;  %s17276_s5 = inlined_call_operand.vmem [shape: f32[8,9], index: 5, kind: input, shape index: {}]   ;;  %s17277_s6 = inlined_call_operand.vmem [shape: f32[8,1], index: 6, kind: input, shape index: {}]   ;;  %s17278_s7 = inlined_call_operand.vmem [shape: f32[8,1], index: 7, kind: input, shape index: {}]   ;;  %s17279_s8 = inlined_call_operand.vmem [shape: f32[16,8], index: 8, kind: input, shape index: {}]   ;;  %s17280_s9 = inlined_call_operand.vmem [shape: f32[16,1], index: 9, kind: input, shape index: {}]   ;;  %s17281_s10 = inlined_call_operand.vmem [shape: f32[16,1], index: 10, kind: input, shape index: {}]   ;;  %s17282_s11 = inlined_call_operand.hbm [shape: f32[16,1024], index: 11, kind: output, shape index: {}]  }
   0x1   :  { %v46_v0 = vld [vmem:[%s17273_s2] sm:$0xff]  ;;  %8235 = vset.pattern.permute.xlu1 %v17377_v1  ;;  %8233 = vset.pattern.permute.xlu0 %v17370_v2 }
   0x2   :  { %81 = vperm.xlu1 %8235, %v46_v0   ;;  %49 = vperm.xlu0 %8233, %v46_v0  }
   0x3   :  { %16 = vsyncpa [#allocation3], 0  ;;  %v17389_v3 = vmov 3   ;;  %v17387_v4 = vmov 1   ;;  %v17383_v5 = vmov 4   ;;  %v17368_v6 = vmov 5  }
   0x4   :  { %v17363_v7 = vmov 6   ;;  %v17385_v8 = vmov 7   ;;  %v17367_v9 = vlaneseq  ;;  %v39_v16 = vld [vmem:[%s17271_s0] sm:$0xff]  ;;  %v40_v17 = vld [vmem:[%s17271_s0 + $0x8] sm:$0xff]  ;;  %v18902_v1 = vmov 0  ;;  %s8310_s29 = smov 32  }
   0x5   :  { %s8311_s30 = smov 1   ;;  %s8312_s12 = smov 127  }
   0x6   :  { %8236 = vset.pattern.permute.xlu1 %v17389_v3  ;;  %8234 = vset.pattern.permute.xlu0 %v17387_v4  ;;  %v8392_v10 = vshrl.u32 %v17367_v9, 7  ;;  %v18897_v9 = vmov 0  ;;  %s8313_s13 = smov 96  }
   0x7   :  { %97 = vperm.xlu1 %8236, %v46_v0   ;;  %65 = vperm.xlu0 %8234, %v46_v0  }
   0x8   :  { %18792 = vst [vmem:[#allocation5_spill] sm:$0xff] %v8392_v10  ;;  %v8395_v11 = vsub.s32 0, %v8392_v10  ;;  %v8398_v12 = vsub.s32 1, %v8392_v10  ;;  %v8401_v13 = vsub.s32 2, %v8392_v10  ;;  %v8410_v18 = vsub.s32 3, %v8392_v10 }
   0x9   :  { %v8417_v23 = vsub.s32 4, %v8392_v10  ;;  %v8424_v30 = vsub.s32 5, %v8392_v10  ;;  %v8431_v43 = vsub.s32 6, %v8392_v10  ;;  %v8434_v54 = vsub.s32 7, %v8392_v10 }
   0xa   :  { %18793 = vst [vmem:[#allocation6_spill] sm:$0xff] %v8395_v11  ;;  %18794 = vst [vmem:[#allocation7_spill] sm:$0xff] %v8398_v12  ;;  %v55_v19 = vrot.slane %v39_v16, %v8395_v11  ;;  %v59_v20 = vrot.slane %v40_v17, %v8395_v11  ;;  %v71_v21 = vrot.slane %v39_v16, %v8398_v12 }
   0xb   :  { %8237 = vset.pattern.permute.xlu1 %v17383_v5  ;;  %8238 = vset.pattern.permute.xlu0 %v17368_v6  ;;  %18795 = vst [vmem:[#allocation8_spill] sm:$0xff] %v8401_v13  ;;  %18796 = vst [vmem:[#allocation9_spill] sm:$0xff] %v8410_v18  ;;  %v75_v22 = vrot.slane %v40_v17, %v8398_v12  ;;  %v87_v24 = vrot.slane %v39_v16, %v8401_v13  ;;  %v8978_v6 = vadd.s32 112, %v8392_v10  ;;  %v18905_v5 = vmov 0 }
   0xc   :  { %113 = vperm.xlu1 %8237, %v46_v0   ;;  %129 = vperm.xlu0 %8238, %v46_v0   ;;  %18797 = vst [vmem:[#allocation10_spill] sm:$0xff] %v8417_v23  ;;  %v91_v25 = vrot.slane %v40_v17, %v8401_v13  ;;  %v103_v27 = vrot.slane %v39_v16, %v8410_v18  ;;  %18798 = vst [vmem:[#allocation11_spill] sm:$0xff] %v8424_v30 }
   0xd   :  { %v107_v28 = vrot.slane %v40_v17, %v8410_v18  ;;  %v119_v35 = vrot.slane %v39_v16, %v8417_v23  ;;  %v123_v36 = vrot.slane %v40_v17, %v8417_v23  ;;  %v135_v41 = vrot.slane %v39_v16, %v8424_v30  ;;  %18799 = vst [vmem:[#allocation12_spill] sm:$0xff] %v8431_v43 }
   0xe   :  { %v139_v42 = vrot.slane %v40_v17, %v8424_v30  ;;  %18800 = vst [vmem:[#allocation13_spill] sm:$0xff] %v8434_v54  ;;  %v151_v57 = vrot.slane %v39_v16, %v8431_v43  ;;  %v155_v58 = vrot.slane %v40_v17, %v8431_v43  ;;  %v167_v62 = vrot.slane %v39_v16, %v8434_v54  ;;  %v176_v16 = vld [vmem:[%s17274_s3] sm:$0xff] }
   0xf   :  { %v171_v63 = vrot.slane %v40_v17, %v8434_v54  ;;  %v5870_v17 = vld [vmem:[%s17272_s1 + $0x2] ss:$4 sm:$0xff]  ;;  %18900 = vst [vmem:[#allocation57_spill] sm:$0xff] %v8978_v6  ;;  %v18932_v54 = vmov 0  ;;  %v17485_v43 = vmov 0.0  }
  0x10   :  { %8239 = vset.pattern.permute.xlu1 %v17363_v7  ;;  %8241 = vset.pattern.permute.xlu0 %v17370_v2 }
  0x11   :  { %145 = vperm.xlu1 %8239, %v46_v0  }
  0x15   :  { %8240 = vset.pattern.permute.xlu1 %v17385_v8 }
  0x16   :  { %161 = vperm.xlu1 %8240, %v46_v0  }
  0x1a   :  { %8242 = vset.pattern.permute.xlu1 %v17370_v2  ;;  %v8981_v2 = vadd.s32 120, %v8392_v10 }
  0x1c   :  { %18901 = vst [vmem:[#allocation58_spill] sm:$0xff] %v8981_v2 }
  0x81   :  { %v82_v14 = vpop.permute.xlu1 %81  ;;  %v50_v15 = vpop.permute.xlu0 %49 }
  0x82   :  { %v60_v31 = vmul.f32 %v55_v19, %v50_v15  ;;  %v61_v32 = vmul.f32 %v59_v20, %v50_v15  ;;  %v92_v37 = vmul.f32 %v87_v24, %v82_v14  ;;  %v93_v38 = vmul.f32 %v91_v25, %v82_v14 }
  0x86   :  { %v98_v26 = vpop.permute.xlu1 %97  ;;  %v66_v29 = vpop.permute.xlu0 %65 }
  0x87   :  { %v76_v33 = vmul.f32 %v71_v21, %v66_v29  ;;  %v77_v34 = vmul.f32 %v75_v22, %v66_v29  ;;  %v108_v44 = vmul.f32 %v103_v27, %v98_v26  ;;  %v109_v45 = vmul.f32 %v107_v28, %v98_v26 }
  0x88   :  { %v8454_v29 = vrot.slane %v5870_v17, %v8398_v12 }
  0x89   :  { %v78_v39 = vadd.f32 %v76_v33, %v60_v31  ;;  %v79_v40 = vadd.f32 %v77_v34, %v61_v32  ;;  %v8457_v31 = vrot.slane %v5870_v17, %v8410_v18  ;;  %v8460_v32 = vrot.slane %v5870_v17, %v8395_v11 }
  0x8a   :  { %v8463_v33 = vrot.slane %v5870_v17, %v8401_v13  ;;  %v8466_v34 = vadd.s32 8, %v8392_v10  ;;  %vm17292_vm0 = vcmp.eq.s32.totalorder %v8392_v10, %v8454_v29  ;;  %v18891_v17 = vmov 0 }
  0x8b   :  { %v94_v46 = vadd.f32 %v92_v37, %v78_v39  ;;  %v95_v47 = vadd.f32 %v93_v38, %v79_v40  ;;  %v114_v48 = vpop.permute.xlu1 %113  ;;  %v130_v49 = vpop.permute.xlu0 %129  ;;  %18801 = vst [vmem:[#allocation14_spill] sm:$0xff] %v8460_v32  ;;  %vm17289_vm1 = vcmp.eq.s32.totalorder %v8392_v10, %v8457_v31  ;;  %vm17304_vm4 = vcmp.eq.s32.totalorder %v8392_v10, %v8460_v32 }
  0x8c   :  { %v124_v50 = vmul.f32 %v119_v35, %v114_v48  ;;  %v125_v51 = vmul.f32 %v123_v36, %v114_v48  ;;  %v140_v55 = vmul.f32 %v135_v41, %v130_v49  ;;  %v141_v56 = vmul.f32 %v139_v42, %v130_v49  ;;  %18802 = vst [vmem:[#allocation15_spill] sm:$0xff] %v8463_v33 }
  0x8d   :  { %v110_v52 = vadd.f32 %v108_v44, %v94_v46  ;;  %v111_v53 = vadd.f32 %v109_v45, %v95_v47  ;;  %18803 = vst [vmem:[#allocation16_spill] sm:$0xff] %v8466_v34  ;;  %vm17284_vm2 = vcmp.eq.s32.totalorder %v8466_v34, %v8454_v29  ;;  %vm17283_vm3 = vcmp.eq.s32.totalorder %v8466_v34, %v8457_v31 }
  0x8e   :  { %vm8484_vm5 = vmpackc.low %vm17284_vm2, %vm17292_vm0  ;;  %v18804_v35 = vmov 0  ;;  %vm17299_vm6 = vcmp.eq.s32.totalorder %v8466_v34, %v8460_v32  ;;  %vm17296_vm7 = vcmp.eq.s32.totalorder %v8392_v10, %v8463_v33  ;;  %v17440_v36 = vmov 1.0|1.0  }
  0x8f   :  { %v126_v59 = vadd.f32 %v124_v50, %v110_v52  ;;  %v127_v60 = vadd.f32 %v125_v51, %v111_v53  ;;  %v18805_v35 = vsel %vm8484_vm5, 4294967295, %v18804_v35  ;;  %6640 = vmatprep.subr.msk.bf16.mxu0 %vm8484_vm5, %v17440_v36  ;;  %vm8501_vm8 = vmpackc.low %vm17283_vm3, %vm17289_vm1  ;;  %v18807_v37 = vmov 0 }
  0x90   :  { %v146_v61 = vpop.permute.xlu1 %145  ;;  %18806 = vst [vmem:[#allocation17_spill] sm:$0xff] %v18805_v35  ;;  %v18808_v37 = vsel %vm8501_vm8, 4294967295, %v18807_v37  ;;  %7024 = vmatprep.subr.msk.bf16.mxu1 %vm8501_vm8, %v17440_v36  ;;  %vm8514_vm9 = vmpackc.low %vm17299_vm6, %vm17304_vm4  ;;  %v18810_v38 = vmov 0  ;;  %vm17293_vm10 = vcmp.eq.s32.totalorder %v8466_v34, %v8463_v33  ;;  %v18813_v39 = vmov 0 }
  0x91   :  { %v142_v0 = vadd.f32 %v140_v55, %v126_v59  ;;  %v143_v14 = vadd.f32 %v141_v56, %v127_v60  ;;  %v156_v15 = vmul.f32 %v151_v57, %v146_v61  ;;  %v157_v19 = vmul.f32 %v155_v58, %v146_v61  ;;  %18809 = vst [vmem:[#allocation18_spill] sm:$0xff] %v18808_v37  ;;  %vm8529_vm11 = vmpackc.low %vm17293_vm10, %vm17296_vm7 }
  0x92   :  { %v18811_v38 = vsel %vm8514_vm9, 4294967295, %v18810_v38  ;;  %6642 = vmatpush1.bf16.msk.msra.mxu0 %vm8514_vm9, %v17440_v36  ;;  %v18814_v39 = vsel %vm8529_vm11, 4294967295, %v18813_v39  ;;  %v8534_v40 = vadd.s32 16, %v8392_v10  ;;  %v8537_v41 = vadd.s32 24, %v8392_v10  ;;  %7026 = vmatpush1.bf16.msk.msra.mxu1 %vm8529_vm11, %v17440_v36 }
  0x93   :  { %v158_v24 = vadd.f32 %v156_v15, %v142_v0  ;;  %v159_v25 = vadd.f32 %v157_v19, %v143_v14  ;;  %18812 = vst [vmem:[#allocation19_spill] sm:$0xff] %v18811_v38  ;;  %18815 = vst [vmem:[#allocation20_spill] sm:$0xff] %v18814_v39  ;;  %v18818_v42 = vmov 0  ;;  %v18821_v44 = vmov 0 }
  0x94   :  { %18816 = vst [vmem:[#allocation21_spill] sm:$0xff] %v8534_v40  ;;  %18817 = vst [vmem:[#allocation22_spill] sm:$0xff] %v8537_v41  ;;  %vm17286_vm12 = vcmp.eq.s32.totalorder %v8534_v40, %v8454_v29  ;;  %vm17285_vm13 = vcmp.eq.s32.totalorder %v8537_v41, %v8454_v29  ;;  %vm17288_vm14 = vcmp.eq.s32.totalorder %v8534_v40, %v8457_v31  ;;  %v8579_v45 = vadd.s32 32, %v8392_v10 }
  0x95   :  { %v162_v20 = vpop.permute.xlu1 %161  ;;  %vm8554_vm15 = vmpackc.low %vm17285_vm13, %vm17286_vm12  ;;  %vm17287_vm3 = vcmp.eq.s32.totalorder %v8537_v41, %v8457_v31  ;;  %vm17291_vm13 = vcmp.eq.s32.totalorder %v8534_v40, %v8460_v32  ;;  %vm17290_vm12 = vcmp.eq.s32.totalorder %v8537_v41, %v8460_v32  ;;  %v18825_v46 = vmov 0 }
  0x96   :  { %v172_v21 = vmul.f32 %v167_v62, %v162_v20  ;;  %v173_v22 = vmul.f32 %v171_v63, %v162_v20  ;;  %v18819_v42 = vsel %vm8554_vm15, 4294967295, %v18818_v42  ;;  %6644 = vmatprep.subr.msk.bf16.mxu0 %vm8554_vm15, %v17440_v36  ;;  %vm8569_vm2 = vmpackc.low %vm17287_vm3, %vm17288_vm14  ;;  %18824 = vst [vmem:[#allocation25_spill] sm:$0xff] %v8579_v45  ;;  %vm17295_vm14 = vcmp.eq.s32.totalorder %v8534_v40, %v8463_v33 }
  0x97   :  { %18820 = vst [vmem:[#allocation23_spill] sm:$0xff] %v18819_v42  ;;  %v18822_v44 = vsel %vm8569_vm2, 4294967295, %v18821_v44  ;;  %7028 = vmatprep.subr.msk.bf16.mxu1 %vm8569_vm2, %v17440_v36  ;;  %vm8589_vm3 = vmpackc.low %vm17290_vm12, %vm17291_vm13  ;;  %vm17294_vm1 = vcmp.eq.s32.totalorder %v8537_v41, %v8463_v33  ;;  %v18828_v47 = vmov 0  ;;  %v8614_v48 = vadd.s32 40, %v8392_v10 }
  0x98   :  { %v8440_v26 = vadd.f32 %v172_v21, %v158_v24  ;;  %v8442_v27 = vadd.f32 %v173_v22, %v159_v25  ;;  %18823 = vst [vmem:[#allocation24_spill] sm:$0xff] %v18822_v44  ;;  %v18826_v46 = vsel %vm8589_vm3, 4294967295, %v18825_v46  ;;  %6646 = vmatpush1.bf16.msk.msra.mxu0 %vm8589_vm3, %v17440_v36  ;;  %vm8606_vm12 = vmpackc.low %vm17294_vm1, %vm17295_vm14  ;;  %vm17298_vm13 = vcmp.eq.s32.totalorder %v8579_v45, %v8454_v29 }
  0x99   :  { %18827 = vst [vmem:[#allocation26_spill] sm:$0xff] %v18826_v46  ;;  %v18829_v47 = vsel %vm8606_vm12, 4294967295, %v18828_v47  ;;  %7030 = vmatpush1.bf16.msk.msra.mxu1 %vm8606_vm12, %v17440_v36  ;;  %18831 = vst [vmem:[#allocation28_spill] sm:$0xff] %v8614_v48  ;;  %vm17301_vm0 = vcmp.eq.s32.totalorder %v8579_v45, %v8457_v31  ;;  %vm17297_vm10 = vcmp.eq.s32.totalorder %v8614_v48, %v8454_v29  ;;  %v18832_v49 = vmov 0 }
  0x9a   :  { %v178_v28 = vadd.f32 %v8442_v27, %v8440_v26  ;;  %18830 = vst [vmem:[#allocation27_spill] sm:$0xff] %v18829_v47  ;;  %vm8628_vm1 = vmpackc.low %vm17297_vm10, %vm17298_vm13  ;;  %vm17300_vm14 = vcmp.eq.s32.totalorder %v8614_v48, %v8457_v31  ;;  %vm17303_vm7 = vcmp.eq.s32.totalorder %v8579_v45, %v8460_v32  ;;  %v18835_v50 = vmov 0 }
  0x9b   :  { %v18833_v49 = vsel %vm8628_vm1, 4294967295, %v18832_v49  ;;  %6648 = vmatprep.subr.msk.bf16.mxu0 %vm8628_vm1, %v17440_v36  ;;  %vm8645_vm10 = vmpackc.low %vm17300_vm14, %vm17301_vm0  ;;  %vm17302_vm13 = vcmp.eq.s32.totalorder %v8614_v48, %v8460_v32  ;;  %v18838_v51 = vmov 0  ;;  %vm17306_vm14 = vcmp.eq.s32.totalorder %v8579_v45, %v8463_v33 }
  0x9c   :  { %179 = vadd.xlane.f32.xlu0 %v178_v28  ;;  %18834 = vst [vmem:[#allocation29_spill] sm:$0xff] %v18833_v49  ;;  %v18836_v50 = vsel %vm8645_vm10, 4294967295, %v18835_v50  ;;  %7032 = vmatprep.subr.msk.bf16.mxu1 %vm8645_vm10, %v17440_v36  ;;  %vm8660_vm6 = vmpackc.low %vm17302_vm13, %vm17303_vm7  ;;  %vm17305_vm0 = vcmp.eq.s32.totalorder %v8614_v48, %v8463_v33  ;;  %v18841_v52 = vmov 0  ;;  %v8682_v53 = vadd.s32 48, %v8392_v10 }
  0x9d   :  { %18837 = vst [vmem:[#allocation30_spill] sm:$0xff] %v18836_v50  ;;  %v18839_v51 = vsel %vm8660_vm6, 4294967295, %v18838_v51  ;;  %6650 = vmatpush1.bf16.msk.msra.mxu0 %vm8660_vm6, %v17440_v36  ;;  %vm8677_vm13 = vmpackc.low %vm17305_vm0, %vm17306_vm14  ;;  %v8685_v55 = vadd.s32 56, %v8392_v10  ;;  %v18846_v56 = vmov 0  ;;  %v18849_v57 = vmov 0 }
  0x9e   :  { %18840 = vst [vmem:[#allocation31_spill] sm:$0xff] %v18839_v51  ;;  %v18842_v52 = vsel %vm8677_vm13, 4294967295, %v18841_v52  ;;  %18844 = vst [vmem:[#allocation33_spill] sm:$0xff] %v8682_v53  ;;  %7034 = vmatpush1.bf16.msk.msra.mxu1 %vm8677_vm13, %v17440_v36  ;;  %vm17312_vm7 = vcmp.eq.s32.totalorder %v8682_v53, %v8454_v29  ;;  %vm17314_vm0 = vcmp.eq.s32.totalorder %v8682_v53, %v8457_v31  ;;  %v8722_v58 = vadd.s32 64, %v8392_v10 }
  0x9f   :  { %18843 = vst [vmem:[#allocation32_spill] sm:$0xff] %v18842_v52  ;;  %18845 = vst [vmem:[#allocation34_spill] sm:$0xff] %v8685_v55  ;;  %vm17311_vm4 = vcmp.eq.s32.totalorder %v8685_v55, %v8454_v29  ;;  %vm17313_vm13 = vcmp.eq.s32.totalorder %v8685_v55, %v8457_v31  ;;  %v18853_v59 = vmov 0  ;;  %v18856_v60 = vmov 0 }
  0xa0   :  { %vm8702_vm14 = vmpackc.low %vm17311_vm4, %vm17312_vm7  ;;  %18852 = vst [vmem:[#allocation37_spill] sm:$0xff] %v8722_v58  ;;  %vm17318_vm4 = vcmp.eq.s32.totalorder %v8682_v53, %v8460_v32  ;;  %vm17317_vm7 = vcmp.eq.s32.totalorder %v8685_v55, %v8460_v32  ;;  %v8762_v61 = vadd.s32 72, %v8392_v10  ;;  %v18860_v62 = vmov 0 }
  0xa1   :  { %v18847_v56 = vsel %vm8702_vm14, 4294967295, %v18846_v56  ;;  %6652 = vmatprep.subr.msk.bf16.mxu0 %vm8702_vm14, %v17440_v36  ;;  %vm8717_vm6 = vmpackc.low %vm17313_vm13, %vm17314_vm0  ;;  %vm17324_vm0 = vcmp.eq.s32.totalorder %v8682_v53, %v8463_v33  ;;  %v18863_v63 = vmov 0  ;;  %v18866_v0 = vmov 0 }
  0xa2   :  { %18848 = vst [vmem:[#allocation35_spill] sm:$0xff] %v18847_v56  ;;  %v18850_v57 = vsel %vm8717_vm6, 4294967295, %v18849_v57  ;;  %7036 = vmatprep.subr.msk.bf16.mxu1 %vm8717_vm6, %v17440_v36  ;;  %vm8737_vm13 = vmpackc.low %vm17317_vm7, %vm17318_vm4  ;;  %vm17323_vm6 = vcmp.eq.s32.totalorder %v8685_v55, %v8463_v33  ;;  %vm17328_vm4 = vcmp.eq.s32.totalorder %v8722_v58, %v8454_v29  ;;  %vm17327_vm14 = vcmp.eq.s32.totalorder %v8762_v61, %v8454_v29 }
  0xa3   :  { %18851 = vst [vmem:[#allocation36_spill] sm:$0xff] %v18850_v57  ;;  %v18854_v59 = vsel %vm8737_vm13, 4294967295, %v18853_v59  ;;  %6654 = vmatpush1.bf16.msk.msra.mxu0 %vm8737_vm13, %v17440_v36  ;;  %vm8754_vm7 = vmpackc.low %vm17323_vm6, %vm17324_vm0  ;;  %vm17332_vm13 = vcmp.eq.s32.totalorder %v8722_v58, %v8457_v31  ;;  %vm17331_vm0 = vcmp.eq.s32.totalorder %v8762_v61, %v8457_v31  ;;  %v18869_v14 = vmov 0 }
  0xa4   :  { %18855 = vst [vmem:[#allocation38_spill] sm:$0xff] %v18854_v59  ;;  %v18857_v60 = vsel %vm8754_vm7, 4294967295, %v18856_v60  ;;  %7038 = vmatpush1.bf16.msk.msra.mxu1 %vm8754_vm7, %v17440_v36  ;;  %18859 = vst [vmem:[#allocation40_spill] sm:$0xff] %v8762_v61  ;;  %vm17334_vm7 = vcmp.eq.s32.totalorder %v8722_v58, %v8460_v32  ;;  %v8830_v15 = vadd.s32 80, %v8392_v10  ;;  %v8833_v19 = vadd.s32 88, %v8392_v10 }
  0xa5   :  { %18858 = vst [vmem:[#allocation39_spill] sm:$0xff] %v18857_v60  ;;  %vm8776_vm6 = vmpackc.low %vm17327_vm14, %vm17328_vm4  ;;  %vm17333_vm4 = vcmp.eq.s32.totalorder %v8762_v61, %v8460_v32  ;;  %v18874_v20 = vmov 0  ;;  %v18877_v21 = vmov 0  ;;  %v8870_v22 = vadd.s32 96, %v8392_v10 }
  0xa6   :  { %v18861_v62 = vsel %vm8776_vm6, 4294967295, %v18860_v62  ;;  %6656 = vmatprep.subr.msk.bf16.mxu0 %vm8776_vm6, %v17440_v36  ;;  %vm8793_vm14 = vmpackc.low %vm17331_vm0, %vm17332_vm13  ;;  %vm17338_vm0 = vcmp.eq.s32.totalorder %v8722_v58, %v8463_v33  ;;  %vm17337_vm13 = vcmp.eq.s32.totalorder %v8762_v61, %v8463_v33  ;;  %18872 = vst [vmem:[#allocation45_spill] sm:$0xff] %v8830_v15  ;;  %v18881_v24 = vmov 0 }
  0xa7   :  { %18862 = vst [vmem:[#allocation41_spill] sm:$0xff] %v18861_v62  ;;  %v18864_v63 = vsel %vm8793_vm14, 4294967295, %v18863_v63  ;;  %7040 = vmatprep.subr.msk.bf16.mxu1 %vm8793_vm14, %v17440_v36  ;;  %vm8808_vm6 = vmpackc.low %vm17333_vm4, %vm17334_vm7  ;;  %vm17344_vm7 = vcmp.eq.s32.totalorder %v8830_v15, %v8454_v29  ;;  %v18884_v25 = vmov 0  ;;  %v8910_v28 = vadd.s32 104, %v8392_v10 }
  0xa8   :  { %18865 = vst [vmem:[#allocation42_spill] sm:$0xff] %v18864_v63  ;;  %v18867_v0 = vsel %vm8808_vm6, 4294967295, %v18866_v0  ;;  %6658 = vmatpush1.bf16.msk.msra.mxu0 %vm8808_vm6, %v17440_v36  ;;  %vm8825_vm4 = vmpackc.low %vm17337_vm13, %vm17338_vm0  ;;  %vm17343_vm6 = vcmp.eq.s32.totalorder %v8833_v19, %v8454_v29  ;;  %vm17346_vm13 = vcmp.eq.s32.totalorder %v8830_v15, %v8457_v31  ;;  %v18987_v60 = vmov 0 }
  0xa9   :  { %18868 = vst [vmem:[#allocation43_spill] sm:$0xff] %v18867_v0  ;;  %v18870_v14 = vsel %vm8825_vm4, 4294967295, %v18869_v14  ;;  %18873 = vst [vmem:[#allocation46_spill] sm:$0xff] %v8833_v19  ;;  %7042 = vmatpush1.bf16.msk.msra.mxu1 %vm8825_vm4, %v17440_v36  ;;  %vm17345_vm4 = vcmp.eq.s32.totalorder %v8833_v19, %v8457_v31  ;;  %v18981_v0 = vmov 0  ;;  %v18996_v56 = vmov 0 }
  0xaa   :  { %18871 = vst [vmem:[#allocation44_spill] sm:$0xff] %v18870_v14  ;;  %vm8850_vm0 = vmpackc.low %vm17343_vm6, %vm17344_vm7  ;;  %vm17350_vm6 = vcmp.eq.s32.totalorder %v8830_v15, %v8460_v32  ;;  %vm17349_vm7 = vcmp.eq.s32.totalorder %v8833_v19, %v8460_v32  ;;  %v19025_v46 = vmov 0  ;;  %v9536_v44 = vadd.s32 200, %v8392_v10 }
  0xab   :  { %v18875_v20 = vsel %vm8850_vm0, 4294967295, %v18874_v20  ;;  %6660 = vmatprep.subr.msk.bf16.mxu0 %vm8850_vm0, %v17440_v36  ;;  %vm8865_vm14 = vmpackc.low %vm17345_vm4, %vm17346_vm13  ;;  %18880 = vst [vmem:[#allocation49_spill] sm:$0xff] %v8870_v22  ;;  %vm17356_vm13 = vcmp.eq.s32.totalorder %v8830_v15, %v8463_v33  ;;  %vm17359_vm0 = vcmp.eq.s32.totalorder %v8910_v28, %v8454_v29 }
  0xac   :  { %18876 = vst [vmem:[#allocation47_spill] sm:$0xff] %v18875_v20  ;;  %v18878_v21 = vsel %vm8865_vm14, 4294967295, %v18877_v21  ;;  %7044 = vmatprep.subr.msk.bf16.mxu1 %vm8865_vm14, %v17440_v36  ;;  %vm8885_vm4 = vmpackc.low %vm17349_vm7, %vm17350_vm6  ;;  %vm17355_vm14 = vcmp.eq.s32.totalorder %v8833_v19, %v8463_v33  ;;  %vm17360_vm6 = vcmp.eq.s32.totalorder %v8870_v22, %v8454_v29 }
  0xad   :  { %18879 = vst [vmem:[#allocation48_spill] sm:$0xff] %v18878_v21  ;;  %v18882_v24 = vsel %vm8885_vm4, 4294967295, %v18881_v24  ;;  %6662 = vmatpush1.bf16.msk.msra.mxu0 %vm8885_vm4, %v17440_v36  ;;  %vm8902_vm7 = vmpackc.low %vm17355_vm14, %vm17356_vm13  ;;  %vm17365_vm4 = vcmp.eq.s32.totalorder %v8870_v22, %v8457_v31  ;;  %vm17364_vm13 = vcmp.eq.s32.totalorder %v8910_v28, %v8457_v31 }
  0xae   :  { %18883 = vst [vmem:[#allocation50_spill] sm:$0xff] %v18882_v24  ;;  %v18885_v25 = vsel %vm8902_vm7, 4294967295, %v18884_v25  ;;  %7046 = vmatpush1.bf16.msk.msra.mxu1 %vm8902_vm7, %v17440_v36  ;;  %18887 = vst [vmem:[#allocation52_spill] sm:$0xff] %v8910_v28  ;;  %vm17372_vm7 = vcmp.eq.s32.totalorder %v8870_v22, %v8460_v32 }
  0xaf   :  { %18886 = vst [vmem:[#allocation51_spill] sm:$0xff] %v18885_v25  ;;  %vm8924_vm14 = vmpackc.low %vm17359_vm0, %vm17360_vm6  ;;  %vm17366_vm6 = vcmp.eq.s32.totalorder %v8910_v28, %v8460_v32 }
  0xb0   :  { %6664 = vmatprep.subr.msk.bf16.mxu0 %vm8924_vm14, %v17440_v36  ;;  %vm8941_vm0 = vmpackc.low %vm17364_vm13, %vm17365_vm4  ;;  %vm17376_vm13 = vcmp.eq.s32.totalorder %v8870_v22, %v8463_v33  ;;  %vm17375_vm4 = vcmp.eq.s32.totalorder %v8910_v28, %v8463_v33  ;;  %19038 = vst [vmem:[#allocation110_spill] sm:$0xff] %v9536_v44 }
  0xb1   :  { %v18892_v17 = vsel %vm8941_vm0, 4294967295, %v18891_v17  ;;  %7048 = vmatprep.subr.msk.bf16.mxu1 %vm8941_vm0, %v17440_v36 }
  0xb2   :  { %197 = vperm.xlu0 %8241, %v176_v16   ;;  %v18888_v16 = vmov 0  ;;  %18893 = vst [vmem:[#allocation54_spill] sm:$0xff] %v18892_v17 }
  0xb3   :  { %v18889_v16 = vsel %vm8924_vm14, 4294967295, %v18888_v16  ;;  %vm8956_vm14 = vmpackc.low %vm17366_vm6, %vm17372_vm7  ;;  %vm17402_vm7 = vcmp.eq.s32.totalorder %v8978_v6, %v8454_v29 }
  0xb4   :  { %18890 = vst [vmem:[#allocation53_spill] sm:$0xff] %v18889_v16  ;;  %6666 = vmatpush1.bf16.msk.msra.mxu0 %vm8956_vm14, %v17440_v36  ;;  %vm8973_vm6 = vmpackc.low %vm17375_vm4, %vm17376_vm13  ;;  %vm17400_vm4 = vcmp.eq.s32.totalorder %v8978_v6, %v8457_v31 }
  0xb5   :  { %v18898_v9 = vsel %vm8973_vm6, 4294967295, %v18897_v9  ;;  %7050 = vmatpush1.bf16.msk.msra.mxu1 %vm8973_vm6, %v17440_v36  ;;  %vm17399_vm6 = vcmp.eq.s32.totalorder %v8981_v2, %v8457_v31 }
  0xb6   :  { %8244 = vset.pattern.permute.xlu0 %v17363_v7  ;;  %v18894_v7 = vmov 0  ;;  %18899 = vst [vmem:[#allocation56_spill] sm:$0xff] %v18898_v9  ;;  %vm9013_vm0 = vmpackc.low %vm17399_vm6, %vm17400_vm4  ;;  %vm17406_vm6 = vcmp.eq.s32.totalorder %v8978_v6, %v8460_v32  ;;  %vm17405_vm4 = vcmp.eq.s32.totalorder %v8981_v2, %v8460_v32 }
  0xb7   :  { %v18895_v7 = vsel %vm8956_vm14, 4294967295, %v18894_v7  ;;  %vm17401_vm14 = vcmp.eq.s32.totalorder %v8981_v2, %v8454_v29  ;;  %v18906_v5 = vsel %vm9013_vm0, 4294967295, %v18905_v5  ;;  %7052 = vmatprep.subr.msk.bf16.mxu1 %vm9013_vm0, %v17440_v36  ;;  %vm9044_vm0 = vmpackc.low %vm17405_vm4, %vm17406_vm6 }
  0xb8   :  { %18896 = vst [vmem:[#allocation55_spill] sm:$0xff] %v18895_v7  ;;  %vm8998_vm13 = vmpackc.low %vm17401_vm14, %vm17402_vm7  ;;  %vm17414_vm14 = vcmp.eq.s32.totalorder %v8978_v6, %v8463_v33  ;;  %vm17413_vm7 = vcmp.eq.s32.totalorder %v8981_v2, %v8463_v33 }
  0xb9   :  { %v18903_v1 = vsel %vm8998_vm13, 4294967295, %v18902_v1  ;;  %6668 = vmatprep.subr.msk.bf16.mxu0 %vm8998_vm13, %v17440_v36  ;;  %18907 = vst [vmem:[#allocation60_spill] sm:$0xff] %v18906_v5  ;;  %vm9066_vm4 = vmpackc.low %vm17413_vm7, %vm17414_vm14 }
  0xba   :  { %18904 = vst [vmem:[#allocation59_spill] sm:$0xff] %v18903_v1  ;;  %6670 = vmatpush1.bf16.msk.msra.mxu0 %vm9044_vm0, %v17440_v36  ;;  %7054 = vmatpush1.bf16.msk.msra.mxu1 %vm9066_vm4, %v17440_v36  ;;  %v18950_v1 = vmov 0 }
 0x129   :  { %v180_v8 = vpop.xlane.xlu0 %179 }
 0x12a   :  { %v182_v4 = vmul.f32 0.00390625, %v180_v8  ;;  %v9049_v8 = vadd.s32 128, %v8392_v10 }
 0x12c   :  { %v9021_v3 = vsub.f32 %v8440_v26, %v182_v4  ;;  %v9024_v11 = vsub.f32 %v8442_v27, %v182_v4  ;;  %v18910_v4 = vmov 0  ;;  %18913 = vst [vmem:[#allocation64_spill] sm:$0xff] %v9049_v8  ;;  %vm17418_vm6 = vcmp.eq.s32.totalorder %v9049_v8, %v8454_v29 }
 0x12d   :  { %v18911_v4 = vsel %vm9044_vm0, 4294967295, %v18910_v4  ;;  %v18918_v26 = vmov 0  ;;  %v18923_v27 = vmov 0  ;;  %vm18926_vm10 = vcmp.eq.s32.totalorder %v9049_v8, %v8460_v32 }
 0x12e   :  { %18908 = vst [vmem:[#allocation61_spill] sm:$0xff] %v9021_v3  ;;  %18909 = vst [vmem:[#allocation62_spill] sm:$0xff] %v9024_v11  ;;  %v185_v18 = vmul.f32 %v9021_v3, %v9021_v3  ;;  %v186_v13 = vmul.f32 %v9024_v11, %v9024_v11 }
 0x12f   :  { %18912 = vst [vmem:[#allocation63_spill] sm:$0xff] %v18911_v4 }
 0x130   :  { %v187_v12 = vadd.f32 %v186_v13, %v185_v18  ;;  %v177_v13 = vld [vmem:[%s17275_s4] sm:$0xff]  ;;  %v18915_v18 = vmov 0 }
 0x131   :  { %v18916_v18 = vsel %vm9066_vm4, 4294967295, %v18915_v18 }
 0x132   :  { %188 = vadd.xlane.f32.xlu1 %v187_v12  ;;  %v9052_v12 = vadd.s32 136, %v8392_v10  ;;  %18917 = vst [vmem:[#allocation66_spill] sm:$0xff] %v18916_v18  ;;  %v18940_v18 = vmov 3  }
 0x134   :  { %18914 = vst [vmem:[#allocation65_spill] sm:$0xff] %v9052_v12  ;;  %vm17417_vm0 = vcmp.eq.s32.totalorder %v9052_v12, %v8454_v29  ;;  %vm17427_vm4 = vcmp.eq.s32.totalorder %v9052_v12, %v8460_v32 }
 0x135   :  { %vm9087_vm7 = vmpackc.low %vm17417_vm0, %vm17418_vm6  ;;  %vm18921_vm0 = vcmp.eq.s32.totalorder %v9049_v8, %v8457_v31  ;;  %vm18922_vm6 = vcmp.eq.s32.totalorder %v9052_v12, %v8457_v31 }
 0x136   :  { %v18919_v26 = vsel %vm9087_vm7, 4294967295, %v18918_v26  ;;  %6672 = vmatprep.subr.msk.bf16.mxu0 %vm9087_vm7, %v17440_v36  ;;  %vm9108_vm14 = vmpackc.low %vm18922_vm6, %vm18921_vm0  ;;  %vm18930_vm0 = vcmp.eq.s32.totalorder %v9049_v8, %v8463_v33  ;;  %vm18931_vm6 = vcmp.eq.s32.totalorder %v9052_v12, %v8463_v33 }
 0x137   :  { %18920 = vst [vmem:[#allocation67_spill] sm:$0xff] %v18919_v26  ;;  %v18924_v27 = vsel %vm9108_vm14, 4294967295, %v18923_v27  ;;  %7056 = vmatprep.subr.msk.bf16.mxu1 %vm9108_vm14, %v17440_v36  ;;  %vm9121_vm13 = vmpackc.low %vm17427_vm4, %vm18926_vm10  ;;  %vm18935_vm10 = vcmp.eq.s32.totalorder %v8392_v10, %v8460_v32  ;;  %vm18936_vm4 = vcmp.eq.s32.totalorder %v8466_v34, %v8460_v32  ;;  %v9157_v26 = vadd.s32 152, %v8392_v10 }
 0x138   :  { %18925 = vst [vmem:[#allocation68_spill] sm:$0xff] %v18924_v27  ;;  %6674 = vmatpush1.bf16.msk.msra.mxu0 %vm9121_vm13, %v17440_v36  ;;  %vm9134_vm14 = vmpackc.low %vm18931_vm6, %vm18930_vm0  ;;  %v534_v30 = vsel %vm18935_vm10, 1.0, %v17485_v43  ;;  %v542_v23 = vsel %vm18936_vm4, 1.0, %v17485_v43  ;;  %vm18937_vm0 = vcmp.eq.s32.totalorder %v8392_v10, %v8463_v33  ;;  %v9154_v27 = vadd.s32 144, %v8392_v10 }
 0x139   :  { %v18933_v54 = vsel %vm9134_vm14, 4294967295, %v18932_v54  ;;  %7058 = vmatpush1.bf16.msk.msra.mxu1 %vm9134_vm14, %v17440_v36  ;;  %18939 = vst [vmem:[#allocation72_spill] sm:$0xff] %v9157_v26  ;;  %v9162_v36 = vsub.f32 %v542_v23, %v542_v23  ;;  %vm18943_vm4 = vcmp.eq.s32.totalorder %v8466_v34, %v8463_v33  ;;  %vm17450_vm10 = vcmp.eq.s32.totalorder %v9157_v26, %v8454_v29 }
 0x13a   :  { %18934 = vst [vmem:[#allocation70_spill] sm:$0xff] %v18933_v54  ;;  %18938 = vst [vmem:[#allocation71_spill] sm:$0xff] %v9154_v27  ;;  %v9160_v54 = vsub.f32 %v534_v30, %v534_v30  ;;  %v544_v4 = vsel %vm18943_vm4, 1.0, %v17485_v43  ;;  %vm17461_vm6 = vcmp.eq.s32.totalorder %v9154_v27, %v8454_v29  ;;  %vm17459_vm14 = vcmp.eq.s32.totalorder %v9157_v26, %v8457_v31 }
 0x13b   :  { %18942 = vst [vmem:[#allocation74_spill] sm:$0xff] %v9162_v36  ;;  %vm9184_vm4 = vmpackc.low %vm17450_vm10, %vm17461_vm6  ;;  %v18945_v23 = vmov 0  ;;  %v9212_v7 = vsub.f32 %v544_v4, %v544_v4 }
 0x13c   :  { %18941 = vst [vmem:[#allocation73_spill] sm:$0xff] %v9160_v54  ;;  %v18946_v23 = vsel %vm9184_vm4, 4294967295, %v18945_v23  ;;  %v18962_v16 = vand.u32 4294901760, %v9160_v54 }
 0x13d   :  { %18947 = vst [vmem:[#allocation76_spill] sm:$0xff] %v18946_v23  ;;  %18954 = vst [vmem:[#allocation78_spill] sm:$0xff] %v9212_v7  ;;  %v18984_v63 = vand.u32 4294901760, %v9212_v7 }
 0x13e   :  { %v9250_v25 = vsub.f32 %v9160_v54, %v18962_v16 }
 0x13f   :  { %v9329_v62 = vsub.f32 %v9212_v7, %v18984_v63  ;;  %v9348_v63 = vadd.s32 184, %v8392_v10 }
 0x141   :  { %18991 = vst [vmem:[#allocation91_spill] sm:$0xff] %v9348_v63  ;;  %vm17546_vm7 = vcmp.eq.s32.totalorder %v9348_v63, %v8457_v31 }
 0x143   :  { %204 = vperm.xlu1 %8242, %v177_v13   ;;  %v18927_v13 = vmov 0 }
 0x144   :  { %v18928_v13 = vsel %vm9121_vm13, 4294967295, %v18927_v13  ;;  %vm18948_vm13 = vcmp.eq.s32.totalorder %v8392_v10, %v8454_v29 }
 0x145   :  { %18929 = vst [vmem:[#allocation69_spill] sm:$0xff] %v18928_v13  ;;  %v536_v13 = vsel %vm18937_vm0, 1.0, %v17485_v43  ;;  %vm17460_vm0 = vcmp.eq.s32.totalorder %v9154_v27, %v8457_v31  ;;  %v535_v30 = vsel %vm18948_vm13, 1.0, %v17485_v43  ;;  %vm18953_vm13 = vcmp.eq.s32.totalorder %v8392_v10, %v8457_v31 }
 0x146   :  { %v9168_v5 = vsub.f32 %v536_v13, %v536_v13  ;;  %vm9202_vm10 = vmpackc.low %vm17459_vm14, %vm17460_vm0  ;;  %v537_v9 = vsel %vm18953_vm13, 1.0, %v17485_v43  ;;  %vm17490_vm14 = vcmp.eq.s32.totalorder %v9154_v27, %v8460_v32  ;;  %vm17474_vm0 = vcmp.eq.s32.totalorder %v9157_v26, %v8460_v32 }
 0x147   :  { %8243 = vset.pattern.permute.xlu1 %v18940_v18  ;;  %v18949_v18 = vmov 1.0|1.0   ;;  %v18951_v1 = vsel %vm9202_vm10, 4294967295, %v18950_v1  ;;  %vm17489_vm13 = vcmp.eq.s32.totalorder %v9157_v26, %v8463_v33  ;;  %vm9239_vm6 = vmpackc.low %vm17474_vm0, %vm17490_vm14  ;;  %v18957_v13 = vmov 0 }
 0x148   :  { %18944 = vst [vmem:[#allocation75_spill] sm:$0xff] %v9168_v5  ;;  %6676 = vmatprep.subr.msk.bf16.mxu0 %vm9184_vm4, %v18949_v18  ;;  %18952 = vst [vmem:[#allocation77_spill] sm:$0xff] %v18951_v1  ;;  %7060 = vmatprep.subr.msk.bf16.mxu1 %vm9202_vm10, %v18949_v18  ;;  %vm18955_vm4 = vcmp.eq.s32.totalorder %v8466_v34, %v8454_v29  ;;  %vm18956_vm10 = vcmp.eq.s32.totalorder %v8466_v34, %v8457_v31  ;;  %v18958_v13 = vsel %vm9239_vm6, 4294967295, %v18957_v13 }
 0x149   :  { %v543_v4 = vsel %vm18955_vm4, 1.0, %v17485_v43  ;;  %v545_v23 = vsel %vm18956_vm10, 1.0, %v17485_v43  ;;  %18959 = vst [vmem:[#allocation79_spill] sm:$0xff] %v18958_v13  ;;  %v9243_v1 = vsub.f32 %v535_v30, %v535_v30  ;;  %v9245_v17 = vsub.f32 %v537_v9, %v537_v9  ;;  %6678 = vmatpush1.bf16.msk.msra.mxu0 %vm9239_vm6, %v18949_v18 }
 0x14a   :  { %vm18963_vm10 = vcmp.eq.s32.totalorder %v9154_v27, %v8463_v33  ;;  %v18964_v30 = vmov 0  ;;  %vm18967_vm0 = vcmp.eq.s32.totalorder %v8534_v40, %v8454_v29  ;;  %v9274_v34 = vadd.s32 160, %v8392_v10 }
 0x14b   :  { %18960 = vst [vmem:[#allocation80_spill] sm:$0xff] %v9243_v1  ;;  %18961 = vst [vmem:[#allocation81_spill] sm:$0xff] %v9245_v17  ;;  %v551_v16 = vsel %vm18967_vm0, 1.0, %v17485_v43  ;;  %v9277_v13 = vadd.s32 168, %v8392_v10  ;;  %v9279_v24 = vsub.f32 %v543_v4, %v543_v4  ;;  %v9281_v21 = vsub.f32 %v545_v23, %v545_v23 }
 0x14c   :  { %vm9261_vm4 = vmpackc.low %vm17489_vm13, %vm18963_vm10  ;;  %18968 = vst [vmem:[#allocation83_spill] sm:$0xff] %v9274_v34  ;;  %v18972_v9 = vand.u32 4294901760, %v9162_v36  ;;  %v18973_v43 = vand.u32 4294901760, %v9168_v5  ;;  %v18974_v23 = vmov 0.0   ;;  %vm18977_vm0 = vcmp.eq.s32.totalorder %v8534_v40, %v8460_v32 }
 0x14d   :  { %v18965_v30 = vsel %vm9261_vm4, 4294967295, %v18964_v30  ;;  %7062 = vmatpush1.bf16.msk.msra.mxu1 %vm9261_vm4, %v18949_v18  ;;  %18969 = vst [vmem:[#allocation84_spill] sm:$0xff] %v9277_v13  ;;  %18970 = vst [vmem:[#allocation85_spill] sm:$0xff] %v9279_v24  ;;  %vm18975_vm4 = vcmp.eq.s32.totalorder %v8537_v41, %v8454_v29  ;;  %vm18978_vm10 = vcmp.eq.s32.totalorder %v8537_v41, %v8460_v32 }
 0x14e   :  { %18966 = vst [vmem:[#allocation82_spill] sm:$0xff] %v18965_v30  ;;  %18971 = vst [vmem:[#allocation86_spill] sm:$0xff] %v9281_v21  ;;  %v9286_v20 = vsub.f32 %v9162_v36, %v18972_v9  ;;  %v9291_v30 = vsub.f32 %v9168_v5, %v18973_v43  ;;  %v559_v4 = vsel %vm18975_vm4, 1.0, %v18974_v23  ;;  %v9305_v9 = vsub.f32 %v551_v16, %v551_v16 }
 0x14f   :  { %v550_v43 = vsel %vm18977_vm0, 1.0, %v18974_v23  ;;  %v558_v14 = vsel %vm18978_vm10, 1.0, %v18974_v23  ;;  %vm18979_vm14 = vcmp.eq.s32.totalorder %v9274_v34, %v8454_v29  ;;  %vm18980_vm13 = vcmp.eq.s32.totalorder %v9277_v13, %v8454_v29 }
 0x150   :  { %18976 = vst [vmem:[#allocation87_spill] sm:$0xff] %v9305_v9  ;;  %vm9321_vm6 = vmpackc.low %vm18980_vm13, %vm18979_vm14  ;;  %vm18985_vm4 = vcmp.eq.s32.totalorder %v9274_v34, %v8457_v31  ;;  %vm18986_vm14 = vcmp.eq.s32.totalorder %v9277_v13, %v8457_v31  ;;  %v9345_v16 = vadd.s32 176, %v8392_v10  ;;  %vm17524_vm0 = vcmp.eq.s32.totalorder %v9274_v34, %v8460_v32 }
 0x151   :  { %v18982_v0 = vsel %vm9321_vm6, 4294967295, %v18981_v0  ;;  %6680 = vmatprep.subr.msk.bf16.mxu0 %vm9321_vm6, %v18949_v18  ;;  %vm9340_vm13 = vmpackc.low %vm18986_vm14, %vm18985_vm4  ;;  %vm17523_vm10 = vcmp.eq.s32.totalorder %v9277_v13, %v8460_v32  ;;  %vm17543_vm4 = vcmp.eq.s32.totalorder %v9274_v34, %v8463_v33  ;;  %vm18992_vm6 = vcmp.eq.s32.totalorder %v8534_v40, %v8457_v31 }
 0x152   :  { %18983 = vst [vmem:[#allocation88_spill] sm:$0xff] %v18982_v0  ;;  %v18988_v60 = vsel %vm9340_vm13, 4294967295, %v18987_v60  ;;  %18990 = vst [vmem:[#allocation90_spill] sm:$0xff] %v9345_v16  ;;  %7064 = vmatprep.subr.msk.bf16.mxu1 %vm9340_vm13, %v18949_v18  ;;  %v553_v0 = vsel %vm18992_vm6, 1.0, %v18974_v23  ;;  %vm18993_vm13 = vcmp.eq.s32.totalorder %v8537_v41, %v8457_v31  ;;  %v9369_v59 = vsub.f32 %v550_v43, %v550_v43 }
 0x153   :  { %18989 = vst [vmem:[#allocation89_spill] sm:$0xff] %v18988_v60  ;;  %v561_v60 = vsel %vm18993_vm13, 1.0, %v18974_v23  ;;  %v9371_v57 = vsub.f32 %v558_v14, %v558_v14  ;;  %vm9379_vm14 = vmpackc.low %vm17523_vm10, %vm17524_vm0  ;;  %v9384_v51 = vsub.f32 %v559_v4, %v559_v4  ;;  %vm19000_vm6 = vcmp.eq.s32.totalorder %v8534_v40, %v8463_v33 }
 0x154   :  { %18994 = vst [vmem:[#allocation92_spill] sm:$0xff] %v9369_v59  ;;  %v18997_v56 = vsel %vm9379_vm14, 4294967295, %v18996_v56  ;;  %v552_v14 = vsel %vm19000_vm6, 1.0, %v18974_v23  ;;  %vm19001_vm13 = vcmp.eq.s32.totalorder %v8537_v41, %v8463_v33  ;;  %6682 = vmatpush1.bf16.msk.msra.mxu0 %vm9379_vm14, %v18949_v18  ;;  %vm19002_vm10 = vcmp.eq.s32.totalorder %v9277_v13, %v8463_v33 }
 0x155   :  { %18995 = vst [vmem:[#allocation93_spill] sm:$0xff] %v9371_v57  ;;  %18998 = vst [vmem:[#allocation94_spill] sm:$0xff] %v18997_v56  ;;  %v560_v43 = vsel %vm19001_vm13, 1.0, %v18974_v23  ;;  %v19003_v4 = vmov 0  ;;  %vm17542_vm6 = vcmp.eq.s32.totalorder %v9345_v16, %v8454_v29  ;;  %vm17541_vm13 = vcmp.eq.s32.totalorder %v9348_v63, %v8454_v29 }
 0x156   :  { %18999 = vst [vmem:[#allocation95_spill] sm:$0xff] %v9384_v51  ;;  %vm9403_vm0 = vmpackc.low %vm19002_vm10, %vm17543_vm4  ;;  %vm17547_vm14 = vcmp.eq.s32.totalorder %v9345_v16, %v8457_v31  ;;  %v9420_v40 = vsub.f32 %v553_v0, %v553_v0  ;;  %v19008_v56 = vmov 0  ;;  %v9436_v49 = vsub.f32 %v552_v14, %v552_v14 }
 0x157   :  { %v19004_v4 = vsel %vm9403_vm0, 4294967295, %v19003_v4  ;;  %7066 = vmatpush1.bf16.msk.msra.mxu1 %vm9403_vm0, %v18949_v18  ;;  %vm9430_vm10 = vmpackc.low %vm17541_vm13, %vm17542_vm6  ;;  %v9438_v0 = vsub.f32 %v560_v43, %v560_v43  ;;  %vm19016_vm6 = vcmp.eq.s32.totalorder %v8579_v45, %v8460_v32  ;;  %vm19017_vm4 = vcmp.eq.s32.totalorder %v8614_v48, %v8460_v32 }
 0x158   :  { %19005 = vst [vmem:[#allocation96_spill] sm:$0xff] %v19004_v4  ;;  %19006 = vst [vmem:[#allocation97_spill] sm:$0xff] %v9420_v40  ;;  %v9422_v4 = vsub.f32 %v561_v60, %v561_v60  ;;  %v19009_v56 = vsel %vm9430_vm10, 4294967295, %v19008_v56  ;;  %6684 = vmatprep.subr.msk.bf16.mxu0 %vm9430_vm10, %v18949_v18  ;;  %v19013_v60 = vmov 0  ;;  %v566_v14 = vsel %vm19016_vm6, 1.0, %v18974_v23 }
 0x159   :  { %19010 = vst [vmem:[#allocation99_spill] sm:$0xff] %v19009_v56  ;;  %19011 = vst [vmem:[#allocation100_spill] sm:$0xff] %v9436_v49  ;;  %v574_v43 = vsel %vm19017_vm4, 1.0, %v18974_v23  ;;  %vm19018_vm10 = vcmp.eq.s32.totalorder %v8579_v45, %v8463_v33  ;;  %vm17576_vm6 = vcmp.eq.s32.totalorder %v9345_v16, %v8460_v32  ;;  %vm19022_vm4 = vcmp.eq.s32.totalorder %v8579_v45, %v8457_v31 }
 0x15a   :  { %19007 = vst [vmem:[#allocation98_spill] sm:$0xff] %v9422_v4  ;;  %19012 = vst [vmem:[#allocation101_spill] sm:$0xff] %v9438_v0  ;;  %v568_v41 = vsel %vm19018_vm10, 1.0, %v18974_v23  ;;  %v569_v56 = vsel %vm19022_vm4, 1.0, %v18974_v23  ;;  %v9507_v42 = vsub.f32 %v566_v14, %v566_v14  ;;  %v9593_v14 = vadd.s32 216, %v8392_v10 }
 0x15b   :  { %vm9449_vm13 = vmpackc.low %vm17546_vm7, %vm17547_vm14  ;;  %vm19019_vm7 = vcmp.eq.s32.totalorder %v8614_v48, %v8463_v33  ;;  %vm19023_vm14 = vcmp.eq.s32.totalorder %v8614_v48, %v8457_v31  ;;  %v9511_v39 = vsub.f32 %v568_v41, %v568_v41  ;;  %v9533_v41 = vadd.s32 192, %v8392_v10 }
 0x15c   :  { %v19014_v60 = vsel %vm9449_vm13, 4294967295, %v19013_v60  ;;  %v576_v52 = vsel %vm19019_vm7, 1.0, %v18974_v23  ;;  %7068 = vmatprep.subr.msk.bf16.mxu1 %vm9449_vm13, %v18949_v18  ;;  %vm19020_vm7 = vcmp.eq.s32.totalorder %v8579_v45, %v8454_v29  ;;  %vm19021_vm13 = vcmp.eq.s32.totalorder %v8614_v48, %v8454_v29  ;;  %19028 = vst [vmem:[#allocation104_spill] sm:$0xff] %v9507_v42  ;;  %19054 = vst [vmem:[#allocation118_spill] sm:$0xff] %v9593_v14 }
 0x15d   :  { %19015 = vst [vmem:[#allocation102_spill] sm:$0xff] %v19014_v60  ;;  %v567_v50 = vsel %vm19020_vm7, 1.0, %v18974_v23  ;;  %v575_v60 = vsel %vm19021_vm13, 1.0, %v18974_v23  ;;  %v577_v47 = vsel %vm19023_vm14, 1.0, %v18974_v23  ;;  %vm19024_vm7 = vcmp.eq.s32.totalorder %v9348_v63, %v8460_v32  ;;  %19030 = vst [vmem:[#allocation106_spill] sm:$0xff] %v9511_v39 }
 0x15e   :  { %vm9502_vm10 = vmpackc.low %vm19024_vm7, %vm17576_vm6  ;;  %v9509_v45 = vsub.f32 %v574_v43, %v574_v43  ;;  %vm19031_vm14 = vcmp.eq.s32.totalorder %v9345_v16, %v8463_v33  ;;  %vm19032_vm13 = vcmp.eq.s32.totalorder %v9348_v63, %v8463_v33  ;;  %v19033_v48 = vmov 0  ;;  %19037 = vst [vmem:[#allocation109_spill] sm:$0xff] %v9533_v41 }
 0x15f   :  { %v19026_v46 = vsel %vm9502_vm10, 4294967295, %v19025_v46  ;;  %6686 = vmatpush1.bf16.msk.msra.mxu0 %vm9502_vm10, %v18949_v18  ;;  %vm9522_vm4 = vmpackc.low %vm19032_vm13, %vm19031_vm14  ;;  %v9527_v43 = vsub.f32 %v576_v52, %v576_v52  ;;  %v9540_v38 = vsub.f32 %v575_v60, %v575_v60  ;;  %v9542_v37 = vsub.f32 %v569_v56, %v569_v56 }
 0x160   :  { %19027 = vst [vmem:[#allocation103_spill] sm:$0xff] %v19026_v46  ;;  %19029 = vst [vmem:[#allocation105_spill] sm:$0xff] %v9509_v45  ;;  %v19034_v48 = vsel %vm9522_vm4, 4294967295, %v19033_v48  ;;  %7070 = vmatpush1.bf16.msk.msra.mxu1 %vm9522_vm4, %v18949_v18  ;;  %v9538_v46 = vsub.f32 %v567_v50, %v567_v50  ;;  %v9544_v35 = vsub.f32 %v577_v47, %v577_v47  ;;  %v19044_v60 = vmov 0 }
 0x161   :  { %19035 = vst [vmem:[#allocation107_spill] sm:$0xff] %v19034_v48  ;;  %19036 = vst [vmem:[#allocation108_spill] sm:$0xff] %v9527_v43  ;;  %vm17580_vm7 = vcmp.eq.s32.totalorder %v9533_v41, %v8454_v29  ;;  %vm17579_vm14 = vcmp.eq.s32.totalorder %v9536_v44, %v8454_v29  ;;  %vm19043_vm4 = vcmp.eq.s32.totalorder %v8682_v53, %v8460_v32  ;;  %v19050_v52 = vmov 0 }
 0x162   :  { %19039 = vst [vmem:[#allocation111_spill] sm:$0xff] %v9538_v46  ;;  %19040 = vst [vmem:[#allocation112_spill] sm:$0xff] %v9540_v38  ;;  %v582_v47 = vsel %vm19043_vm4, 1.0, %v18974_v23  ;;  %vm19047_vm6 = vcmp.eq.s32.totalorder %v8682_v53, %v8454_v29  ;;  %vm19048_vm4 = vcmp.eq.s32.totalorder %v9533_v41, %v8457_v31  ;;  %v9590_v50 = vadd.s32 208, %v8392_v10 }
 0x163   :  { %19041 = vst [vmem:[#allocation113_spill] sm:$0xff] %v9542_v37  ;;  %19042 = vst [vmem:[#allocation114_spill] sm:$0xff] %v9544_v35  ;;  %v583_v56 = vsel %vm19047_vm6, 1.0, %v18974_v23  ;;  %vm17602_vm6 = vcmp.eq.s32.totalorder %v9533_v41, %v8460_v32  ;;  %vm19055_vm10 = vcmp.eq.s32.totalorder %v8685_v55, %v8454_v29  ;;  %v9618_v7 = vsub.f32 %v582_v47, %v582_v47 }
 0x164   :  { %vm9567_vm13 = vmpackc.low %vm17579_vm14, %vm17580_vm7  ;;  %vm19049_vm14 = vcmp.eq.s32.totalorder %v9536_v44, %v8457_v31  ;;  %19053 = vst [vmem:[#allocation117_spill] sm:$0xff] %v9590_v50  ;;  %v19060_v5 = vmov 0  ;;  %vm17624_vm0 = vcmp.eq.s32.totalorder %v9593_v14, %v8457_v31  ;;  %v19076_v43 = vmov 0 }
 0x165   :  { %v19045_v60 = vsel %vm9567_vm13, 4294967295, %v19044_v60  ;;  %6688 = vmatprep.subr.msk.bf16.mxu0 %vm9567_vm13, %v18949_v18  ;;  %vm9585_vm7 = vmpackc.low %vm19049_vm14, %vm19048_vm4  ;;  %vm19057_vm13 = vcmp.eq.s32.totalorder %v8685_v55, %v8460_v32  ;;  %19058 = vst [vmem:[#allocation119_spill] sm:$0xff] %v9618_v7  ;;  %vm19059_vm4 = vcmp.eq.s32.totalorder %v9536_v44, %v8460_v32 }
 0x166   :  { %19046 = vst [vmem:[#allocation115_spill] sm:$0xff] %v19045_v60  ;;  %v19051_v52 = vsel %vm9585_vm7, 4294967295, %v19050_v52  ;;  %7072 = vmatprep.subr.msk.bf16.mxu1 %vm9585_vm7, %v18949_v18  ;;  %v591_v60 = vsel %vm19055_vm10, 1.0, %v18974_v23  ;;  %vm19056_vm7 = vcmp.eq.s32.totalorder %v8682_v53, %v8457_v31  ;;  %v590_v48 = vsel %vm19057_vm13, 1.0, %v18974_v23  ;;  %vm9626_vm14 = vmpackc.low %vm19059_vm4, %vm17602_vm6 }
 0x167   :  { %19052 = vst [vmem:[#allocation116_spill] sm:$0xff] %v19051_v52  ;;  %v585_v52 = vsel %vm19056_vm7, 1.0, %v18974_v23  ;;  %v19061_v5 = vsel %vm9626_vm14, 4294967295, %v19060_v5  ;;  %vm19063_vm10 = vcmp.eq.s32.totalorder %v8685_v55, %v8457_v31  ;;  %vm19064_vm7 = vcmp.eq.s32.totalorder %v8682_v53, %v8463_v33  ;;  %6690 = vmatpush1.bf16.msk.msra.mxu0 %vm9626_vm14, %v18949_v18 }
 0x168   :  { %19062 = vst [vmem:[#allocation120_spill] sm:$0xff] %v19061_v5  ;;  %v593_v36 = vsel %vm19063_vm10, 1.0, %v18974_v23  ;;  %v584_v47 = vsel %vm19064_vm7, 1.0, %v18974_v23  ;;  %vm19065_vm13 = vcmp.eq.s32.totalorder %v8685_v55, %v8463_v33  ;;  %vm19066_vm4 = vcmp.eq.s32.totalorder %v8722_v58, %v8460_v32 }
 0x169   :  { %v592_v54 = vsel %vm19065_vm13, 1.0, %v18974_v23  ;;  %v598_v11 = vsel %vm19066_vm4, 1.0, %v18974_v23  ;;  %vm19067_vm10 = vcmp.eq.s32.totalorder %v9533_v41, %v8463_v33  ;;  %vm19068_vm7 = vcmp.eq.s32.totalorder %v9536_v44, %v8463_v33 }
 0x16a   :  { %vm9655_vm6 = vmpackc.low %vm19068_vm7, %vm19067_vm10  ;;  %v19069_v53 = vmov 0  ;;  %vm17621_vm13 = vcmp.eq.s32.totalorder %v9590_v50, %v8454_v29  ;;  %vm17620_vm4 = vcmp.eq.s32.totalorder %v9593_v14, %v8454_v29  ;;  %vm17625_vm14 = vcmp.eq.s32.totalorder %v9590_v50, %v8457_v31 }
 0x16b   :  { %v19070_v53 = vsel %vm9655_vm6, 4294967295, %v19069_v53  ;;  %7074 = vmatpush1.bf16.msk.msra.mxu1 %vm9655_vm6, %v18949_v18  ;;  %v9670_v55 = vsub.f32 %v583_v56, %v583_v56  ;;  %v9672_v5 = vsub.f32 %v591_v60, %v591_v60  ;;  %v9674_v3 = vsub.f32 %v585_v52, %v585_v52  ;;  %vm9684_vm10 = vmpackc.low %vm17620_vm4, %vm17621_vm13 }
 0x16c   :  { %19071 = vst [vmem:[#allocation121_spill] sm:$0xff] %v19070_v53  ;;  %v9676_v53 = vsub.f32 %v590_v48, %v590_v48  ;;  %v19077_v43 = vsel %vm9684_vm10, 4294967295, %v19076_v43  ;;  %v9688_v39 = vsub.f32 %v593_v36, %v593_v36  ;;  %v9691_v60 = vsub.f32 %v584_v47, %v584_v47  ;;  %6692 = vmatprep.subr.msk.bf16.mxu0 %vm9684_vm10, %v18949_v18  ;;  %vm9704_vm7 = vmpackc.low %vm17624_vm0, %vm17625_vm14 }
 0x16d   :  { %19072 = vst [vmem:[#allocation122_spill] sm:$0xff] %v9670_v55  ;;  %19073 = vst [vmem:[#allocation123_spill] sm:$0xff] %v9672_v5  ;;  %v9693_v52 = vsub.f32 %v592_v54, %v592_v54  ;;  %v19082_v48 = vmov 0  ;;  %vm19085_vm4 = vcmp.eq.s32.totalorder %v8722_v58, %v8454_v29  ;;  %vm19086_vm13 = vcmp.eq.s32.totalorder %v8762_v61, %v8454_v29  ;;  %7076 = vmatprep.subr.msk.bf16.mxu1 %vm9704_vm7, %v18949_v18 }
 0x16e   :  { %19074 = vst [vmem:[#allocation124_spill] sm:$0xff] %v9674_v3  ;;  %19075 = vst [vmem:[#allocation125_spill] sm:$0xff] %v9676_v53  ;;  %v19083_v48 = vsel %vm9704_vm7, 4294967295, %v19082_v48  ;;  %v599_v54 = vsel %vm19085_vm4, 1.0, %v18974_v23  ;;  %v607_v36 = vsel %vm19086_vm13, 1.0, %v18974_v23  ;;  %vm19087_vm10 = vcmp.eq.s32.totalorder %v8762_v61, %v8460_v32 }
 0x16f   :  { %19078 = vst [vmem:[#allocation126_spill] sm:$0xff] %v19077_v43  ;;  %19079 = vst [vmem:[#allocation127_spill] sm:$0xff] %v9688_v39  ;;  %v606_v47 = vsel %vm19087_vm10, 1.0, %v18974_v23  ;;  %v9720_v56 = vsub.f32 %v598_v11, %v598_v11  ;;  %vm19089_vm10 = vcmp.eq.s32.totalorder %v8722_v58, %v8457_v31  ;;  %vm19090_vm0 = vcmp.eq.s32.totalorder %v8762_v61, %v8457_v31 }
 0x170   :  { %19080 = vst [vmem:[#allocation128_spill] sm:$0xff] %v9691_v60  ;;  %19081 = vst [vmem:[#allocation129_spill] sm:$0xff] %v9693_v52  ;;  %v601_v11 = vsel %vm19089_vm10, 1.0, %v18974_v23  ;;  %vm19091_vm4 = vcmp.eq.s32.totalorder %v8722_v58, %v8463_v33  ;;  %vm19092_vm14 = vcmp.eq.s32.totalorder %v9590_v50, %v8460_v32  ;;  %vm19093_vm13 = vcmp.eq.s32.totalorder %v9593_v14, %v8460_v32 }
 0x171   :  { %19084 = vst [vmem:[#allocation130_spill] sm:$0xff] %v19083_v48  ;;  %19088 = vst [vmem:[#allocation131_spill] sm:$0xff] %v9720_v56  ;;  %v609_v48 = vsel %vm19090_vm0, 1.0, %v18974_v23  ;;  %v600_v7 = vsel %vm19091_vm4, 1.0, %v18974_v23  ;;  %v19094_v43 = vmov 0  ;;  %v9758_v3 = vsub.f32 %v599_v54, %v599_v54 }
 0x172   :  { %vm9752_vm7 = vmpackc.low %vm19093_vm13, %vm19092_vm14  ;;  %v9760_v5 = vsub.f32 %v606_v47, %v606_v47  ;;  %vm19099_vm0 = vcmp.eq.s32.totalorder %v9590_v50, %v8463_v33  ;;  %vm19100_vm14 = vcmp.eq.s32.totalorder %v9593_v14, %v8463_v33  ;;  %v19101_v58 = vmov 0 }
 0x173   :  { %v19095_v43 = vsel %vm9752_vm7, 4294967295, %v19094_v43  ;;  %19097 = vst [vmem:[#allocation133_spill] sm:$0xff] %v9758_v3  ;;  %6694 = vmatpush1.bf16.msk.msra.mxu0 %vm9752_vm7, %v18949_v18  ;;  %vm9771_vm4 = vmpackc.low %vm19100_vm14, %vm19099_vm0  ;;  %v9775_v53 = vsub.f32 %v607_v36, %v607_v36  ;;  %vm19105_vm13 = vcmp.eq.s32.totalorder %v8762_v61, %v8463_v33  ;;  %v9785_v47 = vadd.s32 224, %v8392_v10 }
 0x174   :  { %19096 = vst [vmem:[#allocation132_spill] sm:$0xff] %v19095_v43  ;;  %19098 = vst [vmem:[#allocation134_spill] sm:$0xff] %v9760_v5  ;;  %v19102_v58 = vsel %vm9771_vm4, 4294967295, %v19101_v58  ;;  %v608_v54 = vsel %vm19105_vm13, 1.0, %v18974_v23  ;;  %7078 = vmatpush1.bf16.msk.msra.mxu1 %vm9771_vm4, %v18949_v18  ;;  %v9788_v39 = vadd.s32 232, %v8392_v10  ;;  %v9790_v43 = vsub.f32 %v601_v11, %v601_v11 }
 0x175   :  { %19103 = vst [vmem:[#allocation135_spill] sm:$0xff] %v19102_v58  ;;  %19104 = vst [vmem:[#allocation136_spill] sm:$0xff] %v9775_v53  ;;  %v9792_v3 = vsub.f32 %v609_v48, %v609_v48  ;;  %v9795_v53 = vsub.f32 %v600_v7, %v600_v7  ;;  %v9806_v48 = vsub.f32 %v608_v54, %v608_v54  ;;  %v19115_v11 = vmov 0 }
 0x176   :  { %19106 = vst [vmem:[#allocation137_spill] sm:$0xff] %v9785_v47  ;;  %19107 = vst [vmem:[#allocation138_spill] sm:$0xff] %v9788_v39  ;;  %vm17651_vm0 = vcmp.eq.s32.totalorder %v9788_v39, %v8454_v29  ;;  %vm19112_vm4 = vcmp.eq.s32.totalorder %v8830_v15, %v8460_v32  ;;  %vm19113_vm10 = vcmp.eq.s32.totalorder %v8833_v19, %v8460_v32  ;;  %v19122_v58 = vmov 0 }
 0x177   :  { %19108 = vst [vmem:[#allocation139_spill] sm:$0xff] %v9790_v43  ;;  %19109 = vst [vmem:[#allocation140_spill] sm:$0xff] %v9792_v3  ;;  %v614_v7 = vsel %vm19112_vm4, 1.0, %v18974_v23  ;;  %v622_v36 = vsel %vm19113_vm10, 1.0, %v18974_v23  ;;  %vm19114_vm14 = vcmp.eq.s32.totalorder %v9785_v47, %v8454_v29  ;;  %vm19118_vm7 = vcmp.eq.s32.totalorder %v8830_v15, %v8463_v33 }
 0x178   :  { %19110 = vst [vmem:[#allocation141_spill] sm:$0xff] %v9795_v53  ;;  %19111 = vst [vmem:[#allocation142_spill] sm:$0xff] %v9806_v48  ;;  %v616_v54 = vsel %vm19118_vm7, 1.0, %v18974_v23  ;;  %vm19119_vm4 = vcmp.eq.s32.totalorder %v8833_v19, %v8463_v33  ;;  %vm19120_vm10 = vcmp.eq.s32.totalorder %v9785_v47, %v8457_v31  ;;  %v9848_v5 = vadd.s32 240, %v8392_v10 }
 0x179   :  { %vm9822_vm13 = vmpackc.low %vm17651_vm0, %vm19114_vm14  ;;  %v624_v61 = vsel %vm19119_vm4, 1.0, %v18974_v23  ;;  %vm19121_vm14 = vcmp.eq.s32.totalorder %v9788_v39, %v8457_v31  ;;  %v9851_v56 = vadd.s32 248, %v8392_v10  ;;  %vm17677_vm7 = vcmp.eq.s32.totalorder %v9785_v47, %v8460_v32 }
 0x17a   :  { %v19116_v11 = vsel %vm9822_vm13, 4294967295, %v19115_v11  ;;  %6696 = vmatprep.subr.msk.bf16.mxu0 %vm9822_vm13, %v18949_v18  ;;  %vm9843_vm0 = vmpackc.low %vm19121_vm14, %vm19120_vm10  ;;  %19125 = vst [vmem:[#allocation145_spill] sm:$0xff] %v9848_v5  ;;  %vm17674_vm4 = vcmp.eq.s32.totalorder %v9788_v39, %v8460_v32  ;;  %vm17691_vm10 = vcmp.eq.s32.totalorder %v9785_v47, %v8463_v33  ;;  %vm19127_vm13 = vcmp.eq.s32.totalorder %v8830_v15, %v8454_v29 }
 0x17b   :  { %19117 = vst [vmem:[#allocation143_spill] sm:$0xff] %v19116_v11  ;;  %v19123_v58 = vsel %vm9843_vm0, 4294967295, %v19122_v58  ;;  %19126 = vst [vmem:[#allocation146_spill] sm:$0xff] %v9851_v56  ;;  %7080 = vmatprep.subr.msk.bf16.mxu1 %vm9843_vm0, %v18949_v18  ;;  %v615_v10 = vsel %vm19127_vm13, 1.0, %v18974_v23  ;;  %vm19128_vm0 = vcmp.eq.s32.totalorder %v8833_v19, %v8454_v29  ;;  %v9872_v11 = vsub.f32 %v614_v7, %v614_v7 }
 0x17c   :  { %19124 = vst [vmem:[#allocation144_spill] sm:$0xff] %v19123_v58  ;;  %v623_v58 = vsel %vm19128_vm0, 1.0, %v18974_v23  ;;  %v9874_v3 = vsub.f32 %v622_v36, %v622_v36  ;;  %vm9882_vm14 = vmpackc.low %vm17674_vm4, %vm17677_vm7  ;;  %v19131_v43 = vmov 0  ;;  %vm19134_vm13 = vcmp.eq.s32.totalorder %v8830_v15, %v8457_v31 }
 0x17d   :  { %19129 = vst [vmem:[#allocation147_spill] sm:$0xff] %v9872_v11  ;;  %v19132_v43 = vsel %vm9882_vm14, 4294967295, %v19131_v43  ;;  %v617_v52 = vsel %vm19134_vm13, 1.0, %v18974_v23  ;;  %vm19135_vm0 = vcmp.eq.s32.totalorder %v8833_v19, %v8457_v31  ;;  %v9894_v7 = vsub.f32 %v616_v54, %v616_v54  ;;  %6698 = vmatpush1.bf16.msk.msra.mxu0 %vm9882_vm14, %v18949_v18 }
 0x17e   :  { %19130 = vst [vmem:[#allocation148_spill] sm:$0xff] %v9874_v3  ;;  %19133 = vst [vmem:[#allocation149_spill] sm:$0xff] %v19132_v43  ;;  %v625_v36 = vsel %vm19135_vm0, 1.0, %v18974_v23  ;;  %v9896_v60 = vsub.f32 %v624_v61, %v624_v61  ;;  %vm19138_vm4 = vcmp.eq.s32.totalorder %v9788_v39, %v8463_v33  ;;  %v19139_v15 = vmov 0 }
 0x17f   :  { %19136 = vst [vmem:[#allocation150_spill] sm:$0xff] %v9894_v7  ;;  %vm9907_vm13 = vmpackc.low %vm19138_vm4, %vm17691_vm10  ;;  %vm17693_vm0 = vcmp.eq.s32.totalorder %v9848_v5, %v8454_v29  ;;  %vm17692_vm7 = vcmp.eq.s32.totalorder %v9851_v56, %v8454_v29  ;;  %vm17695_vm14 = vcmp.eq.s32.totalorder %v9848_v5, %v8457_v31  ;;  %vm17694_vm6 = vcmp.eq.s32.totalorder %v9851_v56, %v8457_v31 }
 0x180   :  { %19137 = vst [vmem:[#allocation151_spill] sm:$0xff] %v9896_v60  ;;  %v19140_v15 = vsel %vm9907_vm13, 4294967295, %v19139_v15  ;;  %7082 = vmatpush1.bf16.msk.msra.mxu1 %vm9907_vm13, %v18949_v18  ;;  %v9924_v19 = vsub.f32 %v615_v10, %v615_v10  ;;  %vm9934_vm4 = vmpackc.low %vm17692_vm7, %vm17693_vm0  ;;  %v19144_v43 = vmov 0  ;;  %v9938_v55 = vsub.f32 %v617_v52, %v617_v52 }
 0x181   :  { %19141 = vst [vmem:[#allocation152_spill] sm:$0xff] %v19140_v15  ;;  %v9926_v15 = vsub.f32 %v623_v58, %v623_v58  ;;  %v19145_v43 = vsel %vm9934_vm4, 4294967295, %v19144_v43  ;;  %v9940_v45 = vsub.f32 %v625_v36, %v625_v36  ;;  %6700 = vmatprep.subr.msk.bf16.mxu0 %vm9934_vm4, %v18949_v18  ;;  %vm9953_vm10 = vmpackc.low %vm17694_vm6, %vm17695_vm14  ;;  %v19149_v58 = vmov 0 }
 0x182   :  { %19142 = vst [vmem:[#allocation153_spill] sm:$0xff] %v9924_v19  ;;  %19146 = vst [vmem:[#allocation155_spill] sm:$0xff] %v19145_v43  ;;  %v19150_v58 = vsel %vm9953_vm10, 4294967295, %v19149_v58  ;;  %vm19152_vm7 = vcmp.eq.s32.totalorder %v8870_v22, %v8454_v29  ;;  %vm19153_vm0 = vcmp.eq.s32.totalorder %v8870_v22, %v8460_v32  ;;  %7084 = vmatprep.subr.msk.bf16.mxu1 %vm9953_vm10, %v18949_v18  ;;  %v19159_v43 = vmov 0 }
 0x183   :  { %19143 = vst [vmem:[#allocation154_spill] sm:$0xff] %v9926_v15  ;;  %19147 = vst [vmem:[#allocation156_spill] sm:$0xff] %v9938_v55  ;;  %v631_v10 = vsel %vm19152_vm7, 1.0, %v18974_v23  ;;  %v630_v54 = vsel %vm19153_vm0, 1.0, %v18974_v23  ;;  %vm17712_vm6 = vcmp.eq.s32.totalorder %v9848_v5, %v8460_v32  ;;  %vm19154_vm0 = vcmp.eq.s32.totalorder %v8910_v28, %v8454_v29 }
 0x184   :  { %19148 = vst [vmem:[#allocation157_spill] sm:$0xff] %v9940_v45  ;;  %19151 = vst [vmem:[#allocation158_spill] sm:$0xff] %v19150_v58  ;;  %v639_v36 = vsel %vm19154_vm0, 1.0, %v18974_v23  ;;  %vm19155_vm10 = vcmp.eq.s32.totalorder %v8870_v22, %v8457_v31  ;;  %vm19156_vm14 = vcmp.eq.s32.totalorder %v8910_v28, %v8457_v31  ;;  %vm19157_vm4 = vcmp.eq.s32.totalorder %v8910_v28, %v8460_v32 }
 0x185   :  { %v633_v52 = vsel %vm19155_vm10, 1.0, %v18974_v23  ;;  %v641_v61 = vsel %vm19156_vm14, 1.0, %v18974_v23  ;;  %v638_v58 = vsel %vm19157_vm4, 1.0, %v18974_v23  ;;  %vm19158_vm0 = vcmp.eq.s32.totalorder %v9851_v56, %v8460_v32 }
 0x186   :  { %vm10000_vm7 = vmpackc.low %vm19158_vm0, %vm17712_vm6  ;;  %v10004_v60 = vsub.f32 %v631_v10, %v631_v10  ;;  %v10006_v7 = vsub.f32 %v630_v54, %v630_v54  ;;  %vm19164_vm10 = vcmp.eq.s32.totalorder %v8870_v22, %v8463_v33  ;;  %vm19165_vm14 = vcmp.eq.s32.totalorder %v8910_v28, %v8463_v33 }
 0x187   :  { %v19160_v43 = vsel %vm10000_vm7, 4294967295, %v19159_v43  ;;  %v632_v3 = vsel %vm19164_vm10, 1.0, %v18974_v23  ;;  %v640_v11 = vsel %vm19165_vm14, 1.0, %v18974_v23  ;;  %6702 = vmatpush1.bf16.msk.msra.mxu0 %vm10000_vm7, %v18949_v18  ;;  %vm19166_vm4 = vcmp.eq.s32.totalorder %v9848_v5, %v8463_v33 }
 0x188   :  { %19161 = vst [vmem:[#allocation159_spill] sm:$0xff] %v19160_v43  ;;  %19162 = vst [vmem:[#allocation160_spill] sm:$0xff] %v10004_v60  ;;  %vm19167_vm0 = vcmp.eq.s32.totalorder %v9851_v56, %v8463_v33  ;;  %v19168_v54 = vmov 0  ;;  %v17727_v10 = vand.u32 4294901760, %v9243_v1  ;;  %v17728_v28 = vand.u32 4294901760, %v9279_v24 }
 0x189   :  { %19163 = vst [vmem:[#allocation161_spill] sm:$0xff] %v10006_v7  ;;  %vm10025_vm6 = vmpackc.low %vm19167_vm0, %vm19166_vm4  ;;  %v17736_v22 = vand.u32 4294901760, %v9245_v17  ;;  %v10036_v60 = vsub.f32 %v639_v36, %v639_v36  ;;  %v10038_v45 = vsub.f32 %v633_v52, %v633_v52  ;;  %v10040_v55 = vsub.f32 %v641_v61, %v641_v61 }
 0x18a   :  { %v19169_v54 = vsel %vm10025_vm6, 4294967295, %v19168_v54  ;;  %7086 = vmatpush1.bf16.msk.msra.mxu1 %vm10025_vm6, %v18949_v18  ;;  %v10042_v15 = vsub.f32 %v638_v58, %v638_v58  ;;  %v883_v18 = vsub.f32 %v9279_v24, %v17728_v28  ;;  %v19175_v36 = vand.u32 4294901760, %v9281_v21 }
 0x18b   :  { %19170 = vst [vmem:[#allocation162_spill] sm:$0xff] %v19169_v54  ;;  %19171 = vst [vmem:[#allocation163_spill] sm:$0xff] %v10036_v60  ;;  %v873_v54 = vsub.f32 %v9243_v1, %v17727_v10  ;;  %v1773_v43 = vsub.f32 %v9245_v17, %v17736_v22  ;;  %v10057_v58 = vsub.f32 %v632_v3, %v632_v3 }
 0x18c   :  { %19172 = vst [vmem:[#allocation164_spill] sm:$0xff] %v10038_v45  ;;  %19173 = vst [vmem:[#allocation165_spill] sm:$0xff] %v10040_v55  ;;  %v1783_v52 = vsub.f32 %v9281_v21, %v19175_v36  ;;  %v10059_v55 = vsub.f32 %v640_v11, %v640_v11  ;;  %vm19178_vm10 = vcmp.eq.s32.totalorder %v8978_v6, %v8454_v29  ;;  %v884_v24 = vand.u32 4294901760, %v883_v18 }
 0x18d   :  { %19174 = vst [vmem:[#allocation166_spill] sm:$0xff] %v10042_v15  ;;  %19176 = vst [vmem:[#allocation167_spill] sm:$0xff] %v10057_v58  ;;  %v647_v10 = vsel %vm19178_vm10, 1.0, %v18974_v23  ;;  %v874_v28 = vand.u32 4294901760, %v873_v54  ;;  %v1774_v1 = vand.u32 4294901760, %v1773_v43  ;;  %vm19179_vm14 = vcmp.eq.s32.totalorder %v8981_v2, %v8454_v29 }
 0x18e   :  { %19177 = vst [vmem:[#allocation168_spill] sm:$0xff] %v10059_v55  ;;  %v1784_v45 = vand.u32 4294901760, %v1783_v52  ;;  %v655_v36 = vsel %vm19179_vm14, 1.0, %v18974_v23  ;;  %vm19180_vm4 = vcmp.eq.s32.totalorder %v8978_v6, %v8460_v32  ;;  %vm19181_vm0 = vcmp.eq.s32.totalorder %v8981_v2, %v8460_v32 }
 0x18f   :  { %v646_v3 = vsel %vm19180_vm4, 1.0, %v18974_v23  ;;  %v654_v11 = vsel %vm19181_vm0, 1.0, %v18974_v23  ;;  %vm19182_vm10 = vcmp.eq.s32.totalorder %v8978_v6, %v8463_v33  ;;  %vm19183_vm6 = vcmp.eq.s32.totalorder %v8978_v6, %v8457_v31 }
 0x190   :  { %v648_v18 = vsel %vm19182_vm10, 1.0, %v18974_v23  ;;  %v649_v43 = vsel %vm19183_vm6, 1.0, %v18974_v23  ;;  %vm19184_vm14 = vcmp.eq.s32.totalorder %v8981_v2, %v8463_v33  ;;  %v6703_v52 = vpack.c.bf16 %v884_v24, %v874_v28 }
 0x191   :  { %v656_v54 = vsel %vm19184_vm14, 1.0, %v18974_v23  ;;  %v7087_v22 = vpack.c.bf16 %v1784_v45, %v1774_v1  ;;  %v10091_v17 = vsub.f32 %v647_v10, %v647_v10  ;;  %vm19186_vm4 = vcmp.eq.s32.totalorder %v8981_v2, %v8457_v31 }
 0x192   :  { %v657_v7 = vsel %vm19186_vm4, 1.0, %v18974_v23  ;;  %v10098_v60 = vsub.f32 %v646_v3, %v646_v3  ;;  %v10100_v19 = vsub.f32 %v654_v11, %v654_v11  ;;  %v10102_v48 = vsub.f32 %v648_v18, %v648_v18  ;;  %6704 = vmatprep.subr.bf16.mxu0 %v6703_v52 }
 0x193   :  { %19185 = vst [vmem:[#allocation169_spill] sm:$0xff] %v10091_v17  ;;  %7088 = vmatprep.subr.bf16.mxu1 %v7087_v22  ;;  %v10104_v1 = vsub.f32 %v655_v36, %v655_v36  ;;  %v10106_v45 = vsub.f32 %v649_v43, %v649_v43  ;;  %v10108_v24 = vsub.f32 %v656_v54, %v656_v54 }
 0x194   :  { %19187 = vst [vmem:[#allocation170_spill] sm:$0xff] %v10098_v60  ;;  %19188 = vst [vmem:[#allocation171_spill] sm:$0xff] %v10100_v19  ;;  %vm19193_vm6 = vcmp.eq.s32.totalorder %v9049_v8, %v8460_v32  ;;  %v10114_v10 = vsub.f32 %v657_v7, %v657_v7  ;;  %vm19195_vm0 = vcmp.eq.s32.totalorder %v9049_v8, %v8454_v29 }
 0x195   :  { %19189 = vst [vmem:[#allocation172_spill] sm:$0xff] %v10102_v48  ;;  %19190 = vst [vmem:[#allocation173_spill] sm:$0xff] %v10104_v1  ;;  %v662_v28 = vsel %vm19193_vm6, 1.0, %v18974_v23  ;;  %v663_v3 = vsel %vm19195_vm0, 1.0, %v18974_v23  ;;  %vm19196_vm10 = vcmp.eq.s32.totalorder %v9052_v12, %v8454_v29  ;;  %vm19197_vm14 = vcmp.eq.s32.totalorder %v9052_v12, %v8460_v32 }
 0x196   :  { %19191 = vst [vmem:[#allocation174_spill] sm:$0xff] %v10106_v45  ;;  %19192 = vst [vmem:[#allocation175_spill] sm:$0xff] %v10108_v24  ;;  %v671_v22 = vsel %vm19196_vm10, 1.0, %v18974_v23  ;;  %v670_v36 = vsel %vm19197_vm14, 1.0, %v18974_v23  ;;  %vm19198_vm4 = vcmp.eq.s32.totalorder %v9049_v8, %v8457_v31  ;;  %vm19199_vm6 = vcmp.eq.s32.totalorder %v9052_v12, %v8457_v31 }
 0x197   :  { %19194 = vst [vmem:[#allocation176_spill] sm:$0xff] %v10114_v10  ;;  %v665_v7 = vsel %vm19198_vm4, 1.0, %v18974_v23  ;;  %v673_v11 = vsel %vm19199_vm6, 1.0, %v18974_v23  ;;  %vm19200_vm0 = vcmp.eq.s32.totalorder %v9049_v8, %v8463_v33  ;;  %vm19201_vm10 = vcmp.eq.s32.totalorder %v9052_v12, %v8463_v33 }
 0x198   :  { %v664_v18 = vsel %vm19200_vm0, 1.0, %v18974_v23  ;;  %v672_v43 = vsel %vm19201_vm10, 1.0, %v18974_v23  ;;  %v10147_v21 = vsub.f32 %v662_v28, %v662_v28  ;;  %v10150_v2 = vsub.f32 %v663_v3, %v663_v3 }
 0x199   :  { %v10152_v10 = vsub.f32 %v671_v22, %v671_v22  ;;  %v10154_v8 = vsub.f32 %v670_v36, %v670_v36  ;;  %v10156_v45 = vsub.f32 %v664_v18, %v664_v18  ;;  %v10158_v12 = vsub.f32 %v672_v43, %v672_v43 }
 0x19a   :  { %19202 = vst [vmem:[#allocation177_spill] sm:$0xff] %v10147_v21  ;;  %19203 = vst [vmem:[#allocation178_spill] sm:$0xff] %v10150_v2  ;;  %vm19208_vm14 = vcmp.eq.s32.totalorder %v9154_v27, %v8460_v32  ;;  %vm19209_vm4 = vcmp.eq.s32.totalorder %v9157_v26, %v8460_v32  ;;  %v10168_v3 = vsub.f32 %v665_v7, %v665_v7 }
 0x19b   :  { %19204 = vst [vmem:[#allocation179_spill] sm:$0xff] %v10152_v10  ;;  %19205 = vst [vmem:[#allocation180_spill] sm:$0xff] %v10154_v8  ;;  %v678_v52 = vsel %vm19208_vm14, 1.0, %v18974_v23  ;;  %v686_v28 = vsel %vm19209_vm4, 1.0, %v18974_v23  ;;  %v10170_v22 = vsub.f32 %v673_v11, %v673_v11  ;;  %vm19212_vm6 = vcmp.eq.s32.totalorder %v9154_v27, %v8454_v29 }
 0x19c   :  { %19206 = vst [vmem:[#allocation181_spill] sm:$0xff] %v10156_v45  ;;  %19207 = vst [vmem:[#allocation182_spill] sm:$0xff] %v10158_v12  ;;  %v679_v36 = vsel %vm19212_vm6, 1.0, %v18974_v23  ;;  %vm19213_vm0 = vcmp.eq.s32.totalorder %v9154_v27, %v8463_v33  ;;  %vm19214_vm10 = vcmp.eq.s32.totalorder %v9157_v26, %v8454_v29  ;;  %vm19215_vm14 = vcmp.eq.s32.totalorder %v9154_v27, %v8457_v31 }
 0x19d   :  { %19210 = vst [vmem:[#allocation183_spill] sm:$0xff] %v10168_v3  ;;  %19211 = vst [vmem:[#allocation184_spill] sm:$0xff] %v10170_v22  ;;  %v680_v18 = vsel %vm19213_vm0, 1.0, %v18974_v23  ;;  %v687_v7 = vsel %vm19214_vm10, 1.0, %v18974_v23  ;;  %v681_v11 = vsel %vm19215_vm14, 1.0, %v18974_v23  ;;  %vm19216_vm4 = vcmp.eq.s32.totalorder %v9157_v26, %v8463_v33 }
 0x19e   :  { %v688_v61 = vsel %vm19216_vm4, 1.0, %v18974_v23  ;;  %vm19217_vm6 = vcmp.eq.s32.totalorder %v9157_v26, %v8457_v31  ;;  %v10198_v54 = vsub.f32 %v678_v52, %v678_v52  ;;  %v10200_v21 = vsub.f32 %v686_v28, %v686_v28 }
 0x19f   :  { %v689_v43 = vsel %vm19217_vm6, 1.0, %v18974_v23  ;;  %v10204_v48 = vsub.f32 %v679_v36, %v679_v36  ;;  %v10206_v10 = vsub.f32 %v680_v18, %v680_v18  ;;  %v10208_v2 = vsub.f32 %v687_v7, %v687_v7 }
 0x1a0   :  { %19218 = vst [vmem:[#allocation185_spill] sm:$0xff] %v10198_v54  ;;  %19219 = vst [vmem:[#allocation186_spill] sm:$0xff] %v10200_v21  ;;  %v10210_v6 = vsub.f32 %v681_v11, %v681_v11  ;;  %v10212_v8 = vsub.f32 %v688_v61, %v688_v61  ;;  %vm19225_vm0 = vcmp.eq.s32.totalorder %v9274_v34, %v8460_v32 }
 0x1a1   :  { %19220 = vst [vmem:[#allocation187_spill] sm:$0xff] %v10204_v48  ;;  %19221 = vst [vmem:[#allocation188_spill] sm:$0xff] %v10206_v10  ;;  %v694_v52 = vsel %vm19225_vm0, 1.0, %v18974_v23  ;;  %v10218_v28 = vsub.f32 %v689_v43, %v689_v43  ;;  %vm19227_vm10 = vcmp.eq.s32.totalorder %v9274_v34, %v8454_v29  ;;  %vm19228_vm14 = vcmp.eq.s32.totalorder %v9277_v13, %v8454_v29 }
 0x1a2   :  { %19222 = vst [vmem:[#allocation189_spill] sm:$0xff] %v10208_v2  ;;  %19223 = vst [vmem:[#allocation190_spill] sm:$0xff] %v10210_v6  ;;  %v695_v36 = vsel %vm19227_vm10, 1.0, %v18974_v23  ;;  %v703_v18 = vsel %vm19228_vm14, 1.0, %v18974_v23  ;;  %vm19229_vm4 = vcmp.eq.s32.totalorder %v9277_v13, %v8460_v32  ;;  %vm19230_vm6 = vcmp.eq.s32.totalorder %v9274_v34, %v8463_v33 }
 0x1a3   :  { %19224 = vst [vmem:[#allocation191_spill] sm:$0xff] %v10212_v8  ;;  %19226 = vst [vmem:[#allocation192_spill] sm:$0xff] %v10218_v28  ;;  %v702_v61 = vsel %vm19229_vm4, 1.0, %v18974_v23  ;;  %v696_v11 = vsel %vm19230_vm6, 1.0, %v18974_v23  ;;  %vm19231_vm0 = vcmp.eq.s32.totalorder %v9277_v13, %v8463_v33  ;;  %vm19232_vm10 = vcmp.eq.s32.totalorder %v9274_v34, %v8457_v31 }
 0x1a4   :  { %v704_v27 = vsel %vm19231_vm0, 1.0, %v18974_v23  ;;  %v697_v26 = vsel %vm19232_vm10, 1.0, %v18974_v23  ;;  %vm19233_vm14 = vcmp.eq.s32.totalorder %v9277_v13, %v8457_v31  ;;  %v10251_v7 = vsub.f32 %v694_v52, %v694_v52 }
 0x1a5   :  { %v705_v43 = vsel %vm19233_vm14, 1.0, %v18974_v23  ;;  %v10254_v54 = vsub.f32 %v695_v36, %v695_v36  ;;  %v10256_v12 = vsub.f32 %v703_v18, %v703_v18  ;;  %v10258_v45 = vsub.f32 %v702_v61, %v702_v61 }
 0x1a6   :  { %19234 = vst [vmem:[#allocation193_spill] sm:$0xff] %v10251_v7  ;;  %v10260_v24 = vsub.f32 %v696_v11, %v696_v11  ;;  %v10262_v10 = vsub.f32 %v704_v27, %v704_v27  ;;  %vm19240_vm4 = vcmp.eq.s32.totalorder %v9345_v16, %v8460_v32  ;;  %vm19241_vm6 = vcmp.eq.s32.totalorder %v9348_v63, %v8460_v32 }
 0x1a7   :  { %19235 = vst [vmem:[#allocation194_spill] sm:$0xff] %v10254_v54  ;;  %19236 = vst [vmem:[#allocation195_spill] sm:$0xff] %v10256_v12  ;;  %v710_v13 = vsel %vm19240_vm4, 1.0, %v18974_v23  ;;  %v718_v52 = vsel %vm19241_vm6, 1.0, %v18974_v23  ;;  %v10272_v36 = vsub.f32 %v697_v26, %v697_v26  ;;  %v10274_v18 = vsub.f32 %v705_v43, %v705_v43 }
 0x1a8   :  { %19237 = vst [vmem:[#allocation196_spill] sm:$0xff] %v10258_v45  ;;  %19238 = vst [vmem:[#allocation197_spill] sm:$0xff] %v10260_v24  ;;  %vm19244_vm0 = vcmp.eq.s32.totalorder %v9345_v16, %v8454_v29  ;;  %vm19245_vm10 = vcmp.eq.s32.totalorder %v9345_v16, %v8463_v33  ;;  %vm19246_vm14 = vcmp.eq.s32.totalorder %v9348_v63, %v8454_v29  ;;  %v19290_v24 = vand.u32 4294901760, %v9384_v51 }
 0x1a9   :  { %19239 = vst [vmem:[#allocation198_spill] sm:$0xff] %v10262_v10  ;;  %19242 = vst [vmem:[#allocation199_spill] sm:$0xff] %v10272_v36  ;;  %v711_v27 = vsel %vm19244_vm0, 1.0, %v18974_v23  ;;  %v712_v61 = vsel %vm19245_vm10, 1.0, %v18974_v23  ;;  %v719_v26 = vsel %vm19246_vm14, 1.0, %v18974_v23  ;;  %vm19247_vm4 = vcmp.eq.s32.totalorder %v9345_v16, %v8457_v31 }
 0x1aa   :  { %19243 = vst [vmem:[#allocation200_spill] sm:$0xff] %v10274_v18  ;;  %v713_v43 = vsel %vm19247_vm4, 1.0, %v18974_v23  ;;  %vm19248_vm6 = vcmp.eq.s32.totalorder %v9348_v63, %v8463_v33  ;;  %vm19249_vm0 = vcmp.eq.s32.totalorder %v9348_v63, %v8457_v31  ;;  %v10302_v7 = vsub.f32 %v710_v13, %v710_v13 }
 0x1ab   :  { %v720_v21 = vsel %vm19248_vm6, 1.0, %v18974_v23  ;;  %v721_v11 = vsel %vm19249_vm0, 1.0, %v18974_v23  ;;  %v10304_v8 = vsub.f32 %v718_v52, %v718_v52  ;;  %v10308_v60 = vsub.f32 %v711_v27, %v711_v27 }
 0x1ac   :  { %19250 = vst [vmem:[#allocation201_spill] sm:$0xff] %v10302_v7  ;;  %v10310_v55 = vsub.f32 %v712_v61, %v712_v61  ;;  %v10312_v1 = vsub.f32 %v719_v26, %v719_v26  ;;  %v10314_v34 = vsub.f32 %v713_v43, %v713_v43  ;;  %v10316_v45 = vsub.f32 %v720_v21, %v720_v21 }
 0x1ad   :  { %19251 = vst [vmem:[#allocation202_spill] sm:$0xff] %v10304_v8  ;;  %19252 = vst [vmem:[#allocation203_spill] sm:$0xff] %v10308_v60  ;;  %vm19257_vm10 = vcmp.eq.s32.totalorder %v9533_v41, %v8460_v32  ;;  %v10322_v52 = vsub.f32 %v721_v11, %v721_v11  ;;  %vm19259_vm14 = vcmp.eq.s32.totalorder %v9533_v41, %v8454_v29 }
 0x1ae   :  { %19253 = vst [vmem:[#allocation204_spill] sm:$0xff] %v10310_v55  ;;  %19254 = vst [vmem:[#allocation205_spill] sm:$0xff] %v10312_v1  ;;  %v726_v13 = vsel %vm19257_vm10, 1.0, %v18974_v23  ;;  %v727_v27 = vsel %vm19259_vm14, 1.0, %v18974_v23  ;;  %vm19260_vm4 = vcmp.eq.s32.totalorder %v9536_v44, %v8460_v32  ;;  %vm19261_vm6 = vcmp.eq.s32.totalorder %v9533_v41, %v8463_v33 }
 0x1af   :  { %19255 = vst [vmem:[#allocation206_spill] sm:$0xff] %v10314_v34  ;;  %19256 = vst [vmem:[#allocation207_spill] sm:$0xff] %v10316_v45  ;;  %v734_v61 = vsel %vm19260_vm4, 1.0, %v18974_v23  ;;  %v728_v21 = vsel %vm19261_vm6, 1.0, %v18974_v23  ;;  %vm19262_vm0 = vcmp.eq.s32.totalorder %v9536_v44, %v8454_v29  ;;  %vm19263_vm10 = vcmp.eq.s32.totalorder %v9533_v41, %v8457_v31 }
 0x1b0   :  { %19258 = vst [vmem:[#allocation208_spill] sm:$0xff] %v10322_v52  ;;  %v735_v43 = vsel %vm19262_vm0, 1.0, %v18974_v23  ;;  %v729_v16 = vsel %vm19263_vm10, 1.0, %v18974_v23  ;;  %vm19264_vm14 = vcmp.eq.s32.totalorder %v9536_v44, %v8457_v31  ;;  %v10351_v26 = vsub.f32 %v726_v13, %v726_v13 }
 0x1b1   :  { %v737_v63 = vsel %vm19264_vm14, 1.0, %v18974_v23  ;;  %vm19266_vm4 = vcmp.eq.s32.totalorder %v9536_v44, %v8463_v33  ;;  %v10358_v7 = vsub.f32 %v727_v27, %v727_v27  ;;  %v10360_v41 = vsub.f32 %v734_v61, %v734_v61 }
 0x1b2   :  { %19265 = vst [vmem:[#allocation209_spill] sm:$0xff] %v10351_v26  ;;  %v736_v11 = vsel %vm19266_vm4, 1.0, %v18974_v23  ;;  %v10362_v10 = vsub.f32 %v728_v21, %v728_v21  ;;  %v10364_v19 = vsub.f32 %v735_v43, %v735_v43  ;;  %v10366_v55 = vsub.f32 %v729_v16, %v729_v16 }
 0x1b3   :  { %19267 = vst [vmem:[#allocation210_spill] sm:$0xff] %v10358_v7  ;;  %19268 = vst [vmem:[#allocation211_spill] sm:$0xff] %v10360_v41  ;;  %vm19272_vm6 = vcmp.eq.s32.totalorder %v9590_v50, %v8454_v29  ;;  %vm19273_vm0 = vcmp.eq.s32.totalorder %v9593_v14, %v8454_v29  ;;  %v10376_v27 = vsub.f32 %v737_v63, %v737_v63  ;;  %v19293_v41 = vand.u32 4294901760, %v9369_v59 }
 0x1b4   :  { %19269 = vst [vmem:[#allocation212_spill] sm:$0xff] %v10362_v10  ;;  %19270 = vst [vmem:[#allocation213_spill] sm:$0xff] %v10364_v19  ;;  %v743_v13 = vsel %vm19272_vm6, 1.0, %v18974_v23  ;;  %v751_v8 = vsel %vm19273_vm0, 1.0, %v18974_v23  ;;  %v10378_v61 = vsub.f32 %v736_v11, %v736_v11  ;;  %vm19276_vm10 = vcmp.eq.s32.totalorder %v9590_v50, %v8457_v31 }
 0x1b5   :  { %19271 = vst [vmem:[#allocation214_spill] sm:$0xff] %v10366_v55  ;;  %19274 = vst [vmem:[#allocation215_spill] sm:$0xff] %v10376_v27  ;;  %v745_v16 = vsel %vm19276_vm10, 1.0, %v18974_v23  ;;  %vm19277_vm14 = vcmp.eq.s32.totalorder %v9593_v14, %v8457_v31  ;;  %vm19278_vm4 = vcmp.eq.s32.totalorder %v9590_v50, %v8460_v32  ;;  %v17832_v11 = vand.u32 4294901760, %v9305_v9 }
 0x1b6   :  { %19275 = vst [vmem:[#allocation216_spill] sm:$0xff] %v10378_v61  ;;  %v753_v21 = vsel %vm19277_vm14, 1.0, %v18974_v23  ;;  %v742_v63 = vsel %vm19278_vm4, 1.0, %v18974_v23  ;;  %v10397_v61 = vsub.f32 %v743_v13, %v743_v13  ;;  %v10399_v17 = vsub.f32 %v751_v8, %v751_v8 }
 0x1b7   :  { %v10401_v58 = vsub.f32 %v745_v16, %v745_v16  ;;  %v10403_v43 = vsub.f32 %v753_v21, %v753_v21  ;;  %vm19283_vm6 = vcmp.eq.s32.totalorder %v9593_v14, %v8460_v32  ;;  %v10413_v45 = vsub.f32 %v742_v63, %v742_v63 }
 0x1b8   :  { %19279 = vst [vmem:[#allocation217_spill] sm:$0xff] %v10397_v61  ;;  %19280 = vst [vmem:[#allocation218_spill] sm:$0xff] %v10399_v17  ;;  %v10411_v44 = vsel %vm19283_vm6, 1.0, %v18974_v23  ;;  %vm19286_vm0 = vcmp.eq.s32.totalorder %v9785_v47, %v8454_v29  ;;  %vm19287_vm10 = vcmp.eq.s32.totalorder %v9788_v39, %v8454_v29  ;;  %vm19288_vm14 = vcmp.eq.s32.totalorder %v9785_v47, %v8457_v31 }
 0x1b9   :  { %19281 = vst [vmem:[#allocation219_spill] sm:$0xff] %v10401_v58  ;;  %19282 = vst [vmem:[#allocation220_spill] sm:$0xff] %v10403_v43  ;;  %v759_v8 = vsel %vm19286_vm0, 1.0, %v18974_v23  ;;  %v767_v13 = vsel %vm19287_vm10, 1.0, %v18974_v23  ;;  %v761_v16 = vsel %vm19288_vm14, 1.0, %v18974_v23  ;;  %vm19289_vm4 = vcmp.eq.s32.totalorder %v9788_v39, %v8457_v31 }
 0x1ba   :  { %19284 = vst [vmem:[#allocation221_spill] sm:$0xff] %v10411_v44  ;;  %19285 = vst [vmem:[#allocation222_spill] sm:$0xff] %v10413_v45  ;;  %v769_v21 = vsel %vm19289_vm4, 1.0, %v18974_v23  ;;  %v893_v63 = vsub.f32 %v9305_v9, %v17832_v11  ;;  %v903_v15 = vsub.f32 %v9384_v51, %v19290_v24  ;;  %vm19291_vm6 = vcmp.eq.s32.totalorder %v9848_v5, %v8454_v29 }
 0x1bb   :  { %v775_v26 = vsel %vm19291_vm6, 1.0, %v18974_v23  ;;  %vm19292_vm0 = vcmp.eq.s32.totalorder %v9851_v56, %v8454_v29  ;;  %v898_v39 = vsub.f32 %v9369_v59, %v19293_v41  ;;  %v19294_v11 = vand.u32 4294901760, %v9371_v57 }
 0x1bc   :  { %v783_v10 = vsel %vm19292_vm0, 1.0, %v18974_v23  ;;  %v10451_v32 = vsub.f32 %v759_v8, %v759_v8  ;;  %vm19296_vm10 = vcmp.eq.s32.totalorder %v9848_v5, %v8457_v31  ;;  %v19297_v51 = vand.u32 4294901760, %v9420_v40 }
 0x1bd   :  { %v908_v9 = vsub.f32 %v9371_v57, %v19294_v11  ;;  %v777_v24 = vsel %vm19296_vm10, 1.0, %v18974_v23  ;;  %v19298_v47 = vand.u32 4294901760, %v9422_v4  ;;  %v10463_v41 = vsub.f32 %v767_v13, %v767_v13 }
 0x1be   :  { %19295 = vst [vmem:[#allocation223_spill] sm:$0xff] %v10451_v32  ;;  %v1793_v29 = vsub.f32 %v9420_v40, %v19297_v51  ;;  %v10465_v59 = vsub.f32 %v761_v16, %v761_v16  ;;  %v10467_v11 = vsub.f32 %v769_v21, %v769_v21  ;;  %vm19302_vm14 = vcmp.eq.s32.totalorder %v9851_v56, %v8457_v31 }
 0x1bf   :  { %v1803_v45 = vsub.f32 %v9422_v4, %v19298_v47  ;;  %19299 = vst [vmem:[#allocation224_spill] sm:$0xff] %v10463_v41  ;;  %v785_v8 = vsel %vm19302_vm14, 1.0, %v18974_v23  ;;  %v10473_v57 = vsub.f32 %v775_v26, %v775_v26  ;;  %v10475_v5 = vsub.f32 %v783_v10, %v783_v10 }
 0x1c0   :  { %19300 = vst [vmem:[#allocation225_spill] sm:$0xff] %v10465_v59  ;;  %19301 = vst [vmem:[#allocation226_spill] sm:$0xff] %v10467_v11  ;;  %v894_v51 = vand.u32 4294901760, %v893_v63  ;;  %v904_v40 = vand.u32 4294901760, %v903_v15  ;;  %v10477_v44 = vsub.f32 %v777_v24, %v777_v24  ;;  %v899_v47 = vand.u32 4294901760, %v898_v39 }
 0x1c1   :  { %19303 = vst [vmem:[#allocation227_spill] sm:$0xff] %v10473_v57  ;;  %19304 = vst [vmem:[#allocation228_spill] sm:$0xff] %v10475_v5  ;;  %v909_v13 = vand.u32 4294901760, %v908_v9  ;;  %v19306_v16 = vand.u32 4294901760, %v9436_v49  ;;  %v1794_v4 = vand.u32 4294901760, %v1793_v29  ;;  %v1804_v14 = vand.u32 4294901760, %v1803_v45 }
 0x1c2   :  { %19305 = vst [vmem:[#allocation229_spill] sm:$0xff] %v10477_v44  ;;  %v19307_v33 = vand.u32 4294901760, %v9438_v0  ;;  %v10486_v10 = vsub.f32 %v785_v8, %v785_v8  ;;  %v19309_v9 = vand.u32 4294901760, %v9250_v25  ;;  %v19310_v24 = vand.u32 4294901760, %v9286_v20 }
 0x1c3   :  { %v1798_v21 = vsub.f32 %v9436_v49, %v19306_v16  ;;  %v19311_v45 = vand.u32 4294901760, %v9291_v30  ;;  %v10503_v8 = vpack.c.bf16 %v904_v40, %v894_v51  ;;  %v17858_v15 = vand.u32 4294901760, %v9542_v37 }
 0x1c4   :  { %v1808_v31 = vsub.f32 %v9438_v0, %v19307_v33  ;;  %19308 = vst [vmem:[#allocation230_spill] sm:$0xff] %v10486_v10  ;;  %v10495_v29 = vpack.c.bf16 %v19310_v24, %v19309_v9  ;;  %v19312_v33 = vand.u32 4294901760, %v9329_v62  ;;  %v10506_v26 = vpack.c.bf16 %v909_v13, %v899_v47 }
 0x1c5   :  { %v1799_v63 = vand.u32 4294901760, %v1798_v21  ;;  %v19313_v39 = vand.u32 4294901760, %v10168_v3  ;;  %v19314_v20 = vand.u32 4294901760, %v10170_v22  ;;  %v10514_v30 = vpack.c.bf16 %v1804_v14, %v1794_v4 }
 0x1c6   :  { %v10501_v16 = vpack.c.bf16 %v19312_v33, %v19311_v45  ;;  %v1809_v62 = vand.u32 4294901760, %v1808_v31  ;;  %v19315_v24 = vand.u32 4294901760, %v9538_v46  ;;  %v19316_v47 = vand.u32 4294901760, %v9540_v38  ;;  %v19318_v33 = vld [vmem:[#allocation105_spill] sm:$0xff] }
 0x1c7   :  { %v1933_v25 = vsub.f32 %v10168_v3, %v19313_v39  ;;  %v1943_v9 = vsub.f32 %v10170_v22, %v19314_v20  ;;  %v17866_v39 = vand.u32 4294901760, %v10204_v48  ;;  %v1813_v4 = vsub.f32 %v9542_v37, %v17858_v15 }
 0x1c8   :  { %v913_v40 = vsub.f32 %v9538_v46, %v19315_v24  ;;  %v923_v13 = vsub.f32 %v9540_v38, %v19316_v47  ;;  %v19317_v14 = vand.u32 4294901760, %v9507_v42  ;;  %v19319_v20 = vand.u32 4294901760, %v19318_v33 }
 0x1c9   :  { %v1934_v21 = vand.u32 4294901760, %v1933_v25  ;;  %v1944_v45 = vand.u32 4294901760, %v1943_v9  ;;  %v17876_v51 = vand.u32 4294901760, %v10208_v2  ;;  %v1053_v25 = vsub.f32 %v10204_v48, %v17866_v39 }
 0x1ca   :  { %v918_v31 = vsub.f32 %v9507_v42, %v19317_v14  ;;  %v928_v24 = vsub.f32 %v19318_v33, %v19319_v20  ;;  %v17881_v9 = vand.u32 4294901760, %v10210_v6  ;;  %v17884_v47 = vand.u32 4294901760, %v10218_v28  ;;  %v19322_v42 = vld [vmem:[#allocation106_spill] sm:$0xff] }
 0x1cb   :  { %v10534_v46 = vpack.c.bf16 %v1944_v45, %v1934_v21  ;;  %v914_v15 = vand.u32 4294901760, %v913_v40  ;;  %v19321_v37 = vand.u32 4294901760, %v9544_v35  ;;  %v19323_v38 = vand.u32 4294901760, %v19322_v42 }
 0x1cc   :  { %v1063_v21 = vsub.f32 %v10208_v2, %v17876_v51  ;;  %v924_v45 = vand.u32 4294901760, %v923_v13  ;;  %v1054_v33 = vand.u32 4294901760, %v1053_v25  ;;  %v1953_v39 = vsub.f32 %v10210_v6, %v17881_v9  ;;  %v19326_v2 = vld [vmem:[#allocation122_spill] sm:$0xff] }
 0x1cd   :  { %19320 = vst [vmem:[#allocation231_spill] sm:$0xff] %v10534_v46  ;;  %v1823_v14 = vsub.f32 %v9544_v35, %v19321_v37  ;;  %v1818_v20 = vsub.f32 %v19322_v42, %v19323_v38  ;;  %v1963_v40 = vsub.f32 %v10218_v28, %v17884_v47  ;;  %v919_v0 = vand.u32 4294901760, %v918_v31  ;;  %v19324_v35 = vld [vmem:[#allocation108_spill] sm:$0xff]  ;;  %v19433_v28 = vld [vmem:[#allocation175_spill] sm:$0xff] }
 0x1ce   :  { %v929_v37 = vand.u32 4294901760, %v928_v24  ;;  %v19325_v49 = vand.u32 4294901760, %v19324_v35  ;;  %v1064_v42 = vand.u32 4294901760, %v1063_v21  ;;  %v1814_v56 = vand.u32 4294901760, %v1813_v4 }
 0x1cf   :  { %v1954_v46 = vand.u32 4294901760, %v1953_v39  ;;  %v1964_v51 = vand.u32 4294901760, %v1963_v40  ;;  %v17887_v13 = vand.u32 4294901760, %v10254_v54  ;;  %v1824_v25 = vand.u32 4294901760, %v1823_v14 }
 0x1d0   :  { %v1828_v38 = vsub.f32 %v19324_v35, %v19325_v49  ;;  %v17890_v48 = vand.u32 4294901760, %v19326_v2  ;;  %v10561_v9 = vpack.c.bf16 %v1064_v42, %v1054_v33  ;;  %v17885_v6 = vand.u32 4294901760, %v10256_v12  ;;  %v19331_v35 = vld [vmem:[#allocation127_spill] sm:$0xff] }
 0x1d1   :  { %v10564_v47 = vpack.c.bf16 %v1964_v51, %v1954_v46  ;;  %v1073_v31 = vsub.f32 %v10254_v54, %v17887_v13  ;;  %v17886_v49 = vand.u32 4294901760, %v10272_v36  ;;  %v17889_v39 = vand.u32 4294901760, %v10274_v18  ;;  %v19336_v13 = vld [vmem:[#allocation125_spill] sm:$0xff] }
 0x1d2   :  { %19327 = vst [vmem:[#allocation232_spill] sm:$0xff] %v10561_v9  ;;  %v10571_v4 = vpack.c.bf16 %v1809_v62, %v1799_v63  ;;  %v10573_v24 = vpack.c.bf16 %v924_v45, %v914_v15  ;;  %v1819_v14 = vand.u32 4294901760, %v1818_v20  ;;  %v1083_v42 = vsub.f32 %v10256_v12, %v17885_v6  ;;  %v19329_v62 = vld [vmem:[#allocation123_spill] sm:$0xff]  ;;  %v189_v6 = vpop.xlane.xlu1 %188 }
 0x1d3   :  { %19328 = vst [vmem:[#allocation233_spill] sm:$0xff] %v10564_v47  ;;  %v10578_v33 = vpack.c.bf16 %v929_v37, %v919_v0  ;;  %v1074_v46 = vand.u32 4294901760, %v1073_v31  ;;  %v1973_v51 = vsub.f32 %v10272_v36, %v17886_v49  ;;  %v1983_v21 = vsub.f32 %v10274_v18, %v17889_v39  ;;  %v19330_v49 = vld [vmem:[#allocation124_spill] sm:$0xff] }
 0x1d4   :  { %v10586_v63 = vpack.c.bf16 %v1824_v25, %v1814_v56  ;;  %v1829_v15 = vand.u32 4294901760, %v1828_v38  ;;  %v17893_v20 = vand.u32 4294901760, %v19329_v62  ;;  %v1084_v45 = vand.u32 4294901760, %v1083_v42  ;;  %v19431_v18 = vld [vmem:[#allocation172_spill] sm:$0xff] }
 0x1d5   :  { %v933_v0 = vsub.f32 %v19326_v2, %v17890_v48  ;;  %v1974_v40 = vand.u32 4294901760, %v1973_v51  ;;  %v1984_v37 = vand.u32 4294901760, %v1983_v21  ;;  %v17891_v31 = vand.u32 4294901760, %v10308_v60 }
 0x1d6   :  { %v10595_v39 = vpack.c.bf16 %v1084_v45, %v1074_v46  ;;  %v17895_v56 = vand.u32 4294901760, %v10312_v1  ;;  %v190_v38 = vmul.f32 0.00390625, %v189_v6  ;;  %v17897_v51 = vand.u32 4294901760, %v10314_v34 }
 0x1d7   :  { %v10598_v25 = vpack.c.bf16 %v1984_v37, %v1974_v40  ;;  %v1093_v42 = vsub.f32 %v10308_v60, %v17891_v31  ;;  %v10604_v21 = vpack.c.bf16 %v1829_v15, %v1819_v14  ;;  %v943_v48 = vsub.f32 %v19329_v62, %v17893_v20  ;;  %v19334_v40 = vld [vmem:[#allocation119_spill] sm:$0xff] }
 0x1d8   :  { %19332 = vst [vmem:[#allocation234_spill] sm:$0xff] %v10595_v39  ;;  %v1103_v46 = vsub.f32 %v10312_v1, %v17895_v56  ;;  %v17899_v6 = vand.u32 4294901760, %v10322_v52  ;;  %v191_v45 = vadd.f32 1e-05, %v190_v38  ;;  %v19335_v37 = vand.u32 4294901760, %v19334_v40  ;;  %v19428_v60 = vld [vmem:[#allocation179_spill] sm:$0xff] }
 0x1d9   :  { %19333 = vst [vmem:[#allocation235_spill] sm:$0xff] %v10598_v25  ;;  %v1094_v31 = vand.u32 4294901760, %v1093_v42  ;;  %v1993_v14 = vsub.f32 %v10314_v34, %v17897_v51  ;;  %v934_v15 = vand.u32 4294901760, %v933_v0  ;;  %v19337_v2 = vand.u32 4294901760, %v19336_v13  ;;  %v19340_v0 = vld [vmem:[#allocation128_spill] sm:$0xff] }
 0x1da   :  { %v938_v47 = vsub.f32 %v19334_v40, %v19335_v37  ;;  %v1104_v62 = vand.u32 4294901760, %v1103_v46  ;;  %v2003_v56 = vsub.f32 %v10322_v52, %v17899_v6  ;;  %8266 = vrsqrt.f32 %v191_v45 }
 0x1db   :  { %v948_v20 = vsub.f32 %v19336_v13, %v19337_v2  ;;  %v19338_v38 = vand.u32 4294901760, %v19330_v49  ;;  %v19339_v42 = vand.u32 4294901760, %v19331_v35  ;;  %v1994_v51 = vand.u32 4294901760, %v1993_v14 }
 0x1dc   :  { %v19341_v25 = vand.u32 4294901760, %v19340_v0  ;;  %v10634_v2 = vpack.c.bf16 %v1104_v62, %v1094_v31  ;;  %v2004_v46 = vand.u32 4294901760, %v2003_v56  ;;  %v17903_v13 = vand.u32 4294901760, %v10358_v7  ;;  %v19344_v31 = vld [vmem:[#allocation129_spill] sm:$0xff] }
 0x1dd   :  { %v1833_v37 = vsub.f32 %v19330_v49, %v19338_v38  ;;  %v1843_v40 = vsub.f32 %v19331_v35, %v19339_v42  ;;  %v944_v6 = vand.u32 4294901760, %v943_v48  ;;  %v939_v45 = vand.u32 4294901760, %v938_v47 }
 0x1de   :  { %v1838_v39 = vsub.f32 %v19340_v0, %v19341_v25  ;;  %19342 = vst [vmem:[#allocation236_spill] sm:$0xff] %v10634_v2  ;;  %v17907_v9 = vand.u32 4294901760, %v10364_v19  ;;  %v17908_v38 = vand.u32 4294901760, %v10366_v55  ;;  %v949_v49 = vand.u32 4294901760, %v948_v20  ;;  %v19346_v0 = vld [vmem:[#allocation133_spill] sm:$0xff] }
 0x1df   :  { %v10639_v52 = vpack.c.bf16 %v2004_v46, %v1994_v51  ;;  %v1113_v14 = vsub.f32 %v10358_v7, %v17903_v13  ;;  %v17911_v25 = vand.u32 4294901760, %v10376_v27  ;;  %v1834_v62 = vand.u32 4294901760, %v1833_v37 }
 0x1e0   :  { %v19345_v56 = vand.u32 4294901760, %v19344_v31  ;;  %v1123_v48 = vsub.f32 %v10364_v19, %v17907_v9  ;;  %v2013_v47 = vsub.f32 %v10366_v55, %v17908_v38  ;;  %v1844_v20 = vand.u32 4294901760, %v1843_v40 }
 0x1e1   :  { %19343 = vst [vmem:[#allocation237_spill] sm:$0xff] %v10639_v52  ;;  %v1839_v51 = vand.u32 4294901760, %v1838_v39  ;;  %v1114_v46 = vand.u32 4294901760, %v1113_v14  ;;  %v2023_v13 = vsub.f32 %v10376_v27, %v17911_v25  ;;  %v10657_v37 = vpack.c.bf16 %v944_v6, %v934_v15  ;;  %v19347_v39 = vld [vmem:[#allocation136_spill] sm:$0xff] }
 0x1e2   :  { %v1848_v42 = vsub.f32 %v19344_v31, %v19345_v56  ;;  %v17918_v35 = vand.u32 4294901760, %v19346_v0  ;;  %v1124_v56 = vand.u32 4294901760, %v1123_v48  ;;  %v2014_v31 = vand.u32 4294901760, %v2013_v47 }
 0x1e3   :  { %v10660_v52 = vpack.c.bf16 %v949_v49, %v939_v45  ;;  %v2024_v9 = vand.u32 4294901760, %v2023_v13  ;;  %v17912_v2 = vand.u32 4294901760, %v10397_v61  ;;  %v17913_v38 = vand.u32 4294901760, %v10399_v17 }
 0x1e4   :  { %v1849_v40 = vand.u32 4294901760, %v1848_v42  ;;  %v10665_v55 = vpack.c.bf16 %v1124_v56, %v1114_v46  ;;  %v17922_v25 = vand.u32 4294901760, %v10401_v58  ;;  %v8267_v45 = vpop.eup %8266  ;;  %v198_v42 = vpop.permute.xlu0 %197  ;;  %v10677_v48 = vpack.c.bf16 %v1844_v20, %v1834_v62  ;;  %v19351_v56 = vld [vmem:[#allocation61_spill] sm:$0xff]  ;;  %v19353_v20 = vld [vmem:[#allocation140_spill] sm:$0xff] }
 0x1e5   :  { %v10668_v6 = vpack.c.bf16 %v2024_v9, %v2014_v31  ;;  %v1133_v15 = vsub.f32 %v10397_v61, %v17912_v2  ;;  %v1143_v13 = vsub.f32 %v10399_v17, %v17913_v38  ;;  %v10682_v47 = vsub.f32 %v19346_v0, %v17918_v35  ;;  %v19350_v9 = vld [vmem:[#allocation139_spill] sm:$0xff]  ;;  %v19352_v38 = vld [vmem:[#allocation62_spill] sm:$0xff] }
 0x1e6   :  { %19348 = vst [vmem:[#allocation238_spill] sm:$0xff] %v10665_v55  ;;  %v2033_v46 = vsub.f32 %v10401_v58, %v17922_v25  ;;  %v193_v2 = vmul.f32 %v8267_v45, %v19351_v56  ;;  %v194_v14 = vmul.f32 %v8267_v45, %v19352_v38  ;;  %v205_v55 = vpop.permute.xlu1 %204  ;;  %v10690_v62 = vpack.c.bf16 %v1849_v40, %v1839_v51  ;;  %v19357_v38 = vld [vmem:[#allocation131_spill] sm:$0xff]  ;;  %v19359_v40 = vld [vmem:[#allocation134_spill] sm:$0xff] }
 0x1e7   :  { %19349 = vst [vmem:[#allocation239_spill] sm:$0xff] %v10668_v6  ;;  %v1134_v49 = vand.u32 4294901760, %v1133_v15  ;;  %v1144_v6 = vand.u32 4294901760, %v1143_v13  ;;  %v19354_v35 = vand.u32 4294901760, %v10403_v43  ;;  %v19355_v25 = vand.u32 4294901760, %v19347_v39 }
 0x1e8   :  { %v2034_v61 = vand.u32 4294901760, %v2033_v46  ;;  %v200_v0 = vmul.f32 %v198_v42, %v193_v2  ;;  %v201_v27 = vmul.f32 %v198_v42, %v194_v14  ;;  %v19358_v15 = vand.u32 4294901760, %v19357_v38 }
 0x1e9   :  { %v2043_v31 = vsub.f32 %v10403_v43, %v19354_v35  ;;  %v963_v56 = vsub.f32 %v19347_v39, %v19355_v25  ;;  %v10699_v58 = vpack.c.bf16 %v1144_v6, %v1134_v49  ;;  %v19360_v13 = vand.u32 4294901760, %v19359_v40 }
 0x1ea   :  { %v10704_v51 = vsub.f32 %v19357_v38, %v19358_v15  ;;  %v17925_v35 = vand.u32 4294901760, %v10451_v32  ;;  %v207_v2 = vadd.f32 %v205_v55, %v200_v0  ;;  %v208_v14 = vadd.f32 %v205_v55, %v201_v27 }
 0x1eb   :  { %19356 = vst [vmem:[#allocation61_spill] sm:$0xff] %v10699_v58  ;;  %v10709_v45 = vsub.f32 %v19359_v40, %v19360_v13  ;;  %v2044_v46 = vand.u32 4294901760, %v2043_v31  ;;  %v954_v42 = vand.u32 4294901760, %v10682_v47  ;;  %v17927_v25 = vand.u32 4294901760, %v10463_v41 }
 0x1ec   :  { %v19361_v6 = vand.u32 4294901760, %v19350_v9  ;;  %v1153_v13 = vsub.f32 %v10451_v32, %v17925_v35  ;;  %v17934_v31 = vand.u32 4294901760, %v10465_v59  ;;  %v209_v17 = vmax.f32 %v207_v2, 0.0 }
 0x1ed   :  { %v10719_v15 = vpack.c.bf16 %v2044_v46, %v2034_v61  ;;  %v210_v0 = vmax.f32 %v208_v14, 0.0  ;;  %v1163_v55 = vsub.f32 %v10463_v41, %v17927_v25  ;;  %v17935_v27 = vand.u32 4294901760, %v10467_v11  ;;  %v19388_v41 = vld [vmem:[#allocation163_spill] sm:$0xff] }
 0x1ee   :  { %v10717_v49 = vsub.f32 %v19350_v9, %v19361_v6  ;;  %v19363_v47 = vand.u32 4294901760, %v19353_v20  ;;  %v19364_v61 = vand.u32 4294901760, %v9795_v53  ;;  %v1154_v35 = vand.u32 4294901760, %v1153_v13 }
 0x1ef   :  { %19362 = vst [vmem:[#allocation62_spill] sm:$0xff] %v10719_v15  ;;  %v2053_v2 = vsub.f32 %v10465_v59, %v17934_v31  ;;  %v211_v14 = vmin.f32 %v209_v17, 6.0  ;;  %v212_v40 = vmin.f32 %v210_v0, 6.0  ;;  %v1164_v25 = vand.u32 4294901760, %v1163_v55  ;;  %v19368_v55 = vld [vmem:[#allocation142_spill] sm:$0xff] }
 0x1f0   :  { %v10732_v6 = vsub.f32 %v19353_v20, %v19363_v47  ;;  %v10737_v46 = vsub.f32 %v9795_v53, %v19364_v61  ;;  %v2063_v38 = vsub.f32 %v10467_v11, %v17935_v27  ;;  %v964_v9 = vand.u32 4294901760, %v963_v56  ;;  %v19393_v59 = vld [vmem:[#allocation150_spill] sm:$0xff] }
 0x1f1   :  { %v959_v47 = vand.u32 4294901760, %v10704_v51  ;;  %v969_v20 = vand.u32 4294901760, %v10709_v45  ;;  %v2054_v39 = vand.u32 4294901760, %v2053_v2  ;;  %v10747_v61 = vand.u32 4294901760, %v212_v40 }
 0x1f2   :  { %v10749_v13 = vand.u32 4294901760, %v211_v14  ;;  %v10751_v53 = vpack.c.bf16 %v1164_v25, %v1154_v35  ;;  %v2064_v31 = vand.u32 4294901760, %v2063_v38  ;;  %v1854_v17 = vand.u32 4294901760, %v10717_v49  ;;  %v19373_v25 = vld [vmem:[#allocation153_spill] sm:$0xff]  ;;  %v19377_v49 = vld [vmem:[#allocation156_spill] sm:$0xff] }
 0x1f3   :  { %19365 = vst [vmem:[#allocation240_spill] sm:$0xff] %v10747_v61  ;;  %v1864_v0 = vand.u32 4294901760, %v10732_v6  ;;  %v19369_v15 = vand.u32 4294901760, %v19368_v55  ;;  %v17939_v51 = vand.u32 4294901760, %v10473_v57  ;;  %v10762_v45 = vsub.f32 %v212_v40, %v10747_v61  ;;  %v19374_v6 = vld [vmem:[#allocation154_spill] sm:$0xff] }
 0x1f4   :  { %19366 = vst [vmem:[#allocation241_spill] sm:$0xff] %v10749_v13  ;;  %19367 = vst [vmem:[#allocation242_spill] sm:$0xff] %v10751_v53  ;;  %v10765_v2 = vsub.f32 %v211_v14, %v10749_v13  ;;  %v10767_v35 = vpack.c.bf16 %v2064_v31, %v2054_v39  ;;  %v17944_v38 = vand.u32 4294901760, %v10475_v5  ;;  %v17958_v31 = vand.u32 4294901760, %v10486_v10  ;;  %v19378_v13 = vld [vmem:[#allocation157_spill] sm:$0xff] }
 0x1f5   :  { %v10758_v56 = vsub.f32 %v19368_v55, %v19369_v15  ;;  %19370 = vst [vmem:[#allocation243_spill] sm:$0xff] %v10762_v45  ;;  %v1173_v15 = vsub.f32 %v10473_v57, %v17939_v51  ;;  %v17947_v55 = vand.u32 4294901760, %v10477_v44  ;;  %v10777_v40 = vand.u32 4294901760, %v10762_v45 }
 0x1f6   :  { %19371 = vst [vmem:[#allocation244_spill] sm:$0xff] %v10765_v2  ;;  %19372 = vst [vmem:[#allocation245_spill] sm:$0xff] %v10767_v35  ;;  %v10780_v14 = vand.u32 4294901760, %v10765_v2  ;;  %v1183_v39 = vsub.f32 %v10475_v5, %v17944_v38  ;;  %v2083_v38 = vsub.f32 %v10486_v10, %v17958_v31  ;;  %v10798_v5 = vpack.c.bf16 %v964_v9, %v954_v42  ;;  %v19385_v42 = vld [vmem:[#allocation148_spill] sm:$0xff] }
 0x1f7   :  { %19375 = vst [vmem:[#allocation246_spill] sm:$0xff] %v10777_v40  ;;  %v1174_v53 = vand.u32 4294901760, %v1173_v15  ;;  %v2073_v51 = vsub.f32 %v10477_v44, %v17947_v55  ;;  %v857_v58 = vsub.f32 %v10762_v45, %v10777_v40  ;;  %v19379_v35 = vand.u32 4294901760, %v19373_v25 }
 0x1f8   :  { %19376 = vst [vmem:[#allocation247_spill] sm:$0xff] %v10780_v14  ;;  %v863_v57 = vsub.f32 %v10765_v2, %v10780_v14  ;;  %v1184_v11 = vand.u32 4294901760, %v1183_v39  ;;  %v19380_v27 = vand.u32 4294901760, %v19374_v6  ;;  %v2084_v14 = vand.u32 4294901760, %v2083_v38  ;;  %v19383_v2 = vld [vmem:[#allocation147_spill] sm:$0xff] }
 0x1f9   :  { %v973_v15 = vsub.f32 %v19373_v25, %v19379_v35  ;;  %v2074_v44 = vand.u32 4294901760, %v2073_v51  ;;  %v10806_v40 = vand.u32 4294901760, %v857_v58  ;;  %v19384_v31 = vand.u32 4294901760, %v19383_v2  ;;  %v19387_v25 = vld [vmem:[#allocation160_spill] sm:$0xff]  ;;  %v19389_v58 = vld [vmem:[#allocation15_spill] sm:$0xff] }
 0x1fa   :  { %v983_v55 = vsub.f32 %v19374_v6, %v19380_v27  ;;  %v10808_v45 = vand.u32 4294901760, %v863_v57  ;;  %v10810_v39 = vpack.c.bf16 %v1184_v11, %v1174_v53  ;;  %v19386_v10 = vand.u32 4294901760, %v19385_v42 }
 0x1fb   :  { %19381 = vst [vmem:[#allocation156_spill] sm:$0xff] %v10806_v40  ;;  %v978_v9 = vsub.f32 %v19383_v2, %v19384_v31  ;;  %vm19390_vm4 = vcmp.eq.s32.totalorder %v9590_v50, %v19389_v58  ;;  %859 = vmatprep.mubr.f32.mxu0 %v10806_v40  ;;  %1759 = vmatprep.mubr.f32.mxu1 %v10806_v40  ;;  %v19391_v53 = vand.u32 4294901760, %v19377_v49  ;;  %v1859_v27 = vand.u32 4294901760, %v10737_v46 }
 0x1fc   :  { %19382 = vst [vmem:[#allocation248_spill] sm:$0xff] %v10808_v45  ;;  %v988_v35 = vsub.f32 %v19385_v42, %v19386_v10  ;;  %v10824_v57 = vsel %vm19390_vm4, 1.0, %v18974_v23  ;;  %v19392_v10 = vand.u32 4294901760, %v19378_v13  ;;  %v10834_v38 = vpack.c.bf16 %v2084_v14, %v2074_v44  ;;  %865 = vmatmul.mubr.f32.vlgmr.msra.gmra.mrb[0].mxu0 %v10808_v45  ;;  %1765 = vmatmul.mubr.f32.vlgmr.msra.gmra.mrb[0].mxu1 %v10808_v45  ;;  %v19395_v42 = vld [vmem:[#allocation151_spill] sm:$0xff] }
 0x1fd   :  { %v1873_v11 = vsub.f32 %v19377_v49, %v19391_v53  ;;  %v10838_v31 = vpack.c.bf16 %v969_v20, %v959_v47  ;;  %v19394_v40 = vand.u32 4294901760, %v19393_v59  ;;  %v19396_v53 = vand.u32 4294901760, %v19395_v42  ;;  %6706 = vmatpush1.bf16.msra.mxu0 %v10495_v29  ;;  %7090 = vmatpush1.bf16.msra.mxu1 %v10501_v16  ;;  %v19397_v20 = vld [vmem:[#allocation164_spill] sm:$0xff]  ;;  %v19400_v16 = vld [vmem:[#allocation165_spill] sm:$0xff] }
 0x1fe   :  { %v1883_v51 = vsub.f32 %v19378_v13, %v19392_v10  ;;  %v1869_v44 = vand.u32 4294901760, %v10758_v56  ;;  %v974_v14 = vand.u32 4294901760, %v973_v15  ;;  %v984_v10 = vand.u32 4294901760, %v983_v55  ;;  %1192 = vmatprep.mubr.f32.mxu0 %v10747_v61  ;;  %2092 = vmatprep.mubr.f32.mxu1 %v10747_v61 }
 0x1ff   :  { %v1878_v50 = vsub.f32 %v19393_v59, %v19394_v40  ;;  %v1888_v2 = vsub.f32 %v19395_v42, %v19396_v53  ;;  %v7103_v46 = vpack.c.bf16 %v1864_v0, %v1854_v17  ;;  %v19398_v40 = vand.u32 4294901760, %v19387_v25  ;;  %6708 = vmatprep.subr.bf16.mxu0 %v10503_v8  ;;  %7092 = vmatprep.subr.bf16.mxu1 %v10514_v30  ;;  %v19401_v0 = vld [vmem:[#allocation161_spill] sm:$0xff]  ;;  %v19405_v8 = vld [vmem:[#allocation118_spill] sm:$0xff] }
 0x200   :  { %v19399_v53 = vand.u32 4294901760, %v19388_v41  ;;  %v17980_v42 = vand.u32 4294901760, %v19400_v16  ;;  %v1874_v55 = vand.u32 4294901760, %v1873_v11  ;;  %v1884_v56 = vand.u32 4294901760, %v1883_v51  ;;  %v19408_v51 = vld [vmem:[#allocation167_spill] sm:$0xff] }
 0x201   :  { %v993_v45 = vsub.f32 %v19387_v25, %v19398_v40  ;;  %v979_v15 = vand.u32 4294901760, %v978_v9  ;;  %v989_v47 = vand.u32 4294901760, %v988_v35  ;;  %v1879_v61 = vand.u32 4294901760, %v1878_v50  ;;  %v19403_v25 = vld [vmem:[#allocation166_spill] sm:$0xff]  ;;  %6710 = vmatpush1.bf16.msra.mxu0 %v10506_v26  ;;  %7094 = vmatpush1.bf16.msra.mxu1 %v10571_v4 }
 0x202   :  { %v1003_v29 = vsub.f32 %v19388_v41, %v19399_v53  ;;  %v1889_v17 = vand.u32 4294901760, %v1888_v2  ;;  %v19402_v59 = vand.u32 4294901760, %v19401_v0  ;;  %v19404_v13 = vand.u32 4294901760, %v19403_v25  ;;  %6712 = vmatprep.subr.bf16.mxu0 %v10573_v24  ;;  %7096 = vmatprep.subr.bf16.mxu1 %v10586_v63 }
 0x203   :  { %vm19406_vm6 = vcmp.eq.s32.totalorder %v19405_v8, %v19389_v58  ;;  %v7105_v50 = vpack.c.bf16 %v1869_v44, %v1859_v27  ;;  %v6723_v2 = vpack.c.bf16 %v984_v10, %v974_v14  ;;  %v1903_v11 = vsub.f32 %v19400_v16, %v17980_v42  ;;  %v19410_v14 = vld [vmem:[#allocation169_spill] sm:$0xff] }
 0x204   :  { %v10865_v40 = vsub.f32 %v19401_v0, %v19402_v59  ;;  %v10870_v53 = vsub.f32 %v19403_v25, %v19404_v13  ;;  %v10876_v30 = vsel %vm19406_vm6, 1.0, %v18974_v23  ;;  %v19407_v59 = vand.u32 4294901760, %v19397_v20 }
 0x205   :  { %v994_v13 = vand.u32 4294901760, %v993_v45  ;;  %v1004_v35 = vand.u32 4294901760, %v1003_v29  ;;  %v19409_v26 = vand.u32 4294901760, %v19408_v51  ;;  %v7107_v27 = vpack.c.bf16 %v1884_v56, %v1874_v55  ;;  %v19412_v29 = vld [vmem:[#allocation168_spill] sm:$0xff]  ;;  %6714 = vmatpush1.bf16.msra.mxu0 %v10578_v33  ;;  %7098 = vmatpush1.bf16.msra.mxu1 %v10604_v21  ;;  %v19414_v55 = vld [vmem:[#allocation174_spill] sm:$0xff] }
 0x206   :  { %v1893_v9 = vsub.f32 %v19397_v20, %v19407_v59  ;;  %v10893_v44 = vpack.c.bf16 %v989_v47, %v979_v15  ;;  %v17982_v10 = vand.u32 4294901760, %v19410_v14  ;;  %v19411_v59 = vld [vmem:[#allocation173_spill] sm:$0xff]  ;;  %v10897_v8 = vpack.c.bf16 %v1889_v17, %v1879_v61  ;;  %v19415_v15 = vld [vmem:[#allocation176_spill] sm:$0xff]  ;;  %6716 = vmatprep.subr.bf16.mxu0 %v10657_v37  ;;  %7100 = vmatprep.subr.bf16.mxu1 %v10677_v48 }
 0x207   :  { %v10891_v4 = vsub.f32 %v19408_v51, %v19409_v26  ;;  %v19413_v42 = vand.u32 4294901760, %v19412_v29  ;;  %v6727_v17 = vpack.c.bf16 %v1004_v35, %v994_v13  ;;  %v1904_v45 = vand.u32 4294901760, %v1903_v11  ;;  %v19420_v13 = vld [vmem:[#allocation170_spill] sm:$0xff] }
 0x208   :  { %v1894_v47 = vand.u32 4294901760, %v1893_v9  ;;  %v1013_v21 = vsub.f32 %v19410_v14, %v17982_v10  ;;  %v19418_v9 = vand.u32 4294901760, %v19411_v59  ;;  %v19421_v35 = vand.u32 4294901760, %v19420_v13 }
 0x209   :  { %v10904_v25 = vsub.f32 %v19412_v29, %v19413_v42  ;;  %v1899_v42 = vand.u32 4294901760, %v10891_v4  ;;  %v19422_v4 = vld [vmem:[#allocation171_spill] sm:$0xff]  ;;  %6718 = vmatpush1.bf16.msra.mxu0 %v10660_v52  ;;  %7102 = vmatpush1.bf16.msra.mxu1 %v10690_v62  ;;  %v19424_v37 = vand.u32 4294901760, %v19414_v55  ;;  %v19425_v54 = vand.u32 4294901760, %v19415_v15  ;;  %v19447_v62 = vld [vmem:[#allocation177_spill] sm:$0xff] }
 0x20a   :  { %v1023_v26 = vsub.f32 %v19411_v59, %v19418_v9  ;;  %v1018_v11 = vsub.f32 %v19420_v13, %v19421_v35  ;;  %v19423_v24 = vand.u32 4294901760, %v19422_v4  ;;  %6720 = vmatprep.subr.bf16.mxu0 %v10798_v5  ;;  %7104 = vmatprep.subr.bf16.mxu1 %v7103_v46  ;;  %v19427_v9 = vld [vmem:[#allocation178_spill] sm:$0xff]  ;;  %v19432_v61 = vand.u32 4294901760, %v19431_v18  ;;  %v19449_v46 = vld [vmem:[#allocation221_spill] sm:$0xff] }
 0x20b   :  { %v1909_v48 = vand.u32 4294901760, %v10904_v25  ;;  %v1913_v35 = vsub.f32 %v19414_v55, %v19424_v37  ;;  %v19434_v63 = vand.u32 4294901760, %v19433_v28  ;;  %v7111_v12 = vpack.c.bf16 %v1904_v45, %v1894_v47 }
 0x20c   :  { %v1028_v56 = vsub.f32 %v19422_v4, %v19423_v24  ;;  %v1923_v24 = vsub.f32 %v19415_v15, %v19425_v54  ;;  %v1918_v54 = vsub.f32 %v19431_v18, %v19432_v61  ;;  %v1014_v33 = vand.u32 4294901760, %v1013_v21 }
 0x20d   :  { %v1928_v10 = vsub.f32 %v19433_v28, %v19434_v63  ;;  %6722 = vmatpush1.bf16.msra.mxu0 %v10838_v31  ;;  %7106 = vmatpush1.bf16.msra.mxu1 %v7105_v50  ;;  %v1024_v61 = vand.u32 4294901760, %v1023_v26  ;;  %v1019_v19 = vand.u32 4294901760, %v1018_v11  ;;  %v1914_v45 = vand.u32 4294901760, %v1913_v35 }
 0x20e   :  { %6724 = vmatprep.subr.bf16.mxu0 %v6723_v2  ;;  %7108 = vmatprep.subr.bf16.mxu1 %v7107_v27  ;;  %v1924_v47 = vand.u32 4294901760, %v1923_v24  ;;  %v19445_v21 = vand.u32 4294901760, %v19427_v9  ;;  %v19446_v36 = vand.u32 4294901760, %v19428_v60  ;;  %v1029_v50 = vand.u32 4294901760, %v1028_v56  ;;  %v19451_v27 = vld [vmem:[#allocation180_spill] sm:$0xff] }
 0x20f   :  { %v1919_v26 = vand.u32 4294901760, %v1918_v54  ;;  %v1929_v11 = vand.u32 4294901760, %v1928_v10  ;;  %v19448_v22 = vand.u32 4294901760, %v19447_v62  ;;  %v10985_v2 = vsub.f32 %v19449_v46, %v19449_v46  ;;  %v19457_v54 = vld [vmem:[#allocation216_spill] sm:$0xff] }
 0x210   :  { %v1033_v7 = vsub.f32 %v19427_v9, %v19445_v21  ;;  %v1043_v31 = vsub.f32 %v19428_v60, %v19446_v36  ;;  %v19452_v35 = vand.u32 4294901760, %v19451_v27  ;;  %v19453_v21 = vld [vmem:[#allocation181_spill] sm:$0xff]  ;;  %v19455_v36 = vld [vmem:[#allocation182_spill] sm:$0xff]  ;;  %v19459_v46 = vand.u32 4294901760, %v10865_v40 }
 0x211   :  { %v1038_v63 = vsub.f32 %v19447_v62, %v19448_v22  ;;  %19450 = vst [vmem:[#allocation163_spill] sm:$0xff] %v10985_v2  ;;  %v19454_v34 = vand.u32 4294901760, %v19453_v21  ;;  %v19456_v56 = vand.u32 4294901760, %v19455_v36  ;;  %v10999_v22 = vsub.f32 %v10824_v57, %v10824_v57  ;;  %6726 = vmatpush1.bf16.msra.mxu0 %v10893_v44  ;;  %7110 = vmatpush1.bf16.msra.mxu1 %v10897_v8 }
 0x212   :  { %v1048_v24 = vsub.f32 %v19451_v27, %v19452_v35  ;;  %v19460_v35 = vand.u32 4294901760, %v10870_v53  ;;  %6728 = vmatprep.subr.bf16.mxu0 %v6727_v17  ;;  %7112 = vmatprep.subr.bf16.mxu1 %v7111_v12  ;;  %v6731_v1 = vpack.c.bf16 %v1024_v61, %v1014_v33  ;;  %v1034_v32 = vand.u32 4294901760, %v1033_v7  ;;  %v19464_v17 = vld [vmem:[#allocation222_spill] sm:$0xff] }
 0x213   :  { %v1938_v5 = vsub.f32 %v19453_v21, %v19454_v34  ;;  %v1948_v10 = vsub.f32 %v19455_v36, %v19456_v56  ;;  %19458 = vst [vmem:[#allocation15_spill] sm:$0xff] %v10999_v22  ;;  %v7113_v34 = vpack.c.bf16 %v1909_v48, %v1899_v42  ;;  %v7115_v56 = vpack.c.bf16 %v1924_v47, %v1914_v45  ;;  %v19462_v36 = vld [vmem:[#allocation185_spill] sm:$0xff]  ;;  %v19465_v7 = vld [vmem:[#allocation186_spill] sm:$0xff] }
 0x214   :  { %v6729_v37 = vpack.c.bf16 %v19460_v35, %v19459_v46  ;;  %v1044_v3 = vand.u32 4294901760, %v1043_v31  ;;  %v11009_v57 = vsub.f32 %v10876_v30, %v10876_v30  ;;  %v6733_v25 = vpack.c.bf16 %v1029_v50, %v1019_v19  ;;  %v19467_v30 = vld [vmem:[#allocation188_spill] sm:$0xff]  ;;  %v19471_v31 = vld [vmem:[#allocation137_spill] sm:$0xff]  ;;  %v19472_v50 = vld [vmem:[#allocation14_spill] sm:$0xff] }
 0x215   :  { %v7117_v44 = vpack.c.bf16 %v1929_v11, %v1919_v26  ;;  %v1039_v52 = vand.u32 4294901760, %v1038_v63  ;;  %v1049_v8 = vand.u32 4294901760, %v1048_v24  ;;  %v1939_v43 = vand.u32 4294901760, %v1938_v5  ;;  %7114 = vmatpush1.bf16.msra.mxu1 %v7113_v34  ;;  %v19469_v63 = vld [vmem:[#allocation191_spill] sm:$0xff]  ;;  %v19474_v11 = vld [vmem:[#allocation193_spill] sm:$0xff]  ;;  %v19476_v46 = vld [vmem:[#allocation138_spill] sm:$0xff] }
 0x216   :  { %19461 = vst [vmem:[#allocation164_spill] sm:$0xff] %v11009_v57  ;;  %v1949_v40 = vand.u32 4294901760, %v1948_v10  ;;  %v19463_v53 = vand.u32 4294901760, %v19462_v36  ;;  %6730 = vmatpush1.bf16.msra.mxu0 %v6729_v37  ;;  %v19466_v33 = vand.u32 4294901760, %v19465_v7  ;;  %v19468_v61 = vand.u32 4294901760, %v19467_v30  ;;  %7116 = vmatprep.subr.bf16.mxu1 %v7115_v56  ;;  %v19478_v34 = vld [vmem:[#allocation196_spill] sm:$0xff] }
 0x217   :  { %v19470_v45 = vand.u32 4294901760, %v19469_v63  ;;  %vm19473_vm0 = vcmp.eq.s32.totalorder %v19471_v31, %v19472_v50  ;;  %6732 = vmatprep.subr.bf16.mxu0 %v6731_v1  ;;  %v6735_v26 = vpack.c.bf16 %v1044_v3, %v1034_v32  ;;  %v19475_v24 = vand.u32 4294901760, %v19474_v11  ;;  %v19482_v1 = vld [vmem:[#allocation198_spill] sm:$0xff]  ;;  %v19488_v3 = vld [vmem:[#allocation231_spill] sm:$0xff] }
 0x218   :  { %v1058_v42 = vsub.f32 %v19462_v36, %v19463_v53  ;;  %v1068_v48 = vsub.f32 %v19465_v7, %v19466_v33  ;;  %v1958_v19 = vsub.f32 %v19467_v30, %v19468_v61  ;;  %v758_v37 = vsel %vm19473_vm0, 1.0, %v18974_v23  ;;  %v19480_v61 = vld [vmem:[#allocation197_spill] sm:$0xff] }
 0x219   :  { %v1968_v5 = vsub.f32 %v19469_v63, %v19470_v45  ;;  %v1078_v10 = vsub.f32 %v19474_v11, %v19475_v24  ;;  %vm19477_vm10 = vcmp.eq.s32.totalorder %v19476_v46, %v19472_v50  ;;  %v19479_v53 = vand.u32 4294901760, %v19478_v34  ;;  %7118 = vmatpush1.bf16.msra.mxu1 %v7117_v44 }
 0x21a   :  { %v766_v35 = vsel %vm19477_vm10, 1.0, %v18974_v23  ;;  %v19481_v45 = vand.u32 4294901760, %v19480_v61  ;;  %v19483_v56 = vand.u32 4294901760, %v19482_v1  ;;  %vm19484_vm14 = vcmp.eq.s32.totalorder %v19471_v31, %v19389_v58  ;;  %6734 = vmatpush1.bf16.msra.mxu0 %v6733_v25  ;;  %7120 = vmatprep.subr.bf16.mxu1 %v19488_v3  ;;  %v19495_v31 = vld [vmem:[#allocation207_spill] sm:$0xff] }
 0x21b   :  { %v1088_v33 = vsub.f32 %v19478_v34, %v19479_v53  ;;  %v760_v24 = vsel %vm19484_vm14, 1.0, %v18974_v23  ;;  %v6737_v12 = vpack.c.bf16 %v1049_v8, %v1039_v52  ;;  %v7121_v11 = vpack.c.bf16 %v1949_v40, %v1939_v43  ;;  %6736 = vmatprep.subr.bf16.mxu0 %v6735_v26  ;;  %v19489_v8 = vld [vmem:[#allocation201_spill] sm:$0xff] }
 0x21c   :  { %v1978_v47 = vsub.f32 %v19480_v61, %v19481_v45  ;;  %v1988_v32 = vsub.f32 %v19482_v1, %v19483_v56  ;;  %v1059_v53 = vand.u32 4294901760, %v1058_v42  ;;  %v1069_v34 = vand.u32 4294901760, %v1068_v48 }
 0x21d   :  { %v1959_v63 = vand.u32 4294901760, %v1958_v19  ;;  %v1969_v30 = vand.u32 4294901760, %v1968_v5  ;;  %v11050_v45 = vsub.f32 %v758_v37, %v758_v37  ;;  %v11052_v61 = vsub.f32 %v766_v35, %v766_v35  ;;  %v19491_v19 = vld [vmem:[#allocation202_spill] sm:$0xff]  ;;  %v19493_v35 = vld [vmem:[#allocation204_spill] sm:$0xff]  ;;  %7122 = vmatpush1.bf16.msra.mxu1 %v7121_v11 }
 0x21e   :  { %vm19487_vm4 = vcmp.eq.s32.totalorder %v19476_v46, %v19389_v58  ;;  %v1079_v52 = vand.u32 4294901760, %v1078_v10  ;;  %v1089_v43 = vand.u32 4294901760, %v1088_v33  ;;  %v1979_v25 = vand.u32 4294901760, %v1978_v47  ;;  %6738 = vmatpush1.bf16.msra.mxu0 %v6737_v12  ;;  %v19503_v12 = vld [vmem:[#allocation233_spill] sm:$0xff] }
 0x21f   :  { %19485 = vst [vmem:[#allocation165_spill] sm:$0xff] %v11050_v45  ;;  %19486 = vst [vmem:[#allocation161_spill] sm:$0xff] %v11052_v61  ;;  %v768_v56 = vsel %vm19487_vm4, 1.0, %v18974_v23  ;;  %v1989_v44 = vand.u32 4294901760, %v1988_v32  ;;  %v19490_v40 = vand.u32 4294901760, %v19489_v8  ;;  %v11062_v48 = vsub.f32 %v760_v24, %v760_v24  ;;  %7124 = vmatprep.subr.bf16.mxu1 %v19503_v12  ;;  %v19505_v47 = vld [vmem:[#allocation209_spill] sm:$0xff] }
 0x220   :  { %v19492_v5 = vand.u32 4294901760, %v19491_v19  ;;  %v19494_v46 = vand.u32 4294901760, %v19493_v35  ;;  %v19496_v3 = vand.u32 4294901760, %v19495_v31  ;;  %v11074_v33 = vsub.f32 %v768_v56, %v768_v56  ;;  %v19502_v56 = vld [vmem:[#allocation232_spill] sm:$0xff]  ;;  %v19508_v12 = vld [vmem:[#allocation211_spill] sm:$0xff] }
 0x221   :  { %v1098_v42 = vsub.f32 %v19489_v8, %v19490_v40  ;;  %v6741_v32 = vpack.c.bf16 %v1069_v34, %v1059_v53  ;;  %v7125_v24 = vpack.c.bf16 %v1969_v30, %v1959_v63  ;;  %6740 = vmatprep.subr.bf16.mxu0 %v19502_v56  ;;  %v6745_v63 = vpack.c.bf16 %v1089_v43, %v1079_v52  ;;  %v19510_v43 = vld [vmem:[#allocation212_spill] sm:$0xff] }
 0x222   :  { %v1108_v37 = vsub.f32 %v19491_v19, %v19492_v5  ;;  %v1998_v26 = vsub.f32 %v19493_v35, %v19494_v46  ;;  %v2008_v10 = vsub.f32 %v19495_v31, %v19496_v3  ;;  %19497 = vst [vmem:[#allocation167_spill] sm:$0xff] %v11074_v33  ;;  %v19498_v19 = vld [vmem:[#allocation145_spill] sm:$0xff]  ;;  %v19500_v35 = vld [vmem:[#allocation146_spill] sm:$0xff]  ;;  %v7129_v11 = vpack.c.bf16 %v1989_v44, %v1979_v25 }
 0x223   :  { %vm19499_vm6 = vcmp.eq.s32.totalorder %v19498_v19, %v19472_v50  ;;  %vm19501_vm0 = vcmp.eq.s32.totalorder %v19500_v35, %v19472_v50  ;;  %vm19504_vm10 = vcmp.eq.s32.totalorder %v19498_v19, %v19389_v58  ;;  %v1099_v34 = vand.u32 4294901760, %v1098_v42  ;;  %6742 = vmatpush1.bf16.msra.mxu0 %v6741_v32  ;;  %7126 = vmatpush1.bf16.msra.mxu1 %v7125_v24  ;;  %v19515_v32 = vld [vmem:[#allocation235_spill] sm:$0xff] }
 0x224   :  { %v774_v46 = vsel %vm19499_vm6, 1.0, %v18974_v23  ;;  %v782_v3 = vsel %vm19501_vm0, 1.0, %v18974_v23  ;;  %v776_v30 = vsel %vm19504_vm10, 1.0, %v18974_v23  ;;  %v1109_v53 = vand.u32 4294901760, %v1108_v37  ;;  %7128 = vmatprep.subr.bf16.mxu1 %v19515_v32 }
 0x225   :  { %v1999_v5 = vand.u32 4294901760, %v1998_v26  ;;  %v2009_v40 = vand.u32 4294901760, %v2008_v10  ;;  %v19506_v31 = vand.u32 4294901760, %v19505_v47  ;;  %vm19507_vm14 = vcmp.eq.s32.totalorder %v19500_v35, %v19389_v58  ;;  %v19514_v10 = vld [vmem:[#allocation234_spill] sm:$0xff] }
 0x226   :  { %v784_v56 = vsel %vm19507_vm14, 1.0, %v18974_v23  ;;  %v19509_v19 = vand.u32 4294901760, %v19508_v12  ;;  %v19511_v25 = vand.u32 4294901760, %v19510_v43  ;;  %v19512_v42 = vand.u32 4294901760, %v19457_v54  ;;  %6744 = vmatprep.subr.bf16.mxu0 %v19514_v10 }
 0x227   :  { %v1118_v50 = vsub.f32 %v19505_v47, %v19506_v31  ;;  %v11110_v58 = vsub.f32 %v774_v46, %v774_v46  ;;  %v11117_v35 = vsub.f32 %v782_v3, %v782_v3  ;;  %v19519_v31 = vand.u32 4294901760, %v10999_v22  ;;  %6746 = vmatpush1.bf16.msra.mxu0 %v6745_v63  ;;  %7130 = vmatpush1.bf16.msra.mxu1 %v7129_v11 }
 0x228   :  { %v1128_v52 = vsub.f32 %v19508_v12, %v19509_v19  ;;  %v2018_v44 = vsub.f32 %v19510_v43, %v19511_v25  ;;  %v2028_v37 = vsub.f32 %v19457_v54, %v19512_v42  ;;  %v19516_v19 = vand.u32 4294901760, %v19464_v17  ;;  %v19523_v12 = vld [vmem:[#allocation236_spill] sm:$0xff] }
 0x229   :  { %19513 = vst [vmem:[#allocation169_spill] sm:$0xff] %v11110_v58  ;;  %19517 = vst [vmem:[#allocation173_spill] sm:$0xff] %v11117_v35  ;;  %v19518_v25 = vand.u32 4294901760, %v10985_v2  ;;  %v2038_v26 = vsub.f32 %v10999_v22, %v19519_v31  ;;  %v19520_v46 = vand.u32 4294901760, %v11009_v57  ;;  %v11128_v23 = vsub.f32 %v776_v30, %v776_v30  ;;  %6748 = vmatprep.subr.bf16.mxu0 %v19523_v12  ;;  %v19524_v31 = vld [vmem:[#allocation237_spill] sm:$0xff] }
 0x22a   :  { %v1138_v24 = vsub.f32 %v19464_v17, %v19516_v19  ;;  %v11130_v32 = vsub.f32 %v784_v56, %v784_v56  ;;  %v6749_v54 = vpack.c.bf16 %v1109_v53, %v1099_v34  ;;  %v7133_v19 = vpack.c.bf16 %v2009_v40, %v1999_v5  ;;  %7132 = vmatprep.subr.bf16.mxu1 %v19524_v31 }
 0x22b   :  { %v1148_v42 = vsub.f32 %v10985_v2, %v19518_v25  ;;  %v2048_v10 = vsub.f32 %v11009_v57, %v19520_v46  ;;  %19521 = vst [vmem:[#allocation168_spill] sm:$0xff] %v11128_v23  ;;  %v1119_v3 = vand.u32 4294901760, %v1118_v50  ;;  %v1129_v17 = vand.u32 4294901760, %v1128_v52 }
 0x22c   :  { %19522 = vst [vmem:[#allocation174_spill] sm:$0xff] %v11130_v32  ;;  %v2019_v43 = vand.u32 4294901760, %v2018_v44  ;;  %v2029_v25 = vand.u32 4294901760, %v2028_v37  ;;  %v18037_v2 = vand.u32 4294901760, %v11110_v58  ;;  %v1139_v22 = vand.u32 4294901760, %v1138_v24  ;;  %6750 = vmatpush1.bf16.msra.mxu0 %v6749_v54  ;;  %7134 = vmatpush1.bf16.msra.mxu1 %v7133_v19  ;;  %v19529_v24 = vld [vmem:[#allocation238_spill] sm:$0xff] }
 0x22d   :  { %v1149_v46 = vand.u32 4294901760, %v1148_v42  ;;  %v2039_v30 = vand.u32 4294901760, %v2038_v26  ;;  %v2049_v57 = vand.u32 4294901760, %v2048_v10  ;;  %v19525_v56 = vand.u32 4294901760, %v11050_v45  ;;  %6752 = vmatprep.subr.bf16.mxu0 %v19529_v24  ;;  %v19530_v42 = vld [vmem:[#allocation239_spill] sm:$0xff]  ;;  %v19533_v19 = vld [vmem:[#allocation62_spill] sm:$0xff] }
 0x22e   :  { %v19526_v63 = vand.u32 4294901760, %v11052_v61  ;;  %v19527_v34 = vand.u32 4294901760, %v11062_v48  ;;  %v19528_v50 = vand.u32 4294901760, %v11074_v33  ;;  %v18036_v52 = vand.u32 4294901760, %v11128_v23  ;;  %7136 = vmatprep.subr.bf16.mxu1 %v19530_v42  ;;  %v19536_v24 = vld [vmem:[#allocation80_spill] sm:$0xff] }
 0x22f   :  { %v1158_v40 = vsub.f32 %v11050_v45, %v19525_v56  ;;  %v18035_v44 = vand.u32 4294901760, %v11130_v32  ;;  %v6753_v37 = vpack.c.bf16 %v1129_v17, %v1119_v3  ;;  %v7137_v26 = vpack.c.bf16 %v2029_v25, %v2019_v43 }
 0x230   :  { %v1168_v11 = vsub.f32 %v11052_v61, %v19526_v63  ;;  %v2058_v53 = vsub.f32 %v11062_v48, %v19527_v34  ;;  %v2068_v12 = vsub.f32 %v11074_v33, %v19528_v50  ;;  %v6757_v10 = vpack.c.bf16 %v1149_v46, %v1139_v22 }
 0x231   :  { %v7141_v31 = vpack.c.bf16 %v2049_v57, %v2039_v30  ;;  %v1159_v56 = vand.u32 4294901760, %v1158_v40  ;;  %v1178_v50 = vsub.f32 %v11110_v58, %v18037_v2  ;;  %6754 = vmatpush1.bf16.msra.mxu0 %v6753_v37  ;;  %7138 = vmatpush1.bf16.msra.mxu1 %v7137_v26  ;;  %v19531_v54 = vand.u32 4294901760, %v11117_v35  ;;  %v19532_v57 = vld [vmem:[#allocation61_spill] sm:$0xff] }
 0x232   :  { %v1169_v63 = vand.u32 4294901760, %v1168_v11  ;;  %v2059_v34 = vand.u32 4294901760, %v2058_v53  ;;  %v2069_v5 = vand.u32 4294901760, %v2068_v12  ;;  %v2078_v43 = vsub.f32 %v11128_v23, %v18036_v52  ;;  %6756 = vmatprep.subr.bf16.mxu0 %v19532_v57  ;;  %7140 = vmatprep.subr.bf16.mxu1 %v19533_v19  ;;  %v19534_v53 = vld [vmem:[#allocation242_spill] sm:$0xff]  ;;  %v19535_v12 = vld [vmem:[#allocation245_spill] sm:$0xff] }
 0x233   :  { %v1188_v17 = vsub.f32 %v11117_v35, %v19531_v54  ;;  %v2088_v22 = vsub.f32 %v11130_v32, %v18035_v44  ;;  %v1179_v46 = vand.u32 4294901760, %v1178_v50  ;;  %v19542_v54 = vld [vmem:[#allocation75_spill] sm:$0xff]  ;;  %v19547_v19 = vld [vmem:[#allocation98_spill] sm:$0xff]  ;;  %v19556_v44 = vld [vmem:[#allocation113_spill] sm:$0xff] }
 0x234   :  { %v6761_v3 = vpack.c.bf16 %v1169_v63, %v1159_v56  ;;  %v7145_v25 = vpack.c.bf16 %v2069_v5, %v2059_v34  ;;  %v2079_v40 = vand.u32 4294901760, %v2078_v43  ;;  %v19537_v5 = vld [vmem:[#allocation85_spill] sm:$0xff]  ;;  %v19541_v34 = vld [vmem:[#allocation74_spill] sm:$0xff] }
 0x235   :  { %6758 = vmatpush1.bf16.msra.mxu0 %v6757_v10  ;;  %7142 = vmatpush1.bf16.msra.mxu1 %v7141_v31  ;;  %v1189_v30 = vand.u32 4294901760, %v1188_v17  ;;  %v2089_v11 = vand.u32 4294901760, %v2088_v22  ;;  %v6767_v42 = vpack.c.bf16 %v19537_v5, %v19536_v24  ;;  %v19538_v10 = vld [vmem:[#allocation81_spill] sm:$0xff]  ;;  %v19539_v31 = vld [vmem:[#allocation86_spill] sm:$0xff]  ;;  %v19544_v22 = vld [vmem:[#allocation87_spill] sm:$0xff] }
 0x236   :  { %6760 = vmatprep.subr.bf16.mxu0 %v19534_v53  ;;  %7144 = vmatprep.subr.bf16.mxu1 %v19535_v12  ;;  %v7151_v56 = vpack.c.bf16 %v19539_v31, %v19538_v10  ;;  %v19540_v63 = vld [vmem:[#allocation73_spill] sm:$0xff]  ;;  %v19543_v17 = vld [vmem:[#allocation78_spill] sm:$0xff]  ;;  %v19552_v53 = vld [vmem:[#allocation100_spill] sm:$0xff] }
 0x237   :  { %v6765_v37 = vpack.c.bf16 %v1189_v30, %v1179_v46  ;;  %v7149_v26 = vpack.c.bf16 %v2089_v11, %v2079_v40  ;;  %v6769_v50 = vpack.c.bf16 %v19541_v34, %v19540_v63  ;;  %v7153_v43 = vpack.c.bf16 %v19543_v17, %v19542_v54  ;;  %v19549_v46 = vld [vmem:[#allocation243_spill] sm:$0xff]  ;;  %v19550_v30 = vld [vmem:[#allocation92_spill] sm:$0xff]  ;;  %v19551_v40 = vld [vmem:[#allocation93_spill] sm:$0xff] }
 0x238   :  { %v6773_v11 = vpack.c.bf16 %v19551_v40, %v19550_v30  ;;  %v19553_v12 = vld [vmem:[#allocation101_spill] sm:$0xff]  ;;  %v19557_v52 = vld [vmem:[#allocation114_spill] sm:$0xff]  ;;  %v19561_v40 = vld [vmem:[#allocation108_spill] sm:$0xff] }
 0x239   :  { %6762 = vmatpush1.bf16.msra.mxu0 %v6761_v3  ;;  %7146 = vmatpush1.bf16.msra.mxu1 %v7145_v25  ;;  %v19548_v25 = vld [vmem:[#allocation241_spill] sm:$0xff]  ;;  %v7159_v2 = vpack.c.bf16 %v19557_v52, %v19556_v44  ;;  %v19562_v30 = vld [vmem:[#allocation122_spill] sm:$0xff] }
 0x23a   :  { %6764 = vmatprep.subr.bf16.mxu0 %v10810_v39  ;;  %7148 = vmatprep.subr.bf16.mxu1 %v10834_v38  ;;  %v19545_v39 = vld [vmem:[#allocation95_spill] sm:$0xff]  ;;  %v19546_v38 = vld [vmem:[#allocation97_spill] sm:$0xff] }
 0x23b   :  { %v6771_v57 = vpack.c.bf16 %v19545_v39, %v19544_v22  ;;  %v7155_v3 = vpack.c.bf16 %v19547_v19, %v19546_v38  ;;  %v19563_v38 = vld [vmem:[#allocation123_spill] sm:$0xff] }
 0x23d   :  { %6766 = vmatpush1.bf16.msra.mxu0 %v6765_v37  ;;  %7150 = vmatpush1.bf16.msra.mxu1 %v7149_v26  ;;  %v7157_v37 = vpack.c.bf16 %v19553_v12, %v19552_v53  ;;  %v19554_v26 = vld [vmem:[#allocation111_spill] sm:$0xff]  ;;  %v6779_v12 = vpack.c.bf16 %v19563_v38, %v19562_v30  ;;  %v19564_v53 = vld [vmem:[#allocation124_spill] sm:$0xff]  ;;  %v19575_v30 = vld [vmem:[#allocation134_spill] sm:$0xff] }
 0x23e   :  { %6768 = vmatprep.subr.bf16.mxu0 %v6767_v42  ;;  %7152 = vmatprep.subr.bf16.mxu1 %v7151_v56  ;;  %v19555_v42 = vld [vmem:[#allocation112_spill] sm:$0xff] }
 0x23f   :  { %v6775_v56 = vpack.c.bf16 %v19555_v42, %v19554_v26  ;;  %v19565_v42 = vld [vmem:[#allocation127_spill] sm:$0xff]  ;;  %v19567_v26 = vld [vmem:[#allocation125_spill] sm:$0xff] }
 0x240   :  { %1194 = vmatmul.mubr.f32.vlgmr.msra.gmra.mrb[0].mxu0 %v19548_v25  ;;  %2094 = vmatmul.mubr.f32.vlgmr.msra.gmra.mrb[0].mxu1 %v19548_v25  ;;  %v19559_v25 = vld [vmem:[#allocation105_spill] sm:$0xff] }
 0x241   :  { %6770 = vmatpush1.bf16.msra.mxu0 %v6769_v50  ;;  %1330 = vmatprep.mubr.f32.mxu0 %v19549_v46  ;;  %v19558_v50 = vld [vmem:[#allocation104_spill] sm:$0xff] }
 0x242   :  { %7154 = vmatpush1.bf16.msra.mxu1 %v7153_v43  ;;  %2230 = vmatprep.mubr.f32.mxu1 %v19549_v46  ;;  %v6777_v19 = vpack.c.bf16 %v19559_v25, %v19558_v50  ;;  %v19560_v43 = vld [vmem:[#allocation106_spill] sm:$0xff]  ;;  %v19569_v25 = vld [vmem:[#allocation129_spill] sm:$0xff]  ;;  %v19571_v50 = vld [vmem:[#allocation136_spill] sm:$0xff] }
 0x243   :  { %6772 = vmatprep.subr.bf16.mxu0 %v6771_v57  ;;  %7156 = vmatprep.subr.bf16.mxu1 %v7155_v3  ;;  %v7161_v46 = vpack.c.bf16 %v19561_v40, %v19560_v43  ;;  %v7163_v57 = vpack.c.bf16 %v19565_v42, %v19564_v53  ;;  %v19566_v3 = vld [vmem:[#allocation119_spill] sm:$0xff]  ;;  %v19573_v43 = vld [vmem:[#allocation140_spill] sm:$0xff] }
 0x244   :  { %v6781_v52 = vpack.c.bf16 %v19567_v26, %v19566_v3  ;;  %v19572_v40 = vld [vmem:[#allocation139_spill] sm:$0xff]  ;;  %v19577_v26 = vld [vmem:[#allocation142_spill] sm:$0xff] }
 0x245   :  { %6774 = vmatpush1.bf16.msra.mxu0 %v6773_v11  ;;  %v19568_v11 = vld [vmem:[#allocation128_spill] sm:$0xff]  ;;  %v7167_v38 = vpack.c.bf16 %v19573_v43, %v19572_v40 }
 0x246   :  { %7158 = vmatpush1.bf16.msra.mxu1 %v7157_v37  ;;  %6776 = vmatprep.subr.bf16.mxu0 %v6775_v56  ;;  %v7165_v37 = vpack.c.bf16 %v19569_v25, %v19568_v11  ;;  %v19570_v56 = vld [vmem:[#allocation133_spill] sm:$0xff] }
 0x247   :  { %7160 = vmatprep.subr.bf16.mxu1 %v7159_v2  ;;  %v6783_v44 = vpack.c.bf16 %v19571_v50, %v19570_v56  ;;  %v19574_v2 = vld [vmem:[#allocation131_spill] sm:$0xff]  ;;  %v19579_v25 = vld [vmem:[#allocation157_spill] sm:$0xff]  ;;  %v19581_v56 = vld [vmem:[#allocation148_spill] sm:$0xff] }
 0x248   :  { %v6785_v42 = vpack.c.bf16 %v19575_v30, %v19574_v2  ;;  %v7171_v50 = vpack.c.bf16 %v19579_v25, %v19377_v49  ;;  %v19583_v30 = vld [vmem:[#allocation151_spill] sm:$0xff] }
 0x249   :  { %6778 = vmatpush1.bf16.msra.mxu0 %v6777_v19  ;;  %v19576_v19 = vld [vmem:[#allocation141_spill] sm:$0xff] }
 0x24a   :  { %7162 = vmatpush1.bf16.msra.mxu1 %v7161_v46  ;;  %6780 = vmatprep.subr.bf16.mxu0 %v6779_v12  ;;  %v7169_v46 = vpack.c.bf16 %v19577_v26, %v19576_v19  ;;  %v19578_v12 = vld [vmem:[#allocation153_spill] sm:$0xff] }
 0x24b   :  { %7164 = vmatprep.subr.bf16.mxu1 %v7163_v57  ;;  %v6787_v3 = vpack.c.bf16 %v19374_v6, %v19578_v12  ;;  %v19580_v57 = vld [vmem:[#allocation147_spill] sm:$0xff]  ;;  %v7175_v6 = vpack.c.bf16 %v19400_v16, %v19397_v20 }
 0x24c   :  { %v6789_v43 = vpack.c.bf16 %v19581_v56, %v19580_v57 }
 0x24d   :  { %6782 = vmatpush1.bf16.msra.mxu0 %v6781_v52  ;;  %v19582_v52 = vld [vmem:[#allocation150_spill] sm:$0xff] }
 0x24e   :  { %7166 = vmatpush1.bf16.msra.mxu1 %v7165_v37  ;;  %6784 = vmatprep.subr.bf16.mxu0 %v6783_v44  ;;  %v7173_v37 = vpack.c.bf16 %v19583_v30, %v19582_v52  ;;  %v19584_v44 = vld [vmem:[#allocation160_spill] sm:$0xff] }
 0x24f   :  { %7168 = vmatprep.subr.bf16.mxu1 %v7167_v38  ;;  %v6791_v2 = vpack.c.bf16 %v19388_v41, %v19584_v44  ;;  %v19585_v38 = vld [vmem:[#allocation166_spill] sm:$0xff] }
 0x250   :  { %v6793_v25 = vpack.c.bf16 %v19585_v38, %v19401_v0 }
 0x251   :  { %6786 = vmatpush1.bf16.msra.mxu0 %v6785_v42  ;;  %v7177_v42 = vpack.c.bf16 %v19412_v29, %v19408_v51 }
 0x252   :  { %7170 = vmatpush1.bf16.msra.mxu1 %v7169_v46  ;;  %6788 = vmatprep.subr.bf16.mxu0 %v6787_v3  ;;  %v6795_v3 = vpack.c.bf16 %v19411_v59, %v19410_v14  ;;  %v7179_v46 = vpack.c.bf16 %v19415_v15, %v19414_v55  ;;  %v19587_v15 = vld [vmem:[#allocation184_spill] sm:$0xff] }
 0x253   :  { %7172 = vmatprep.subr.bf16.mxu1 %v7171_v50  ;;  %v6797_v50 = vpack.c.bf16 %v19422_v4, %v19420_v13  ;;  %v19588_v4 = vld [vmem:[#allocation183_spill] sm:$0xff] }
 0x255   :  { %6790 = vmatpush1.bf16.msra.mxu0 %v6789_v43  ;;  %v7181_v43 = vpack.c.bf16 %v19433_v28, %v19431_v18 }
 0x256   :  { %7174 = vmatpush1.bf16.msra.mxu1 %v7173_v37  ;;  %6792 = vmatprep.subr.bf16.mxu0 %v6791_v2  ;;  %v6799_v2 = vpack.c.bf16 %v19428_v60, %v19427_v9  ;;  %v19590_v60 = vld [vmem:[#allocation189_spill] sm:$0xff]  ;;  %v19593_v9 = vld [vmem:[#allocation188_spill] sm:$0xff] }
 0x257   :  { %7176 = vmatprep.subr.bf16.mxu1 %v7175_v6  ;;  %v6801_v6 = vpack.c.bf16 %v19451_v27, %v19447_v62  ;;  %v19594_v27 = vld [vmem:[#allocation191_spill] sm:$0xff]  ;;  %v19596_v62 = vld [vmem:[#allocation190_spill] sm:$0xff] }
 0x259   :  { %6794 = vmatpush1.bf16.msra.mxu0 %v6793_v25  ;;  %v19586_v25 = vld [vmem:[#allocation182_spill] sm:$0xff] }
 0x25a   :  { %7178 = vmatpush1.bf16.msra.mxu1 %v7177_v42  ;;  %6796 = vmatprep.subr.bf16.mxu0 %v6795_v3  ;;  %v7185_v37 = vpack.c.bf16 %v19586_v25, %v19453_v21  ;;  %v19589_v42 = vpack.c.bf16 %v19587_v15, %v19588_v4  ;;  %v6805_v3 = vpack.c.bf16 %v19465_v7, %v19462_v36  ;;  %v19598_v25 = vld [vmem:[#allocation193_spill] sm:$0xff]  ;;  %v19599_v21 = vld [vmem:[#allocation196_spill] sm:$0xff]  ;;  %v19601_v15 = vld [vmem:[#allocation194_spill] sm:$0xff] }
 0x25b   :  { %7180 = vmatprep.subr.bf16.mxu1 %v7179_v46  ;;  %v19591_v46 = vld [vmem:[#allocation187_spill] sm:$0xff] }
 0x25d   :  { %6798 = vmatpush1.bf16.msra.mxu0 %v6797_v50  ;;  %v19592_v50 = vpack.c.bf16 %v19590_v60, %v19591_v46  ;;  %v19605_v60 = vld [vmem:[#allocation199_spill] sm:$0xff] }
 0x25e   :  { %7182 = vmatpush1.bf16.msra.mxu1 %v7181_v43  ;;  %6800 = vmatprep.subr.bf16.mxu0 %v6799_v2  ;;  %v7189_v43 = vpack.c.bf16 %v19594_v27, %v19593_v9  ;;  %v19595_v2 = vld [vmem:[#allocation192_spill] sm:$0xff]  ;;  %v19607_v27 = vld [vmem:[#allocation202_spill] sm:$0xff]  ;;  %v19609_v9 = vld [vmem:[#allocation203_spill] sm:$0xff] }
 0x25f   :  { %7184 = vmatprep.subr.bf16.mxu1 %v19589_v42  ;;  %v19597_v28 = vpack.c.bf16 %v19595_v2, %v19596_v62  ;;  %v6809_v42 = vpack.c.bf16 %v19599_v21, %v19598_v25  ;;  %v19612_v25 = vld [vmem:[#allocation207_spill] sm:$0xff] }
 0x261   :  { %6802 = vmatpush1.bf16.msra.mxu0 %v6801_v6  ;;  %v19600_v6 = vld [vmem:[#allocation195_spill] sm:$0xff] }
 0x262   :  { %7186 = vmatpush1.bf16.msra.mxu1 %v7185_v37  ;;  %6804 = vmatprep.subr.bf16.mxu0 %v19592_v50  ;;  %v19602_v7 = vpack.c.bf16 %v19600_v6, %v19601_v15  ;;  %v19603_v37 = vld [vmem:[#allocation197_spill] sm:$0xff]  ;;  %v19604_v50 = vld [vmem:[#allocation200_spill] sm:$0xff]  ;;  %v19614_v15 = vld [vmem:[#allocation206_spill] sm:$0xff] }
 0x263   :  { %7188 = vmatprep.subr.bf16.mxu1 %v19597_v28  ;;  %v7193_v36 = vpack.c.bf16 %v19482_v1, %v19603_v37  ;;  %v19606_v46 = vpack.c.bf16 %v19604_v50, %v19605_v60  ;;  %v6813_v28 = vpack.c.bf16 %v19607_v27, %v19489_v8  ;;  %v19616_v1 = vld [vmem:[#allocation211_spill] sm:$0xff]  ;;  %v19618_v37 = vld [vmem:[#allocation210_spill] sm:$0xff]  ;;  %v19621_v8 = vld [vmem:[#allocation216_spill] sm:$0xff] }
 0x265   :  { %6806 = vmatpush1.bf16.msra.mxu0 %v6805_v3  ;;  %v19608_v3 = vld [vmem:[#allocation205_spill] sm:$0xff] }
 0x266   :  { %7190 = vmatpush1.bf16.msra.mxu1 %v7189_v43  ;;  %6808 = vmatprep.subr.bf16.mxu0 %v19602_v7  ;;  %v19610_v21 = vpack.c.bf16 %v19608_v3, %v19609_v9  ;;  %v19611_v43 = vld [vmem:[#allocation204_spill] sm:$0xff]  ;;  %v19623_v9 = vld [vmem:[#allocation214_spill] sm:$0xff] }
 0x267   :  { %7192 = vmatprep.subr.bf16.mxu1 %v19606_v46  ;;  %v7197_v6 = vpack.c.bf16 %v19612_v25, %v19611_v43  ;;  %v19613_v7 = vld [vmem:[#allocation208_spill] sm:$0xff]  ;;  %v6817_v46 = vpack.c.bf16 %v19616_v1, %v19505_v47  ;;  %v19625_v25 = vld [vmem:[#allocation222_spill] sm:$0xff]  ;;  %v19626_v43 = vld [vmem:[#allocation163_spill] sm:$0xff] }
 0x268   :  { %v19615_v2 = vpack.c.bf16 %v19613_v7, %v19614_v15  ;;  %v19628_v7 = vld [vmem:[#allocation217_spill] sm:$0xff]  ;;  %v19631_v47 = vld [vmem:[#allocation164_spill] sm:$0xff] }
 0x269   :  { %6810 = vmatpush1.bf16.msra.mxu0 %v6809_v42  ;;  %v19617_v42 = vld [vmem:[#allocation213_spill] sm:$0xff] }
 0x26a   :  { %7194 = vmatpush1.bf16.msra.mxu1 %v7193_v36  ;;  %6812 = vmatprep.subr.bf16.mxu0 %v19610_v21  ;;  %v19619_v27 = vpack.c.bf16 %v19617_v42, %v19618_v37  ;;  %v19620_v36 = vld [vmem:[#allocation212_spill] sm:$0xff]  ;;  %v19622_v21 = vld [vmem:[#allocation215_spill] sm:$0xff] }
 0x26b   :  { %7196 = vmatprep.subr.bf16.mxu1 %v19615_v2  ;;  %v7201_v3 = vpack.c.bf16 %v19621_v8, %v19620_v36  ;;  %v19624_v50 = vpack.c.bf16 %v19622_v21, %v19623_v9  ;;  %v6821_v2 = vpack.c.bf16 %v19626_v43, %v19625_v25  ;;  %v19633_v37 = vld [vmem:[#allocation219_spill] sm:$0xff]  ;;  %v19639_v25 = vld [vmem:[#allocation225_spill] sm:$0xff] }
 0x26c   :  { %v19636_v8 = vld [vmem:[#allocation223_spill] sm:$0xff] }
 0x26d   :  { %6814 = vmatpush1.bf16.msra.mxu0 %v6813_v28  ;;  %v19627_v28 = vld [vmem:[#allocation218_spill] sm:$0xff] }
 0x26e   :  { %7198 = vmatpush1.bf16.msra.mxu1 %v7197_v6  ;;  %6816 = vmatprep.subr.bf16.mxu0 %v19619_v27  ;;  %v19629_v1 = vpack.c.bf16 %v19627_v28, %v19628_v7  ;;  %v19630_v6 = vld [vmem:[#allocation15_spill] sm:$0xff]  ;;  %v19632_v27 = vld [vmem:[#allocation220_spill] sm:$0xff] }
 0x26f   :  { %7200 = vmatprep.subr.bf16.mxu1 %v19624_v50  ;;  %v7205_v42 = vpack.c.bf16 %v19631_v47, %v19630_v6  ;;  %v19634_v15 = vpack.c.bf16 %v19632_v27, %v19633_v37  ;;  %v6825_v50 = vpack.c.bf16 %v11052_v61, %v11050_v45  ;;  %v19642_v47 = vld [vmem:[#allocation227_spill] sm:$0xff]  ;;  %v19645_v45 = vld [vmem:[#allocation229_spill] sm:$0xff] }
 0x271   :  { %6818 = vmatpush1.bf16.msra.mxu0 %v6817_v46  ;;  %v19635_v46 = vld [vmem:[#allocation224_spill] sm:$0xff] }
 0x272   :  { %7202 = vmatpush1.bf16.msra.mxu1 %v7201_v3  ;;  %6820 = vmatprep.subr.bf16.mxu0 %v19629_v1  ;;  %v19637_v43 = vpack.c.bf16 %v19635_v46, %v19636_v8  ;;  %v7209_v3 = vpack.c.bf16 %v11074_v33, %v11062_v48  ;;  %v19638_v1 = vld [vmem:[#allocation226_spill] sm:$0xff]  ;;  %v19647_v33 = vmov 1.0|1.0  }
 0x273   :  { %7204 = vmatprep.subr.bf16.mxu1 %v19634_v15  ;;  %v19640_v28 = vpack.c.bf16 %v19638_v1, %v19639_v25  ;;  %v6829_v15 = vpack.c.bf16 %v11117_v35, %v11110_v58 }
 0x275   :  { %6822 = vmatpush1.bf16.msra.mxu0 %v6821_v2  ;;  %v19641_v2 = vld [vmem:[#allocation228_spill] sm:$0xff] }
 0x276   :  { %7206 = vmatpush1.bf16.msra.mxu1 %v7205_v42  ;;  %6824 = vmatprep.subr.bf16.mxu0 %v19637_v43  ;;  %v19643_v61 = vpack.c.bf16 %v19641_v2, %v19642_v47  ;;  %v7213_v42 = vpack.c.bf16 %v11130_v32, %v11128_v23  ;;  %v19644_v43 = vld [vmem:[#allocation230_spill] sm:$0xff] }
 0x277   :  { %7208 = vmatprep.subr.bf16.mxu1 %v19640_v28  ;;  %v19646_v46 = vpack.c.bf16 %v19644_v43, %v19645_v45  ;;  %v19652_v32 = vld [vmem:[#allocation246_spill] sm:$0xff]  ;;  %v19767_v28 = vand.u32 4294901760, %v19539_v31 }
 0x279   :  { %6826 = vmatpush1.bf16.msra.mxu0 %v6825_v50 }
 0x27a   :  { %7210 = vmatpush1.bf16.msra.mxu1 %v7209_v3  ;;  %6828 = vmatprep.subr.bf16.mxu0 %v19643_v61  ;;  %v19650_v3 = vld [vmem:[#allocation244_spill] sm:$0xff] }
 0x27b   :  { %7212 = vmatprep.subr.bf16.mxu1 %v19646_v46  ;;  %v19667_v61 = vld [vmem:[#allocation36_spill] sm:$0xff]  ;;  %v19669_v46 = vld [vmem:[#allocation38_spill] sm:$0xff] }
 0x27c   :  { %vm19668_vm14 = vnez %v19667_v61  ;;  %v19679_v61 = vld [vmem:[#allocation44_spill] sm:$0xff] }
 0x27d   :  { %6830 = vmatpush1.bf16.msra.mxu0 %v6829_v15  ;;  %v19661_v15 = vld [vmem:[#allocation31_spill] sm:$0xff] }
 0x27e   :  { %7214 = vmatpush1.bf16.msra.mxu1 %v7213_v42  ;;  %6832 = vmatprep.subr.msk.bf16.mxu0 %vm8484_vm5, %v19647_v33  ;;  %vm19662_vm6 = vnez %v19661_v15  ;;  %v19663_v42 = vld [vmem:[#allocation32_spill] sm:$0xff]  ;;  %v19673_v15 = vld [vmem:[#allocation41_spill] sm:$0xff] }
 0x27f   :  { %7216 = vmatprep.subr.msk.bf16.mxu1 %vm8501_vm8, %v19647_v33  ;;  %vm19664_vm0 = vnez %v19663_v42  ;;  %v19675_v42 = vld [vmem:[#allocation42_spill] sm:$0xff] }
 0x280   :  { %1333 = vmatmul.mubr.f32.vlgmr.msra.gmra.mrb[0].mxu0 %v19650_v3 }
 0x281   :  { %2233 = vmatmul.mubr.f32.vlgmr.msra.gmra.mrb[0].mxu1 %v19650_v3  ;;  %6834 = vmatpush1.bf16.msk.msra.mxu0 %vm8514_vm9, %v19647_v33  ;;  %v19665_v3 = vld [vmem:[#allocation35_spill] sm:$0xff] }
 0x282   :  { %1406 = vmatprep.mubr.f32.mxu0 %v19652_v32  ;;  %7218 = vmatpush1.bf16.msk.msra.mxu1 %vm8529_vm11, %v19647_v33  ;;  %vm19666_vm10 = vnez %v19665_v3  ;;  %v19677_v3 = vld [vmem:[#allocation43_spill] sm:$0xff] }
 0x283   :  { %2306 = vmatprep.mubr.f32.mxu1 %v19652_v32  ;;  %6836 = vmatprep.subr.msk.bf16.mxu0 %vm8554_vm15, %v19647_v33  ;;  %v19659_v32 = vld [vmem:[#allocation30_spill] sm:$0xff] }
 0x284   :  { %7220 = vmatprep.subr.msk.bf16.mxu1 %vm8569_vm2, %v19647_v33  ;;  %vm19660_vm4 = vnez %v19659_v32  ;;  %v19671_v32 = vld [vmem:[#allocation39_spill] sm:$0xff] }
 0x285   :  { %6838 = vmatpush1.bf16.msk.msra.mxu0 %vm8589_vm3, %v19647_v33 }
 0x286   :  { %7222 = vmatpush1.bf16.msk.msra.mxu1 %vm8606_vm12, %v19647_v33  ;;  %6840 = vmatprep.subr.msk.bf16.mxu0 %vm8628_vm1, %v19647_v33  ;;  %vm19670_vm1 = vnez %v19669_v46  ;;  %v19681_v46 = vld [vmem:[#allocation47_spill] sm:$0xff] }
 0x287   :  { %7224 = vmatprep.subr.msk.bf16.mxu1 %vm19660_vm4, %v19647_v33  ;;  %vm19672_vm4 = vnez %v19671_v32  ;;  %v19683_v32 = vld [vmem:[#allocation48_spill] sm:$0xff] }
 0x289   :  { %6842 = vmatpush1.bf16.msk.msra.mxu0 %vm19662_vm6, %v19647_v33  ;;  %vm19674_vm6 = vnez %v19673_v15  ;;  %v19685_v15 = vld [vmem:[#allocation50_spill] sm:$0xff] }
 0x28a   :  { %7226 = vmatpush1.bf16.msk.msra.mxu1 %vm19664_vm0, %v19647_v33  ;;  %6844 = vmatprep.subr.msk.bf16.mxu0 %vm19666_vm10, %v19647_v33  ;;  %vm19676_vm0 = vnez %v19675_v42  ;;  %vm19678_vm10 = vnez %v19677_v3  ;;  %v19687_v42 = vld [vmem:[#allocation51_spill] sm:$0xff]  ;;  %v19689_v3 = vld [vmem:[#allocation53_spill] sm:$0xff] }
 0x28b   :  { %7228 = vmatprep.subr.msk.bf16.mxu1 %vm19668_vm14, %v19647_v33  ;;  %vm19680_vm14 = vnez %v19679_v61  ;;  %v19691_v61 = vld [vmem:[#allocation54_spill] sm:$0xff] }
 0x28d   :  { %6846 = vmatpush1.bf16.msk.msra.mxu0 %vm19670_vm1, %v19647_v33  ;;  %vm19682_vm1 = vnez %v19681_v46  ;;  %v19693_v46 = vld [vmem:[#allocation55_spill] sm:$0xff] }
 0x28e   :  { %7230 = vmatpush1.bf16.msk.msra.mxu1 %vm19672_vm4, %v19647_v33  ;;  %6848 = vmatprep.subr.msk.bf16.mxu0 %vm19674_vm6, %v19647_v33  ;;  %vm19684_vm4 = vnez %v19683_v32  ;;  %vm19686_vm6 = vnez %v19685_v15  ;;  %v19695_v32 = vld [vmem:[#allocation56_spill] sm:$0xff]  ;;  %v19697_v15 = vld [vmem:[#allocation59_spill] sm:$0xff] }
 0x28f   :  { %7232 = vmatprep.subr.msk.bf16.mxu1 %vm19676_vm0, %v19647_v33  ;;  %vm19688_vm0 = vnez %v19687_v42  ;;  %v19699_v42 = vld [vmem:[#allocation60_spill] sm:$0xff] }
 0x291   :  { %6850 = vmatpush1.bf16.msk.msra.mxu0 %vm19678_vm10, %v19647_v33  ;;  %vm19690_vm10 = vnez %v19689_v3  ;;  %v19701_v3 = vld [vmem:[#allocation63_spill] sm:$0xff] }
 0x292   :  { %7234 = vmatpush1.bf16.msk.msra.mxu1 %vm19680_vm14, %v19647_v33  ;;  %6852 = vmatprep.subr.msk.bf16.mxu0 %vm19682_vm1, %v19647_v33  ;;  %vm19692_vm14 = vnez %v19691_v61  ;;  %vm19694_vm1 = vnez %v19693_v46  ;;  %v19703_v61 = vld [vmem:[#allocation66_spill] sm:$0xff]  ;;  %v19705_v46 = vld [vmem:[#allocation67_spill] sm:$0xff] }
 0x293   :  { %7236 = vmatprep.subr.msk.bf16.mxu1 %vm19684_vm4, %v19647_v33  ;;  %vm19696_vm4 = vnez %v19695_v32  ;;  %v19707_v32 = vld [vmem:[#allocation68_spill] sm:$0xff] }
 0x295   :  { %6854 = vmatpush1.bf16.msk.msra.mxu0 %vm19686_vm6, %v19647_v33  ;;  %vm19698_vm6 = vnez %v19697_v15  ;;  %v19709_v15 = vld [vmem:[#allocation69_spill] sm:$0xff] }
 0x296   :  { %7238 = vmatpush1.bf16.msk.msra.mxu1 %vm19688_vm0, %v19647_v33  ;;  %6856 = vmatprep.subr.msk.bf16.mxu0 %vm19690_vm10, %v19647_v33  ;;  %vm19700_vm0 = vnez %v19699_v42  ;;  %vm19702_vm10 = vnez %v19701_v3  ;;  %v19711_v42 = vld [vmem:[#allocation70_spill] sm:$0xff]  ;;  %v19713_v3 = vld [vmem:[#allocation76_spill] sm:$0xff] }
 0x297   :  { %7240 = vmatprep.subr.msk.bf16.mxu1 %vm19692_vm14, %v19647_v33  ;;  %vm19704_vm14 = vnez %v19703_v61  ;;  %v19715_v61 = vld [vmem:[#allocation77_spill] sm:$0xff] }
 0x299   :  { %6858 = vmatpush1.bf16.msk.msra.mxu0 %vm19694_vm1, %v19647_v33  ;;  %vm19706_vm1 = vnez %v19705_v46  ;;  %v19717_v46 = vld [vmem:[#allocation79_spill] sm:$0xff] }
 0x29a   :  { %7242 = vmatpush1.bf16.msk.msra.mxu1 %vm19696_vm4, %v19647_v33  ;;  %6860 = vmatprep.subr.msk.bf16.mxu0 %vm19698_vm6, %v19647_v33  ;;  %vm19708_vm4 = vnez %v19707_v32  ;;  %vm19710_vm6 = vnez %v19709_v15  ;;  %v19719_v32 = vld [vmem:[#allocation82_spill] sm:$0xff]  ;;  %v19721_v15 = vld [vmem:[#allocation88_spill] sm:$0xff] }
 0x29b   :  { %7244 = vmatprep.subr.msk.bf16.mxu1 %vm19700_vm0, %v19647_v33  ;;  %vm19712_vm0 = vnez %v19711_v42  ;;  %v19723_v42 = vld [vmem:[#allocation89_spill] sm:$0xff] }
 0x29d   :  { %6862 = vmatpush1.bf16.msk.msra.mxu0 %vm19702_vm10, %v19647_v33  ;;  %vm19714_vm10 = vnez %v19713_v3  ;;  %v19725_v3 = vld [vmem:[#allocation94_spill] sm:$0xff] }
 0x29e   :  { %7246 = vmatpush1.bf16.msk.msra.mxu1 %vm19704_vm14, %v19647_v33  ;;  %6864 = vmatprep.subr.msk.bf16.mxu0 %vm19706_vm1, %v19647_v33  ;;  %vm19716_vm14 = vnez %v19715_v61  ;;  %vm19718_vm1 = vnez %v19717_v46  ;;  %v19727_v61 = vld [vmem:[#allocation96_spill] sm:$0xff]  ;;  %v19729_v46 = vld [vmem:[#allocation99_spill] sm:$0xff] }
 0x29f   :  { %7248 = vmatprep.subr.msk.bf16.mxu1 %vm19708_vm4, %v19647_v33  ;;  %vm19720_vm4 = vnez %v19719_v32  ;;  %v19731_v32 = vld [vmem:[#allocation102_spill] sm:$0xff] }
 0x2a1   :  { %6866 = vmatpush1.bf16.msk.msra.mxu0 %vm19710_vm6, %v19647_v33  ;;  %vm19722_vm6 = vnez %v19721_v15  ;;  %v19733_v15 = vld [vmem:[#allocation103_spill] sm:$0xff] }
 0x2a2   :  { %7250 = vmatpush1.bf16.msk.msra.mxu1 %vm19712_vm0, %v19647_v33  ;;  %6868 = vmatprep.subr.msk.bf16.mxu0 %vm19714_vm10, %v19647_v33  ;;  %vm19724_vm0 = vnez %v19723_v42  ;;  %vm19726_vm10 = vnez %v19725_v3  ;;  %v19735_v42 = vld [vmem:[#allocation107_spill] sm:$0xff] }
 0x2a3   :  { %7252 = vmatprep.subr.msk.bf16.mxu1 %vm19716_vm14, %v19647_v33  ;;  %vm19728_vm14 = vnez %v19727_v61  ;;  %v19737_v3 = vld [vmem:[#allocation115_spill] sm:$0xff]  ;;  %v19739_v61 = vld [vmem:[#allocation116_spill] sm:$0xff] }
 0x2a5   :  { %6870 = vmatpush1.bf16.msk.msra.mxu0 %vm19718_vm1, %v19647_v33  ;;  %vm19730_vm1 = vnez %v19729_v46  ;;  %v19741_v46 = vld [vmem:[#allocation120_spill] sm:$0xff] }
 0x2a6   :  { %7254 = vmatpush1.bf16.msk.msra.mxu1 %vm19720_vm4, %v19647_v33  ;;  %6872 = vmatprep.subr.msk.bf16.mxu0 %vm19722_vm6, %v19647_v33  ;;  %vm19732_vm4 = vnez %v19731_v32  ;;  %vm19734_vm6 = vnez %v19733_v15  ;;  %v19743_v32 = vld [vmem:[#allocation121_spill] sm:$0xff]  ;;  %v19745_v15 = vld [vmem:[#allocation126_spill] sm:$0xff] }
 0x2a7   :  { %7256 = vmatprep.subr.msk.bf16.mxu1 %vm19724_vm0, %v19647_v33  ;;  %vm19736_vm0 = vnez %v19735_v42  ;;  %v19747_v42 = vld [vmem:[#allocation130_spill] sm:$0xff] }
 0x2a9   :  { %6874 = vmatpush1.bf16.msk.msra.mxu0 %vm19726_vm10, %v19647_v33  ;;  %vm19738_vm10 = vnez %v19737_v3  ;;  %v19749_v3 = vld [vmem:[#allocation132_spill] sm:$0xff] }
 0x2aa   :  { %7258 = vmatpush1.bf16.msk.msra.mxu1 %vm19728_vm14, %v19647_v33  ;;  %6876 = vmatprep.subr.msk.bf16.mxu0 %vm19730_vm1, %v19647_v33  ;;  %vm19740_vm14 = vnez %v19739_v61  ;;  %vm19742_vm1 = vnez %v19741_v46  ;;  %v19751_v61 = vld [vmem:[#allocation135_spill] sm:$0xff] }
 0x2ab   :  { %7260 = vmatprep.subr.msk.bf16.mxu1 %vm19732_vm4, %v19647_v33  ;;  %vm19744_vm4 = vnez %v19743_v32  ;;  %v19753_v46 = vld [vmem:[#allocation143_spill] sm:$0xff]  ;;  %v19755_v32 = vld [vmem:[#allocation144_spill] sm:$0xff] }
 0x2ad   :  { %6878 = vmatpush1.bf16.msk.msra.mxu0 %vm19734_vm6, %v19647_v33  ;;  %vm19746_vm6 = vnez %v19745_v15  ;;  %v19757_v15 = vld [vmem:[#allocation149_spill] sm:$0xff] }
 0x2ae   :  { %7262 = vmatpush1.bf16.msk.msra.mxu1 %vm19736_vm0, %v19647_v33  ;;  %6880 = vmatprep.subr.msk.bf16.mxu0 %vm19738_vm10, %v19647_v33  ;;  %vm19748_vm0 = vnez %v19747_v42  ;;  %vm19750_vm10 = vnez %v19749_v3  ;;  %v19760_v3 = vld [vmem:[#allocation155_spill] sm:$0xff] }
 0x2af   :  { %7264 = vmatprep.subr.msk.bf16.mxu1 %vm19740_vm14, %v19647_v33  ;;  %vm19752_vm14 = vnez %v19751_v61  ;;  %v19762_v61 = vand.u32 4294901760, %v19536_v24  ;;  %v19770_v24 = vand.u32 4294901760, %v19541_v34  ;;  %v19778_v34 = vld [vmem:[#allocation97_spill] sm:$0xff] }
 0x2b1   :  { %6882 = vmatpush1.bf16.msk.msra.mxu0 %vm19742_vm1, %v19647_v33  ;;  %vm19754_vm1 = vnez %v19753_v46  ;;  %v19763_v46 = vand.u32 4294901760, %v19537_v5  ;;  %v19771_v5 = vld [vmem:[#allocation162_spill] sm:$0xff] }
 0x2b2   :  { %7266 = vmatpush1.bf16.msk.msra.mxu1 %vm19744_vm4, %v19647_v33  ;;  %6884 = vmatprep.subr.msk.bf16.mxu0 %vm19746_vm6, %v19647_v33  ;;  %vm19756_vm4 = vnez %v19755_v32  ;;  %vm19758_vm6 = vnez %v19757_v15  ;;  %v19764_v32 = vld [vmem:[#allocation158_spill] sm:$0xff]  ;;  %v19766_v15 = vand.u32 4294901760, %v19538_v10  ;;  %v19774_v10 = vand.u32 4294901760, %v19543_v17  ;;  %v19784_v17 = vld [vmem:[#allocation93_spill] sm:$0xff] }
 0x2b3   :  { %7268 = vmatprep.subr.msk.bf16.mxu1 %vm19748_vm0, %v19647_v33  ;;  %v6895_v50 = vpack.c.bf16 %v19763_v46, %v19762_v61  ;;  %v19773_v61 = vand.u32 4294901760, %v19542_v54  ;;  %v19776_v46 = vand.u32 4294901760, %v19545_v39  ;;  %v19782_v54 = vld [vmem:[#allocation92_spill] sm:$0xff] }
 0x2b4   :  { %v7279_v23 = vpack.c.bf16 %v19767_v28, %v19766_v15  ;;  %v19775_v28 = vand.u32 4294901760, %v19544_v22  ;;  %v19787_v22 = vld [vmem:[#allocation100_spill] sm:$0xff] }
 0x2b5   :  { %6886 = vmatpush1.bf16.msk.msra.mxu0 %vm19750_vm10, %v19647_v33  ;;  %vm19761_vm10 = vnez %v19760_v3  ;;  %v19769_v3 = vand.u32 4294901760, %v19540_v63  ;;  %v7281_v31 = vpack.c.bf16 %v19774_v10, %v19773_v61  ;;  %v19777_v63 = vld [vmem:[#allocation247_spill] sm:$0xff]  ;;  %v19785_v61 = vand.u32 4294901760, %v19784_v17  ;;  %v19786_v10 = vld [vmem:[#allocation240_spill] sm:$0xff]  ;;  %v19797_v17 = vld [vmem:[#allocation114_spill] sm:$0xff] }
 0x2b6   :  { %7270 = vmatpush1.bf16.msk.msra.mxu1 %vm19752_vm14, %v19647_v33  ;;  %6888 = vmatprep.subr.msk.bf16.mxu0 %vm19754_vm1, %v19647_v33  ;;  %v6899_v15 = vpack.c.bf16 %v19776_v46, %v19775_v28  ;;  %v19788_v39 = vand.u32 4294901760, %v19787_v22  ;;  %v19789_v28 = vld [vmem:[#allocation101_spill] sm:$0xff] }
 0x2b7   :  { %7272 = vmatprep.subr.msk.bf16.mxu1 %vm19756_vm4, %v19647_v33  ;;  %vm19765_vm4 = vnez %v19764_v32  ;;  %v6897_v35 = vpack.c.bf16 %v19770_v24, %v19769_v3  ;;  %v19779_v3 = vand.u32 4294901760, %v19778_v34  ;;  %v19780_v24 = vld [vmem:[#allocation98_spill] sm:$0xff]  ;;  %v19790_v46 = vand.u32 4294901760, %v19789_v28  ;;  %v19791_v34 = vld [vmem:[#allocation111_spill] sm:$0xff] }
 0x2b8   :  { %v19781_v42 = vand.u32 4294901760, %v19780_v24  ;;  %v19793_v24 = vld [vmem:[#allocation112_spill] sm:$0xff] }
 0x2b9   :  { %6890 = vmatpush1.bf16.msk.msra.mxu0 %vm19758_vm6, %v19647_v33  ;;  %v7285_v32 = vpack.c.bf16 %v19790_v46, %v19788_v39  ;;  %v19803_v46 = vld [vmem:[#allocation106_spill] sm:$0xff] }
 0x2ba   :  { %7274 = vmatpush1.bf16.msk.msra.mxu1 %vm9907_vm13, %v19647_v33  ;;  %6892 = vmatprep.subr.msk.bf16.mxu0 %vm19761_vm10, %v19647_v33  ;;  %vm19772_vm10 = vnez %v19771_v5  ;;  %v7283_v5 = vpack.c.bf16 %v19781_v42, %v19779_v3  ;;  %v19794_v42 = vand.u32 4294901760, %v19793_v24 }
 0x2bb   :  { %7276 = vmatprep.subr.msk.bf16.mxu1 %vm19765_vm4, %v19647_v33 }
 0x2bd   :  { %6894 = vmatpush1.bf16.msk.msra.mxu0 %vm10000_vm7, %v19647_v33 }
 0x2be   :  { %7278 = vmatpush1.bf16.msk.msra.mxu1 %vm19772_vm10, %v19647_v33  ;;  %6896 = vmatprep.subr.bf16.mxu0 %v6895_v50  ;;  %v19783_v50 = vand.u32 4294901760, %v19782_v54  ;;  %v19792_v33 = vand.u32 4294901760, %v19791_v34  ;;  %v19804_v34 = vand.u32 4294901760, %v19803_v46  ;;  %v19819_v46 = vld [vmem:[#allocation129_spill] sm:$0xff] }
 0x2bf   :  { %7280 = vmatprep.subr.bf16.mxu1 %v7279_v23 }
 0x2c0   :  { %1410 = vmatmul.mubr.f32.vlgmr.msra.gmra.mrb[0].mxu0 %v19777_v63  ;;  %v6901_v23 = vpack.c.bf16 %v19785_v61, %v19783_v50  ;;  %v6903_v3 = vpack.c.bf16 %v19794_v42, %v19792_v33  ;;  %v19798_v50 = vand.u32 4294901760, %v19797_v17  ;;  %v19805_v33 = vld [vmem:[#allocation108_spill] sm:$0xff] }
 0x2c1   :  { %2310 = vmatmul.mubr.f32.vlgmr.msra.gmra.mrb[0].mxu1 %v19777_v63  ;;  %6898 = vmatpush1.bf16.msra.mxu0 %v6897_v35  ;;  %v19795_v35 = vld [vmem:[#allocation113_spill] sm:$0xff]  ;;  %v19806_v24 = vand.u32 4294901760, %v19805_v33 }
 0x2c2   :  { %1609 = vmatprep.mubr.f32.mxu0 %v19786_v10  ;;  %7282 = vmatpush1.bf16.msra.mxu1 %v7281_v31  ;;  %v19796_v54 = vand.u32 4294901760, %v19795_v35  ;;  %v19799_v31 = vld [vmem:[#allocation104_spill] sm:$0xff]  ;;  %v19801_v63 = vld [vmem:[#allocation105_spill] sm:$0xff]  ;;  %v19809_v35 = vld [vmem:[#allocation123_spill] sm:$0xff] }
 0x2c3   :  { %2509 = vmatprep.mubr.f32.mxu1 %v19786_v10  ;;  %6900 = vmatprep.subr.bf16.mxu0 %v6899_v15  ;;  %v19800_v22 = vand.u32 4294901760, %v19799_v31  ;;  %v19802_v28 = vand.u32 4294901760, %v19801_v63  ;;  %v7289_v42 = vpack.c.bf16 %v19806_v24, %v19804_v34  ;;  %v19807_v15 = vld [vmem:[#allocation122_spill] sm:$0xff]  ;;  %v19810_v58 = vand.u32 4294901760, %v19809_v35  ;;  %v19814_v63 = vld [vmem:[#allocation119_spill] sm:$0xff] }
 0x2c4   :  { %v7287_v61 = vpack.c.bf16 %v19798_v50, %v19796_v54  ;;  %7284 = vmatprep.subr.bf16.mxu1 %v7283_v5  ;;  %v19808_v10 = vand.u32 4294901760, %v19807_v15  ;;  %v19811_v5 = vand.u32 4294901760, %v19564_v53  ;;  %v19820_v34 = vand.u32 4294901760, %v19819_v46  ;;  %v19826_v15 = vld [vmem:[#allocation140_spill] sm:$0xff]  ;;  %v19838_v46 = vld [vmem:[#allocation157_spill] sm:$0xff] }
 0x2c5   :  { %6902 = vmatpush1.bf16.msra.mxu0 %v6901_v23  ;;  %v6905_v39 = vpack.c.bf16 %v19802_v28, %v19800_v22  ;;  %v19812_v23 = vld [vmem:[#allocation127_spill] sm:$0xff]  ;;  %v19818_v28 = vand.u32 4294901760, %v19568_v11  ;;  %v19827_v35 = vand.u32 4294901760, %v19826_v15  ;;  %v19845_v15 = vld [vmem:[#allocation13_spill] sm:$0xff] }
 0x2c6   :  { %7286 = vmatpush1.bf16.msra.mxu1 %v7285_v32  ;;  %6904 = vmatprep.subr.bf16.mxu0 %v6903_v3  ;;  %v6907_v17 = vpack.c.bf16 %v19810_v58, %v19808_v10  ;;  %v19813_v54 = vand.u32 4294901760, %v19812_v23  ;;  %v19815_v32 = vand.u32 4294901760, %v19814_v63  ;;  %v19816_v3 = vld [vmem:[#allocation125_spill] sm:$0xff]  ;;  %v19828_v23 = vld [vmem:[#allocation131_spill] sm:$0xff]  ;;  %v19832_v63 = vand.u32 4294901760, %v19576_v19 }
 0x2c7   :  { %7288 = vmatprep.subr.bf16.mxu1 %v7287_v61  ;;  %v19817_v31 = vand.u32 4294901760, %v19816_v3  ;;  %v7293_v33 = vpack.c.bf16 %v19820_v34, %v19818_v28  ;;  %v19821_v58 = vld [vmem:[#allocation133_spill] sm:$0xff]  ;;  %v19823_v61 = vld [vmem:[#allocation136_spill] sm:$0xff]  ;;  %v19839_v34 = vand.u32 4294901760, %v19838_v46  ;;  %v19862_v46 = vld [vmem:[#allocation171_spill] sm:$0xff] }
 0x2c8   :  { %v7291_v50 = vpack.c.bf16 %v19813_v54, %v19811_v5  ;;  %v19822_v10 = vand.u32 4294901760, %v19821_v58  ;;  %v19824_v53 = vand.u32 4294901760, %v19823_v61 }
 0x2c9   :  { %6906 = vmatpush1.bf16.msra.mxu0 %v6905_v39  ;;  %v6909_v22 = vpack.c.bf16 %v19817_v31, %v19815_v32  ;;  %v19825_v39 = vand.u32 4294901760, %v19572_v40  ;;  %v19833_v32 = vand.u32 4294901760, %v19577_v26  ;;  %v19835_v31 = vld [vmem:[#allocation154_spill] sm:$0xff]  ;;  %v19841_v26 = vld [vmem:[#allocation11_spill] sm:$0xff] }
 0x2ca   :  { %7290 = vmatpush1.bf16.msra.mxu1 %v7289_v42  ;;  %6908 = vmatprep.subr.bf16.mxu0 %v6907_v17  ;;  %v6911_v24 = vpack.c.bf16 %v19824_v53, %v19822_v10  ;;  %v19829_v42 = vand.u32 4294901760, %v19828_v23  ;;  %v19830_v17 = vld [vmem:[#allocation134_spill] sm:$0xff]  ;;  %v19836_v40 = vand.u32 4294901760, %v19835_v31  ;;  %v19847_v23 = vand.u32 4294901760, %v19583_v30 }
 0x2cb   :  { %7292 = vmatprep.subr.bf16.mxu1 %v7291_v50  ;;  %v7295_v5 = vpack.c.bf16 %v19827_v35, %v19825_v39  ;;  %v19831_v54 = vand.u32 4294901760, %v19830_v17  ;;  %v7297_v3 = vpack.c.bf16 %v19833_v32, %v19832_v63  ;;  %v19834_v50 = vand.u32 4294901760, %v19578_v12  ;;  %v19840_v10 = vld [vmem:[#allocation10_spill] sm:$0xff]  ;;  %v19842_v12 = vld [vmem:[#allocation12_spill] sm:$0xff] }
 0x2cc   :  { %v19848_v17 = vand.u32 4294901760, %v19584_v44  ;;  %v19852_v32 = vand.u32 4294901760, %v19401_v0  ;;  %v19855_v30 = vand.u32 4294901760, %v19412_v29  ;;  %v19856_v44 = vand.u32 4294901760, %v19410_v14 }
 0x2cd   :  { %6910 = vmatpush1.bf16.msra.mxu0 %v6909_v22  ;;  %v6913_v11 = vpack.c.bf16 %v19831_v54, %v19829_v42  ;;  %v6915_v28 = vpack.c.bf16 %v19836_v40, %v19834_v50  ;;  %v19837_v22 = vand.u32 4294901760, %v19377_v49  ;;  %v19844_v49 = vand.u32 4294901760, %v19581_v56 }
 0x2ce   :  { %7294 = vmatpush1.bf16.msra.mxu1 %v7293_v33  ;;  %6912 = vmatprep.subr.bf16.mxu0 %v6911_v24  ;;  %v8274_v33 = vld [vmem:[%s17272_s1 + $0x2] ss:$4 sm:$0xff]  ;;  %v19843_v24 = vand.u32 4294901760, %v19580_v57  ;;  %v19849_v54 = vand.u32 4294901760, %v19388_v41  ;;  %v19850_v57 = vand.u32 4294901760, %v19397_v20  ;;  %v19851_v56 = vand.u32 4294901760, %v19400_v16 }
 0x2cf   :  { %7296 = vmatprep.subr.bf16.mxu1 %v7295_v5  ;;  %v7299_v58 = vpack.c.bf16 %v19839_v34, %v19837_v22  ;;  %v11609_v19 = vrot.slane %v8274_v33, %v19840_v10  ;;  %v11612_v61 = vrot.slane %v8274_v33, %v19841_v26  ;;  %v11615_v53 = vrot.slane %v8274_v33, %v19842_v12 }
 0x2d0   :  { %v6917_v39 = vpack.c.bf16 %v19844_v49, %v19843_v24  ;;  %v11622_v35 = vrot.slane %v8274_v33, %v19845_v15  ;;  %v19846_v5 = vand.u32 4294901760, %v19582_v52  ;;  %v7303_v63 = vpack.c.bf16 %v19851_v56, %v19850_v57  ;;  %v19867_v24 = vld [vmem:[#allocation178_spill] sm:$0xff]  ;;  %v19869_v49 = vld [vmem:[#allocation179_spill] sm:$0xff]  ;;  %v19876_v56 = vld [vmem:[#allocation180_spill] sm:$0xff] }
 0x2d1   :  { %6914 = vmatpush1.bf16.msra.mxu0 %v6913_v11  ;;  %v6919_v11 = vpack.c.bf16 %v19849_v54, %v19848_v17  ;;  %v19854_v52 = vand.u32 4294901760, %v19408_v51  ;;  %v19857_v41 = vand.u32 4294901760, %v19411_v59  ;;  %v19858_v20 = vand.u32 4294901760, %v19414_v55 }
 0x2d2   :  { %7298 = vmatpush1.bf16.msra.mxu1 %v7297_v3  ;;  %6916 = vmatprep.subr.bf16.mxu0 %v6915_v28  ;;  %v7301_v42 = vpack.c.bf16 %v19847_v23, %v19846_v5  ;;  %v19853_v3 = vand.u32 4294901760, %v19585_v38  ;;  %v19859_v28 = vld [vmem:[#allocation176_spill] sm:$0xff]  ;;  %v19861_v0 = vand.u32 4294901760, %v19420_v13  ;;  %v19863_v38 = vand.u32 4294901760, %v19862_v46  ;;  %v19874_v13 = vld [vmem:[#allocation177_spill] sm:$0xff] }
 0x2d3   :  { %7300 = vmatprep.subr.bf16.mxu1 %v7299_v58  ;;  %v7305_v31 = vpack.c.bf16 %v19855_v30, %v19854_v52  ;;  %v6923_v40 = vpack.c.bf16 %v19857_v41, %v19856_v44  ;;  %v19860_v16 = vand.u32 4294901760, %v19859_v28  ;;  %v19864_v51 = vand.u32 4294901760, %v19431_v18  ;;  %v19865_v58 = vld [vmem:[#allocation175_spill] sm:$0xff]  ;;  %v19872_v23 = vld [vmem:[#allocation184_spill] sm:$0xff]  ;;  %v19878_v18 = vld [vmem:[#allocation181_spill] sm:$0xff] }
 0x2d4   :  { %v6921_v50 = vpack.c.bf16 %v19853_v3, %v19852_v32  ;;  %v6925_v34 = vpack.c.bf16 %v19863_v38, %v19861_v0  ;;  %v19866_v29 = vand.u32 4294901760, %v19865_v58  ;;  %v19868_v14 = vand.u32 4294901760, %v19867_v24  ;;  %v19880_v30 = vld [vmem:[#allocation182_spill] sm:$0xff]  ;;  %v19887_v46 = vld [vmem:[#allocation192_spill] sm:$0xff]  ;;  %v19889_v58 = vld [vmem:[#allocation185_spill] sm:$0xff] }
 0x2d5   :  { %v7307_v22 = vpack.c.bf16 %v19860_v16, %v19858_v20  ;;  %v19870_v59 = vand.u32 4294901760, %v19869_v49  ;;  %6918 = vmatpush1.bf16.msra.mxu0 %v6917_v39  ;;  %v19871_v55 = vand.u32 4294901760, %v19588_v4  ;;  %v19873_v17 = vand.u32 4294901760, %v19872_v23  ;;  %v19882_v20 = vld [vmem:[#allocation187_spill] sm:$0xff]  ;;  %v19884_v16 = vld [vmem:[#allocation189_spill] sm:$0xff]  ;;  %v19891_v24 = vld [vmem:[#allocation186_spill] sm:$0xff] }
 0x2d6   :  { %v7309_v33 = vpack.c.bf16 %v19866_v29, %v19864_v51  ;;  %v19875_v57 = vand.u32 4294901760, %v19874_v13  ;;  %v19877_v32 = vand.u32 4294901760, %v19876_v56  ;;  %v19879_v52 = vand.u32 4294901760, %v19878_v18  ;;  %7302 = vmatpush1.bf16.msra.mxu1 %v7301_v42  ;;  %6920 = vmatprep.subr.bf16.mxu0 %v6919_v11  ;;  %v19895_v23 = vld [vmem:[#allocation191_spill] sm:$0xff]  ;;  %v19897_v42 = vld [vmem:[#allocation194_spill] sm:$0xff]  ;;  %v19902_v18 = vld [vmem:[#allocation200_spill] sm:$0xff] }
 0x2d7   :  { %v6927_v5 = vpack.c.bf16 %v19870_v59, %v19868_v14  ;;  %v7311_v54 = vpack.c.bf16 %v19873_v17, %v19871_v55  ;;  %v19881_v44 = vand.u32 4294901760, %v19880_v30  ;;  %v19883_v28 = vand.u32 4294901760, %v19882_v20  ;;  %v19893_v59 = vld [vmem:[#allocation188_spill] sm:$0xff]  ;;  %7304 = vmatprep.subr.bf16.mxu1 %v7303_v63 }
 0x2d8   :  { %v6929_v3 = vpack.c.bf16 %v19877_v32, %v19875_v57  ;;  %v19885_v0 = vand.u32 4294901760, %v19884_v16  ;;  %v19886_v4 = vand.u32 4294901760, %v19596_v62  ;;  %v19888_v38 = vand.u32 4294901760, %v19887_v46  ;;  %v19899_v57 = vld [vmem:[#allocation195_spill] sm:$0xff]  ;;  %v19910_v46 = vld [vmem:[#allocation198_spill] sm:$0xff] }
 0x2d9   :  { %v7313_v41 = vpack.c.bf16 %v19881_v44, %v19879_v52  ;;  %v19890_v29 = vand.u32 4294901760, %v19889_v58  ;;  %v19892_v14 = vand.u32 4294901760, %v19891_v24  ;;  %v19894_v55 = vand.u32 4294901760, %v19893_v59  ;;  %v19904_v44 = vld [vmem:[#allocation193_spill] sm:$0xff]  ;;  %6922 = vmatpush1.bf16.msra.mxu0 %v6921_v50 }
 0x2da   :  { %v6931_v39 = vpack.c.bf16 %v19885_v0, %v19883_v28  ;;  %v7315_v51 = vpack.c.bf16 %v19888_v38, %v19886_v4  ;;  %v19896_v17 = vand.u32 4294901760, %v19895_v23  ;;  %v19898_v11 = vand.u32 4294901760, %v19897_v42  ;;  %v19906_v28 = vld [vmem:[#allocation196_spill] sm:$0xff]  ;;  %v19908_v4 = vld [vmem:[#allocation197_spill] sm:$0xff]  ;;  %7306 = vmatpush1.bf16.msra.mxu1 %v7305_v31  ;;  %6924 = vmatprep.subr.bf16.mxu0 %v6923_v40 }
 0x2db   :  { %v11688_v49 = vpack.c.bf16 %v19892_v14, %v19890_v29  ;;  %v19900_v62 = vand.u32 4294901760, %v19899_v57  ;;  %v19901_v32 = vand.u32 4294901760, %v19605_v60  ;;  %v19903_v52 = vand.u32 4294901760, %v19902_v18  ;;  %v19912_v29 = vld [vmem:[#allocation203_spill] sm:$0xff]  ;;  %v19914_v14 = vld [vmem:[#allocation205_spill] sm:$0xff]  ;;  %7308 = vmatprep.subr.bf16.mxu1 %v7307_v22 }
 0x2dc   :  { %v11694_v13 = vpack.c.bf16 %v19896_v17, %v19894_v55  ;;  %v19905_v20 = vand.u32 4294901760, %v19904_v44  ;;  %v19907_v16 = vand.u32 4294901760, %v19906_v28  ;;  %v19909_v63 = vand.u32 4294901760, %v19908_v4  ;;  %v19916_v55 = vld [vmem:[#allocation206_spill] sm:$0xff]  ;;  %v19918_v17 = vld [vmem:[#allocation208_spill] sm:$0xff]  ;;  %v19920_v57 = vld [vmem:[#allocation201_spill] sm:$0xff] }
 0x2dd   :  { %v11700_v56 = vpack.c.bf16 %v19900_v62, %v19898_v11  ;;  %v11706_v30 = vpack.c.bf16 %v19903_v52, %v19901_v32  ;;  %v19911_v38 = vand.u32 4294901760, %v19910_v46  ;;  %v19913_v24 = vand.u32 4294901760, %v19912_v29  ;;  %v19922_v32 = vld [vmem:[#allocation202_spill] sm:$0xff]  ;;  %v19924_v44 = vld [vmem:[#allocation204_spill] sm:$0xff]  ;;  %v19926_v28 = vld [vmem:[#allocation207_spill] sm:$0xff]  ;;  %6926 = vmatpush1.bf16.msra.mxu0 %v6925_v34 }
 0x2de   :  { %v11712_v0 = vpack.c.bf16 %v19907_v16, %v19905_v20  ;;  %v19915_v60 = vand.u32 4294901760, %v19914_v14  ;;  %v19917_v23 = vand.u32 4294901760, %v19916_v55  ;;  %v19919_v42 = vand.u32 4294901760, %v19918_v17  ;;  %v19958_v22 = vld [vmem:[#allocation5_spill] sm:$0xff]  ;;  %7310 = vmatpush1.bf16.msra.mxu1 %v7309_v33  ;;  %6928 = vmatprep.subr.bf16.mxu0 %v6927_v5 }
 0x2df   :  { %v11718_v58 = vpack.c.bf16 %v19911_v38, %v19909_v63  ;;  %v19921_v62 = vand.u32 4294901760, %v19920_v57  ;;  %v19923_v18 = vand.u32 4294901760, %v19922_v32  ;;  %v19925_v20 = vand.u32 4294901760, %v19924_v44  ;;  %v19928_v63 = vld [vmem:[#allocation210_spill] sm:$0xff]  ;;  %v19930_v38 = vld [vmem:[#allocation213_spill] sm:$0xff]  ;;  %v19939_v32 = vld [vmem:[#allocation216_spill] sm:$0xff]  ;;  %7312 = vmatprep.subr.bf16.mxu1 %v7311_v54 }
 0x2e0   :  { %v11724_v59 = vpack.c.bf16 %v19915_v60, %v19913_v24  ;;  %v11730_v11 = vpack.c.bf16 %v19919_v42, %v19917_v23  ;;  %v19927_v16 = vand.u32 4294901760, %v19926_v28  ;;  %v19929_v46 = vand.u32 4294901760, %v19928_v63  ;;  %v19934_v23 = vld [vmem:[#allocation209_spill] sm:$0xff]  ;;  %v19936_v42 = vld [vmem:[#allocation211_spill] sm:$0xff] }
 0x2e1   :  { %v11736_v52 = vpack.c.bf16 %v19923_v18, %v19921_v62  ;;  %v19931_v29 = vand.u32 4294901760, %v19930_v38  ;;  %v19932_v14 = vand.u32 4294901760, %v19623_v9  ;;  %v19933_v60 = vand.u32 4294901760, %v19622_v21  ;;  %v19946_v38 = vld [vmem:[#allocation222_spill] sm:$0xff]  ;;  %v19961_v34 = vld [vmem:[#allocation165_spill] sm:$0xff]  ;;  %6930 = vmatpush1.bf16.msra.mxu0 %v6929_v3 }
 0x2e2   :  { %v11742_v4 = vpack.c.bf16 %v19927_v16, %v19925_v20  ;;  %v19935_v17 = vand.u32 4294901760, %v19934_v23  ;;  %v19937_v57 = vand.u32 4294901760, %v19936_v42  ;;  %v19938_v50 = vand.u32 4294901760, %v19620_v36  ;;  %v19942_v20 = vld [vmem:[#allocation218_spill] sm:$0xff]  ;;  %7314 = vmatpush1.bf16.msra.mxu1 %v7313_v41  ;;  %6932 = vmatprep.subr.bf16.mxu0 %v6931_v39 }
 0x2e3   :  { %v11748_v24 = vpack.c.bf16 %v19931_v29, %v19929_v46  ;;  %v11754_v55 = vpack.c.bf16 %v19933_v60, %v19932_v14  ;;  %v19940_v18 = vand.u32 4294901760, %v19939_v32  ;;  %v19941_v9 = vand.u32 4294901760, %v19628_v7  ;;  %v19948_v29 = vld [vmem:[#allocation163_spill] sm:$0xff]  ;;  %v19951_v7 = vld [vmem:[#allocation164_spill] sm:$0xff]  ;;  %7316 = vmatprep.subr.bf16.mxu1 %v7315_v51 }
 0x2e4   :  { %v11760_v62 = vpack.c.bf16 %v19937_v57, %v19935_v17  ;;  %v19943_v21 = vand.u32 4294901760, %v19942_v20  ;;  %v19944_v16 = vand.u32 4294901760, %v19633_v37  ;;  %v19945_v63 = vand.u32 4294901760, %v19632_v27  ;;  %v19954_v37 = vld [vmem:[#allocation224_spill] sm:$0xff] }
 0x2e5   :  { %v11766_v44 = vpack.c.bf16 %v19940_v18, %v19938_v50  ;;  %v19947_v36 = vand.u32 4294901760, %v19946_v38  ;;  %v19949_v14 = vand.u32 4294901760, %v19948_v29  ;;  %v19950_v31 = vand.u32 4294901760, %v19630_v6  ;;  %v19959_v6 = vld [vmem:[#allocation16_spill] sm:$0xff]  ;;  %6934 = vmatpush1.bf16.msra.mxu0 %v11688_v49 }
 0x2e6   :  { %v11772_v28 = vpack.c.bf16 %v19943_v21, %v19941_v9  ;;  %v11778_v46 = vpack.c.bf16 %v19945_v63, %v19944_v16  ;;  %v19952_v40 = vand.u32 4294901760, %v19951_v7  ;;  %v19953_v17 = vand.u32 4294901760, %v19636_v8  ;;  %v19963_v21 = vld [vmem:[#allocation161_spill] sm:$0xff]  ;;  %7318 = vmatpush1.bf16.msra.mxu1 %v11694_v13  ;;  %6936 = vmatprep.subr.bf16.mxu0 %v11700_v56 }
 0x2e7   :  { %v11784_v60 = vpack.c.bf16 %v19949_v14, %v19947_v36  ;;  %v19955_v42 = vand.u32 4294901760, %v19954_v37  ;;  %v19956_v57 = vand.u32 4294901760, %v19639_v25  ;;  %v19957_v50 = vand.u32 4294901760, %v19638_v1  ;;  %v19966_v36 = vld [vmem:[#allocation167_spill] sm:$0xff]  ;;  %v19972_v37 = vld [vmem:[#allocation169_spill] sm:$0xff]  ;;  %7320 = vmatprep.subr.bf16.mxu1 %v11706_v30 }
 0x2e8   :  { %v11790_v23 = vpack.c.bf16 %v19952_v40, %v19950_v31  ;;  %vm18069_vm10 = vcmp.eq.s32.totalorder %v19958_v22, %v11612_v61  ;;  %vm18074_vm7 = vcmp.eq.s32.totalorder %v19959_v6, %v11612_v61  ;;  %v19960_v18 = vmov 0.0   ;;  %v19996_v30 = vld [vmem:[#allocation25_spill] sm:$0xff] }
 0x2e9   :  { %v11796_v27 = vpack.c.bf16 %v19955_v42, %v19953_v17  ;;  %v11802_v32 = vpack.c.bf16 %v19957_v50, %v19956_v57  ;;  %v539_v8 = vsel %vm18069_vm10, 1.0, %v19960_v18  ;;  %vm18072_vm4 = vcmp.eq.s32.totalorder %v19958_v22, %v11622_v35  ;;  %v19974_v57 = vld [vmem:[#allocation173_spill] sm:$0xff]  ;;  %6938 = vmatpush1.bf16.msra.mxu0 %v11712_v0 }
 0x2ea   :  { %vm18071_vm13 = vcmp.eq.s32.totalorder %v19959_v6, %v11622_v35  ;;  %v547_v25 = vsel %vm18074_vm7, 1.0, %v19960_v18  ;;  %v541_v1 = vsel %vm18072_vm4, 1.0, %v19960_v18  ;;  %vm18070_vm10 = vcmp.eq.s32.totalorder %v19958_v22, %v11609_v19  ;;  %7322 = vmatpush1.bf16.msra.mxu1 %v11718_v58  ;;  %6940 = vmatprep.subr.bf16.mxu0 %v11724_v59 }
 0x2eb   :  { %v549_v9 = vsel %vm18071_vm13, 1.0, %v19960_v18  ;;  %v19962_v20 = vand.u32 4294901760, %v19961_v34  ;;  %v19964_v16 = vand.u32 4294901760, %v19963_v21  ;;  %v19965_v38 = vand.u32 4294901760, %v11062_v48  ;;  %7324 = vmatprep.subr.bf16.mxu1 %v11730_v11 }
 0x2ec   :  { %v19967_v29 = vand.u32 4294901760, %v19966_v36  ;;  %v19968_v31 = vand.u32 4294901760, %v19642_v47  ;;  %v19969_v7 = vand.u32 4294901760, %v19641_v2  ;;  %v538_v33 = vsel %vm18070_vm10, 1.0, %v19960_v18  ;;  %v19976_v2 = vld [vmem:[#allocation168_spill] sm:$0xff] }
 0x2ed   :  { %v11834_v63 = vpack.c.bf16 %v19964_v16, %v19962_v20  ;;  %v19970_v5 = vand.u32 4294901760, %v19645_v45  ;;  %v19971_v48 = vand.u32 4294901760, %v19644_v43  ;;  %v19973_v42 = vand.u32 4294901760, %v19972_v37  ;;  %v19978_v20 = vld [vmem:[#allocation174_spill] sm:$0xff]  ;;  %6942 = vmatpush1.bf16.msra.mxu0 %v11736_v52  ;;  %v20005_v52 = vld [vmem:[#allocation33_spill] sm:$0xff] }
 0x2ee   :  { %v11840_v14 = vpack.c.bf16 %v19967_v29, %v19965_v38  ;;  %v11846_v40 = vpack.c.bf16 %v19969_v7, %v19968_v31  ;;  %v19975_v47 = vand.u32 4294901760, %v19974_v57  ;;  %v19977_v34 = vand.u32 4294901760, %v19976_v2  ;;  %7326 = vmatpush1.bf16.msra.mxu1 %v11742_v4  ;;  %6944 = vmatprep.subr.bf16.mxu0 %v11748_v24 }
 0x2ef   :  { %v11856_v17 = vpack.c.bf16 %v19971_v48, %v19970_v5  ;;  %v19979_v21 = vand.u32 4294901760, %v19978_v20  ;;  %v11870_v38 = vsub.f32 %v539_v8, %v539_v8  ;;  %v11872_v54 = vsub.f32 %v547_v25, %v547_v25  ;;  %v19985_v25 = vld [vmem:[#allocation21_spill] sm:$0xff]  ;;  %v19998_v20 = vld [vmem:[#allocation28_spill] sm:$0xff]  ;;  %7328 = vmatprep.subr.bf16.mxu1 %v11754_v55 }
 0x2f0   :  { %v11862_v50 = vpack.c.bf16 %v19975_v47, %v19973_v42  ;;  %v11874_v45 = vsub.f32 %v541_v1, %v541_v1  ;;  %v11876_v43 = vsub.f32 %v549_v9, %v549_v9  ;;  %vm18073_vm10 = vcmp.eq.s32.totalorder %v19959_v6, %v11609_v19  ;;  %v19986_v1 = vld [vmem:[#allocation22_spill] sm:$0xff] }
 0x2f1   :  { %v11868_v16 = vpack.c.bf16 %v19979_v21, %v19977_v34  ;;  %19980 = vst [vmem:[#allocation170_spill] sm:$0xff] %v11870_v38  ;;  %19981 = vst [vmem:[#allocation172_spill] sm:$0xff] %v11872_v54  ;;  %v546_v36 = vsel %vm18073_vm10, 1.0, %v19960_v18  ;;  %v11884_v29 = vsub.f32 %v538_v33, %v538_v33  ;;  %vm18076_vm13 = vcmp.eq.s32.totalorder %v19958_v22, %v11615_v53 }
 0x2f2   :  { %19982 = vst [vmem:[#allocation221_spill] sm:$0xff] %v11874_v45  ;;  %19983 = vst [vmem:[#allocation14_spill] sm:$0xff] %v11876_v43  ;;  %vm18075_vm4 = vcmp.eq.s32.totalorder %v19959_v6, %v11615_v53  ;;  %v540_v3 = vsel %vm18076_vm13, 1.0, %v19960_v18  ;;  %vm18077_vm10 = vcmp.eq.s32.totalorder %v19985_v25, %v11612_v61  ;;  %vm18078_vm7 = vcmp.eq.s32.totalorder %v19986_v1, %v11612_v61 }
 0x2f3   :  { %19984 = vst [vmem:[#allocation231_spill] sm:$0xff] %v11884_v29  ;;  %v548_v8 = vsel %vm18075_vm4, 1.0, %v19960_v18  ;;  %v555_v41 = vsel %vm18077_vm10, 1.0, %v19960_v18  ;;  %v563_v39 = vsel %vm18078_vm7, 1.0, %v19960_v18  ;;  %vm18083_vm4 = vcmp.eq.s32.totalorder %v19985_v25, %v11622_v35  ;;  %6946 = vmatpush1.bf16.msra.mxu0 %v11760_v62  ;;  %7330 = vmatpush1.bf16.msra.mxu1 %v11766_v44 }
 0x2f4   :  { %vm18079_vm13 = vcmp.eq.s32.totalorder %v19986_v1, %v11622_v35  ;;  %v557_v51 = vsel %vm18083_vm4, 1.0, %v19960_v18  ;;  %vm18082_vm10 = vcmp.eq.s32.totalorder %v19985_v25, %v11609_v19  ;;  %vm18080_vm7 = vcmp.eq.s32.totalorder %v19986_v1, %v11609_v19  ;;  %6948 = vmatprep.subr.bf16.mxu0 %v11772_v28  ;;  %7332 = vmatprep.subr.bf16.mxu1 %v11778_v46  ;;  %v20011_v28 = vld [vmem:[#allocation37_spill] sm:$0xff] }
 0x2f5   :  { %v565_v9 = vsel %vm18079_vm13, 1.0, %v19960_v18  ;;  %v11927_v31 = vsub.f32 %v546_v36, %v546_v36  ;;  %v554_v7 = vsel %vm18082_vm10, 1.0, %v19960_v18  ;;  %v562_v33 = vsel %vm18080_vm7, 1.0, %v19960_v18 }
 0x2f6   :  { %vm18081_vm13 = vcmp.eq.s32.totalorder %v19985_v25, %v11615_v53  ;;  %v11941_v49 = vsub.f32 %v540_v3, %v540_v3  ;;  %v11943_v5 = vsub.f32 %v548_v8, %v548_v8  ;;  %v11945_v48 = vsub.f32 %v555_v41, %v555_v41 }
 0x2f7   :  { %19987 = vst [vmem:[#allocation232_spill] sm:$0xff] %v11927_v31  ;;  %v556_v37 = vsel %vm18081_vm13, 1.0, %v19960_v18  ;;  %v11952_v42 = vsub.f32 %v563_v39, %v563_v39  ;;  %v11954_v57 = vsub.f32 %v557_v51, %v557_v51  ;;  %v11956_v13 = vsub.f32 %v565_v9, %v565_v9  ;;  %6950 = vmatpush1.bf16.msra.mxu0 %v11784_v60 }
 0x2f8   :  { %19988 = vst [vmem:[#allocation233_spill] sm:$0xff] %v11941_v49  ;;  %19989 = vst [vmem:[#allocation234_spill] sm:$0xff] %v11943_v5  ;;  %vm18084_vm7 = vcmp.eq.s32.totalorder %v19986_v1, %v11615_v53  ;;  %v11960_v56 = vsub.f32 %v554_v7, %v554_v7  ;;  %v11962_v47 = vsub.f32 %v562_v33, %v562_v33  ;;  %7334 = vmatpush1.bf16.msra.mxu1 %v11790_v23 }
 0x2f9   :  { %19990 = vst [vmem:[#allocation235_spill] sm:$0xff] %v11945_v48  ;;  %19991 = vst [vmem:[#allocation236_spill] sm:$0xff] %v11952_v42  ;;  %v564_v2 = vsel %vm18084_vm7, 1.0, %v19960_v18  ;;  %vm18085_vm13 = vcmp.eq.s32.totalorder %v19996_v30, %v11612_v61  ;;  %v11971_v34 = vsub.f32 %v556_v37, %v556_v37  ;;  %vm18086_vm10 = vcmp.eq.s32.totalorder %v19998_v20, %v11612_v61 }
 0x2fa   :  { %19992 = vst [vmem:[#allocation237_spill] sm:$0xff] %v11954_v57  ;;  %19993 = vst [vmem:[#allocation238_spill] sm:$0xff] %v11956_v13  ;;  %v571_v21 = vsel %vm18085_vm13, 1.0, %v19960_v18  ;;  %vm18087_vm4 = vcmp.eq.s32.totalorder %v19996_v30, %v11622_v35  ;;  %v579_v0 = vsel %vm18086_vm10, 1.0, %v19960_v18  ;;  %vm18088_vm7 = vcmp.eq.s32.totalorder %v19998_v20, %v11622_v35  ;;  %6952 = vmatprep.subr.bf16.mxu0 %v11796_v27 }
 0x2fb   :  { %19994 = vst [vmem:[#allocation239_spill] sm:$0xff] %v11960_v56  ;;  %19995 = vst [vmem:[#allocation61_spill] sm:$0xff] %v11962_v47  ;;  %v573_v36 = vsel %vm18087_vm4, 1.0, %v19960_v18  ;;  %vm18092_vm13 = vcmp.eq.s32.totalorder %v19996_v30, %v11609_v19  ;;  %v581_v58 = vsel %vm18088_vm7, 1.0, %v19960_v18  ;;  %vm18091_vm10 = vcmp.eq.s32.totalorder %v19998_v20, %v11609_v19  ;;  %7336 = vmatprep.subr.bf16.mxu1 %v11802_v32 }
 0x2fc   :  { %19997 = vst [vmem:[#allocation62_spill] sm:$0xff] %v11971_v34  ;;  %v570_v59 = vsel %vm18092_vm13, 1.0, %v19960_v18  ;;  %vm18089_vm4 = vcmp.eq.s32.totalorder %v19996_v30, %v11615_v53  ;;  %v12008_v3 = vsub.f32 %v564_v2, %v564_v2  ;;  %v578_v11 = vsel %vm18091_vm10, 1.0, %v19960_v18  ;;  %6954 = vmatpush1.bf16.msra.mxu0 %v11834_v63  ;;  %7338 = vmatpush1.bf16.msra.mxu1 %v11840_v14 }
 0x2fd   :  { %vm18090_vm7 = vcmp.eq.s32.totalorder %v19998_v20, %v11615_v53  ;;  %v572_v8 = vsel %vm18089_vm4, 1.0, %v19960_v18  ;;  %v12021_v41 = vsub.f32 %v571_v21, %v571_v21  ;;  %v12023_v39 = vsub.f32 %v579_v0, %v579_v0  ;;  %v20008_v21 = vld [vmem:[#allocation34_spill] sm:$0xff]  ;;  %6956 = vmatprep.subr.bf16.mxu0 %v11846_v40  ;;  %7340 = vmatprep.subr.bf16.mxu1 %v11856_v17 }
 0x2fe   :  { %19999 = vst [vmem:[#allocation242_spill] sm:$0xff] %v12008_v3  ;;  %v12025_v51 = vsub.f32 %v573_v36, %v573_v36  ;;  %v580_v9 = vsel %vm18090_vm7, 1.0, %v19960_v18  ;;  %v12033_v7 = vsub.f32 %v581_v58, %v581_v58  ;;  %v12035_v33 = vsub.f32 %v570_v59, %v570_v59 }
 0x2ff   :  { %20000 = vst [vmem:[#allocation245_spill] sm:$0xff] %v12021_v41  ;;  %20001 = vst [vmem:[#allocation80_spill] sm:$0xff] %v12023_v39  ;;  %vm18094_vm4 = vcmp.eq.s32.totalorder %v20005_v52, %v11612_v61  ;;  %v12040_v37 = vsub.f32 %v578_v11, %v578_v11  ;;  %v12042_v2 = vsub.f32 %v572_v8, %v572_v8  ;;  %v20012_v11 = vld [vmem:[#allocation40_spill] sm:$0xff] }
 0x300   :  { %20002 = vst [vmem:[#allocation85_spill] sm:$0xff] %v12025_v51  ;;  %20003 = vst [vmem:[#allocation81_spill] sm:$0xff] %v12033_v7  ;;  %vm18093_vm7 = vcmp.eq.s32.totalorder %v20008_v21, %v11612_v61  ;;  %v587_v4 = vsel %vm18094_vm4, 1.0, %v19960_v18  ;;  %v12050_v24 = vsub.f32 %v580_v9, %v580_v9  ;;  %vm18096_vm10 = vcmp.eq.s32.totalorder %v20005_v52, %v11622_v35 }
 0x301   :  { %20004 = vst [vmem:[#allocation86_spill] sm:$0xff] %v12035_v33  ;;  %20006 = vst [vmem:[#allocation73_spill] sm:$0xff] %v12040_v37  ;;  %v595_v0 = vsel %vm18093_vm7, 1.0, %v19960_v18  ;;  %vm18095_vm13 = vcmp.eq.s32.totalorder %v20008_v21, %v11622_v35  ;;  %v589_v55 = vsel %vm18096_vm10, 1.0, %v19960_v18  ;;  %vm18097_vm7 = vcmp.eq.s32.totalorder %v20005_v52, %v11609_v19  ;;  %6958 = vmatpush1.bf16.msra.mxu0 %v11862_v50 }
 0x302   :  { %20007 = vst [vmem:[#allocation74_spill] sm:$0xff] %v12042_v2  ;;  %20009 = vst [vmem:[#allocation75_spill] sm:$0xff] %v12050_v24  ;;  %v597_v36 = vsel %vm18095_vm13, 1.0, %v19960_v18  ;;  %vm18340_vm4 = vcmp.eq.s32.totalorder %v20008_v21, %v11609_v19  ;;  %v12075_v62 = vsub.f32 %v587_v4, %v587_v4  ;;  %v586_v58 = vsel %vm18097_vm7, 1.0, %v19960_v18  ;;  %7342 = vmatpush1.bf16.msra.mxu1 %v11868_v16 }
 0x303   :  { %v594_v59 = vsel %vm18340_vm4, 1.0, %v19960_v18  ;;  %vm18098_vm13 = vcmp.eq.s32.totalorder %v20005_v52, %v11615_v53  ;;  %vm18104_vm10 = vcmp.eq.s32.totalorder %v20008_v21, %v11615_v53  ;;  %vm18102_vm7 = vcmp.eq.s32.totalorder %v20011_v28, %v11612_v61 }
 0x304   :  { %20010 = vst [vmem:[#allocation78_spill] sm:$0xff] %v12075_v62  ;;  %v588_v44 = vsel %vm18098_vm13, 1.0, %v19960_v18  ;;  %vm18101_vm6 = vcmp.eq.s32.totalorder %v20012_v11, %v11612_v61  ;;  %v596_v8 = vsel %vm18104_vm10, 1.0, %v19960_v18  ;;  %v603_v46 = vsel %vm18102_vm7, 1.0, %v19960_v18 }
 0x305   :  { %v611_v9 = vsel %vm18101_vm6, 1.0, %v19960_v18  ;;  %vm18100_vm13 = vcmp.eq.s32.totalorder %v20011_v28, %v11622_v35  ;;  %v12113_v4 = vsub.f32 %v595_v0, %v595_v0  ;;  %v12115_v26 = vsub.f32 %v589_v55, %v589_v55 }
 0x306   :  { %v12117_v10 = vsub.f32 %v597_v36, %v597_v36  ;;  %v605_v12 = vsel %vm18100_vm13, 1.0, %v19960_v18  ;;  %v12125_v15 = vsub.f32 %v586_v58, %v586_v58  ;;  %v12127_v62 = vsub.f32 %v594_v59, %v594_v59  ;;  %v20023_v59 = vld [vmem:[#allocation45_spill] sm:$0xff] }
 0x307   :  { %20013 = vst [vmem:[#allocation87_spill] sm:$0xff] %v12113_v4  ;;  %20014 = vst [vmem:[#allocation95_spill] sm:$0xff] %v12115_v26  ;;  %v12129_v60 = vsub.f32 %v588_v44, %v588_v44  ;;  %v12132_v0 = vsub.f32 %v596_v8, %v596_v8  ;;  %v12134_v55 = vsub.f32 %v603_v46, %v603_v46  ;;  %v20024_v44 = vld [vmem:[#allocation46_spill] sm:$0xff] }
 0x308   :  { %20015 = vst [vmem:[#allocation124_spill] sm:$0xff] %v12117_v10  ;;  %20016 = vst [vmem:[#allocation128_spill] sm:$0xff] %v12125_v15  ;;  %v12136_v36 = vsub.f32 %v611_v9, %v611_v9  ;;  %vm18103_vm13 = vcmp.eq.s32.totalorder %v20012_v11, %v11622_v35  ;;  %v12144_v27 = vsub.f32 %v605_v12, %v605_v12  ;;  %v20056_v10 = vld [vmem:[#allocation30_spill] sm:$0xff] }
 0x309   :  { %20017 = vst [vmem:[#allocation139_spill] sm:$0xff] %v12127_v62  ;;  %20018 = vst [vmem:[#allocation141_spill] sm:$0xff] %v12129_v60  ;;  %v613_v23 = vsel %vm18103_vm13, 1.0, %v19960_v18  ;;  %vm18106_vm6 = vcmp.eq.s32.totalorder %v20011_v28, %v11609_v19  ;;  %vm18105_vm7 = vcmp.eq.s32.totalorder %v20012_v11, %v11609_v19  ;;  %vm18108_vm13 = vcmp.eq.s32.totalorder %v20011_v28, %v11615_v53 }
 0x30a   :  { %20019 = vst [vmem:[#allocation142_spill] sm:$0xff] %v12132_v0  ;;  %20020 = vst [vmem:[#allocation153_spill] sm:$0xff] %v12134_v55  ;;  %v602_v32 = vsel %vm18106_vm6, 1.0, %v19960_v18  ;;  %v610_v58 = vsel %vm18105_vm7, 1.0, %v19960_v18  ;;  %vm18107_vm10 = vcmp.eq.s32.totalorder %v20012_v11, %v11615_v53  ;;  %v604_v12 = vsel %vm18108_vm13, 1.0, %v19960_v18  ;;  %v20037_v0 = vld [vmem:[#allocation241_spill] sm:$0xff] }
 0x30b   :  { %20021 = vst [vmem:[#allocation147_spill] sm:$0xff] %v12136_v36  ;;  %20022 = vst [vmem:[#allocation148_spill] sm:$0xff] %v12144_v27  ;;  %v612_v63 = vsel %vm18107_vm10, 1.0, %v19960_v18  ;;  %vm18109_vm7 = vcmp.eq.s32.totalorder %v20023_v59, %v11612_v61  ;;  %vm18110_vm6 = vcmp.eq.s32.totalorder %v20024_v44, %v11612_v61  ;;  %vm18331_vm10 = vcmp.eq.s32.totalorder %v20023_v59, %v11622_v35 }
 0x30c   :  { %v619_v14 = vsel %vm18109_vm7, 1.0, %v19960_v18  ;;  %v627_v40 = vsel %vm18110_vm6, 1.0, %v19960_v18  ;;  %vm18324_vm13 = vcmp.eq.s32.totalorder %v20024_v44, %v11622_v35  ;;  %v621_v17 = vsel %vm18331_vm10, 1.0, %v19960_v18  ;;  %1611 = vmatmul.mubr.f32.vlgmr.msra.gmra.mrb[0].mxu0 %v20037_v0  ;;  %2511 = vmatmul.mubr.f32.vlgmr.msra.gmra.mrb[0].mxu1 %v20037_v0 }
 0x30d   :  { %v629_v8 = vsel %vm18324_vm13, 1.0, %v19960_v18  ;;  %vm18120_vm7 = vcmp.eq.s32.totalorder %v20023_v59, %v11609_v19  ;;  %vm18119_vm6 = vcmp.eq.s32.totalorder %v20024_v44, %v11609_v19  ;;  %v12203_v46 = vsub.f32 %v613_v23, %v613_v23 }
 0x30e   :  { %v12205_v9 = vsub.f32 %v602_v32, %v602_v32  ;;  %v618_v27 = vsel %vm18120_vm7, 1.0, %v19960_v18  ;;  %v626_v36 = vsel %vm18119_vm6, 1.0, %v19960_v18  ;;  %v20027_v55 = vmov 1.0|1.0  }
 0x30f   :  { %20025 = vst [vmem:[#allocation150_spill] sm:$0xff] %v12203_v46  ;;  %6960 = vmatprep.subr.msk.bf16.mxu0 %vm8484_vm5, %v20027_v55  ;;  %v12219_v50 = vsub.f32 %v610_v58, %v610_v58  ;;  %v12221_v23 = vsub.f32 %v604_v12, %v604_v12  ;;  %v12223_v32 = vsub.f32 %v612_v63, %v612_v63 }
 0x310   :  { %20026 = vst [vmem:[#allocation151_spill] sm:$0xff] %v12205_v9  ;;  %7344 = vmatprep.subr.msk.bf16.mxu1 %vm8501_vm8, %v20027_v55  ;;  %v12228_v46 = vsub.f32 %v619_v14, %v619_v14  ;;  %v12230_v60 = vsub.f32 %v627_v40, %v627_v40  ;;  %v12232_v62 = vsub.f32 %v621_v17, %v621_v17  ;;  %v20041_v14 = vld [vmem:[#allocation49_spill] sm:$0xff]  ;;  %v20042_v40 = vld [vmem:[#allocation52_spill] sm:$0xff] }
 0x311   :  { %20029 = vst [vmem:[#allocation160_spill] sm:$0xff] %v12219_v50  ;;  %20030 = vst [vmem:[#allocation166_spill] sm:$0xff] %v12221_v23  ;;  %v12234_v16 = vsub.f32 %v629_v8, %v629_v8  ;;  %v12237_v58 = vsub.f32 %v618_v27, %v618_v27  ;;  %v12239_v12 = vsub.f32 %v626_v36, %v626_v36  ;;  %6962 = vmatpush1.bf16.msk.msra.mxu0 %vm8514_vm9, %v20027_v55  ;;  %v20043_v17 = vld [vmem:[#allocation240_spill] sm:$0xff] }
 0x312   :  { %20031 = vst [vmem:[#allocation183_spill] sm:$0xff] %v12223_v32  ;;  %20033 = vst [vmem:[#allocation190_spill] sm:$0xff] %v12228_v46  ;;  %vm18321_vm5 = vcmp.eq.s32.totalorder %v20023_v59, %v11615_v53  ;;  %vm18121_vm8 = vcmp.eq.s32.totalorder %v20024_v44, %v11615_v53  ;;  %vm18320_vm6 = vcmp.eq.s32.totalorder %v20041_v14, %v11612_v61  ;;  %1682 = vmatprep.mubr.f32.mxu0 %v20043_v17  ;;  %v20049_v32 = vld [vmem:[#allocation57_spill] sm:$0xff] }
 0x313   :  { %20034 = vst [vmem:[#allocation199_spill] sm:$0xff] %v12230_v60  ;;  %20035 = vst [vmem:[#allocation212_spill] sm:$0xff] %v12232_v62  ;;  %v620_v27 = vsel %vm18321_vm5, 1.0, %v19960_v18  ;;  %v628_v36 = vsel %vm18121_vm8, 1.0, %v19960_v18  ;;  %vm18124_vm7 = vcmp.eq.s32.totalorder %v20042_v40, %v11612_v61  ;;  %7346 = vmatpush1.bf16.msk.msra.mxu1 %vm8529_vm11, %v20027_v55  ;;  %v635_v9 = vsel %vm18320_vm6, 1.0, %v19960_v18  ;;  %2582 = vmatprep.mubr.f32.mxu1 %v20043_v17  ;;  %v20051_v62 = vld [vmem:[#allocation29_spill] sm:$0xff] }
 0x314   :  { %20036 = vst [vmem:[#allocation215_spill] sm:$0xff] %v12234_v16  ;;  %20038 = vst [vmem:[#allocation214_spill] sm:$0xff] %v12237_v58  ;;  %v643_v63 = vsel %vm18124_vm7, 1.0, %v19960_v18  ;;  %vm18319_vm9 = vcmp.eq.s32.totalorder %v20041_v14, %v11622_v35  ;;  %vm18127_vm8 = vcmp.eq.s32.totalorder %v20042_v40, %v11622_v35  ;;  %6964 = vmatprep.subr.msk.bf16.mxu0 %vm8554_vm15, %v20027_v55  ;;  %7348 = vmatprep.subr.msk.bf16.mxu1 %vm8569_vm2, %v20027_v55 }
 0x315   :  { %20039 = vst [vmem:[#allocation217_spill] sm:$0xff] %v12239_v12  ;;  %v637_v12 = vsel %vm18319_vm9, 1.0, %v19960_v18  ;;  %v645_v58 = vsel %vm18127_vm8, 1.0, %v19960_v18  ;;  %vm18316_vm11 = vcmp.eq.s32.totalorder %v20041_v14, %v11609_v19  ;;  %vm18143_vm7 = vcmp.eq.s32.totalorder %v20042_v40, %v11609_v19  ;;  %6966 = vmatpush1.bf16.msk.msra.mxu0 %vm8589_vm3, %v20027_v55 }
 0x316   :  { %v634_v8 = vsel %vm18316_vm11, 1.0, %v19960_v18  ;;  %v642_v16 = vsel %vm18143_vm7, 1.0, %v19960_v18  ;;  %vm18141_vm15 = vcmp.eq.s32.totalorder %v20041_v14, %v11615_v53  ;;  %vm18137_vm8 = vcmp.eq.s32.totalorder %v20042_v40, %v11615_v53  ;;  %v20085_v14 = vld [vmem:[#allocation42_spill] sm:$0xff] }
 0x317   :  { %v12311_v17 = vsub.f32 %v620_v27, %v620_v27  ;;  %v636_v60 = vsel %vm18141_vm15, 1.0, %v19960_v18  ;;  %v644_v46 = vsel %vm18137_vm8, 1.0, %v19960_v18  ;;  %vm18140_vm2 = vcmp.eq.s32.totalorder %v20049_v32, %v11612_v61  ;;  %7350 = vmatpush1.bf16.msk.msra.mxu1 %vm8606_vm12, %v20027_v55 }
 0x318   :  { %vm20052_vm3 = vnez %v20051_v62  ;;  %v12329_v27 = vsub.f32 %v628_v36, %v628_v36  ;;  %v12333_v50 = vsub.f32 %v643_v63, %v643_v63  ;;  %v651_v15 = vsel %vm18140_vm2, 1.0, %v19960_v18 }
 0x319   :  { %20048 = vst [vmem:[#allocation15_spill] sm:$0xff] %v12311_v17  ;;  %6968 = vmatprep.subr.msk.bf16.mxu0 %vm20052_vm3, %v20027_v55  ;;  %v12331_v17 = vsub.f32 %v635_v9, %v635_v9  ;;  %vm20057_vm8 = vnez %v20056_v10  ;;  %v12342_v23 = vsub.f32 %v637_v12, %v637_v12  ;;  %v12344_v26 = vsub.f32 %v645_v58, %v645_v58  ;;  %v20065_v10 = vld [vmem:[#allocation31_spill] sm:$0xff] }
 0x31a   :  { %20053 = vst [vmem:[#allocation220_spill] sm:$0xff] %v12329_v27  ;;  %20055 = vst [vmem:[#allocation223_spill] sm:$0xff] %v12333_v50  ;;  %7352 = vmatprep.subr.msk.bf16.mxu1 %vm20057_vm8, %v20027_v55  ;;  %v12346_v62 = vsub.f32 %v634_v8, %v634_v8  ;;  %v12348_v36 = vsub.f32 %v642_v16, %v642_v16  ;;  %v12350_v9 = vsub.f32 %v636_v60, %v636_v60  ;;  %v20064_v50 = vld [vmem:[#allocation58_spill] sm:$0xff]  ;;  %v20070_v12 = vld [vmem:[#allocation35_spill] sm:$0xff] }
 0x31b   :  { %20054 = vst [vmem:[#allocation219_spill] sm:$0xff] %v12331_v17  ;;  %20058 = vst [vmem:[#allocation226_spill] sm:$0xff] %v12342_v23  ;;  %v12352_v63 = vsub.f32 %v644_v46, %v644_v46  ;;  %vm18142_vm12 = vcmp.eq.s32.totalorder %v20064_v50, %v11612_v61  ;;  %vm18144_vm3 = vcmp.eq.s32.totalorder %v20049_v32, %v11622_v35  ;;  %vm20066_vm8 = vnez %v20065_v10  ;;  %v20068_v46 = vld [vmem:[#allocation32_spill] sm:$0xff]  ;;  %v12392_v8 = vld [vmem:[%s17276_s5] sm:$0xff] }
 0x31c   :  { %20059 = vst [vmem:[#allocation225_spill] sm:$0xff] %v12344_v26  ;;  %20060 = vst [vmem:[#allocation228_spill] sm:$0xff] %v12346_v62  ;;  %6970 = vmatpush1.bf16.msk.msra.mxu0 %vm20066_vm8, %v20027_v55  ;;  %v659_v16 = vsel %vm18142_vm12, 1.0, %v19960_v18  ;;  %v12365_v58 = vsub.f32 %v651_v15, %v651_v15  ;;  %vm18169_vm2 = vcmp.eq.s32.totalorder %v20064_v50, %v11622_v35  ;;  %v653_v60 = vsel %vm18144_vm3, 1.0, %v19960_v18  ;;  %v20072_v10 = vld [vmem:[#allocation36_spill] sm:$0xff]  ;;  %v20080_v17 = vld [vmem:[#allocation41_spill] sm:$0xff] }
 0x31d   :  { %20061 = vst [vmem:[#allocation227_spill] sm:$0xff] %v12348_v36  ;;  %20062 = vst [vmem:[#allocation230_spill] sm:$0xff] %v12350_v9  ;;  %vm20069_vm15 = vnez %v20068_v46  ;;  %vm20071_vm8 = vnez %v20070_v12  ;;  %v661_v15 = vsel %vm18169_vm2, 1.0, %v19960_v18  ;;  %vm18149_vm12 = vcmp.eq.s32.totalorder %v20049_v32, %v11609_v19  ;;  %4615 = vperm.xlu1 %8243, %v12392_v8   ;;  %v20075_v9 = vld [vmem:[#allocation65_spill] sm:$0xff]  ;;  %4685 = vperm.xlu0 %8244, %v12392_v8   ;;  %v20076_v36 = vld [vmem:[#allocation38_spill] sm:$0xff] }
 0x31e   :  { %20063 = vst [vmem:[#allocation229_spill] sm:$0xff] %v12352_v63  ;;  %20067 = vst [vmem:[#allocation97_spill] sm:$0xff] %v12365_v58  ;;  %7354 = vmatpush1.bf16.msk.msra.mxu1 %vm20069_vm15, %v20027_v55  ;;  %6972 = vmatprep.subr.msk.bf16.mxu0 %vm20071_vm8, %v20027_v55  ;;  %vm18148_vm7 = vcmp.eq.s32.totalorder %v20064_v50, %v11609_v19  ;;  %vm18151_vm3 = vcmp.eq.s32.totalorder %v20049_v32, %v11615_v53  ;;  %vm20073_vm15 = vnez %v20072_v10  ;;  %v20074_v63 = vld [vmem:[#allocation64_spill] sm:$0xff] }
 0x31f   :  { %7356 = vmatprep.subr.msk.bf16.mxu1 %vm20073_vm15, %v20027_v55  ;;  %v650_v46 = vsel %vm18149_vm12, 1.0, %v19960_v18  ;;  %v658_v12 = vsel %vm18148_vm7, 1.0, %v19960_v18  ;;  %vm18154_vm8 = vcmp.eq.s32.totalorder %v20064_v50, %v11615_v53  ;;  %v652_v58 = vsel %vm18151_vm3, 1.0, %v19960_v18 }
 0x320   :  { %v660_v10 = vsel %vm18154_vm8, 1.0, %v19960_v18  ;;  %vm18157_vm15 = vcmp.eq.s32.totalorder %v20074_v63, %v11612_v61  ;;  %vm18168_vm7 = vcmp.eq.s32.totalorder %v20075_v9, %v11612_v61  ;;  %vm18163_vm12 = vcmp.eq.s32.totalorder %v20074_v63, %v11622_v35 }
 0x321   :  { %vm20077_vm3 = vnez %v20076_v36  ;;  %v667_v62 = vsel %vm18157_vm15, 1.0, %v19960_v18  ;;  %v675_v26 = vsel %vm18168_vm7, 1.0, %v19960_v18  ;;  %vm18167_vm8 = vcmp.eq.s32.totalorder %v20075_v9, %v11622_v35  ;;  %v20078_v36 = vld [vmem:[#allocation39_spill] sm:$0xff] }
 0x322   :  { %6974 = vmatpush1.bf16.msk.msra.mxu0 %vm20077_vm3, %v20027_v55  ;;  %v669_v23 = vsel %vm18163_vm12, 1.0, %v19960_v18  ;;  %vm20079_vm3 = vnez %v20078_v36  ;;  %vm20081_vm15 = vnez %v20080_v17  ;;  %v12446_v27 = vsub.f32 %v659_v16, %v659_v16 }
 0x323   :  { %7358 = vmatpush1.bf16.msk.msra.mxu1 %vm20079_vm3, %v20027_v55  ;;  %6976 = vmatprep.subr.msk.bf16.mxu0 %vm20081_vm15, %v20027_v55  ;;  %v12448_v50 = vsub.f32 %v653_v60, %v653_v60  ;;  %v12450_v32 = vsub.f32 %v661_v15, %v661_v15  ;;  %v677_v40 = vsel %vm18167_vm8, 1.0, %v19960_v18  ;;  %vm20086_vm12 = vnez %v20085_v14  ;;  %v20095_v14 = vld [vmem:[#allocation43_spill] sm:$0xff] }
 0x324   :  { %20082 = vst [vmem:[#allocation98_spill] sm:$0xff] %v12446_v27  ;;  %7360 = vmatprep.subr.msk.bf16.mxu1 %vm20086_vm12, %v20027_v55  ;;  %v12459_v36 = vsub.f32 %v650_v46, %v650_v46  ;;  %v12461_v4 = vsub.f32 %v658_v12, %v658_v12  ;;  %v12463_v17 = vsub.f32 %v652_v58, %v652_v58  ;;  %v20090_v16 = vmov 1   ;;  %v20103_v12 = vld [vmem:[#allocation48_spill] sm:$0xff] }
 0x325   :  { %20083 = vst [vmem:[#allocation92_spill] sm:$0xff] %v12448_v50  ;;  %20084 = vst [vmem:[#allocation93_spill] sm:$0xff] %v12450_v32  ;;  %8245 = vset.pattern.permute.xlu1 %v20090_v16  ;;  %v12466_v60 = vsub.f32 %v660_v10, %v660_v10  ;;  %v12468_v15 = vsub.f32 %v667_v62, %v667_v62  ;;  %v12470_v32 = vsub.f32 %v675_v26, %v675_v26  ;;  %v20098_v62 = vmov 7   ;;  %v20099_v26 = vld [vmem:[#allocation44_spill] sm:$0xff] }
 0x326   :  { %20087 = vst [vmem:[#allocation100_spill] sm:$0xff] %v12459_v36  ;;  %20088 = vst [vmem:[#allocation101_spill] sm:$0xff] %v12461_v4  ;;  %v12472_v50 = vsub.f32 %v669_v23, %v669_v23  ;;  %4761 = vperm.xlu1 %8245, %v12392_v8   ;;  %vm20096_vm12 = vnez %v20095_v14  ;;  %v12478_v46 = vsub.f32 %v677_v40, %v677_v40  ;;  %8247 = vset.pattern.permute.xlu0 %v20098_v62  ;;  %v20101_v23 = vld [vmem:[#allocation47_spill] sm:$0xff]  ;;  %v20107_v16 = vmov 4  }
 0x327   :  { %20089 = vst [vmem:[#allocation111_spill] sm:$0xff] %v12463_v17  ;;  %20091 = vst [vmem:[#allocation112_spill] sm:$0xff] %v12466_v60  ;;  %6978 = vmatpush1.bf16.msk.msra.mxu0 %vm20096_vm12, %v20027_v55  ;;  %vm18191_vm15 = vcmp.eq.s32.totalorder %v20074_v63, %v11609_v19  ;;  %vm18170_vm3 = vcmp.eq.s32.totalorder %v20075_v9, %v11609_v19  ;;  %vm20100_vm8 = vnez %v20099_v26  ;;  %vm20102_vm7 = vnez %v20101_v23  ;;  %v20105_v26 = vld [vmem:[#allocation71_spill] sm:$0xff]  ;;  %v20106_v23 = vld [vmem:[#allocation72_spill] sm:$0xff] }
 0x328   :  { %20092 = vst [vmem:[#allocation113_spill] sm:$0xff] %v12468_v15  ;;  %20093 = vst [vmem:[#allocation114_spill] sm:$0xff] %v12470_v32  ;;  %7362 = vmatpush1.bf16.msk.msra.mxu1 %vm20100_vm8, %v20027_v55  ;;  %6980 = vmatprep.subr.msk.bf16.mxu0 %vm20102_vm7, %v20027_v55  ;;  %v666_v40 = vsel %vm18191_vm15, 1.0, %v19960_v18  ;;  %v674_v58 = vsel %vm18170_vm3, 1.0, %v19960_v18  ;;  %vm18173_vm12 = vcmp.eq.s32.totalorder %v20074_v63, %v11615_v53  ;;  %vm20104_vm2 = vnez %v20103_v12 }
 0x329   :  { %20094 = vst [vmem:[#allocation104_spill] sm:$0xff] %v12472_v50  ;;  %20097 = vst [vmem:[#allocation105_spill] sm:$0xff] %v12478_v46  ;;  %vm18171_vm8 = vcmp.eq.s32.totalorder %v20075_v9, %v11615_v53  ;;  %7364 = vmatprep.subr.msk.bf16.mxu1 %vm20104_vm2, %v20027_v55  ;;  %v668_v10 = vsel %vm18173_vm12, 1.0, %v19960_v18  ;;  %vm18177_vm7 = vcmp.eq.s32.totalorder %v20105_v26, %v11612_v61  ;;  %4809 = vperm.xlu0 %8247, %v12392_v8   ;;  %v20108_v46 = vld [vmem:[#allocation50_spill] sm:$0xff]  ;;  %v20124_v9 = vmov 2  }
 0x32a   :  { %v676_v14 = vsel %vm18171_vm8, 1.0, %v19960_v18  ;;  %vm18176_vm3 = vcmp.eq.s32.totalorder %v20106_v23, %v11612_v61  ;;  %v683_v12 = vsel %vm18177_vm7, 1.0, %v19960_v18  ;;  %vm18178_vm2 = vcmp.eq.s32.totalorder %v20105_v26, %v11622_v35  ;;  %8246 = vset.pattern.permute.xlu1 %v20107_v16  ;;  %v20112_v16 = vld [vmem:[#allocation53_spill] sm:$0xff] }
 0x32b   :  { %v691_v62 = vsel %vm18176_vm3, 1.0, %v19960_v18  ;;  %vm18190_vm8 = vcmp.eq.s32.totalorder %v20106_v23, %v11622_v35  ;;  %vm20109_vm12 = vnez %v20108_v46  ;;  %v685_v50 = vsel %vm18178_vm2, 1.0, %v19960_v18  ;;  %4781 = vperm.xlu1 %8246, %v12392_v8   ;;  %v20110_v46 = vld [vmem:[#allocation51_spill] sm:$0xff] }
 0x32c   :  { %6982 = vmatpush1.bf16.msk.msra.mxu0 %vm20109_vm12, %v20027_v55  ;;  %v693_v32 = vsel %vm18190_vm8, 1.0, %v19960_v18  ;;  %vm18189_vm3 = vcmp.eq.s32.totalorder %v20105_v26, %v11609_v19  ;;  %vm18188_vm7 = vcmp.eq.s32.totalorder %v20106_v23, %v11609_v19  ;;  %vm20111_vm12 = vnez %v20110_v46  ;;  %v20116_v46 = vld [vmem:[#allocation54_spill] sm:$0xff] }
 0x32d   :  { %7366 = vmatpush1.bf16.msk.msra.mxu1 %vm20111_vm12, %v20027_v55  ;;  %vm20113_vm2 = vnez %v20112_v16  ;;  %v12554_v15 = vsub.f32 %v666_v40, %v666_v40  ;;  %v12556_v60 = vsub.f32 %v674_v58, %v674_v58  ;;  %v682_v17 = vsel %vm18189_vm3, 1.0, %v19960_v18  ;;  %8248 = vset.pattern.permute.xlu0 %v20124_v9 }
 0x32e   :  { %6984 = vmatprep.subr.msk.bf16.mxu0 %vm20113_vm2, %v20027_v55  ;;  %v690_v4 = vsel %vm18188_vm7, 1.0, %v19960_v18  ;;  %vm20117_vm12 = vnez %v20116_v46  ;;  %v12569_v16 = vsub.f32 %v668_v10, %v668_v10  ;;  %v12571_v40 = vsub.f32 %v676_v14, %v676_v14  ;;  %v20125_v10 = vld [vmem:[#allocation55_spill] sm:$0xff]  ;;  %v20134_v46 = vld [vmem:[#allocation84_spill] sm:$0xff]  ;;  %4935 = vperm.xlu0 %8248, %v12392_v8  }
 0x32f   :  { %20114 = vst [vmem:[#allocation106_spill] sm:$0xff] %v12554_v15  ;;  %20115 = vst [vmem:[#allocation108_spill] sm:$0xff] %v12556_v60  ;;  %7368 = vmatprep.subr.msk.bf16.mxu1 %vm20117_vm12, %v20027_v55  ;;  %v12573_v58 = vsub.f32 %v683_v12, %v683_v12  ;;  %v12575_v60 = vsub.f32 %v691_v62, %v691_v62  ;;  %v12577_v15 = vsub.f32 %v685_v50, %v685_v50  ;;  %v20131_v62 = vld [vmem:[#allocation59_spill] sm:$0xff]  ;;  %v20137_v9 = vmov 0  }
 0x330   :  { %20118 = vst [vmem:[#allocation122_spill] sm:$0xff] %v12569_v16  ;;  %20119 = vst [vmem:[#allocation123_spill] sm:$0xff] %v12571_v40  ;;  %v12579_v36 = vsub.f32 %v693_v32, %v693_v32  ;;  %vm18192_vm2 = vcmp.eq.s32.totalorder %v20105_v26, %v11615_v53  ;;  %vm20126_vm12 = vnez %v20125_v10  ;;  %v12588_v14 = vsub.f32 %v682_v17, %v682_v17  ;;  %v20129_v32 = vld [vmem:[#allocation56_spill] sm:$0xff]  ;;  %v20133_v17 = vld [vmem:[#allocation83_spill] sm:$0xff] }
 0x331   :  { %20120 = vst [vmem:[#allocation127_spill] sm:$0xff] %v12573_v58  ;;  %20121 = vst [vmem:[#allocation119_spill] sm:$0xff] %v12575_v60  ;;  %6986 = vmatpush1.bf16.msk.msra.mxu0 %vm20126_vm12, %v20027_v55  ;;  %v12590_v12 = vsub.f32 %v690_v4, %v690_v4  ;;  %vm18213_vm7 = vcmp.eq.s32.totalorder %v20106_v23, %v11615_v53  ;;  %v684_v50 = vsel %vm18192_vm2, 1.0, %v19960_v18  ;;  %vm20130_vm3 = vnez %v20129_v32  ;;  %v20135_v10 = vld [vmem:[#allocation60_spill] sm:$0xff] }
 0x332   :  { %20122 = vst [vmem:[#allocation125_spill] sm:$0xff] %v12577_v15  ;;  %20123 = vst [vmem:[#allocation129_spill] sm:$0xff] %v12579_v36  ;;  %7370 = vmatpush1.bf16.msk.msra.mxu1 %vm20130_vm3, %v20027_v55  ;;  %vm20132_vm8 = vnez %v20131_v62  ;;  %v692_v4 = vsel %vm18213_vm7, 1.0, %v19960_v18  ;;  %vm18194_vm12 = vcmp.eq.s32.totalorder %v20133_v17, %v11612_v61  ;;  %vm18193_vm15 = vcmp.eq.s32.totalorder %v20134_v46, %v11612_v61  ;;  %v20142_v36 = vld [vmem:[#allocation67_spill] sm:$0xff]  ;;  %v20147_v16 = vld [vmem:[#allocation68_spill] sm:$0xff] }
 0x333   :  { %20127 = vst [vmem:[#allocation133_spill] sm:$0xff] %v12588_v14  ;;  %20128 = vst [vmem:[#allocation136_spill] sm:$0xff] %v12590_v12  ;;  %6988 = vmatprep.subr.msk.bf16.mxu0 %vm20132_vm8, %v20027_v55  ;;  %vm18196_vm2 = vcmp.eq.s32.totalorder %v20133_v17, %v11622_v35  ;;  %vm20136_vm3 = vnez %v20135_v10  ;;  %v699_v32 = vsel %vm18194_vm12, 1.0, %v19960_v18  ;;  %v707_v62 = vsel %vm18193_vm15, 1.0, %v19960_v18  ;;  %8252 = vset.pattern.permute.xlu1 %v20137_v9  ;;  %v20138_v12 = vld [vmem:[#allocation63_spill] sm:$0xff] }
 0x334   :  { %7372 = vmatprep.subr.msk.bf16.mxu1 %vm20136_vm3, %v20027_v55  ;;  %vm18198_vm8 = vcmp.eq.s32.totalorder %v20134_v46, %v11622_v35  ;;  %v701_v27 = vsel %vm18196_vm2, 1.0, %v19960_v18  ;;  %vm18200_vm3 = vcmp.eq.s32.totalorder %v20133_v17, %v11609_v19  ;;  %vm18212_vm15 = vcmp.eq.s32.totalorder %v20134_v46, %v11609_v19 }
 0x335   :  { %v709_v10 = vsel %vm18198_vm8, 1.0, %v19960_v18  ;;  %vm18206_vm12 = vcmp.eq.s32.totalorder %v20133_v17, %v11615_v53  ;;  %vm20139_vm2 = vnez %v20138_v12  ;;  %v698_v8 = vsel %vm18200_vm3, 1.0, %v19960_v18  ;;  %v20140_v12 = vld [vmem:[#allocation66_spill] sm:$0xff] }
 0x336   :  { %6990 = vmatpush1.bf16.msk.msra.mxu0 %vm20139_vm2, %v20027_v55  ;;  %v706_v14 = vsel %vm18212_vm15, 1.0, %v19960_v18  ;;  %vm18211_vm8 = vcmp.eq.s32.totalorder %v20134_v46, %v11615_v53  ;;  %v700_v9 = vsel %vm18206_vm12, 1.0, %v19960_v18  ;;  %vm20141_vm2 = vnez %v20140_v12 }
 0x337   :  { %7374 = vmatpush1.bf16.msk.msra.mxu1 %vm20141_vm2, %v20027_v55  ;;  %vm20143_vm3 = vnez %v20142_v36  ;;  %v12666_v15 = vsub.f32 %v684_v50, %v684_v50  ;;  %v12668_v60 = vsub.f32 %v692_v4, %v692_v4  ;;  %v12670_v58 = vsub.f32 %v699_v32, %v699_v32 }
 0x338   :  { %6992 = vmatprep.subr.msk.bf16.mxu0 %vm20143_vm3, %v20027_v55  ;;  %v708_v40 = vsel %vm18211_vm8, 1.0, %v19960_v18  ;;  %vm20148_vm12 = vnez %v20147_v16  ;;  %v12679_v12 = vsub.f32 %v707_v62, %v707_v62  ;;  %v12681_v17 = vsub.f32 %v701_v27, %v701_v27  ;;  %v20156_v16 = vld [vmem:[#allocation69_spill] sm:$0xff]  ;;  %v20159_v62 = vld [vmem:[#allocation90_spill] sm:$0xff] }
 0x339   :  { %20144 = vst [vmem:[#allocation140_spill] sm:$0xff] %v12666_v15  ;;  %20145 = vst [vmem:[#allocation131_spill] sm:$0xff] %v12668_v60  ;;  %7376 = vmatprep.subr.msk.bf16.mxu1 %vm20148_vm12, %v20027_v55  ;;  %v12683_v36 = vsub.f32 %v709_v10, %v709_v10  ;;  %v20152_v4 = vmov 5   ;;  %v12687_v32 = vsub.f32 %v698_v8, %v698_v8  ;;  %v12691_v60 = vsub.f32 %v700_v9, %v700_v9  ;;  %v20160_v10 = vld [vmem:[#allocation91_spill] sm:$0xff]  ;;  %v20161_v9 = vld [vmem:[#allocation70_spill] sm:$0xff] }
 0x33a   :  { %20146 = vst [vmem:[#allocation134_spill] sm:$0xff] %v12670_v58  ;;  %20149 = vst [vmem:[#allocation154_spill] sm:$0xff] %v12679_v12  ;;  %8249 = vset.pattern.permute.xlu0 %v20152_v4  ;;  %v12689_v58 = vsub.f32 %v706_v14, %v706_v14  ;;  %vm20157_vm12 = vnez %v20156_v16  ;;  %v12697_v27 = vsub.f32 %v708_v40, %v708_v40  ;;  %vm20162_vm15 = vnez %v20161_v9  ;;  %v20163_v14 = vld [vmem:[#allocation76_spill] sm:$0xff]  ;;  %v20165_v9 = vld [vmem:[#allocation77_spill] sm:$0xff] }
 0x33b   :  { %20150 = vst [vmem:[#allocation157_spill] sm:$0xff] %v12681_v17  ;;  %20151 = vst [vmem:[#allocation176_spill] sm:$0xff] %v12683_v36  ;;  %6994 = vmatpush1.bf16.msk.msra.mxu0 %vm20157_vm12, %v20027_v55  ;;  %vm18215_vm3 = vcmp.eq.s32.totalorder %v20159_v62, %v11612_v61  ;;  %vm18214_vm2 = vcmp.eq.s32.totalorder %v20160_v10, %v11612_v61  ;;  %vm18222_vm8 = vcmp.eq.s32.totalorder %v20159_v62, %v11622_v35  ;;  %v20167_v4 = vld [vmem:[#allocation79_spill] sm:$0xff] }
 0x33c   :  { %20153 = vst [vmem:[#allocation171_spill] sm:$0xff] %v12687_v32  ;;  %20154 = vst [vmem:[#allocation175_spill] sm:$0xff] %v12689_v58  ;;  %7378 = vmatpush1.bf16.msk.msra.mxu1 %vm20162_vm15, %v20027_v55  ;;  %vm20164_vm7 = vnez %v20163_v14  ;;  %v715_v40 = vsel %vm18215_vm3, 1.0, %v19960_v18  ;;  %v723_v8 = vsel %vm18214_vm2, 1.0, %v19960_v18  ;;  %vm18216_vm12 = vcmp.eq.s32.totalorder %v20160_v10, %v11622_v35  ;;  %v20170_v58 = vld [vmem:[#allocation110_spill] sm:$0xff] }
 0x33d   :  { %20155 = vst [vmem:[#allocation178_spill] sm:$0xff] %v12691_v60  ;;  %20158 = vst [vmem:[#allocation179_spill] sm:$0xff] %v12697_v27  ;;  %6996 = vmatprep.subr.msk.bf16.mxu0 %vm20164_vm7, %v20027_v55  ;;  %v717_v16 = vsel %vm18222_vm8, 1.0, %v19960_v18  ;;  %vm20166_vm15 = vnez %v20165_v9  ;;  %v725_v14 = vsel %vm18216_vm12, 1.0, %v19960_v18  ;;  %vm18221_vm7 = vcmp.eq.s32.totalorder %v20159_v62, %v11609_v19  ;;  %v20169_v60 = vld [vmem:[#allocation109_spill] sm:$0xff]  ;;  %v20171_v32 = vld [vmem:[#allocation82_spill] sm:$0xff] }
 0x33e   :  { %7380 = vmatprep.subr.msk.bf16.mxu1 %vm20166_vm15, %v20027_v55  ;;  %vm18219_vm2 = vcmp.eq.s32.totalorder %v20160_v10, %v11609_v19  ;;  %vm18224_vm3 = vcmp.eq.s32.totalorder %v20159_v62, %v11615_v53  ;;  %v714_v9 = vsel %vm18221_vm7, 1.0, %v19960_v18  ;;  %vm18227_vm15 = vcmp.eq.s32.totalorder %v20160_v10, %v11615_v53 }
 0x33f   :  { %v722_v15 = vsel %vm18219_vm2, 1.0, %v19960_v18  ;;  %v716_v50 = vsel %vm18224_vm3, 1.0, %v19960_v18  ;;  %vm20168_vm12 = vnez %v20167_v4  ;;  %v724_v27 = vsel %vm18227_vm15, 1.0, %v19960_v18  ;;  %v20173_v4 = vld [vmem:[#allocation88_spill] sm:$0xff] }
 0x340   :  { %6998 = vmatpush1.bf16.msk.msra.mxu0 %vm20168_vm12, %v20027_v55  ;;  %vm18245_vm2 = vcmp.eq.s32.totalorder %v20169_v60, %v11612_v61  ;;  %vm18239_vm7 = vcmp.eq.s32.totalorder %v20170_v58, %v11612_v61  ;;  %vm18238_vm8 = vcmp.eq.s32.totalorder %v20169_v60, %v11622_v35  ;;  %vm20172_vm3 = vnez %v20171_v32 }
 0x341   :  { %7382 = vmatpush1.bf16.msk.msra.mxu1 %vm20172_vm3, %v20027_v55  ;;  %vm20174_vm12 = vnez %v20173_v4  ;;  %v731_v36 = vsel %vm18245_vm2, 1.0, %v19960_v18  ;;  %v739_v17 = vsel %vm18239_vm7, 1.0, %v19960_v18  ;;  %vm18237_vm15 = vcmp.eq.s32.totalorder %v20170_v58, %v11622_v35  ;;  %v20175_v4 = vld [vmem:[#allocation89_spill] sm:$0xff] }
 0x342   :  { %7000 = vmatprep.subr.msk.bf16.mxu0 %vm20174_vm12, %v20027_v55  ;;  %v733_v32 = vsel %vm18238_vm8, 1.0, %v19960_v18  ;;  %vm20176_vm3 = vnez %v20175_v4  ;;  %v12788_v12 = vsub.f32 %v715_v40, %v715_v40  ;;  %v12790_v10 = vsub.f32 %v723_v8, %v723_v8  ;;  %v20184_v40 = vld [vmem:[#allocation94_spill] sm:$0xff] }
 0x343   :  { %7384 = vmatprep.subr.msk.bf16.mxu1 %vm20176_vm3, %v20027_v55  ;;  %v12792_v62 = vsub.f32 %v717_v16, %v717_v16  ;;  %v741_v46 = vsel %vm18237_vm15, 1.0, %v19960_v18  ;;  %v12798_v23 = vsub.f32 %v725_v14, %v725_v14  ;;  %v12800_v26 = vsub.f32 %v714_v9, %v714_v9  ;;  %v20190_v14 = vld [vmem:[#allocation96_spill] sm:$0xff] }
 0x344   :  { %20177 = vst [vmem:[#allocation184_spill] sm:$0xff] %v12788_v12  ;;  %20178 = vst [vmem:[#allocation177_spill] sm:$0xff] %v12790_v10  ;;  %v12802_v63 = vsub.f32 %v722_v15, %v722_v15  ;;  %v12804_v44 = vsub.f32 %v716_v50, %v716_v50  ;;  %vm20185_vm12 = vnez %v20184_v40  ;;  %v12809_v8 = vsub.f32 %v724_v27, %v724_v27  ;;  %v20192_v15 = vld [vmem:[#allocation99_spill] sm:$0xff]  ;;  %v20197_v40 = vld [vmem:[#allocation117_spill] sm:$0xff] }
 0x345   :  { %20179 = vst [vmem:[#allocation180_spill] sm:$0xff] %v12792_v62  ;;  %20180 = vst [vmem:[#allocation181_spill] sm:$0xff] %v12798_v23  ;;  %7002 = vmatpush1.bf16.msk.msra.mxu0 %vm20185_vm12, %v20027_v55  ;;  %v12811_v16 = vsub.f32 %v731_v36, %v731_v36  ;;  %v12813_v4 = vsub.f32 %v739_v17, %v739_v17  ;;  %v12815_v62 = vsub.f32 %v733_v32, %v733_v32  ;;  %v20195_v36 = vld [vmem:[#allocation102_spill] sm:$0xff] }
 0x346   :  { %20181 = vst [vmem:[#allocation182_spill] sm:$0xff] %v12800_v26  ;;  %20182 = vst [vmem:[#allocation187_spill] sm:$0xff] %v12802_v63  ;;  %vm20191_vm3 = vnez %v20190_v14  ;;  %vm20193_vm15 = vnez %v20192_v15  ;;  %v12823_v50 = vsub.f32 %v741_v46, %v741_v46  ;;  %vm18241_vm12 = vcmp.eq.s32.totalorder %v20169_v60, %v11609_v19  ;;  %v20198_v14 = vld [vmem:[#allocation118_spill] sm:$0xff]  ;;  %v20199_v15 = vld [vmem:[#allocation103_spill] sm:$0xff] }
 0x347   :  { %20183 = vst [vmem:[#allocation189_spill] sm:$0xff] %v12804_v44  ;;  %20186 = vst [vmem:[#allocation192_spill] sm:$0xff] %v12809_v8  ;;  %7386 = vmatpush1.bf16.msk.msra.mxu1 %vm20191_vm3, %v20027_v55  ;;  %7004 = vmatprep.subr.msk.bf16.mxu0 %vm20193_vm15, %v20027_v55  ;;  %vm18240_vm8 = vcmp.eq.s32.totalorder %v20170_v58, %v11609_v19  ;;  %vm20196_vm7 = vnez %v20195_v36  ;;  %v730_v27 = vsel %vm18241_vm12, 1.0, %v19960_v18  ;;  %vm20200_vm12 = vnez %v20199_v15  ;;  %v20203_v15 = vld [vmem:[#allocation115_spill] sm:$0xff] }
 0x348   :  { %20187 = vst [vmem:[#allocation185_spill] sm:$0xff] %v12811_v16  ;;  %20188 = vst [vmem:[#allocation186_spill] sm:$0xff] %v12813_v4  ;;  %7388 = vmatprep.subr.msk.bf16.mxu1 %vm20196_vm7, %v20027_v55  ;;  %v738_v46 = vsel %vm18240_vm8, 1.0, %v19960_v18  ;;  %vm18243_vm15 = vcmp.eq.s32.totalorder %v20169_v60, %v11615_v53  ;;  %vm18242_vm3 = vcmp.eq.s32.totalorder %v20170_v58, %v11615_v53  ;;  %v20270_v12 = vand.u32 4294901760, %v11870_v38 }
 0x349   :  { %20189 = vst [vmem:[#allocation188_spill] sm:$0xff] %v12815_v62  ;;  %20194 = vst [vmem:[#allocation191_spill] sm:$0xff] %v12823_v50  ;;  %v732_v9 = vsel %vm18243_vm15, 1.0, %v19960_v18  ;;  %v740_v32 = vsel %vm18242_vm3, 1.0, %v19960_v18  ;;  %vm18249_vm7 = vcmp.eq.s32.totalorder %v20197_v40, %v11612_v61  ;;  %vm18248_vm8 = vcmp.eq.s32.totalorder %v20198_v14, %v11612_v61  ;;  %7006 = vmatpush1.bf16.msk.msra.mxu0 %vm20200_vm12, %v20027_v55  ;;  %v20201_v50 = vld [vmem:[#allocation107_spill] sm:$0xff] }
 0x34a   :  { %v747_v36 = vsel %vm18249_vm7, 1.0, %v19960_v18  ;;  %v755_v17 = vsel %vm18248_vm8, 1.0, %v19960_v18  ;;  %vm18290_vm3 = vcmp.eq.s32.totalorder %v20197_v40, %v11622_v35  ;;  %vm18259_vm15 = vcmp.eq.s32.totalorder %v20198_v14, %v11622_v35 }
 0x34b   :  { %vm20202_vm2 = vnez %v20201_v50  ;;  %vm20204_vm12 = vnez %v20203_v15  ;;  %v749_v62 = vsel %vm18290_vm3, 1.0, %v19960_v18  ;;  %v757_v4 = vsel %vm18259_vm15, 1.0, %v19960_v18  ;;  %v20205_v50 = vld [vmem:[#allocation116_spill] sm:$0xff] }
 0x34c   :  { %7390 = vmatpush1.bf16.msk.msra.mxu1 %vm20202_vm2, %v20027_v55  ;;  %7008 = vmatprep.subr.msk.bf16.mxu0 %vm20204_vm12, %v20027_v55  ;;  %vm18258_vm8 = vcmp.eq.s32.totalorder %v20197_v40, %v11609_v19  ;;  %vm18257_vm2 = vcmp.eq.s32.totalorder %v20198_v14, %v11609_v19  ;;  %vm20206_vm7 = vnez %v20205_v50  ;;  %v12893_v15 = vsub.f32 %v730_v27, %v730_v27 }
 0x34d   :  { %7392 = vmatprep.subr.msk.bf16.mxu1 %vm20206_vm7, %v20027_v55  ;;  %v12895_v16 = vsub.f32 %v738_v46, %v738_v46  ;;  %v746_v8 = vsel %vm18258_vm8, 1.0, %v19960_v18  ;;  %v754_v44 = vsel %vm18257_vm2, 1.0, %v19960_v18  ;;  %v12905_v63 = vsub.f32 %v732_v9, %v732_v9  ;;  %v20213_v46 = vld [vmem:[#allocation120_spill] sm:$0xff]  ;;  %v20217_v9 = vld [vmem:[#allocation121_spill] sm:$0xff] }
 0x34e   :  { %20207 = vst [vmem:[#allocation194_spill] sm:$0xff] %v12893_v15  ;;  %v12907_v26 = vsub.f32 %v740_v32, %v740_v32  ;;  %v12909_v50 = vsub.f32 %v747_v36, %v747_v36  ;;  %v12911_v27 = vsub.f32 %v755_v17, %v755_v17  ;;  %vm20214_vm7 = vnez %v20213_v46  ;;  %v20219_v17 = vld [vmem:[#allocation126_spill] sm:$0xff] }
 0x34f   :  { %20208 = vst [vmem:[#allocation195_spill] sm:$0xff] %v12895_v16  ;;  %20209 = vst [vmem:[#allocation200_spill] sm:$0xff] %v12905_v63  ;;  %7010 = vmatpush1.bf16.msk.msra.mxu0 %vm20214_vm7, %v20027_v55  ;;  %v12916_v16 = vsub.f32 %v749_v62, %v749_v62  ;;  %v12918_v15 = vsub.f32 %v757_v4, %v757_v4  ;;  %vm18260_vm12 = vcmp.eq.s32.totalorder %v20197_v40, %v11615_v53 }
 0x350   :  { %20210 = vst [vmem:[#allocation193_spill] sm:$0xff] %v12907_v26  ;;  %20211 = vst [vmem:[#allocation196_spill] sm:$0xff] %v12909_v50  ;;  %vm18262_vm2 = vcmp.eq.s32.totalorder %v20198_v14, %v11615_v53  ;;  %vm20218_vm8 = vnez %v20217_v9  ;;  %vm20220_vm15 = vnez %v20219_v17  ;;  %v12930_v32 = vsub.f32 %v746_v8, %v746_v8  ;;  %v20224_v9 = vld [vmem:[#allocation137_spill] sm:$0xff]  ;;  %v20232_v26 = vld [vmem:[#allocation144_spill] sm:$0xff] }
 0x351   :  { %20212 = vst [vmem:[#allocation197_spill] sm:$0xff] %v12911_v27  ;;  %20215 = vst [vmem:[#allocation198_spill] sm:$0xff] %v12916_v16  ;;  %7394 = vmatpush1.bf16.msk.msra.mxu1 %vm20218_vm8, %v20027_v55  ;;  %7012 = vmatprep.subr.msk.bf16.mxu0 %vm20220_vm15, %v20027_v55  ;;  %v12932_v62 = vsub.f32 %v754_v44, %v754_v44  ;;  %v748_v4 = vsel %vm18260_vm12, 1.0, %v19960_v18  ;;  %v756_v36 = vsel %vm18262_vm2, 1.0, %v19960_v18  ;;  %v20225_v44 = vld [vmem:[#allocation138_spill] sm:$0xff]  ;;  %v20244_v50 = vld [vmem:[#allocation152_spill] sm:$0xff] }
 0x352   :  { %20216 = vst [vmem:[#allocation203_spill] sm:$0xff] %v12918_v15  ;;  %20221 = vst [vmem:[#allocation205_spill] sm:$0xff] %v12930_v32  ;;  %7396 = vmatprep.subr.msk.bf16.mxu1 %vm19748_vm0, %v20027_v55  ;;  %vm18283_vm8 = vcmp.eq.s32.totalorder %v20224_v9, %v11612_v61  ;;  %vm18265_vm15 = vcmp.eq.s32.totalorder %v20225_v44, %v11612_v61  ;;  %vm18280_vm7 = vcmp.eq.s32.totalorder %v20224_v9, %v11622_v35 }
 0x353   :  { %20222 = vst [vmem:[#allocation206_spill] sm:$0xff] %v12932_v62  ;;  %vm18279_vm12 = vcmp.eq.s32.totalorder %v20225_v44, %v11622_v35  ;;  %v763_v8 = vsel %vm18283_vm8, 1.0, %v19960_v18  ;;  %v771_v17 = vsel %vm18265_vm15, 1.0, %v19960_v18  ;;  %v765_v46 = vsel %vm18280_vm7, 1.0, %v19960_v18  ;;  %v20226_v62 = vld [vmem:[#allocation132_spill] sm:$0xff] }
 0x354   :  { %vm18271_vm0 = vcmp.eq.s32.totalorder %v20224_v9, %v11609_v19  ;;  %vm20227_vm2 = vnez %v20226_v62  ;;  %v12970_v32 = vsub.f32 %v748_v4, %v748_v4  ;;  %v773_v15 = vsel %vm18279_vm12, 1.0, %v19960_v18 }
 0x355   :  { %7014 = vmatpush1.bf16.msk.msra.mxu0 %vm20227_vm2, %v20027_v55  ;;  %vm18276_vm15 = vcmp.eq.s32.totalorder %v20225_v44, %v11609_v19  ;;  %v762_v16 = vsel %vm18271_vm0, 1.0, %v19960_v18  ;;  %7398 = vmatpush1.bf16.msk.msra.mxu1 %vm19752_vm14, %v20027_v55  ;;  %v12988_v4 = vsub.f32 %v756_v36, %v756_v36  ;;  %vm18275_vm2 = vcmp.eq.s32.totalorder %v20224_v9, %v11615_v53  ;;  %v20271_v9 = vld [vmem:[#allocation162_spill] sm:$0xff] }
 0x356   :  { %20228 = vst [vmem:[#allocation208_spill] sm:$0xff] %v12970_v32  ;;  %7016 = vmatprep.subr.msk.bf16.mxu0 %vm19754_vm1, %v20027_v55  ;;  %v770_v32 = vsel %vm18276_vm15, 1.0, %v19960_v18  ;;  %vm20233_vm0 = vnez %v20232_v26  ;;  %v13000_v27 = vsub.f32 %v763_v8, %v763_v8  ;;  %v13002_v62 = vsub.f32 %v771_v17, %v771_v17  ;;  %v20239_v8 = vld [vmem:[#allocation149_spill] sm:$0xff] }
 0x357   :  { %20231 = vst [vmem:[#allocation201_spill] sm:$0xff] %v12988_v4  ;;  %7400 = vmatprep.subr.msk.bf16.mxu1 %vm20233_vm0, %v20027_v55  ;;  %v13004_v36 = vsub.f32 %v765_v46, %v765_v46  ;;  %v764_v4 = vsel %vm18275_vm2, 1.0, %v19960_v18  ;;  %v13010_v63 = vsub.f32 %v773_v15, %v773_v15  ;;  %v13012_v23 = vsub.f32 %v762_v16, %v762_v16  ;;  %v20242_v15 = vld [vmem:[#allocation145_spill] sm:$0xff]  ;;  %v20243_v16 = vld [vmem:[#allocation146_spill] sm:$0xff] }
 0x358   :  { %20234 = vst [vmem:[#allocation202_spill] sm:$0xff] %v13000_v27  ;;  %20235 = vst [vmem:[#allocation204_spill] sm:$0xff] %v13002_v62  ;;  %vm18278_vm1 = vcmp.eq.s32.totalorder %v20225_v44, %v11615_v53  ;;  %vm20240_vm14 = vnez %v20239_v8  ;;  %v13020_v17 = vsub.f32 %v770_v32, %v770_v32  ;;  %vm18282_vm0 = vcmp.eq.s32.totalorder %v20242_v15, %v11612_v61  ;;  %v20246_v8 = vld [vmem:[#allocation155_spill] sm:$0xff] }
 0x359   :  { %20236 = vst [vmem:[#allocation207_spill] sm:$0xff] %v13004_v36  ;;  %20237 = vst [vmem:[#allocation210_spill] sm:$0xff] %v13010_v63  ;;  %7018 = vmatpush1.bf16.msk.msra.mxu0 %vm20240_vm14, %v20027_v55  ;;  %v772_v46 = vsel %vm18278_vm1, 1.0, %v19960_v18  ;;  %vm18281_vm2 = vcmp.eq.s32.totalorder %v20243_v16, %v11612_v61  ;;  %vm20245_vm15 = vnez %v20244_v50  ;;  %vm20247_vm14 = vnez %v20246_v8  ;;  %v20249_v50 = vld [vmem:[#allocation158_spill] sm:$0xff]  ;;  %v20261_v36 = vld [vmem:[#allocation159_spill] sm:$0xff] }
 0x35a   :  { %20238 = vst [vmem:[#allocation213_spill] sm:$0xff] %v13012_v23  ;;  %20241 = vst [vmem:[#allocation209_spill] sm:$0xff] %v13020_v17  ;;  %7402 = vmatpush1.bf16.msk.msra.mxu1 %vm20245_vm15, %v20027_v55  ;;  %7020 = vmatprep.subr.msk.bf16.mxu0 %vm20247_vm14, %v20027_v55  ;;  %v13036_v32 = vsub.f32 %v764_v4, %v764_v4  ;;  %v779_v26 = vsel %vm18282_vm0, 1.0, %v19960_v18  ;;  %v787_v17 = vsel %vm18281_vm2, 1.0, %v19960_v18  ;;  %vm20250_vm15 = vnez %v20249_v50 }
 0x35b   :  { %vm18289_vm1 = vcmp.eq.s32.totalorder %v20242_v15, %v11622_v35  ;;  %7404 = vmatprep.subr.msk.bf16.mxu1 %vm20250_vm15, %v20027_v55  ;;  %vm20251_vm14 = vcmp.eq.s32.totalorder %v19958_v22, %v11612_v61  ;;  %vm20252_vm12 = vcmp.eq.s32.totalorder %v19959_v6, %v11612_v61  ;;  %v20253_v4 = vmov 0 }
 0x35c   :  { %20248 = vst [vmem:[#allocation211_spill] sm:$0xff] %v13036_v32  ;;  %vm13057_vm7 = vmpackc.low %vm20252_vm12, %vm20251_vm14  ;;  %vm18288_vm2 = vcmp.eq.s32.totalorder %v20243_v16, %v11622_v35  ;;  %v781_v8 = vsel %vm18289_vm1, 1.0, %v19960_v18  ;;  %vm18301_vm15 = vcmp.eq.s32.totalorder %v20242_v15, %v11609_v19  ;;  %vm18300_vm0 = vcmp.eq.s32.totalorder %v20243_v16, %v11609_v19 }
 0x35d   :  { %v20254_v4 = vsel %vm13057_vm7, 4294967295, %v20253_v4  ;;  %vm20256_vm12 = vcmp.eq.s32.totalorder %v19958_v22, %v11622_v35  ;;  %vm20257_vm14 = vcmp.eq.s32.totalorder %v19959_v6, %v11622_v35  ;;  %v20258_v50 = vmov 0 }
 0x35e   :  { %20255 = vst [vmem:[#allocation216_spill] sm:$0xff] %v20254_v4  ;;  %vm13077_vm8 = vmpackc.low %vm20257_vm14, %vm20256_vm12  ;;  %v789_v32 = vsel %vm18288_vm2, 1.0, %v19960_v18  ;;  %v778_v23 = vsel %vm18301_vm15, 1.0, %v19960_v18  ;;  %v786_v63 = vsel %vm18300_vm0, 1.0, %v19960_v18  ;;  %vm18297_vm12 = vcmp.eq.s32.totalorder %v20242_v15, %v11615_v53 }
 0x35f   :  { %v20259_v50 = vsel %vm13077_vm8, 4294967295, %v20258_v50  ;;  %vm20262_vm14 = vnez %v20261_v36  ;;  %vm20263_vm2 = vcmp.eq.s32.totalorder %v19958_v22, %v11609_v19  ;;  %vm20264_vm1 = vcmp.eq.s32.totalorder %v19959_v6, %v11609_v19 }
 0x360   :  { %20260 = vst [vmem:[#allocation218_spill] sm:$0xff] %v20259_v50  ;;  %7022 = vmatpush1.bf16.msk.msra.mxu0 %vm20262_vm14, %v20027_v55  ;;  %vm13104_vm3 = vmpackc.low %vm20264_vm1, %vm20263_vm2  ;;  %v20265_v62 = vmov 0  ;;  %v13108_v27 = vsub.f32 %v772_v46, %v772_v46  ;;  %v13110_v10 = vsub.f32 %v779_v26, %v779_v26  ;;  %v780_v36 = vsel %vm18297_vm12, 1.0, %v19960_v18 }
 0x361   :  { %v20266_v62 = vsel %vm13104_vm3, 4294967295, %v20265_v62  ;;  %v13119_v44 = vsub.f32 %v11870_v38, %v20270_v12  ;;  %vm20272_vm2 = vnez %v20271_v9  ;;  %7408 = vmatprep.subr.msk.bf16.mxu0 %vm13057_vm7, %v20027_v55  ;;  %vm20273_vm1 = vcmp.eq.s32.totalorder %v19958_v22, %v11615_v53 }
 0x362   :  { %20267 = vst [vmem:[#allocation222_spill] sm:$0xff] %v20266_v62  ;;  %20268 = vst [vmem:[#allocation163_spill] sm:$0xff] %v13108_v27  ;;  %7406 = vmatpush1.bf16.msk.msra.mxu1 %vm20272_vm2, %v20027_v55  ;;  %vm20274_vm14 = vcmp.eq.s32.totalorder %v19959_v6, %v11615_v53  ;;  %v20275_v26 = vmov 0  ;;  %v13137_v12 = vsub.f32 %v787_v17, %v787_v17  ;;  %v13139_v46 = vsub.f32 %v781_v8, %v781_v8 }
 0x363   :  { %20269 = vst [vmem:[#allocation164_spill] sm:$0xff] %v13110_v10  ;;  %vm13133_vm12 = vmpackc.low %vm20274_vm14, %vm20273_vm1  ;;  %v20280_v9 = vand.u32 4294901760, %v11872_v54  ;;  %7792 = vmatprep.subr.msk.bf16.mxu1 %vm13077_vm8, %v20027_v55  ;;  %vm20281_vm2 = vcmp.eq.s32.totalorder %v19985_v25, %v11612_v61  ;;  %vm20282_vm1 = vcmp.eq.s32.totalorder %v19986_v1, %v11612_v61  ;;  %v20283_v22 = vmov 0  ;;  %1684 = vmatmul.mubr.f32.vlgmr.msra.gmra.mrb[0].mxu0 %v20037_v0 }
 0x364   :  { %v20276_v26 = vsel %vm13133_vm12, 4294967295, %v20275_v26  ;;  %20278 = vst [vmem:[#allocation5_spill] sm:$0xff] %v13137_v12  ;;  %20279 = vst [vmem:[#allocation16_spill] sm:$0xff] %v13139_v46  ;;  %v13159_v6 = vsub.f32 %v789_v32, %v789_v32  ;;  %v13161_v17 = vsub.f32 %v778_v23, %v778_v23  ;;  %v13163_v8 = vsub.f32 %v786_v63, %v786_v63 }
 0x365   :  { %20277 = vst [vmem:[#allocation224_spill] sm:$0xff] %v20276_v26  ;;  %v13144_v38 = vsub.f32 %v11872_v54, %v20280_v9  ;;  %vm13155_vm14 = vmpackc.low %vm20282_vm1, %vm20281_vm2  ;;  %vm18308_vm0 = vcmp.eq.s32.totalorder %v20243_v16, %v11615_v53  ;;  %vm20289_vm15 = vcmp.eq.s32.totalorder %v19985_v25, %v11622_v35  ;;  %vm20290_vm2 = vcmp.eq.s32.totalorder %v19986_v1, %v11622_v35 }
 0x366   :  { %v20284_v22 = vsel %vm13155_vm14, 4294967295, %v20283_v22  ;;  %20286 = vst [vmem:[#allocation161_spill] sm:$0xff] %v13159_v6  ;;  %20287 = vst [vmem:[#allocation167_spill] sm:$0xff] %v13161_v17  ;;  %v20291_v9 = vmov 0  ;;  %v13182_v63 = vsel %vm18308_vm0, 1.0, %v19960_v18  ;;  %v13184_v23 = vsub.f32 %v780_v36, %v780_v36  ;;  %2584 = vmatmul.mubr.f32.vlgmr.msra.gmra.mrb[0].mxu1 %v20037_v0  ;;  %7410 = vmatpush1.bf16.msk.msra.mxu0 %vm13104_vm3, %v20027_v55 }
 0x367   :  { %20285 = vst [vmem:[#allocation165_spill] sm:$0xff] %v20284_v22  ;;  %20288 = vst [vmem:[#allocation169_spill] sm:$0xff] %v13163_v8  ;;  %v20295_v32 = vand.u32 4294901760, %v11874_v45  ;;  %v20296_v4 = vand.u32 4294901760, %v11876_v43  ;;  %v20299_v18 = vmov 0  ;;  %v20303_v62 = vand.u32 4294901760, %v11927_v31  ;;  %7794 = vmatpush1.bf16.msk.msra.mxu1 %vm13133_vm12, %v20027_v55  ;;  %7412 = vmatprep.subr.msk.bf16.mxu0 %vm13155_vm14, %v20027_v55 }
 0x368   :  { %vm13174_vm1 = vmpackc.low %vm20290_vm2, %vm20289_vm15  ;;  %20294 = vst [vmem:[#allocation168_spill] sm:$0xff] %v13184_v23  ;;  %vm20297_vm15 = vcmp.eq.s32.totalorder %v19985_v25, %v11609_v19  ;;  %vm20298_vm2 = vcmp.eq.s32.totalorder %v19986_v1, %v11609_v19  ;;  %vm20315_vm6 = vcmp.eq.s32.totalorder %v19996_v30, %v11622_v35  ;;  %vm20320_vm5 = vcmp.eq.s32.totalorder %v19996_v30, %v11609_v19 }
 0x369   :  { %v20292_v9 = vsel %vm13174_vm1, 4294967295, %v20291_v9  ;;  %v13189_v50 = vsub.f32 %v11874_v45, %v20295_v32  ;;  %v13194_v54 = vsub.f32 %v11876_v43, %v20296_v4  ;;  %vm13206_vm0 = vmpackc.low %vm20298_vm2, %vm20297_vm15  ;;  %v20302_v4 = vand.u32 4294901760, %v11884_v29  ;;  %v20304_v45 = vld [vmem:[#allocation156_spill] sm:$0xff]  ;;  %7796 = vmatprep.subr.msk.bf16.mxu1 %vm13174_vm1, %v20027_v55 }
 0x36a   :  { %20293 = vst [vmem:[#allocation173_spill] sm:$0xff] %v20292_v9  ;;  %v20300_v18 = vsel %vm13206_vm0, 4294967295, %v20299_v18  ;;  %v13219_v0 = vsub.f32 %v11927_v31, %v20303_v62  ;;  %2659 = vmatprep.mubr.f32.mxu0 %v20304_v45  ;;  %vm20305_vm15 = vcmp.eq.s32.totalorder %v19985_v25, %v11615_v53  ;;  %vm20306_vm2 = vcmp.eq.s32.totalorder %v19986_v1, %v11615_v53 }
 0x36b   :  { %20301 = vst [vmem:[#allocation174_spill] sm:$0xff] %v20300_v18  ;;  %v13214_v32 = vsub.f32 %v11884_v29, %v20302_v4  ;;  %vm13232_vm11 = vmpackc.low %vm20306_vm2, %vm20305_vm15  ;;  %v20307_v4 = vmov 0  ;;  %3559 = vmatprep.mubr.f32.mxu1 %v20304_v45  ;;  %vm20310_vm15 = vcmp.eq.s32.totalorder %v19996_v30, %v11612_v61  ;;  %vm20311_vm2 = vcmp.eq.s32.totalorder %v19998_v20, %v11612_v61 }
 0x36c   :  { %v20308_v4 = vsel %vm13232_vm11, 4294967295, %v20307_v4  ;;  %vm13250_vm9 = vmpackc.low %vm20311_vm2, %vm20310_vm15  ;;  %v20312_v25 = vmov 0  ;;  %vm20316_vm15 = vcmp.eq.s32.totalorder %v19998_v20, %v11622_v35  ;;  %v20317_v43 = vmov 0  ;;  %7414 = vmatpush1.bf16.msk.msra.mxu0 %vm13206_vm0, %v20027_v55  ;;  %7798 = vmatpush1.bf16.msk.msra.mxu1 %vm13232_vm11, %v20027_v55 }
 0x36d   :  { %20309 = vst [vmem:[#allocation21_spill] sm:$0xff] %v20308_v4  ;;  %v20313_v25 = vsel %vm13250_vm9, 4294967295, %v20312_v25  ;;  %vm13267_vm2 = vmpackc.low %vm20316_vm15, %vm20315_vm6  ;;  %vm20321_vm6 = vcmp.eq.s32.totalorder %v19998_v20, %v11609_v19  ;;  %v20322_v36 = vmov 0  ;;  %v3584_v62 = vand.u32 4294901760, %v13194_v54  ;;  %7416 = vmatprep.subr.msk.bf16.mxu0 %vm13250_vm9, %v20027_v55 }
 0x36e   :  { %20314 = vst [vmem:[#allocation22_spill] sm:$0xff] %v20313_v25  ;;  %v20318_v43 = vsel %vm13267_vm2, 4294967295, %v20317_v43  ;;  %vm13284_vm15 = vmpackc.low %vm20321_vm6, %vm20320_vm5  ;;  %v2679_v31 = vand.u32 4294901760, %v13214_v32  ;;  %v20325_v1 = vand.u32 4294901760, %v11941_v49  ;;  %vm20326_vm5 = vcmp.eq.s32.totalorder %v19996_v30, %v11615_v53  ;;  %7800 = vmatprep.subr.msk.bf16.mxu1 %vm13267_vm2, %v20027_v55 }
 0x36f   :  { %20319 = vst [vmem:[#allocation25_spill] sm:$0xff] %v20318_v43  ;;  %v20323_v36 = vsel %vm13284_vm15, 4294967295, %v20322_v36  ;;  %vm20327_vm6 = vcmp.eq.s32.totalorder %v19998_v20, %v11615_v53  ;;  %v20328_v54 = vmov 0  ;;  %v2689_v32 = vand.u32 4294901760, %v13219_v0 }
 0x370   :  { %20324 = vst [vmem:[#allocation28_spill] sm:$0xff] %v20323_v36  ;;  %v3578_v45 = vsub.f32 %v11941_v49, %v20325_v1  ;;  %vm13306_vm13 = vmpackc.low %vm20327_vm6, %vm20326_vm5  ;;  %v20331_v1 = vand.u32 4294901760, %v11943_v5  ;;  %v20332_v4 = vand.u32 4294901760, %v11945_v48  ;;  %v20333_v9 = vand.u32 4294901760, %v11952_v42  ;;  %7418 = vmatpush1.bf16.msk.msra.mxu0 %vm13284_vm15, %v20027_v55 }
 0x371   :  { %v20329_v54 = vsel %vm13306_vm13, 4294967295, %v20328_v54  ;;  %vm20334_vm5 = vcmp.eq.s32.totalorder %v20005_v52, %v11612_v61  ;;  %vm20335_vm6 = vcmp.eq.s32.totalorder %v20008_v21, %v11612_v61  ;;  %v20336_v20 = vmov 0  ;;  %7802 = vmatpush1.bf16.msk.msra.mxu1 %vm13306_vm13, %v20027_v55 }
 0x372   :  { %20330 = vst [vmem:[#allocation33_spill] sm:$0xff] %v20329_v54  ;;  %v3588_v18 = vsub.f32 %v11943_v5, %v20331_v1  ;;  %v2693_v25 = vsub.f32 %v11945_v48, %v20332_v4  ;;  %v2703_v30 = vsub.f32 %v11952_v42, %v20333_v9  ;;  %vm13329_vm10 = vmpackc.low %vm20335_vm6, %vm20334_vm5  ;;  %v20339_v0 = vand.u32 4294901760, %v11954_v57 }
 0x373   :  { %v20337_v20 = vsel %vm13329_vm10, 4294967295, %v20336_v20  ;;  %v20340_v9 = vand.u32 4294901760, %v11956_v13  ;;  %v20341_v43 = vand.u32 4294901760, %v11960_v56  ;;  %v20342_v26 = vand.u32 4294901760, %v11962_v47  ;;  %7420 = vmatprep.subr.msk.bf16.mxu0 %vm13329_vm10, %v20027_v55 }
 0x374   :  { %20338 = vst [vmem:[#allocation34_spill] sm:$0xff] %v20337_v20  ;;  %v3593_v4 = vsub.f32 %v11954_v57, %v20339_v0  ;;  %vm20343_vm5 = vcmp.eq.s32.totalorder %v20005_v52, %v11622_v35  ;;  %vm20344_vm6 = vcmp.eq.s32.totalorder %v20008_v21, %v11622_v35  ;;  %v20345_v0 = vmov 0 }
 0x375   :  { %v3603_v1 = vsub.f32 %v11956_v13, %v20340_v9  ;;  %v2698_v22 = vsub.f32 %v11960_v56, %v20341_v43  ;;  %v2708_v42 = vsub.f32 %v11962_v47, %v20342_v26  ;;  %vm13351_vm4 = vmpackc.low %vm20344_vm6, %vm20343_vm5  ;;  %v20348_v9 = vand.u32 4294901760, %v11971_v34 }
 0x376   :  { %v20346_v0 = vsel %vm13351_vm4, 4294967295, %v20345_v0  ;;  %v20349_v43 = vand.u32 4294901760, %v12008_v3  ;;  %v20350_v26 = vand.u32 4294901760, %v12021_v41  ;;  %vm20351_vm5 = vcmp.eq.s32.totalorder %v20005_v52, %v11609_v19  ;;  %7804 = vmatprep.subr.msk.bf16.mxu1 %vm13351_vm4, %v20027_v55 }
 0x377   :  { %20347 = vst [vmem:[#allocation37_spill] sm:$0xff] %v20346_v0  ;;  %v3598_v13 = vsub.f32 %v11971_v34, %v20348_v9  ;;  %vm20352_vm6 = vcmp.eq.s32.totalorder %v20008_v21, %v11609_v19  ;;  %v20353_v9 = vmov 0  ;;  %v2694_v36 = vand.u32 4294901760, %v2693_v25 }
 0x378   :  { %v3608_v56 = vsub.f32 %v12008_v3, %v20349_v43  ;;  %v2713_v47 = vsub.f32 %v12021_v41, %v20350_v26  ;;  %vm13374_vm2 = vmpackc.low %vm20352_vm6, %vm20351_vm5  ;;  %v3579_v43 = vand.u32 4294901760, %v3578_v45  ;;  %v20356_v3 = vand.u32 4294901760, %v12023_v39 }
 0x379   :  { %v20354_v9 = vsel %vm13374_vm2, 4294967295, %v20353_v9  ;;  %vm20357_vm5 = vcmp.eq.s32.totalorder %v20005_v52, %v11615_v53  ;;  %vm20358_vm6 = vcmp.eq.s32.totalorder %v20008_v21, %v11615_v53  ;;  %v3589_v45 = vand.u32 4294901760, %v3588_v18  ;;  %7422 = vmatpush1.bf16.msk.msra.mxu0 %vm13374_vm2, %v20027_v55 }
 0x37a   :  { %20355 = vst [vmem:[#allocation40_spill] sm:$0xff] %v20354_v9  ;;  %v2723_v26 = vsub.f32 %v12023_v39, %v20356_v3  ;;  %vm13395_vm15 = vmpackc.low %vm20358_vm6, %vm20357_vm5  ;;  %v20359_v3 = vmov 0  ;;  %v2704_v57 = vand.u32 4294901760, %v2703_v30  ;;  %vm20362_vm10 = vcmp.eq.s32.totalorder %v20011_v28, %v11612_v61 }
 0x37b   :  { %v20360_v3 = vsel %vm13395_vm15, 4294967295, %v20359_v3  ;;  %vm20363_vm13 = vcmp.eq.s32.totalorder %v20012_v11, %v11612_v61  ;;  %v20364_v52 = vmov 0  ;;  %v3594_v21 = vand.u32 4294901760, %v3593_v4  ;;  %7806 = vmatpush1.bf16.msk.msra.mxu1 %vm13395_vm15, %v20027_v55 }
 0x37c   :  { %20361 = vst [vmem:[#allocation45_spill] sm:$0xff] %v20360_v3  ;;  %vm13409_vm9 = vmpackc.low %vm20363_vm13, %vm20362_vm10  ;;  %v3604_v18 = vand.u32 4294901760, %v3603_v1  ;;  %v2699_v25 = vand.u32 4294901760, %v2698_v22  ;;  %v2709_v30 = vand.u32 4294901760, %v2708_v42  ;;  %vm20367_vm5 = vcmp.eq.s32.totalorder %v20011_v28, %v11622_v35 }
 0x37d   :  { %v20365_v52 = vsel %vm13409_vm9, 4294967295, %v20364_v52  ;;  %vm20368_vm6 = vcmp.eq.s32.totalorder %v20012_v11, %v11622_v35  ;;  %v20369_v54 = vmov 0  ;;  %v3599_v0 = vand.u32 4294901760, %v3598_v13  ;;  %7424 = vmatprep.subr.msk.bf16.mxu0 %vm13409_vm9, %v20027_v55 }
 0x37e   :  { %20366 = vst [vmem:[#allocation17_spill] sm:$0xff] %v20365_v52  ;;  %vm13419_vm4 = vmpackc.low %vm20368_vm6, %vm20367_vm5  ;;  %v3609_v20 = vand.u32 4294901760, %v3608_v56  ;;  %v2714_v39 = vand.u32 4294901760, %v2713_v47  ;;  %v20372_v41 = vand.u32 4294901760, %v12025_v51  ;;  %vm20373_vm13 = vcmp.eq.s32.totalorder %v20011_v28, %v11609_v19 }
 0x37f   :  { %v20370_v54 = vsel %vm13419_vm4, 4294967295, %v20369_v54  ;;  %vm20374_vm10 = vcmp.eq.s32.totalorder %v20012_v11, %v11609_v19  ;;  %v20375_v42 = vmov 0  ;;  %v2724_v13 = vand.u32 4294901760, %v2723_v26  ;;  %7808 = vmatprep.subr.msk.bf16.mxu1 %vm13419_vm4, %v20027_v55 }
 0x380   :  { %20371 = vst [vmem:[#allocation18_spill] sm:$0xff] %v20370_v54  ;;  %v13426_v4 = vsub.f32 %v12025_v51, %v20372_v41  ;;  %vm13437_vm5 = vmpackc.low %vm20374_vm10, %vm20373_vm13  ;;  %v20378_v56 = vand.u32 4294901760, %v12033_v7  ;;  %v20379_v41 = vand.u32 4294901760, %v12035_v33  ;;  %vm20380_vm6 = vcmp.eq.s32.totalorder %v20011_v28, %v11615_v53 }
 0x381   :  { %v20376_v42 = vsel %vm13437_vm5, 4294967295, %v20375_v42  ;;  %vm20381_vm13 = vcmp.eq.s32.totalorder %v20012_v11, %v11615_v53  ;;  %v20382_v26 = vmov 0  ;;  %v20387_v1 = vand.u32 4294901760, %v13144_v38  ;;  %7426 = vmatpush1.bf16.msk.msra.mxu0 %vm13437_vm5, %v20027_v55 }
 0x382   :  { %20377 = vst [vmem:[#allocation19_spill] sm:$0xff] %v20376_v42  ;;  %v13444_v47 = vsub.f32 %v12033_v7, %v20378_v56  ;;  %v13449_v22 = vsub.f32 %v12035_v33, %v20379_v41  ;;  %vm13464_vm10 = vmpackc.low %vm20381_vm13, %vm20380_vm6  ;;  %v13470_v56 = vsub.f32 %v13182_v63, %v13182_v63  ;;  %v20386_v41 = vand.u32 4294901760, %v13119_v44  ;;  %v20390_v63 = vld [vmem:[#allocation46_spill] sm:$0xff]  ;;  %v20440_v42 = vld [vmem:[#allocation148_spill] sm:$0xff] }
 0x383   :  { %v20383_v26 = vsel %vm13464_vm10, 4294967295, %v20382_v26  ;;  %v20388_v3 = vand.u32 4294901760, %v12040_v37  ;;  %vm20389_vm6 = vcmp.eq.s32.totalorder %v20023_v59, %v11612_v61  ;;  %vm20391_vm13 = vcmp.eq.s32.totalorder %v20390_v63, %v11612_v61  ;;  %7810 = vmatpush1.bf16.msk.msra.mxu1 %vm13464_vm10, %v20027_v55  ;;  %v20441_v33 = vld [vmem:[#allocation150_spill] sm:$0xff]  ;;  %v20442_v7 = vld [vmem:[#allocation151_spill] sm:$0xff] }
 0x384   :  { %20384 = vst [vmem:[#allocation20_spill] sm:$0xff] %v20383_v26  ;;  %20385 = vst [vmem:[#allocation23_spill] sm:$0xff] %v13470_v56  ;;  %v13476_v52 = vpack.c.bf16 %v20387_v1, %v20386_v41  ;;  %v20392_v38 = vmov 0  ;;  %v20395_v44 = vand.u32 4294901760, %v13189_v50  ;;  %v13501_v1 = vpack.c.bf16 %v2689_v32, %v2679_v31  ;;  %v20431_v26 = vld [vmem:[#allocation141_spill] sm:$0xff] }
 0x385   :  { %v13481_v28 = vsub.f32 %v12040_v37, %v20388_v3  ;;  %vm13493_vm9 = vmpackc.low %vm20391_vm13, %vm20389_vm6  ;;  %v13503_v41 = vpack.c.bf16 %v3589_v45, %v3579_v43  ;;  %v13505_v11 = vpack.c.bf16 %v2704_v57, %v2694_v36  ;;  %vm20396_vm4 = vcmp.eq.s32.totalorder %v20023_v59, %v11622_v35  ;;  %v20434_v37 = vld [vmem:[#allocation147_spill] sm:$0xff] }
 0x386   :  { %v20393_v38 = vsel %vm13493_vm9, 4294967295, %v20392_v38  ;;  %v13499_v3 = vpack.c.bf16 %v3584_v62, %v20395_v44  ;;  %vm20397_vm15 = vcmp.eq.s32.totalorder %v20390_v63, %v11622_v35  ;;  %v20398_v54 = vmov 0  ;;  %7428 = vmatprep.subr.msk.bf16.mxu0 %vm13493_vm9, %v20027_v55  ;;  %v20424_v62 = vld [vmem:[#allocation128_spill] sm:$0xff] }
 0x387   :  { %20394 = vst [vmem:[#allocation24_spill] sm:$0xff] %v20393_v38  ;;  %vm13513_vm6 = vmpackc.low %vm20397_vm15, %vm20396_vm4  ;;  %v13517_v9 = vpack.c.bf16 %v3604_v18, %v3594_v21  ;;  %v13519_v50 = vpack.c.bf16 %v2709_v30, %v2699_v25  ;;  %v13521_v31 = vpack.c.bf16 %v3609_v20, %v3599_v0  ;;  %vm20401_vm13 = vcmp.eq.s32.totalorder %v20023_v59, %v11609_v19  ;;  %v20413_v25 = vld [vmem:[#allocation78_spill] sm:$0xff]  ;;  %v20423_v20 = vld [vmem:[#allocation124_spill] sm:$0xff] }
 0x388   :  { %v20399_v54 = vsel %vm13513_vm6, 4294967295, %v20398_v54  ;;  %vm20402_vm4 = vcmp.eq.s32.totalorder %v20390_v63, %v11609_v19  ;;  %v20403_v57 = vmov 0  ;;  %v13537_v36 = vpack.c.bf16 %v2724_v13, %v2714_v39  ;;  %v20414_v13 = vld [vmem:[#allocation87_spill] sm:$0xff]  ;;  %7812 = vmatprep.subr.msk.bf16.mxu1 %vm13513_vm6, %v20027_v55 }
 0x389   :  { %20400 = vst [vmem:[#allocation26_spill] sm:$0xff] %v20399_v54  ;;  %vm13533_vm15 = vmpackc.low %vm20402_vm4, %vm20401_vm13  ;;  %v20406_v0 = vand.u32 4294901760, %v12042_v2  ;;  %vm20407_vm13 = vcmp.eq.s32.totalorder %v20023_v59, %v11615_v53  ;;  %vm20408_vm4 = vcmp.eq.s32.totalorder %v20390_v63, %v11615_v53  ;;  %v20409_v39 = vmov 0  ;;  %v20415_v59 = vld [vmem:[#allocation49_spill] sm:$0xff]  ;;  %v20417_v63 = vld [vmem:[#allocation52_spill] sm:$0xff] }
 0x38a   :  { %v20404_v57 = vsel %vm13533_vm15, 4294967295, %v20403_v57  ;;  %vm13558_vm5 = vmpackc.low %vm20408_vm4, %vm20407_vm13  ;;  %v20412_v21 = vand.u32 4294901760, %v12050_v24  ;;  %vm20416_vm13 = vcmp.eq.s32.totalorder %v20415_v59, %v11612_v61  ;;  %vm20418_vm4 = vcmp.eq.s32.totalorder %v20417_v63, %v11612_v61  ;;  %v20425_v30 = vld [vmem:[#allocation139_spill] sm:$0xff]  ;;  %7430 = vmatpush1.bf16.msk.msra.mxu0 %vm13533_vm15, %v20027_v55 }
 0x38b   :  { %20405 = vst [vmem:[#allocation27_spill] sm:$0xff] %v20404_v57  ;;  %v13544_v43 = vsub.f32 %v12042_v2, %v20406_v0  ;;  %v20410_v39 = vsel %vm13558_vm5, 4294967295, %v20409_v39  ;;  %vm13579_vm9 = vmpackc.low %vm20418_vm4, %vm20416_vm13  ;;  %v20419_v0 = vmov 0  ;;  %vm20426_vm6 = vcmp.eq.s32.totalorder %v20415_v59, %v11622_v35  ;;  %v20433_v2 = vld [vmem:[#allocation153_spill] sm:$0xff]  ;;  %7814 = vmatpush1.bf16.msk.msra.mxu1 %vm13558_vm5, %v20027_v55  ;;  %v20450_v57 = vld [vmem:[#allocation160_spill] sm:$0xff] }
 0x38c   :  { %20411 = vst [vmem:[#allocation29_spill] sm:$0xff] %v20410_v39  ;;  %v13566_v18 = vsub.f32 %v12050_v24, %v20412_v21  ;;  %v20420_v0 = vsel %vm13579_vm9, 4294967295, %v20419_v0  ;;  %v20422_v21 = vld [vmem:[#allocation95_spill] sm:$0xff]  ;;  %vm20427_vm10 = vcmp.eq.s32.totalorder %v20417_v63, %v11622_v35  ;;  %v20428_v54 = vmov 0  ;;  %v20432_v24 = vld [vmem:[#allocation142_spill] sm:$0xff]  ;;  %7432 = vmatprep.subr.msk.bf16.mxu0 %vm13579_vm9, %v20027_v55 }
 0x38d   :  { %20421 = vst [vmem:[#allocation30_spill] sm:$0xff] %v20420_v0  ;;  %vm13593_vm2 = vmpackc.low %vm20427_vm10, %vm20426_vm6  ;;  %vm20435_vm13 = vcmp.eq.s32.totalorder %v20415_v59, %v11609_v19  ;;  %vm20436_vm10 = vcmp.eq.s32.totalorder %v20417_v63, %v11609_v19  ;;  %v20437_v38 = vmov 0  ;;  %vm20443_vm4 = vcmp.eq.s32.totalorder %v20415_v59, %v11615_v53  ;;  %v20451_v59 = vld [vmem:[#allocation57_spill] sm:$0xff] }
 0x38e   :  { %v20429_v54 = vsel %vm13593_vm2, 4294967295, %v20428_v54  ;;  %vm13610_vm6 = vmpackc.low %vm20436_vm10, %vm20435_vm13  ;;  %vm20444_vm13 = vcmp.eq.s32.totalorder %v20417_v63, %v11615_v53  ;;  %v20445_v45 = vmov 0  ;;  %v3629_v51 = vand.u32 4294901760, %v13566_v18  ;;  %7816 = vmatprep.subr.msk.bf16.mxu1 %vm13593_vm2, %v20027_v55  ;;  %v20453_v63 = vld [vmem:[#allocation58_spill] sm:$0xff] }
 0x38f   :  { %20430 = vst [vmem:[#allocation31_spill] sm:$0xff] %v20429_v54  ;;  %v20438_v38 = vsel %vm13610_vm6, 4294967295, %v20437_v38  ;;  %vm13630_vm10 = vmpackc.low %vm20444_vm13, %vm20443_vm4  ;;  %v20448_v44 = vand.u32 4294901760, %v20413_v25  ;;  %v20449_v39 = vand.u32 4294901760, %v20414_v13  ;;  %vm20452_vm4 = vcmp.eq.s32.totalorder %v20451_v59, %v11612_v61  ;;  %7434 = vmatpush1.bf16.msk.msra.mxu0 %vm13610_vm6, %v20027_v55 }
 0x390   :  { %20439 = vst [vmem:[#allocation32_spill] sm:$0xff] %v20438_v38  ;;  %v20446_v45 = vsel %vm13630_vm10, 4294967295, %v20445_v45  ;;  %vm20454_vm13 = vcmp.eq.s32.totalorder %v20453_v63, %v11612_v61  ;;  %v20455_v18 = vmov 0  ;;  %v20459_v34 = vand.u32 4294901760, %v20423_v20  ;;  %7818 = vmatpush1.bf16.msk.msra.mxu1 %vm13630_vm10, %v20027_v55 }
 0x391   :  { %20447 = vst [vmem:[#allocation35_spill] sm:$0xff] %v20446_v45  ;;  %v2733_v32 = vsub.f32 %v20413_v25, %v20448_v44  ;;  %v2743_v0 = vsub.f32 %v20414_v13, %v20449_v39  ;;  %vm13651_vm9 = vmpackc.low %vm20454_vm13, %vm20452_vm4  ;;  %v20458_v44 = vand.u32 4294901760, %v20422_v21  ;;  %v20460_v54 = vand.u32 4294901760, %v20424_v62 }
 0x392   :  { %v20456_v18 = vsel %vm13651_vm9, 4294967295, %v20455_v18  ;;  %v3643_v13 = vsub.f32 %v20423_v20, %v20459_v34  ;;  %v20461_v48 = vand.u32 4294901760, %v20425_v30  ;;  %vm20462_vm4 = vcmp.eq.s32.totalorder %v20451_v59, %v11622_v35  ;;  %7436 = vmatprep.subr.msk.bf16.mxu0 %vm13651_vm9, %v20027_v55 }
 0x393   :  { %20457 = vst [vmem:[#allocation36_spill] sm:$0xff] %v20456_v18  ;;  %v3633_v39 = vsub.f32 %v20422_v21, %v20458_v44  ;;  %v2738_v25 = vsub.f32 %v20424_v62, %v20460_v54  ;;  %vm20463_vm13 = vcmp.eq.s32.totalorder %v20453_v63, %v11622_v35  ;;  %v20464_v44 = vmov 0 }
 0x394   :  { %v2748_v5 = vsub.f32 %v20425_v30, %v20461_v48  ;;  %vm13673_vm2 = vmpackc.low %vm20463_vm13, %vm20462_vm4  ;;  %v20467_v34 = vand.u32 4294901760, %v20431_v26  ;;  %v20468_v54 = vand.u32 4294901760, %v20432_v24  ;;  %v20469_v48 = vand.u32 4294901760, %v20433_v2 }
 0x395   :  { %v20465_v44 = vsel %vm13673_vm2, 4294967295, %v20464_v44  ;;  %v20470_v21 = vand.u32 4294901760, %v20434_v37  ;;  %vm20471_vm4 = vcmp.eq.s32.totalorder %v20451_v59, %v11609_v19  ;;  %vm20472_vm13 = vcmp.eq.s32.totalorder %v20453_v63, %v11609_v19  ;;  %7820 = vmatprep.subr.msk.bf16.mxu1 %vm13673_vm2, %v20027_v55 }
 0x396   :  { %20466 = vst [vmem:[#allocation38_spill] sm:$0xff] %v20465_v44  ;;  %v3638_v20 = vsub.f32 %v20431_v26, %v20467_v34  ;;  %v3648_v62 = vsub.f32 %v20432_v24, %v20468_v54  ;;  %v2753_v30 = vsub.f32 %v20433_v2, %v20469_v48  ;;  %vm13698_vm5 = vmpackc.low %vm20472_vm13, %vm20471_vm4  ;;  %v20473_v34 = vmov 0  ;;  %v20479_v24 = vld [vmem:[#allocation166_spill] sm:$0xff] }
 0x397   :  { %v2763_v49 = vsub.f32 %v20434_v37, %v20470_v21  ;;  %v20474_v34 = vsel %vm13698_vm5, 4294967295, %v20473_v34  ;;  %v20476_v54 = vand.u32 4294901760, %v20440_v42  ;;  %v20477_v21 = vand.u32 4294901760, %v20441_v33  ;;  %7438 = vmatpush1.bf16.msk.msra.mxu0 %vm13698_vm5, %v20027_v55 }
 0x398   :  { %20475 = vst [vmem:[#allocation39_spill] sm:$0xff] %v20474_v34  ;;  %v20478_v38 = vand.u32 4294901760, %v20442_v7  ;;  %vm20480_vm4 = vcmp.eq.s32.totalorder %v20451_v59, %v11615_v53  ;;  %vm20481_vm13 = vcmp.eq.s32.totalorder %v20453_v63, %v11615_v53  ;;  %v20485_v26 = vand.u32 4294901760, %v20450_v57  ;;  %v20487_v59 = vld [vmem:[#allocation64_spill] sm:$0xff]  ;;  %v20489_v63 = vld [vmem:[#allocation65_spill] sm:$0xff] }
 0x399   :  { %v3653_v48 = vsub.f32 %v20440_v42, %v20476_v54  ;;  %v3663_v37 = vsub.f32 %v20441_v33, %v20477_v21  ;;  %vm13724_vm6 = vmpackc.low %vm20481_vm13, %vm20480_vm4  ;;  %v20482_v54 = vmov 0  ;;  %v2744_v21 = vand.u32 4294901760, %v2743_v0 }
 0x39a   :  { %v2758_v2 = vsub.f32 %v20442_v7, %v20478_v38  ;;  %v20483_v54 = vsel %vm13724_vm6, 4294967295, %v20482_v54  ;;  %v2734_v38 = vand.u32 4294901760, %v2733_v32  ;;  %v2768_v45 = vsub.f32 %v20450_v57, %v20485_v26  ;;  %v20486_v7 = vld [vmem:[#allocation183_spill] sm:$0xff]  ;;  %7822 = vmatpush1.bf16.msk.msra.mxu1 %vm13724_vm6, %v20027_v55 }
 0x39b   :  { %20484 = vst [vmem:[#allocation41_spill] sm:$0xff] %v20483_v54  ;;  %vm20488_vm9 = vcmp.eq.s32.totalorder %v20487_v59, %v11612_v61  ;;  %vm20490_vm4 = vcmp.eq.s32.totalorder %v20489_v63, %v11612_v61  ;;  %v20491_v18 = vmov 0  ;;  %v3634_v32 = vand.u32 4294901760, %v3633_v39 }
 0x39c   :  { %vm13741_vm13 = vmpackc.low %vm20490_vm4, %vm20488_vm9  ;;  %v3644_v0 = vand.u32 4294901760, %v3643_v13  ;;  %v2739_v42 = vand.u32 4294901760, %v2738_v25  ;;  %v2749_v26 = vand.u32 4294901760, %v2748_v5  ;;  %vm20494_vm10 = vcmp.eq.s32.totalorder %v20487_v59, %v11622_v35 }
 0x39d   :  { %v20492_v18 = vsel %vm13741_vm13, 4294967295, %v20491_v18  ;;  %vm20495_vm2 = vcmp.eq.s32.totalorder %v20489_v63, %v11622_v35  ;;  %v20496_v33 = vmov 0  ;;  %v3639_v44 = vand.u32 4294901760, %v3638_v20  ;;  %7440 = vmatprep.subr.msk.bf16.mxu0 %vm13741_vm13, %v20027_v55 }
 0x39e   :  { %20493 = vst [vmem:[#allocation42_spill] sm:$0xff] %v20492_v18  ;;  %vm13751_vm15 = vmpackc.low %vm20495_vm2, %vm20494_vm10  ;;  %v3649_v57 = vand.u32 4294901760, %v3648_v62  ;;  %v2754_v29 = vand.u32 4294901760, %v2753_v30  ;;  %v2764_v56 = vand.u32 4294901760, %v2763_v49  ;;  %vm20499_vm9 = vcmp.eq.s32.totalorder %v20487_v59, %v11609_v19  ;;  %v20512_v18 = vld [vmem:[#allocation199_spill] sm:$0xff] }
 0x39f   :  { %v20497_v33 = vsel %vm13751_vm15, 4294967295, %v20496_v33  ;;  %vm20500_vm4 = vcmp.eq.s32.totalorder %v20489_v63, %v11609_v19  ;;  %v20501_v5 = vmov 0  ;;  %v3654_v25 = vand.u32 4294901760, %v3653_v48  ;;  %v20511_v48 = vld [vmem:[#allocation190_spill] sm:$0xff]  ;;  %7824 = vmatprep.subr.msk.bf16.mxu1 %vm13751_vm15, %v20027_v55 }
 0x3a0   :  { %20498 = vst [vmem:[#allocation43_spill] sm:$0xff] %v20497_v33  ;;  %vm13764_vm11 = vmpackc.low %vm20500_vm4, %vm20499_vm9  ;;  %v3664_v13 = vand.u32 4294901760, %v3663_v37  ;;  %v2759_v20 = vand.u32 4294901760, %v2758_v2  ;;  %v20504_v62 = vand.u32 4294901760, %v20479_v24  ;;  %vm20505_vm2 = vcmp.eq.s32.totalorder %v20487_v59, %v11615_v53  ;;  %v20513_v59 = vld [vmem:[#allocation71_spill] sm:$0xff] }
 0x3a1   :  { %v20502_v5 = vsel %vm13764_vm11, 4294967295, %v20501_v5  ;;  %vm20506_vm10 = vcmp.eq.s32.totalorder %v20489_v63, %v11615_v53  ;;  %v20507_v37 = vmov 0  ;;  %v2769_v2 = vand.u32 4294901760, %v2768_v45  ;;  %v20515_v63 = vld [vmem:[#allocation72_spill] sm:$0xff]  ;;  %7442 = vmatpush1.bf16.msk.msra.mxu0 %vm13764_vm11, %v20027_v55 }
 0x3a2   :  { %20503 = vst [vmem:[#allocation44_spill] sm:$0xff] %v20502_v5  ;;  %v13771_v49 = vsub.f32 %v20479_v24, %v20504_v62  ;;  %vm13785_vm9 = vmpackc.low %vm20506_vm10, %vm20505_vm2  ;;  %v20510_v30 = vand.u32 4294901760, %v20486_v7  ;;  %vm20514_vm4 = vcmp.eq.s32.totalorder %v20513_v59, %v11612_v61  ;;  %vm20516_vm2 = vcmp.eq.s32.totalorder %v20515_v63, %v11612_v61  ;;  %v20578_v5 = vld [vmem:[#allocation230_spill] sm:$0xff] }
 0x3a3   :  { %v20508_v37 = vsel %vm13785_vm9, 4294967295, %v20507_v37  ;;  %vm13805_vm10 = vmpackc.low %vm20516_vm2, %vm20514_vm4  ;;  %v20517_v45 = vmov 0  ;;  %v20521_v62 = vand.u32 4294901760, %v13444_v47  ;;  %v20522_v54 = vand.u32 4294901760, %v13449_v22  ;;  %7826 = vmatpush1.bf16.msk.msra.mxu1 %vm13785_vm9, %v20027_v55 }
 0x3a4   :  { %20509 = vst [vmem:[#allocation47_spill] sm:$0xff] %v20508_v37  ;;  %v13792_v39 = vsub.f32 %v20486_v7, %v20510_v30  ;;  %v20518_v45 = vsel %vm13805_vm10, 4294967295, %v20517_v45  ;;  %v20520_v30 = vand.u32 4294901760, %v13426_v4  ;;  %v20523_v33 = vand.u32 4294901760, %v13481_v28  ;;  %7444 = vmatprep.subr.msk.bf16.mxu0 %vm13805_vm10, %v20027_v55  ;;  %v20563_v37 = vld [vmem:[#allocation225_spill] sm:$0xff] }
 0x3a5   :  { %20519 = vst [vmem:[#allocation48_spill] sm:$0xff] %v20518_v45  ;;  %v20524_v24 = vand.u32 4294901760, %v13544_v43  ;;  %v13825_v8 = vpack.c.bf16 %v2744_v21, %v2734_v38  ;;  %vm20525_vm4 = vcmp.eq.s32.totalorder %v20513_v59, %v11622_v35  ;;  %vm20526_vm2 = vcmp.eq.s32.totalorder %v20515_v63, %v11622_v35  ;;  %v20560_v43 = vld [vmem:[#allocation219_spill] sm:$0xff]  ;;  %v20562_v45 = vld [vmem:[#allocation226_spill] sm:$0xff] }
 0x3a6   :  { %v13813_v34 = vpack.c.bf16 %v20521_v62, %v20520_v30  ;;  %v13819_v7 = vpack.c.bf16 %v20523_v33, %v20522_v54  ;;  %vm13833_vm15 = vmpackc.low %vm20526_vm2, %vm20525_vm4  ;;  %v20527_v4 = vmov 0  ;;  %v13837_v47 = vpack.c.bf16 %v3644_v0, %v3634_v32  ;;  %v20553_v30 = vld [vmem:[#allocation15_spill] sm:$0xff] }
 0x3a7   :  { %v13823_v23 = vpack.c.bf16 %v3629_v51, %v20524_v24  ;;  %v20528_v4 = vsel %vm13833_vm15, 4294967295, %v20527_v4  ;;  %v13839_v33 = vpack.c.bf16 %v2749_v26, %v2739_v42  ;;  %v13841_v22 = vpack.c.bf16 %v3649_v57, %v3639_v44  ;;  %v20536_v57 = vld [vmem:[#allocation215_spill] sm:$0xff]  ;;  %7828 = vmatprep.subr.msk.bf16.mxu1 %vm13833_vm15, %v20027_v55 }
 0x3a8   :  { %20529 = vst [vmem:[#allocation50_spill] sm:$0xff] %v20528_v4  ;;  %v13843_v51 = vpack.c.bf16 %v2764_v56, %v2754_v29  ;;  %vm20530_vm13 = vcmp.eq.s32.totalorder %v20513_v59, %v11609_v19  ;;  %vm20531_vm4 = vcmp.eq.s32.totalorder %v20515_v63, %v11609_v19  ;;  %v20532_v24 = vmov 0  ;;  %v20535_v29 = vld [vmem:[#allocation212_spill] sm:$0xff]  ;;  %v20561_v4 = vld [vmem:[#allocation223_spill] sm:$0xff] }
 0x3a9   :  { %vm13854_vm2 = vmpackc.low %vm20531_vm4, %vm20530_vm13  ;;  %v13858_v42 = vpack.c.bf16 %v3664_v13, %v3654_v25  ;;  %vm20537_vm13 = vcmp.eq.s32.totalorder %v20513_v59, %v11615_v53  ;;  %vm20538_vm4 = vcmp.eq.s32.totalorder %v20515_v63, %v11615_v53  ;;  %v20539_v44 = vmov 0  ;;  %v20544_v25 = vld [vmem:[#allocation83_spill] sm:$0xff]  ;;  %v20546_v13 = vld [vmem:[#allocation84_spill] sm:$0xff] }
 0x3aa   :  { %v20533_v24 = vsel %vm13854_vm2, 4294967295, %v20532_v24  ;;  %vm13875_vm11 = vmpackc.low %vm20538_vm4, %vm20537_vm13  ;;  %v13879_v54 = vpack.c.bf16 %v2769_v2, %v2759_v20  ;;  %v20542_v21 = vand.u32 4294901760, %v20511_v48  ;;  %v20543_v0 = vand.u32 4294901760, %v20512_v18  ;;  %v20551_v2 = vld [vmem:[#allocation214_spill] sm:$0xff]  ;;  %v20552_v59 = vld [vmem:[#allocation217_spill] sm:$0xff]  ;;  %7446 = vmatpush1.bf16.msk.msra.mxu0 %vm13854_vm2, %v20027_v55 }
 0x3ab   :  { %20534 = vst [vmem:[#allocation51_spill] sm:$0xff] %v20533_v24  ;;  %v20540_v44 = vsel %vm13875_vm11, 4294967295, %v20539_v44  ;;  %vm20545_vm13 = vcmp.eq.s32.totalorder %v20544_v25, %v11612_v61  ;;  %vm20547_vm4 = vcmp.eq.s32.totalorder %v20546_v13, %v11612_v61  ;;  %v20548_v20 = vmov 0  ;;  %v20571_v24 = vld [vmem:[#allocation228_spill] sm:$0xff]  ;;  %7830 = vmatpush1.bf16.msk.msra.mxu1 %vm13875_vm11, %v20027_v55 }
 0x3ac   :  { %20541 = vst [vmem:[#allocation53_spill] sm:$0xff] %v20540_v44  ;;  %v13885_v32 = vsub.f32 %v20511_v48, %v20542_v21  ;;  %v13890_v26 = vsub.f32 %v20512_v18, %v20543_v0  ;;  %vm13901_vm10 = vmpackc.low %vm20547_vm4, %vm20545_vm13  ;;  %v20554_v0 = vld [vmem:[#allocation220_spill] sm:$0xff]  ;;  %vm20555_vm15 = vcmp.eq.s32.totalorder %v20544_v25, %v11622_v35  ;;  %vm20556_vm9 = vcmp.eq.s32.totalorder %v20546_v13, %v11622_v35  ;;  %v20572_v18 = vld [vmem:[#allocation227_spill] sm:$0xff] }
 0x3ad   :  { %v20549_v20 = vsel %vm13901_vm10, 4294967295, %v20548_v20  ;;  %vm13915_vm6 = vmpackc.low %vm20556_vm9, %vm20555_vm15  ;;  %v20557_v28 = vmov 0  ;;  %vm20564_vm13 = vcmp.eq.s32.totalorder %v20544_v25, %v11609_v19  ;;  %vm20565_vm15 = vcmp.eq.s32.totalorder %v20546_v13, %v11609_v19  ;;  %7448 = vmatprep.subr.msk.bf16.mxu0 %vm13901_vm10, %v20027_v55 }
 0x3ae   :  { %20550 = vst [vmem:[#allocation54_spill] sm:$0xff] %v20549_v20  ;;  %v20558_v28 = vsel %vm13915_vm6, 4294967295, %v20557_v28  ;;  %vm13932_vm9 = vmpackc.low %vm20565_vm15, %vm20564_vm13  ;;  %v20566_v38 = vmov 0  ;;  %v20569_v62 = vand.u32 4294901760, %v20535_v29  ;;  %v20570_v21 = vand.u32 4294901760, %v20536_v57  ;;  %7832 = vmatprep.subr.msk.bf16.mxu1 %vm13915_vm6, %v20027_v55 }
 0x3af   :  { %20559 = vst [vmem:[#allocation55_spill] sm:$0xff] %v20558_v28  ;;  %v20567_v38 = vsel %vm13932_vm9, 4294967295, %v20566_v38  ;;  %vm20573_vm4 = vcmp.eq.s32.totalorder %v20544_v25, %v11615_v53  ;;  %vm20574_vm13 = vcmp.eq.s32.totalorder %v20546_v13, %v11615_v53  ;;  %v2784_v48 = vand.u32 4294901760, %v13890_v26  ;;  %v20580_v25 = vld [vmem:[#allocation90_spill] sm:$0xff]  ;;  %v20582_v13 = vld [vmem:[#allocation91_spill] sm:$0xff]  ;;  %7450 = vmatpush1.bf16.msk.msra.mxu0 %vm13932_vm9, %v20027_v55 }
 0x3b0   :  { %20568 = vst [vmem:[#allocation56_spill] sm:$0xff] %v20567_v38  ;;  %v13939_v63 = vsub.f32 %v20535_v29, %v20569_v62  ;;  %v13944_v56 = vsub.f32 %v20536_v57, %v20570_v21  ;;  %vm13960_vm15 = vmpackc.low %vm20574_vm13, %vm20573_vm4  ;;  %v20575_v62 = vmov 0  ;;  %v2774_v21 = vand.u32 4294901760, %v13885_v32  ;;  %v20579_v57 = vld [vmem:[#allocation229_spill] sm:$0xff] }
 0x3b1   :  { %v20576_v62 = vsel %vm13960_vm15, 4294967295, %v20575_v62  ;;  %vm20581_vm10 = vcmp.eq.s32.totalorder %v20580_v25, %v11612_v61  ;;  %vm20583_vm4 = vcmp.eq.s32.totalorder %v20582_v13, %v11612_v61  ;;  %v20584_v20 = vmov 0  ;;  %7834 = vmatpush1.bf16.msk.msra.mxu1 %vm13960_vm15, %v20027_v55 }
 0x3b2   :  { %20577 = vst [vmem:[#allocation59_spill] sm:$0xff] %v20576_v62  ;;  %vm13977_vm13 = vmpackc.low %vm20583_vm4, %vm20581_vm10  ;;  %v20587_v32 = vand.u32 4294901760, %v20551_v2  ;;  %v20588_v29 = vand.u32 4294901760, %v20552_v59  ;;  %v20589_v28 = vand.u32 4294901760, %v20553_v30  ;;  %v20590_v6 = vand.u32 4294901760, %v20554_v0 }
 0x3b3   :  { %v20585_v20 = vsel %vm13977_vm13, 4294967295, %v20584_v20  ;;  %vm20591_vm10 = vcmp.eq.s32.totalorder %v20580_v25, %v11622_v35  ;;  %vm20592_vm4 = vcmp.eq.s32.totalorder %v20582_v13, %v11622_v35  ;;  %v20606_v38 = vand.u32 4294901760, %v20572_v18  ;;  %7452 = vmatprep.subr.msk.bf16.mxu0 %vm13977_vm13, %v20027_v55 }
 0x3b4   :  { %20586 = vst [vmem:[#allocation60_spill] sm:$0xff] %v20585_v20  ;;  %v2778_v26 = vsub.f32 %v20551_v2, %v20587_v32  ;;  %v2788_v44 = vsub.f32 %v20552_v59, %v20588_v29  ;;  %v3678_v17 = vsub.f32 %v20553_v30, %v20589_v28  ;;  %v3688_v46 = vsub.f32 %v20554_v0, %v20590_v6  ;;  %vm13999_vm6 = vmpackc.low %vm20592_vm4, %vm20591_vm10  ;;  %v20614_v20 = vld [vmem:[#allocation97_spill] sm:$0xff] }
 0x3b5   :  { %v20593_v32 = vmov 0  ;;  %v20596_v29 = vand.u32 4294901760, %v20560_v43  ;;  %v20597_v28 = vand.u32 4294901760, %v20561_v4  ;;  %v20598_v6 = vand.u32 4294901760, %v20562_v45  ;;  %7836 = vmatprep.subr.msk.bf16.mxu1 %vm13999_vm6, %v20027_v55 }
 0x3b6   :  { %v20594_v32 = vsel %vm13999_vm6, 4294967295, %v20593_v32  ;;  %v20599_v2 = vand.u32 4294901760, %v20563_v37  ;;  %vm20600_vm10 = vcmp.eq.s32.totalorder %v20580_v25, %v11609_v19  ;;  %vm20601_vm4 = vcmp.eq.s32.totalorder %v20582_v13, %v11609_v19 }
 0x3b7   :  { %20595 = vst [vmem:[#allocation63_spill] sm:$0xff] %v20594_v32  ;;  %v2793_v59 = vsub.f32 %v20560_v43, %v20596_v29  ;;  %v2803_v30 = vsub.f32 %v20561_v4, %v20597_v28  ;;  %v3693_v0 = vsub.f32 %v20562_v45, %v20598_v6  ;;  %vm14024_vm11 = vmpackc.low %vm20601_vm4, %vm20600_vm10  ;;  %v20602_v29 = vmov 0 }
 0x3b8   :  { %v3703_v12 = vsub.f32 %v20563_v37, %v20599_v2  ;;  %v20603_v29 = vsel %vm14024_vm11, 4294967295, %v20602_v29  ;;  %v3674_v28 = vand.u32 4294901760, %v13939_v63  ;;  %v3684_v6 = vand.u32 4294901760, %v13944_v56  ;;  %7454 = vmatpush1.bf16.msk.msra.mxu0 %vm14024_vm11, %v20027_v55 }
 0x3b9   :  { %20604 = vst [vmem:[#allocation66_spill] sm:$0xff] %v20603_v29  ;;  %v20605_v2 = vand.u32 4294901760, %v20571_v24  ;;  %v2808_v45 = vsub.f32 %v20572_v18, %v20606_v38  ;;  %vm20607_vm10 = vcmp.eq.s32.totalorder %v20580_v25, %v11615_v53  ;;  %vm20608_vm4 = vcmp.eq.s32.totalorder %v20582_v13, %v11615_v53  ;;  %v20648_v29 = vld [vmem:[#allocation101_spill] sm:$0xff] }
 0x3ba   :  { %vm14048_vm9 = vmpackc.low %vm20608_vm4, %vm20607_vm10  ;;  %v20609_v56 = vmov 0  ;;  %v20612_v38 = vand.u32 4294901760, %v20578_v5  ;;  %vm20616_vm10 = vcmp.eq.s32.totalorder %v20169_v60, %v11612_v61  ;;  %vm20617_vm4 = vcmp.eq.s32.totalorder %v20170_v58, %v11612_v61 }
 0x3bb   :  { %v2798_v37 = vsub.f32 %v20571_v24, %v20605_v2  ;;  %v20610_v56 = vsel %vm14048_vm9, 4294967295, %v20609_v56  ;;  %v20613_v2 = vand.u32 4294901760, %v20579_v57  ;;  %v20615_v24 = vld [vmem:[#allocation98_spill] sm:$0xff]  ;;  %vm14069_vm13 = vmpackc.low %vm20617_vm4, %vm20616_vm10  ;;  %v20618_v25 = vmov 0  ;;  %7838 = vmatpush1.bf16.msk.msra.mxu1 %vm14048_vm9, %v20027_v55 }
 0x3bc   :  { %20611 = vst [vmem:[#allocation67_spill] sm:$0xff] %v20610_v56  ;;  %v3698_v63 = vsub.f32 %v20578_v5, %v20612_v38  ;;  %v20619_v25 = vsel %vm14069_vm13, 4294967295, %v20618_v25  ;;  %v2779_v13 = vand.u32 4294901760, %v2778_v26  ;;  %v2789_v38 = vand.u32 4294901760, %v2788_v44  ;;  %7456 = vmatprep.subr.msk.bf16.mxu0 %vm14069_vm13, %v20027_v55 }
 0x3bd   :  { %v3708_v62 = vsub.f32 %v20579_v57, %v20613_v2  ;;  %20620 = vst [vmem:[#allocation68_spill] sm:$0xff] %v20619_v25  ;;  %v3679_v2 = vand.u32 4294901760, %v3678_v17  ;;  %v3689_v18 = vand.u32 4294901760, %v3688_v46  ;;  %vm20621_vm15 = vcmp.eq.s32.totalorder %v20169_v60, %v11622_v35 }
 0x3be   :  { %vm20622_vm6 = vcmp.eq.s32.totalorder %v20170_v58, %v11622_v35  ;;  %v20623_v4 = vmov 0  ;;  %v2794_v32 = vand.u32 4294901760, %v2793_v59  ;;  %v2804_v57 = vand.u32 4294901760, %v2803_v30  ;;  %v20631_v59 = vld [vmem:[#allocation92_spill] sm:$0xff] }
 0x3bf   :  { %vm14079_vm2 = vmpackc.low %vm20622_vm6, %vm20621_vm15  ;;  %v3694_v5 = vand.u32 4294901760, %v3693_v0  ;;  %v3704_v43 = vand.u32 4294901760, %v3703_v12  ;;  %vm20626_vm10 = vcmp.eq.s32.totalorder %v20169_v60, %v11609_v19  ;;  %vm20627_vm4 = vcmp.eq.s32.totalorder %v20170_v58, %v11609_v19  ;;  %v20632_v0 = vld [vmem:[#allocation93_spill] sm:$0xff] }
 0x3c0   :  { %v20624_v4 = vsel %vm14079_vm2, 4294967295, %v20623_v4  ;;  %vm14092_vm5 = vmpackc.low %vm20627_vm4, %vm20626_vm10  ;;  %v20628_v46 = vmov 0  ;;  %v2799_v17 = vand.u32 4294901760, %v2798_v37  ;;  %v2809_v44 = vand.u32 4294901760, %v2808_v45  ;;  %7840 = vmatprep.subr.msk.bf16.mxu1 %vm14079_vm2, %v20027_v55 }
 0x3c1   :  { %20625 = vst [vmem:[#allocation69_spill] sm:$0xff] %v20624_v4  ;;  %v20629_v46 = vsel %vm14092_vm5, 4294967295, %v20628_v46  ;;  %vm20633_vm6 = vcmp.eq.s32.totalorder %v20169_v60, %v11615_v53  ;;  %vm20634_vm15 = vcmp.eq.s32.totalorder %v20170_v58, %v11615_v53  ;;  %v20635_v37 = vmov 0  ;;  %7458 = vmatpush1.bf16.msk.msra.mxu0 %vm14092_vm5, %v20027_v55 }
 0x3c2   :  { %20630 = vst [vmem:[#allocation70_spill] sm:$0xff] %v20629_v46  ;;  %vm14110_vm10 = vmpackc.low %vm20634_vm15, %vm20633_vm6  ;;  %v3699_v45 = vand.u32 4294901760, %v3698_v63  ;;  %v3709_v26 = vand.u32 4294901760, %v3708_v62  ;;  %v20638_v12 = vand.u32 4294901760, %v20614_v20  ;;  %v20639_v25 = vand.u32 4294901760, %v20615_v24 }
 0x3c3   :  { %v20636_v37 = vsel %vm14110_vm10, 4294967295, %v20635_v37  ;;  %vm20640_vm4 = vcmp.eq.s32.totalorder %v20197_v40, %v11612_v61  ;;  %vm20641_vm6 = vcmp.eq.s32.totalorder %v20198_v14, %v11612_v61  ;;  %v20642_v60 = vmov 0  ;;  %7842 = vmatpush1.bf16.msk.msra.mxu1 %vm14110_vm10, %v20027_v55 }
 0x3c4   :  { %20637 = vst [vmem:[#allocation76_spill] sm:$0xff] %v20636_v37  ;;  %v14117_v30 = vsub.f32 %v20614_v20, %v20638_v12  ;;  %v14122_v56 = vsub.f32 %v20615_v24, %v20639_v25  ;;  %vm14133_vm15 = vmpackc.low %vm20641_vm6, %vm20640_vm4  ;;  %v20645_v58 = vand.u32 4294901760, %v13771_v49  ;;  %v20646_v62 = vand.u32 4294901760, %v13792_v39  ;;  %v20647_v12 = vld [vmem:[#allocation100_spill] sm:$0xff] }
 0x3c5   :  { %v20643_v60 = vsel %vm14133_vm15, 4294967295, %v20642_v60  ;;  %v14143_v25 = vpack.c.bf16 %v2784_v48, %v2774_v21  ;;  %v18586_v4 = vand.u32 4294901760, %v20647_v12  ;;  %v18593_v24 = vand.u32 4294901760, %v20648_v29  ;;  %7460 = vmatprep.subr.msk.bf16.mxu0 %vm14133_vm15, %v20027_v55 }
 0x3c6   :  { %20644 = vst [vmem:[#allocation77_spill] sm:$0xff] %v20643_v60  ;;  %v14141_v63 = vpack.c.bf16 %v20646_v62, %v20645_v58  ;;  %vm20649_vm2 = vcmp.eq.s32.totalorder %v20197_v40, %v11622_v35  ;;  %vm20650_vm4 = vcmp.eq.s32.totalorder %v20198_v14, %v11622_v35  ;;  %v20651_v20 = vmov 0  ;;  %v20683_v60 = vld [vmem:[#allocation104_spill] sm:$0xff] }
 0x3c7   :  { %vm14153_vm6 = vmpackc.low %vm20650_vm4, %vm20649_vm2  ;;  %v14157_v49 = vpack.c.bf16 %v3684_v6, %v3674_v28  ;;  %v14159_v39 = vpack.c.bf16 %v2789_v38, %v2779_v13  ;;  %v14161_v48 = vpack.c.bf16 %v3689_v18, %v3679_v2  ;;  %v14163_v21 = vpack.c.bf16 %v2804_v57, %v2794_v32  ;;  %v20676_v2 = vld [vmem:[#allocation113_spill] sm:$0xff] }
 0x3c8   :  { %v20652_v20 = vsel %vm14153_vm6, 4294967295, %v20651_v20  ;;  %vm20654_vm13 = vcmp.eq.s32.totalorder %v20197_v40, %v11609_v19  ;;  %vm20655_vm2 = vcmp.eq.s32.totalorder %v20198_v14, %v11609_v19  ;;  %v20656_v58 = vmov 0  ;;  %7844 = vmatprep.subr.msk.bf16.mxu1 %vm14153_vm6, %v20027_v55 }
 0x3c9   :  { %20653 = vst [vmem:[#allocation79_spill] sm:$0xff] %v20652_v20  ;;  %vm14174_vm4 = vmpackc.low %vm20655_vm2, %vm20654_vm13  ;;  %v14178_v28 = vpack.c.bf16 %v3704_v43, %v3694_v5  ;;  %v14180_v18 = vpack.c.bf16 %v2809_v44, %v2799_v17  ;;  %v20659_v57 = vand.u32 4294901760, %v20631_v59  ;;  %v20660_v6 = vand.u32 4294901760, %v20632_v0  ;;  %v20667_v17 = vld [vmem:[#allocation111_spill] sm:$0xff]  ;;  %v20691_v20 = vld [vmem:[#allocation108_spill] sm:$0xff] }
 0x3ca   :  { %v20657_v58 = vsel %vm14174_vm4, 4294967295, %v20656_v58  ;;  %vm20661_vm13 = vcmp.eq.s32.totalorder %v20197_v40, %v11615_v53  ;;  %vm20662_vm2 = vcmp.eq.s32.totalorder %v20198_v14, %v11615_v53  ;;  %v20663_v5 = vmov 0  ;;  %v20668_v40 = vld [vmem:[#allocation137_spill] sm:$0xff]  ;;  %v20670_v14 = vld [vmem:[#allocation138_spill] sm:$0xff]  ;;  %7462 = vmatpush1.bf16.msk.msra.mxu0 %vm14174_vm4, %v20027_v55 }
 0x3cb   :  { %20658 = vst [vmem:[#allocation109_spill] sm:$0xff] %v20657_v58  ;;  %v14185_v32 = vsub.f32 %v20631_v59, %v20659_v57  ;;  %v14190_v13 = vsub.f32 %v20632_v0, %v20660_v6  ;;  %vm14204_vm5 = vmpackc.low %vm20662_vm2, %vm20661_vm13  ;;  %v14208_v43 = vpack.c.bf16 %v3709_v26, %v3699_v45  ;;  %vm20669_vm15 = vcmp.eq.s32.totalorder %v20668_v40, %v11612_v61  ;;  %v20675_v57 = vld [vmem:[#allocation112_spill] sm:$0xff]  ;;  %v20693_v0 = vld [vmem:[#allocation123_spill] sm:$0xff] }
 0x3cc   :  { %v20664_v5 = vsel %vm14204_vm5, 4294967295, %v20663_v5  ;;  %vm20671_vm13 = vcmp.eq.s32.totalorder %v20670_v14, %v11612_v61  ;;  %v20672_v62 = vmov 0  ;;  %v14229_v45 = vsub.f32 %v20647_v12, %v18586_v4  ;;  %v20682_v4 = vld [vmem:[#allocation114_spill] sm:$0xff]  ;;  %7846 = vmatpush1.bf16.msk.msra.mxu1 %vm14204_vm5, %v20027_v55 }
 0x3cd   :  { %20665 = vst [vmem:[#allocation110_spill] sm:$0xff] %v20664_v5  ;;  %20666 = vst [vmem:[#allocation82_spill] sm:$0xff] %v14208_v43  ;;  %v14234_v26 = vsub.f32 %v20648_v29, %v18593_v24  ;;  %v20679_v44 = vmov 0  ;;  %v20684_v24 = vld [vmem:[#allocation105_spill] sm:$0xff]  ;;  %v20685_v29 = vld [vmem:[#allocation106_spill] sm:$0xff]  ;;  %vm20686_vm10 = vcmp.eq.s32.totalorder %v20668_v40, %v11609_v19  ;;  %v20688_v38 = vmov 0 }
 0x3ce   :  { %vm14222_vm2 = vmpackc.low %vm20671_vm13, %vm20669_vm15  ;;  %vm20677_vm15 = vcmp.eq.s32.totalorder %v20668_v40, %v11622_v35  ;;  %vm20678_vm13 = vcmp.eq.s32.totalorder %v20670_v14, %v11622_v35  ;;  %v3714_v37 = vand.u32 4294901760, %v14185_v32  ;;  %v20692_v12 = vld [vmem:[#allocation122_spill] sm:$0xff]  ;;  %v20696_v32 = vmov 0  ;;  %v20700_v5 = vld [vmem:[#allocation127_spill] sm:$0xff] }
 0x3cf   :  { %v20673_v62 = vsel %vm14222_vm2, 4294967295, %v20672_v62  ;;  %vm14244_vm6 = vmpackc.low %vm20678_vm13, %vm20677_vm15  ;;  %vm20687_vm15 = vcmp.eq.s32.totalorder %v20670_v14, %v11609_v19  ;;  %7464 = vmatprep.subr.msk.bf16.mxu0 %vm14222_vm2, %v20027_v55  ;;  %v3724_v59 = vand.u32 4294901760, %v14190_v13  ;;  %v20699_v6 = vand.u32 4294901760, %v20667_v17 }
 0x3d0   :  { %20674 = vst [vmem:[#allocation88_spill] sm:$0xff] %v20673_v62  ;;  %v20680_v44 = vsel %vm14244_vm6, 4294967295, %v20679_v44  ;;  %vm14261_vm13 = vmpackc.low %vm20687_vm15, %vm20686_vm10  ;;  %vm20694_vm10 = vcmp.eq.s32.totalorder %v20668_v40, %v11615_v53  ;;  %vm20695_vm15 = vcmp.eq.s32.totalorder %v20670_v14, %v11615_v53  ;;  %v20701_v62 = vld [vmem:[#allocation119_spill] sm:$0xff]  ;;  %7848 = vmatprep.subr.msk.bf16.mxu1 %vm14244_vm6, %v20027_v55  ;;  %v20704_v13 = vmov 0 }
 0x3d1   :  { %20681 = vst [vmem:[#allocation89_spill] sm:$0xff] %v20680_v44  ;;  %v20689_v38 = vsel %vm14261_vm13, 4294967295, %v20688_v38  ;;  %vm14281_vm4 = vmpackc.low %vm20695_vm15, %vm20694_vm10  ;;  %v3718_v46 = vsub.f32 %v20667_v17, %v20699_v6  ;;  %vm20702_vm10 = vcmp.eq.s32.totalorder %v20242_v15, %v11612_v61  ;;  %vm20703_vm15 = vcmp.eq.s32.totalorder %v20243_v16, %v11612_v61  ;;  %7466 = vmatpush1.bf16.msk.msra.mxu0 %vm14261_vm13, %v20027_v55 }
 0x3d2   :  { %20690 = vst [vmem:[#allocation94_spill] sm:$0xff] %v20689_v38  ;;  %v20697_v32 = vsel %vm14281_vm4, 4294967295, %v20696_v32  ;;  %vm14300_vm2 = vmpackc.low %vm20703_vm15, %vm20702_vm10  ;;  %v2819_v40 = vand.u32 4294901760, %v14229_v45  ;;  %v2829_v14 = vand.u32 4294901760, %v14234_v26  ;;  %v20707_v6 = vand.u32 4294901760, %v20675_v57  ;;  %7850 = vmatpush1.bf16.msk.msra.mxu1 %vm14281_vm4, %v20027_v55 }
 0x3d3   :  { %20698 = vst [vmem:[#allocation96_spill] sm:$0xff] %v20697_v32  ;;  %v20705_v13 = vsel %vm14300_vm2, 4294967295, %v20704_v13  ;;  %v20708_v58 = vand.u32 4294901760, %v20676_v2  ;;  %vm20709_vm6 = vcmp.eq.s32.totalorder %v20242_v15, %v11622_v35  ;;  %vm20710_vm10 = vcmp.eq.s32.totalorder %v20243_v16, %v11622_v35  ;;  %7468 = vmatprep.subr.msk.bf16.mxu0 %vm14300_vm2, %v20027_v55  ;;  %v20729_v32 = vld [vmem:[#allocation129_spill] sm:$0xff] }
 0x3d4   :  { %20706 = vst [vmem:[#allocation99_spill] sm:$0xff] %v20705_v13  ;;  %v3728_v10 = vsub.f32 %v20675_v57, %v20707_v6  ;;  %vm14318_vm15 = vmpackc.low %vm20710_vm10, %vm20709_vm6  ;;  %v20711_v61 = vmov 0  ;;  %v20714_v45 = vand.u32 4294901760, %v20682_v4  ;;  %v20715_v6 = vand.u32 4294901760, %v20683_v60 }
 0x3d5   :  { %v2833_v44 = vsub.f32 %v20676_v2, %v20708_v58  ;;  %v20712_v61 = vsel %vm14318_vm15, 4294967295, %v20711_v61  ;;  %v20716_v58 = vand.u32 4294901760, %v20684_v24  ;;  %v20717_v17 = vand.u32 4294901760, %v20685_v29  ;;  %7852 = vmatprep.subr.msk.bf16.mxu1 %vm14318_vm15, %v20027_v55 }
 0x3d6   :  { %20713 = vst [vmem:[#allocation102_spill] sm:$0xff] %v20712_v61  ;;  %v2843_v26 = vsub.f32 %v20682_v4, %v20714_v45  ;;  %v3733_v57 = vsub.f32 %v20683_v60, %v20715_v6  ;;  %v20718_v27 = vand.u32 4294901760, %v20691_v20  ;;  %v20719_v4 = vand.u32 4294901760, %v20692_v12 }
 0x3d7   :  { %v3743_v2 = vsub.f32 %v20684_v24, %v20716_v58  ;;  %v2838_v35 = vsub.f32 %v20685_v29, %v20717_v17  ;;  %v20720_v60 = vand.u32 4294901760, %v20693_v0  ;;  %v20721_v24 = vld [vmem:[#allocation125_spill] sm:$0xff]  ;;  %vm20722_vm6 = vcmp.eq.s32.totalorder %v20242_v15, %v11609_v19  ;;  %v20736_v29 = vld [vmem:[#allocation136_spill] sm:$0xff] }
 0x3d8   :  { %v2848_v45 = vsub.f32 %v20691_v20, %v20718_v27  ;;  %v3738_v6 = vsub.f32 %v20692_v12, %v20719_v4  ;;  %vm20723_vm10 = vcmp.eq.s32.totalorder %v20243_v16, %v11609_v19  ;;  %v20724_v27 = vmov 0  ;;  %v20735_v20 = vld [vmem:[#allocation133_spill] sm:$0xff] }
 0x3d9   :  { %v3748_v58 = vsub.f32 %v20693_v0, %v20720_v60  ;;  %vm14359_vm13 = vmpackc.low %vm20723_vm10, %vm20722_vm6  ;;  %v3719_v4 = vand.u32 4294901760, %v3718_v46  ;;  %v20727_v60 = vand.u32 4294901760, %v20700_v5  ;;  %v20728_v43 = vand.u32 4294901760, %v20701_v62 }
 0x3da   :  { %v20725_v27 = vsel %vm14359_vm13, 4294967295, %v20724_v27  ;;  %vm20730_vm6 = vcmp.eq.s32.totalorder %v20242_v15, %v11615_v53  ;;  %vm20731_vm10 = vcmp.eq.s32.totalorder %v20243_v16, %v11615_v53  ;;  %v20732_v19 = vmov 0  ;;  %7470 = vmatpush1.bf16.msk.msra.mxu0 %vm14359_vm13, %v20027_v55 }
 0x3db   :  { %20726 = vst [vmem:[#allocation117_spill] sm:$0xff] %v20725_v27  ;;  %v2853_v17 = vsub.f32 %v20700_v5, %v20727_v60  ;;  %v2863_v13 = vsub.f32 %v20701_v62, %v20728_v43  ;;  %vm14379_vm2 = vmpackc.low %vm20731_vm10, %vm20730_vm6  ;;  %v3729_v46 = vand.u32 4294901760, %v3728_v10  ;;  %v2834_v60 = vand.u32 4294901760, %v2833_v44  ;;  %7472 = vmatprep.subr.bf16.mxu0 %v13476_v52 }
 0x3dc   :  { %v20733_v19 = vsel %vm14379_vm2, 4294967295, %v20732_v19  ;;  %v18642_v43 = vand.u32 4294901760, %v20735_v20  ;;  %v2844_v62 = vand.u32 4294901760, %v2843_v26  ;;  %v3734_v5 = vand.u32 4294901760, %v3733_v57  ;;  %7854 = vmatpush1.bf16.msk.msra.mxu1 %vm14379_vm2, %v20027_v55  ;;  %v20779_v55 = vld [vmem:[#allocation182_spill] sm:$0xff] }
 0x3dd   :  { %20734 = vst [vmem:[#allocation118_spill] sm:$0xff] %v20733_v19  ;;  %v3744_v61 = vand.u32 4294901760, %v3743_v2  ;;  %v2839_v0 = vand.u32 4294901760, %v2838_v35  ;;  %v2849_v15 = vand.u32 4294901760, %v2848_v45  ;;  %v3739_v53 = vand.u32 4294901760, %v3738_v6  ;;  %v20739_v35 = vld [vmem:[#allocation140_spill] sm:$0xff]  ;;  %7856 = vmatprep.subr.bf16.mxu1 %v13499_v3 }
 0x3de   :  { %v3749_v16 = vand.u32 4294901760, %v3748_v58  ;;  %v20737_v12 = vand.u32 4294901760, %v20721_v24  ;;  %v2854_v44 = vand.u32 4294901760, %v2853_v17  ;;  %v2864_v2 = vand.u32 4294901760, %v2863_v13 }
 0x3df   :  { %v20738_v57 = vand.u32 4294901760, %v20729_v32  ;;  %v20740_v6 = vand.u32 4294901760, %v14117_v30  ;;  %v14406_v38 = vpack.c.bf16 %v3724_v59, %v3714_v37  ;;  %v2858_v52 = vsub.f32 %v20735_v20, %v18642_v43 }
 0x3e0   :  { %v3753_v10 = vsub.f32 %v20721_v24, %v20737_v12  ;;  %v20741_v12 = vand.u32 4294901760, %v14122_v56  ;;  %v20742_v13 = vand.u32 4294901760, %v20736_v29  ;;  %v14415_v45 = vpack.c.bf16 %v2829_v14, %v2819_v40  ;;  %v20746_v56 = vld [vmem:[#allocation131_spill] sm:$0xff] }
 0x3e1   :  { %v3763_v26 = vsub.f32 %v20729_v32, %v20738_v57  ;;  %v20743_v57 = vld [vmem:[#allocation248_spill] sm:$0xff]  ;;  %v14417_v3 = vpack.c.bf16 %v3729_v46, %v3719_v4  ;;  %v14419_v30 = vpack.c.bf16 %v2844_v62, %v2834_v60  ;;  %v14424_v59 = vpack.c.bf16 %v3744_v61, %v3734_v5  ;;  %v20753_v5 = vld [vmem:[#allocation134_spill] sm:$0xff] }
 0x3e2   :  { %v14404_v58 = vpack.c.bf16 %v20741_v12, %v20740_v6  ;;  %v2868_v17 = vsub.f32 %v20736_v29, %v20742_v13  ;;  %2665 = vmatmul.mubr.f32.vlgmr.msra.gmra.mrb[2].mxu0 %v20743_v57  ;;  %v18643_v6 = vand.u32 4294901760, %v20746_v56  ;;  %3565 = vmatmul.mubr.f32.vlgmr.msra.gmra.mrb[2].mxu1 %v20743_v57  ;;  %v14426_v37 = vpack.c.bf16 %v2849_v15, %v2839_v0  ;;  %v20750_v13 = vld [vmem:[#allocation240_spill] sm:$0xff]  ;;  %v20754_v60 = vld [vmem:[#allocation154_spill] sm:$0xff] }
 0x3e3   :  { %20744 = vst [vmem:[#allocation103_spill] sm:$0xff] %v14417_v3  ;;  %20745 = vst [vmem:[#allocation107_spill] sm:$0xff] %v14419_v30  ;;  %7474 = vmatpush1.bf16.msra.mxu0 %v13501_v1  ;;  %v14428_v12 = vpack.c.bf16 %v3749_v16, %v3739_v53  ;;  %2992 = vmatprep.mubr.f32.mxu0 %v20750_v13  ;;  %v14432_v40 = vpack.c.bf16 %v2864_v2, %v2854_v44  ;;  %v3754_v62 = vand.u32 4294901760, %v3753_v10  ;;  %v20755_v53 = vld [vmem:[#allocation157_spill] sm:$0xff]  ;;  %v20756_v10 = vld [vmem:[#allocation176_spill] sm:$0xff] }
 0x3e4   :  { %20747 = vst [vmem:[#allocation115_spill] sm:$0xff] %v14424_v59  ;;  %20748 = vst [vmem:[#allocation116_spill] sm:$0xff] %v14426_v37  ;;  %7858 = vmatpush1.bf16.msra.mxu1 %v13503_v41  ;;  %v3764_v14 = vand.u32 4294901760, %v3763_v26  ;;  %v20752_v4 = vand.u32 4294901760, %v20739_v35  ;;  %3892 = vmatprep.mubr.f32.mxu1 %v20750_v13  ;;  %v2859_v1 = vand.u32 4294901760, %v2858_v52  ;;  %v2869_v0 = vand.u32 4294901760, %v2868_v17 }
 0x3e5   :  { %20749 = vst [vmem:[#allocation120_spill] sm:$0xff] %v14428_v12  ;;  %20751 = vst [vmem:[#allocation121_spill] sm:$0xff] %v14432_v40  ;;  %7476 = vmatprep.subr.bf16.mxu0 %v13505_v11  ;;  %7860 = vmatprep.subr.bf16.mxu1 %v13517_v9  ;;  %v3768_v41 = vsub.f32 %v20746_v56, %v18643_v6  ;;  %v20757_v2 = vld [vmem:[#allocation171_spill] sm:$0xff]  ;;  %v20759_v17 = vld [vmem:[#allocation178_spill] sm:$0xff]  ;;  %v20767_v43 = vand.u32 4294901760, %v20753_v5 }
 0x3e6   :  { %v3758_v46 = vsub.f32 %v20739_v35, %v20752_v4  ;;  %v20758_v11 = vld [vmem:[#allocation175_spill] sm:$0xff]  ;;  %v20761_v15 = vld [vmem:[#allocation184_spill] sm:$0xff]  ;;  %v14455_v6 = vpack.c.bf16 %v3764_v14, %v3754_v62  ;;  %v20763_v16 = vld [vmem:[#allocation177_spill] sm:$0xff]  ;;  %v14461_v52 = vpack.c.bf16 %v2869_v0, %v2859_v1  ;;  %v20769_v14 = vand.u32 4294901760, %v20755_v53 }
 0x3e7   :  { %7478 = vmatpush1.bf16.msra.mxu0 %v13519_v50  ;;  %v20760_v4 = vld [vmem:[#allocation179_spill] sm:$0xff]  ;;  %v20764_v61 = vld [vmem:[#allocation180_spill] sm:$0xff]  ;;  %v20765_v13 = vld [vmem:[#allocation181_spill] sm:$0xff]  ;;  %v2873_v9 = vsub.f32 %v20753_v5, %v20767_v43  ;;  %v3769_v62 = vand.u32 4294901760, %v3768_v41  ;;  %v20770_v50 = vand.u32 4294901760, %v20756_v10  ;;  %v20771_v1 = vand.u32 4294901760, %v20757_v2 }
 0x3e8   :  { %7862 = vmatpush1.bf16.msra.mxu1 %v13521_v31  ;;  %7480 = vmatprep.subr.bf16.mxu0 %v13537_v36  ;;  %20762 = vst [vmem:[#allocation126_spill] sm:$0xff] %v14455_v6  ;;  %20766 = vst [vmem:[#allocation130_spill] sm:$0xff] %v14461_v52  ;;  %v3759_v57 = vand.u32 4294901760, %v3758_v46  ;;  %v20768_v31 = vand.u32 4294901760, %v20754_v60  ;;  %v3773_v26 = vsub.f32 %v20755_v53, %v20769_v14  ;;  %v20772_v43 = vand.u32 4294901760, %v20758_v11  ;;  %v20780_v6 = vld [vmem:[#allocation187_spill] sm:$0xff] }
 0x3e9   :  { %7864 = vmatprep.subr.bf16.mxu1 %v13813_v34  ;;  %v3783_v34 = vsub.f32 %v20756_v10, %v20770_v50  ;;  %v2878_v46 = vsub.f32 %v20757_v2, %v20771_v1  ;;  %v20773_v41 = vand.u32 4294901760, %v20759_v17  ;;  %v20774_v14 = vand.u32 4294901760, %v20760_v4  ;;  %v20781_v40 = vld [vmem:[#allocation189_spill] sm:$0xff]  ;;  %v20824_v5 = vld [vmem:[#allocation208_spill] sm:$0xff] }
 0x3ea   :  { %v2883_v36 = vsub.f32 %v20754_v60, %v20768_v31  ;;  %v2888_v0 = vsub.f32 %v20758_v11, %v20772_v43  ;;  %v20775_v50 = vand.u32 4294901760, %v20761_v15  ;;  %v20777_v43 = vand.u32 4294901760, %v20764_v61  ;;  %v20822_v35 = vld [vmem:[#allocation103_spill] sm:$0xff] }
 0x3eb   :  { %7482 = vmatpush1.bf16.msra.mxu0 %v13819_v7  ;;  %v3778_v31 = vsub.f32 %v20759_v17, %v20773_v41  ;;  %v3788_v44 = vsub.f32 %v20760_v4, %v20774_v14  ;;  %v20776_v7 = vand.u32 4294901760, %v20763_v16  ;;  %v20778_v27 = vand.u32 4294901760, %v20765_v13  ;;  %v20825_v17 = vld [vmem:[#allocation115_spill] sm:$0xff] }
 0x3ec   :  { %v2893_v19 = vsub.f32 %v20761_v15, %v20775_v50  ;;  %7866 = vmatpush1.bf16.msra.mxu1 %v13823_v23  ;;  %7484 = vmatprep.subr.bf16.mxu0 %v13825_v8  ;;  %v3793_v41 = vsub.f32 %v20764_v61, %v20777_v43  ;;  %v18653_v52 = vand.u32 4294901760, %v20779_v55  ;;  %v2874_v50 = vand.u32 4294901760, %v2873_v9 }
 0x3ed   :  { %v2903_v1 = vsub.f32 %v20763_v16, %v20776_v7  ;;  %v3803_v14 = vsub.f32 %v20765_v13, %v20778_v27  ;;  %7868 = vmatprep.subr.bf16.mxu1 %v13837_v47  ;;  %v2884_v23 = vand.u32 4294901760, %v2883_v36  ;;  %v18651_v8 = vand.u32 4294901760, %v20780_v6 }
 0x3ee   :  { %v18652_v12 = vand.u32 4294901760, %v20781_v40  ;;  %v14506_v37 = vpack.c.bf16 %v3769_v62, %v3759_v57  ;;  %v3774_v7 = vand.u32 4294901760, %v3773_v26  ;;  %v3784_v59 = vand.u32 4294901760, %v3783_v34  ;;  %v20784_v62 = vld [vmem:[#allocation186_spill] sm:$0xff] }
 0x3ef   :  { %v2879_v30 = vand.u32 4294901760, %v2878_v46  ;;  %7486 = vmatpush1.bf16.msra.mxu0 %v13839_v33  ;;  %v2889_v43 = vand.u32 4294901760, %v2888_v0  ;;  %v3779_v3 = vand.u32 4294901760, %v3778_v31  ;;  %v3789_v27 = vand.u32 4294901760, %v3788_v44  ;;  %v20783_v44 = vld [vmem:[#allocation185_spill] sm:$0xff]  ;;  %v20785_v46 = vld [vmem:[#allocation188_spill] sm:$0xff] }
 0x3f0   :  { %v2894_v13 = vand.u32 4294901760, %v2893_v19  ;;  %7870 = vmatpush1.bf16.msra.mxu1 %v13841_v22  ;;  %7488 = vmatprep.subr.bf16.mxu0 %v13843_v51  ;;  %v2904_v47 = vand.u32 4294901760, %v2903_v1  ;;  %v3794_v9 = vand.u32 4294901760, %v3793_v41  ;;  %v3804_v36 = vand.u32 4294901760, %v3803_v14  ;;  %v20782_v22 = vld [vmem:[#allocation192_spill] sm:$0xff]  ;;  %v20786_v31 = vld [vmem:[#allocation191_spill] sm:$0xff] }
 0x3f1   :  { %v2898_v57 = vsub.f32 %v20779_v55, %v18653_v52  ;;  %7872 = vmatprep.subr.bf16.mxu1 %v13858_v42  ;;  %v2908_v33 = vsub.f32 %v20780_v6, %v18651_v8  ;;  %v14521_v19 = vsub.f32 %v20781_v40, %v18652_v12  ;;  %v18654_v51 = vand.u32 4294901760, %v20782_v22  ;;  %v20787_v42 = vld [vmem:[#allocation194_spill] sm:$0xff]  ;;  %v20793_v41 = vld [vmem:[#allocation195_spill] sm:$0xff]  ;;  %v20844_v40 = vld [vmem:[#allocation168_spill] sm:$0xff] }
 0x3f2   :  { %v14530_v14 = vpack.c.bf16 %v2884_v23, %v2874_v50  ;;  %v14532_v8 = vpack.c.bf16 %v3784_v59, %v3774_v7  ;;  %v14534_v12 = vpack.c.bf16 %v2889_v43, %v2879_v30  ;;  %v14536_v52 = vpack.c.bf16 %v3789_v27, %v3779_v3  ;;  %v20846_v55 = vld [vmem:[#allocation126_spill] sm:$0xff] }
 0x3f3   :  { %7490 = vmatpush1.bf16.msra.mxu0 %v13879_v54  ;;  %v14540_v34 = vpack.c.bf16 %v2904_v47, %v2894_v13  ;;  %v14542_v0 = vpack.c.bf16 %v3804_v36, %v3794_v9  ;;  %v2899_v1 = vand.u32 4294901760, %v2898_v57  ;;  %v18655_v26 = vand.u32 4294901760, %v20793_v41  ;;  %v20799_v47 = vld [vmem:[#allocation200_spill] sm:$0xff]  ;;  %v20800_v36 = vld [vmem:[#allocation193_spill] sm:$0xff] }
 0x3f4   :  { %20788 = vst [vmem:[#allocation132_spill] sm:$0xff] %v14532_v8  ;;  %20789 = vst [vmem:[#allocation135_spill] sm:$0xff] %v14534_v12  ;;  %7874 = vmatpush1.bf16.msra.mxu1 %v14141_v63  ;;  %7492 = vmatprep.subr.bf16.mxu0 %v14143_v25  ;;  %v2909_v54 = vand.u32 4294901760, %v2908_v33  ;;  %v14550_v3 = vsub.f32 %v20782_v22, %v18654_v51  ;;  %v20794_v63 = vand.u32 4294901760, %v20783_v44  ;;  %v20795_v30 = vand.u32 4294901760, %v20784_v62  ;;  %v20801_v33 = vld [vmem:[#allocation196_spill] sm:$0xff] }
 0x3f5   :  { %20790 = vst [vmem:[#allocation143_spill] sm:$0xff] %v14536_v52  ;;  %20791 = vst [vmem:[#allocation144_spill] sm:$0xff] %v14540_v34  ;;  %7876 = vmatprep.subr.bf16.mxu1 %v14157_v49  ;;  %v20796_v49 = vand.u32 4294901760, %v20785_v46  ;;  %v20797_v23 = vand.u32 4294901760, %v20786_v31  ;;  %v20798_v43 = vand.u32 4294901760, %v20787_v42  ;;  %v20805_v9 = vld [vmem:[#allocation205_spill] sm:$0xff] }
 0x3f6   :  { %20792 = vst [vmem:[#allocation149_spill] sm:$0xff] %v14542_v0  ;;  %v14555_v25 = vsub.f32 %v20783_v44, %v20794_v63  ;;  %v14560_v13 = vsub.f32 %v20784_v62, %v20795_v30  ;;  %v20802_v30 = vld [vmem:[#allocation197_spill] sm:$0xff]  ;;  %v18656_v0 = vand.u32 4294901760, %v20805_v9  ;;  %v14593_v63 = vpack.c.bf16 %v2909_v54, %v2899_v1  ;;  %v20819_v52 = vld [vmem:[#allocation127_spill] sm:$0xff] }
 0x3f7   :  { %v14565_v50 = vsub.f32 %v20785_v46, %v20796_v49  ;;  %v14570_v7 = vsub.f32 %v20786_v31, %v20797_v23  ;;  %v14575_v27 = vsub.f32 %v20787_v42, %v20798_v43  ;;  %7494 = vmatpush1.bf16.msra.mxu0 %v14159_v39  ;;  %v14587_v23 = vsub.f32 %v20793_v41, %v18655_v26  ;;  %v20803_v43 = vld [vmem:[#allocation198_spill] sm:$0xff]  ;;  %v20804_v39 = vld [vmem:[#allocation203_spill] sm:$0xff]  ;;  %v20829_v31 = vld [vmem:[#allocation116_spill] sm:$0xff] }
 0x3f8   :  { %7878 = vmatpush1.bf16.msra.mxu1 %v14161_v48  ;;  %7496 = vmatprep.subr.bf16.mxu0 %v14163_v21  ;;  %20806 = vst [vmem:[#allocation145_spill] sm:$0xff] %v14593_v63  ;;  %v20807_v21 = vld [vmem:[#allocation206_spill] sm:$0xff]  ;;  %v2924_v34 = vand.u32 4294901760, %v14560_v13  ;;  %v20809_v54 = vand.u32 4294901760, %v20800_v36  ;;  %v20810_v13 = vand.u32 4294901760, %v20801_v33  ;;  %v20811_v51 = vand.u32 4294901760, %v20802_v30 }
 0x3f9   :  { %7880 = vmatprep.subr.bf16.mxu1 %v14178_v28  ;;  %v20808_v28 = vand.u32 4294901760, %v20799_v47  ;;  %v20813_v49 = vand.u32 4294901760, %v20803_v43  ;;  %v20814_v57 = vand.u32 4294901760, %v20804_v39  ;;  %v20820_v12 = vld [vmem:[#allocation119_spill] sm:$0xff]  ;;  %v20831_v42 = vld [vmem:[#allocation210_spill] sm:$0xff]  ;;  %v20847_v46 = vand.u32 4294901760, %v14521_v19 }
 0x3fa   :  { %v14611_v48 = vsub.f32 %v20800_v36, %v20809_v54  ;;  %v14616_v26 = vsub.f32 %v20801_v33, %v20810_v13  ;;  %v14621_v59 = vsub.f32 %v20802_v30, %v20811_v51  ;;  %v14639_v51 = vsub.f32 %v20805_v9, %v18656_v0  ;;  %v20833_v36 = vld [vmem:[#allocation209_spill] sm:$0xff]  ;;  %v20834_v33 = vld [vmem:[#allocation211_spill] sm:$0xff]  ;;  %v20838_v9 = vld [vmem:[#allocation120_spill] sm:$0xff] }
 0x3fb   :  { %7498 = vmatpush1.bf16.msra.mxu0 %v14180_v18  ;;  %v14606_v1 = vsub.f32 %v20799_v47, %v20808_v28  ;;  %v20812_v18 = vld [vmem:[#allocation82_spill] sm:$0xff]  ;;  %v2929_v28 = vand.u32 4294901760, %v14587_v23  ;;  %v14629_v54 = vsub.f32 %v20803_v43, %v20813_v49  ;;  %v14634_v13 = vsub.f32 %v20804_v39, %v20814_v57  ;;  %v20818_v49 = vld [vmem:[#allocation123_spill] sm:$0xff]  ;;  %v20832_v47 = vld [vmem:[#allocation213_spill] sm:$0xff] }
 0x3fc   :  { %7882 = vmatpush1.bf16.msra.mxu1 %v20812_v18  ;;  %7500 = vmatprep.subr.bf16.mxu0 %v14404_v58  ;;  %20815 = vst [vmem:[#allocation146_spill] sm:$0xff] %v14639_v51  ;;  %v20816_v58 = vand.u32 4294901760, %v20807_v21  ;;  %v20817_v18 = vld [vmem:[#allocation122_spill] sm:$0xff]  ;;  %v20823_v51 = vld [vmem:[#allocation107_spill] sm:$0xff]  ;;  %v20836_v43 = vld [vmem:[#allocation164_spill] sm:$0xff]  ;;  %v3829_v57 = vand.u32 4294901760, %v14611_v48 }
 0x3fd   :  { %7884 = vmatprep.subr.bf16.mxu1 %v14406_v38  ;;  %v20828_v38 = vld [vmem:[#allocation204_spill] sm:$0xff]  ;;  %v20835_v30 = vld [vmem:[#allocation163_spill] sm:$0xff]  ;;  %v20837_v39 = vld [vmem:[#allocation5_spill] sm:$0xff]  ;;  %v3819_v8 = vand.u32 4294901760, %v14606_v1  ;;  %v20848_v41 = vand.u32 4294901760, %v14550_v3  ;;  %v20849_v62 = vand.u32 4294901760, %v14555_v25 }
 0x3fe   :  { %v14645_v23 = vsub.f32 %v20807_v21, %v20816_v58  ;;  %v20827_v58 = vld [vmem:[#allocation202_spill] sm:$0xff]  ;;  %v20839_v0 = vld [vmem:[#allocation121_spill] sm:$0xff]  ;;  %v20840_v21 = vld [vmem:[#allocation16_spill] sm:$0xff]  ;;  %v20851_v48 = vand.u32 4294901760, %v14565_v50  ;;  %v3844_v19 = vand.u32 4294901760, %v14634_v13 }
 0x3ff   :  { %7502 = vmatpush1.bf16.msra.mxu0 %v14415_v45  ;;  %v20842_v44 = vld [vmem:[#allocation167_spill] sm:$0xff]  ;;  %v7901_v6 = vpack.c.bf16 %v20848_v41, %v20847_v46  ;;  %v7519_v61 = vpack.c.bf16 %v2924_v34, %v20849_v62  ;;  %v18680_v22 = vand.u32 4294901760, %v20827_v58  ;;  %v20850_v63 = vld [vmem:[#allocation130_spill] sm:$0xff]  ;;  %v20853_v46 = vand.u32 4294901760, %v20824_v5 }
 0x400   :  { %7886 = vmatpush1.bf16.msra.mxu1 %v20822_v35  ;;  %7504 = vmatprep.subr.bf16.mxu0 %v20823_v51  ;;  %v20830_v35 = vld [vmem:[#allocation207_spill] sm:$0xff]  ;;  %v20843_v51 = vld [vmem:[#allocation169_spill] sm:$0xff]  ;;  %v20854_v62 = vand.u32 4294901760, %v14575_v27  ;;  %v2949_v50 = vand.u32 4294901760, %v14645_v23  ;;  %v7905_v13 = vpack.c.bf16 %v3829_v57, %v3819_v8  ;;  %v18684_v23 = vand.u32 4294901760, %v20833_v36 }
 0x401   :  { %7888 = vmatprep.subr.bf16.mxu1 %v20825_v17  ;;  %v20826_v17 = vld [vmem:[#allocation201_spill] sm:$0xff]  ;;  %v20845_v45 = vld [vmem:[#allocation23_spill] sm:$0xff]  ;;  %v3838_v41 = vsub.f32 %v20824_v5, %v20853_v46 }
 0x402   :  { %v7521_v34 = vpack.c.bf16 %v2929_v28, %v20854_v62  ;;  %v20858_v46 = vld [vmem:[#allocation135_spill] sm:$0xff]  ;;  %v20861_v28 = vld [vmem:[#allocation149_spill] sm:$0xff] }
 0x403   :  { %7506 = vmatpush1.bf16.msra.mxu0 %v20829_v31  ;;  %v20841_v31 = vld [vmem:[#allocation161_spill] sm:$0xff]  ;;  %v20855_v3 = vld [vmem:[#allocation146_spill] sm:$0xff]  ;;  %v3839_v57 = vand.u32 4294901760, %v3838_v41  ;;  %v20859_v62 = vld [vmem:[#allocation143_spill] sm:$0xff]  ;;  %v18690_v41 = vand.u32 4294901760, %v20840_v21 }
 0x404   :  { %7890 = vmatpush1.bf16.msra.mxu1 %v20838_v9  ;;  %7508 = vmatprep.subr.bf16.mxu0 %v20839_v0  ;;  %v2934_v9 = vand.u32 4294901760, %v14616_v26  ;;  %v2944_v0 = vand.u32 4294901760, %v14621_v59  ;;  %v20852_v26 = vand.u32 4294901760, %v14570_v7  ;;  %v3834_v59 = vand.u32 4294901760, %v14629_v54  ;;  %v20857_v54 = vld [vmem:[#allocation132_spill] sm:$0xff] }
 0x405   :  { %7892 = vmatprep.subr.bf16.mxu1 %v20846_v55  ;;  %v18679_v55 = vand.u32 4294901760, %v20828_v38  ;;  %v2939_v25 = vand.u32 4294901760, %v20855_v3  ;;  %v20856_v7 = vand.u32 4294901760, %v20826_v17  ;;  %v20860_v3 = vld [vmem:[#allocation144_spill] sm:$0xff] }
 0x406   :  { %v7903_v1 = vpack.c.bf16 %v20852_v26, %v20851_v48  ;;  %v7523_v48 = vpack.c.bf16 %v2944_v0, %v2934_v9  ;;  %v18682_v26 = vand.u32 4294901760, %v20830_v35  ;;  %v7907_v8 = vpack.c.bf16 %v3844_v19, %v3834_v59 }
 0x407   :  { %7510 = vmatpush1.bf16.msra.mxu0 %v20850_v63  ;;  %v3848_v63 = vsub.f32 %v20826_v17, %v20856_v7  ;;  %v2963_v27 = vsub.f32 %v20828_v38, %v18679_v55  ;;  %v18683_v9 = vand.u32 4294901760, %v20834_v33  ;;  %v18685_v0 = vand.u32 4294901760, %v20835_v30 }
 0x408   :  { %7894 = vmatpush1.bf16.msra.mxu1 %v14506_v37  ;;  %7512 = vmatprep.subr.bf16.mxu0 %v14530_v14  ;;  %v18681_v37 = vand.u32 4294901760, %v20831_v42  ;;  %v2953_v14 = vsub.f32 %v20827_v58, %v18680_v22  ;;  %v7525_v7 = vpack.c.bf16 %v2949_v50, %v2939_v25  ;;  %v18686_v55 = vand.u32 4294901760, %v20836_v43 }
 0x409   :  { %7896 = vmatprep.subr.bf16.mxu1 %v20857_v54  ;;  %v3849_v54 = vand.u32 4294901760, %v3848_v63  ;;  %v18689_v22 = vand.u32 4294901760, %v20837_v39  ;;  %v3853_v59 = vsub.f32 %v20830_v35, %v18682_v26  ;;  %v2964_v50 = vand.u32 4294901760, %v2963_v27 }
 0x40a   :  { %v3863_v19 = vsub.f32 %v20831_v42, %v18681_v37  ;;  %v2954_v25 = vand.u32 4294901760, %v2953_v14  ;;  %v20862_v63 = vand.u32 4294901760, %v20832_v47  ;;  %v3858_v37 = vsub.f32 %v20834_v33, %v18683_v9 }
 0x40b   :  { %7514 = vmatpush1.bf16.msra.mxu0 %v20858_v46  ;;  %v3868_v26 = vsub.f32 %v20835_v30, %v18685_v0  ;;  %v3854_v0 = vand.u32 4294901760, %v3853_v59  ;;  %v20866_v59 = vand.u32 4294901760, %v20843_v51 }
 0x40c   :  { %7898 = vmatpush1.bf16.msra.mxu1 %v20859_v62  ;;  %7516 = vmatprep.subr.bf16.mxu0 %v20860_v3  ;;  %v2958_v62 = vsub.f32 %v20832_v47, %v20862_v63  ;;  %v20863_v3 = vld [vmem:[#allocation145_spill] sm:$0xff]  ;;  %v2973_v63 = vsub.f32 %v20836_v43, %v18686_v55  ;;  %v3864_v46 = vand.u32 4294901760, %v3863_v19  ;;  %v7909_v55 = vpack.c.bf16 %v3849_v54, %v3839_v57 }
 0x40d   :  { %7900 = vmatprep.subr.bf16.mxu1 %v20861_v28  ;;  %v2968_v28 = vsub.f32 %v20833_v36, %v18684_v23  ;;  %v7527_v14 = vpack.c.bf16 %v2964_v50, %v2954_v25  ;;  %v3869_v9 = vand.u32 4294901760, %v3868_v26  ;;  %v20865_v23 = vand.u32 4294901760, %v20842_v44 }
 0x40e   :  { %v2959_v43 = vand.u32 4294901760, %v2958_v62  ;;  %v2988_v19 = vsub.f32 %v20843_v51, %v20866_v59  ;;  %v20867_v57 = vand.u32 4294901760, %v20844_v40 }
 0x40f   :  { %7518 = vmatpush1.bf16.msra.mxu0 %v20863_v3  ;;  %v2983_v3 = vsub.f32 %v20837_v39, %v18689_v22  ;;  %v2969_v33 = vand.u32 4294901760, %v2968_v28  ;;  %v3859_v22 = vand.u32 4294901760, %v3858_v37  ;;  %v7911_v37 = vpack.c.bf16 %v3864_v46, %v3854_v0  ;;  %v20869_v0 = vld [vmem:[#allocation170_spill] sm:$0xff]  ;;  %v20870_v46 = vld [vmem:[#allocation172_spill] sm:$0xff] }
 0x410   :  { %7902 = vmatpush1.bf16.msra.mxu1 %v7901_v6  ;;  %7520 = vmatprep.subr.bf16.mxu0 %v7519_v61  ;;  %v3873_v6 = vsub.f32 %v20840_v21, %v18690_v41  ;;  %v20864_v61 = vand.u32 4294901760, %v20841_v31  ;;  %v2974_v41 = vand.u32 4294901760, %v2973_v63  ;;  %v3878_v54 = vsub.f32 %v20844_v40, %v20867_v57  ;;  %v20879_v57 = vld [vmem:[#allocation241_spill] sm:$0xff] }
 0x411   :  { %7904 = vmatprep.subr.bf16.mxu1 %v7903_v1  ;;  %v2978_v1 = vsub.f32 %v20842_v44, %v20865_v23  ;;  %v2984_v21 = vand.u32 4294901760, %v2983_v3  ;;  %v7529_v50 = vpack.c.bf16 %v2969_v33, %v2959_v43  ;;  %v2989_v28 = vand.u32 4294901760, %v2988_v19  ;;  %v20871_v33 = vld [vmem:[#allocation221_spill] sm:$0xff]  ;;  %v20872_v43 = vld [vmem:[#allocation14_spill] sm:$0xff] }
 0x412   :  { %v3883_v27 = vsub.f32 %v20841_v31, %v20864_v61  ;;  %v3874_v25 = vand.u32 4294901760, %v3873_v6  ;;  %v3879_v63 = vand.u32 4294901760, %v3878_v54  ;;  %v20877_v6 = vld [vmem:[#allocation235_spill] sm:$0xff]  ;;  %v20880_v54 = vld [vmem:[#allocation237_spill] sm:$0xff] }
 0x413   :  { %7522 = vmatpush1.bf16.msra.mxu0 %v7521_v34  ;;  %v20868_v34 = vand.u32 4294901760, %v20845_v45  ;;  %v2979_v62 = vand.u32 4294901760, %v2978_v1  ;;  %v20878_v1 = vld [vmem:[#allocation236_spill] sm:$0xff] }
 0x414   :  { %7906 = vmatpush1.bf16.msra.mxu1 %v7905_v13  ;;  %7524 = vmatprep.subr.bf16.mxu0 %v7523_v48  ;;  %v3884_v23 = vand.u32 4294901760, %v3883_v27  ;;  %v7913_v13 = vpack.c.bf16 %v3869_v9, %v3859_v22  ;;  %v7531_v48 = vpack.c.bf16 %v2984_v21, %v2974_v41  ;;  %v7535_v27 = vpack.c.bf16 %v20870_v46, %v20869_v0  ;;  %v20874_v22 = vld [vmem:[#allocation232_spill] sm:$0xff]  ;;  %v20875_v9 = vld [vmem:[#allocation233_spill] sm:$0xff]  ;;  %v20876_v41 = vld [vmem:[#allocation234_spill] sm:$0xff] }
 0x415   :  { %v3888_v26 = vsub.f32 %v20845_v45, %v20868_v34  ;;  %7908 = vmatprep.subr.bf16.mxu1 %v7907_v8  ;;  %v7533_v59 = vpack.c.bf16 %v2989_v28, %v2979_v62  ;;  %v7539_v19 = vpack.c.bf16 %v20878_v1, %v20877_v6  ;;  %v20881_v34 = vld [vmem:[#allocation238_spill] sm:$0xff] }
 0x416   :  { %v7915_v61 = vpack.c.bf16 %v3884_v23, %v3874_v25  ;;  %v20883_v25 = vld [vmem:[#allocation61_spill] sm:$0xff]  ;;  %v20885_v62 = vld [vmem:[#allocation62_spill] sm:$0xff] }
 0x417   :  { %7526 = vmatpush1.bf16.msra.mxu0 %v7525_v7  ;;  %v3889_v3 = vand.u32 4294901760, %v3888_v26  ;;  %v7919_v7 = vpack.c.bf16 %v20872_v43, %v20871_v33  ;;  %v7923_v26 = vpack.c.bf16 %v20881_v34, %v20880_v54  ;;  %v20886_v28 = vld [vmem:[#allocation242_spill] sm:$0xff] }
 0x418   :  { %7910 = vmatpush1.bf16.msra.mxu1 %v7909_v55  ;;  %7528 = vmatprep.subr.bf16.mxu0 %v7527_v14  ;;  %v20873_v55 = vld [vmem:[#allocation231_spill] sm:$0xff]  ;;  %v7921_v14 = vpack.c.bf16 %v20876_v41, %v20875_v9 }
 0x419   :  { %7912 = vmatprep.subr.bf16.mxu1 %v7911_v37  ;;  %v7917_v8 = vpack.c.bf16 %v3889_v3, %v3879_v63  ;;  %v7537_v21 = vpack.c.bf16 %v20874_v22, %v20873_v55  ;;  %v20882_v37 = vld [vmem:[#allocation239_spill] sm:$0xff]  ;;  %v20888_v63 = vld [vmem:[#allocation80_spill] sm:$0xff] }
 0x41a   :  { %v7541_v23 = vpack.c.bf16 %v20883_v25, %v20882_v37 }
 0x41b   :  { %7530 = vmatpush1.bf16.msra.mxu0 %v7529_v50  ;;  %v20884_v50 = vld [vmem:[#allocation243_spill] sm:$0xff] }
 0x41c   :  { %7914 = vmatpush1.bf16.msra.mxu1 %v7913_v13  ;;  %7532 = vmatprep.subr.bf16.mxu0 %v7531_v48  ;;  %v7925_v13 = vpack.c.bf16 %v20886_v28, %v20885_v62  ;;  %v20887_v48 = vld [vmem:[#allocation245_spill] sm:$0xff]  ;;  %v20895_v28 = vld [vmem:[#allocation78_spill] sm:$0xff]  ;;  %v20896_v62 = vld [vmem:[#allocation87_spill] sm:$0xff] }
 0x41d   :  { %7916 = vmatprep.subr.bf16.mxu1 %v7915_v61  ;;  %v7543_v3 = vpack.c.bf16 %v20888_v63, %v20887_v48  ;;  %v20889_v61 = vld [vmem:[#allocation85_spill] sm:$0xff]  ;;  %v7547_v37 = vpack.c.bf16 %v20896_v62, %v20895_v28  ;;  %v20897_v63 = vld [vmem:[#allocation95_spill] sm:$0xff]  ;;  %v20899_v48 = vld [vmem:[#allocation128_spill] sm:$0xff] }
 0x41e   :  { %v20908_v28 = vld [vmem:[#allocation160_spill] sm:$0xff] }
 0x41f   :  { %7534 = vmatpush1.bf16.msra.mxu0 %v7533_v59  ;;  %v20890_v59 = vld [vmem:[#allocation81_spill] sm:$0xff] }
 0x420   :  { %7918 = vmatpush1.bf16.msra.mxu1 %v7917_v8  ;;  %7536 = vmatprep.subr.bf16.mxu0 %v7535_v27  ;;  %v7927_v8 = vpack.c.bf16 %v20890_v59, %v20889_v61  ;;  %v20891_v27 = vld [vmem:[#allocation86_spill] sm:$0xff]  ;;  %v20900_v59 = vld [vmem:[#allocation139_spill] sm:$0xff] }
 0x421   :  { %7920 = vmatprep.subr.bf16.mxu1 %v7919_v7  ;;  %v20892_v7 = vld [vmem:[#allocation73_spill] sm:$0xff] }
 0x422   :  { %2994 = vmatmul.mubr.f32.vlgmr.msra.gmra.mrb[2].mxu0 %v20879_v57 }
 0x423   :  { %3894 = vmatmul.mubr.f32.vlgmr.msra.gmra.mrb[2].mxu1 %v20879_v57  ;;  %7538 = vmatpush1.bf16.msra.mxu0 %v7537_v21  ;;  %v7545_v21 = vpack.c.bf16 %v20892_v7, %v20891_v27  ;;  %v20894_v57 = vld [vmem:[#allocation75_spill] sm:$0xff]  ;;  %v20902_v7 = vld [vmem:[#allocation142_spill] sm:$0xff] }
 0x424   :  { %3130 = vmatprep.mubr.f32.mxu0 %v20884_v50  ;;  %7922 = vmatpush1.bf16.msra.mxu1 %v7921_v14  ;;  %v20893_v14 = vld [vmem:[#allocation74_spill] sm:$0xff]  ;;  %v20904_v27 = vld [vmem:[#allocation147_spill] sm:$0xff] }
 0x425   :  { %4030 = vmatprep.mubr.f32.mxu1 %v20884_v50  ;;  %7540 = vmatprep.subr.bf16.mxu0 %v7539_v19  ;;  %v7929_v25 = vpack.c.bf16 %v20894_v57, %v20893_v14  ;;  %v20898_v50 = vld [vmem:[#allocation124_spill] sm:$0xff]  ;;  %v20906_v14 = vld [vmem:[#allocation150_spill] sm:$0xff] }
 0x426   :  { %7924 = vmatprep.subr.bf16.mxu1 %v7923_v26  ;;  %v7931_v19 = vpack.c.bf16 %v20898_v50, %v20897_v63  ;;  %v7549_v26 = vpack.c.bf16 %v20900_v59, %v20899_v48  ;;  %v20905_v57 = vld [vmem:[#allocation148_spill] sm:$0xff]  ;;  %v20910_v59 = vld [vmem:[#allocation183_spill] sm:$0xff] }
 0x427   :  { %7542 = vmatpush1.bf16.msra.mxu0 %v7541_v23  ;;  %v20901_v23 = vld [vmem:[#allocation141_spill] sm:$0xff]  ;;  %v7935_v62 = vpack.c.bf16 %v20906_v14, %v20905_v57  ;;  %v20912_v48 = vld [vmem:[#allocation199_spill] sm:$0xff] }
 0x428   :  { %7926 = vmatpush1.bf16.msra.mxu1 %v7925_v13  ;;  %7544 = vmatprep.subr.bf16.mxu0 %v7543_v3  ;;  %v7933_v13 = vpack.c.bf16 %v20902_v7, %v20901_v23  ;;  %v20903_v3 = vld [vmem:[#allocation153_spill] sm:$0xff]  ;;  %v20913_v7 = vld [vmem:[#allocation212_spill] sm:$0xff]  ;;  %v20914_v23 = vld [vmem:[#allocation215_spill] sm:$0xff] }
 0x429   :  { %7928 = vmatprep.subr.bf16.mxu1 %v7927_v8  ;;  %v7551_v61 = vpack.c.bf16 %v20904_v27, %v20903_v3  ;;  %v20907_v8 = vld [vmem:[#allocation151_spill] sm:$0xff]  ;;  %v7939_v27 = vpack.c.bf16 %v20914_v23, %v20913_v7  ;;  %v20916_v3 = vld [vmem:[#allocation217_spill] sm:$0xff] }
 0x42a   :  { %v7553_v50 = vpack.c.bf16 %v20908_v28, %v20907_v8  ;;  %v20918_v28 = vld [vmem:[#allocation220_spill] sm:$0xff]  ;;  %v20920_v8 = vld [vmem:[#allocation223_spill] sm:$0xff] }
 0x42b   :  { %7546 = vmatpush1.bf16.msra.mxu0 %v7545_v21  ;;  %v20909_v21 = vld [vmem:[#allocation166_spill] sm:$0xff] }
 0x42c   :  { %7930 = vmatpush1.bf16.msra.mxu1 %v7929_v25  ;;  %7548 = vmatprep.subr.bf16.mxu0 %v7547_v37  ;;  %v7937_v25 = vpack.c.bf16 %v20910_v59, %v20909_v21  ;;  %v20911_v37 = vld [vmem:[#allocation190_spill] sm:$0xff]  ;;  %v20922_v21 = vld [vmem:[#allocation225_spill] sm:$0xff] }
 0x42d   :  { %7932 = vmatprep.subr.bf16.mxu1 %v7931_v19  ;;  %v7555_v63 = vpack.c.bf16 %v20912_v48, %v20911_v37  ;;  %v20915_v19 = vld [vmem:[#allocation214_spill] sm:$0xff]  ;;  %v20924_v37 = vld [vmem:[#allocation227_spill] sm:$0xff] }
 0x42e   :  { %v7557_v14 = vpack.c.bf16 %v20916_v3, %v20915_v19  ;;  %v20921_v59 = vld [vmem:[#allocation226_spill] sm:$0xff]  ;;  %v20926_v3 = vld [vmem:[#allocation229_spill] sm:$0xff] }
 0x42f   :  { %7550 = vmatpush1.bf16.msra.mxu0 %v7549_v26  ;;  %v20917_v26 = vld [vmem:[#allocation15_spill] sm:$0xff]  ;;  %v7943_v48 = vpack.c.bf16 %v20922_v21, %v20921_v59  ;;  %v20928_v19 = vld [vmem:[#allocation98_spill] sm:$0xff] }
 0x430   :  { %7934 = vmatpush1.bf16.msra.mxu1 %v7933_v13  ;;  %7552 = vmatprep.subr.bf16.mxu0 %v7551_v61  ;;  %v7941_v13 = vpack.c.bf16 %v20918_v28, %v20917_v26  ;;  %v20919_v61 = vld [vmem:[#allocation219_spill] sm:$0xff]  ;;  %v20929_v28 = vld [vmem:[#allocation92_spill] sm:$0xff]  ;;  %v20930_v26 = vld [vmem:[#allocation93_spill] sm:$0xff] }
 0x431   :  { %7936 = vmatprep.subr.bf16.mxu1 %v7935_v62  ;;  %v7559_v57 = vpack.c.bf16 %v20920_v8, %v20919_v61  ;;  %v20923_v62 = vld [vmem:[#allocation228_spill] sm:$0xff]  ;;  %v7947_v8 = vpack.c.bf16 %v20930_v26, %v20929_v28  ;;  %v20932_v61 = vld [vmem:[#allocation101_spill] sm:$0xff] }
 0x432   :  { %v7561_v23 = vpack.c.bf16 %v20924_v37, %v20923_v62  ;;  %v20934_v37 = vld [vmem:[#allocation112_spill] sm:$0xff]  ;;  %v20936_v62 = vld [vmem:[#allocation114_spill] sm:$0xff] }
 0x433   :  { %7554 = vmatpush1.bf16.msra.mxu0 %v7553_v50  ;;  %v20925_v50 = vld [vmem:[#allocation230_spill] sm:$0xff] }
 0x434   :  { %7938 = vmatpush1.bf16.msra.mxu1 %v7937_v25  ;;  %7556 = vmatprep.subr.bf16.mxu0 %v7555_v63  ;;  %v7945_v25 = vpack.c.bf16 %v20926_v3, %v20925_v50  ;;  %v20927_v63 = vld [vmem:[#allocation97_spill] sm:$0xff]  ;;  %v20937_v3 = vld [vmem:[#allocation104_spill] sm:$0xff] }
 0x435   :  { %7940 = vmatprep.subr.bf16.mxu1 %v7939_v27  ;;  %v7563_v7 = vpack.c.bf16 %v20928_v19, %v20927_v63  ;;  %v20931_v27 = vld [vmem:[#allocation100_spill] sm:$0xff]  ;;  %v20938_v50 = vld [vmem:[#allocation105_spill] sm:$0xff] }
 0x436   :  { %v7565_v21 = vpack.c.bf16 %v20932_v61, %v20931_v27  ;;  %v7951_v19 = vpack.c.bf16 %v20938_v50, %v20937_v3  ;;  %v20940_v63 = vld [vmem:[#allocation108_spill] sm:$0xff] }
 0x437   :  { %7558 = vmatpush1.bf16.msra.mxu0 %v7557_v14  ;;  %v20933_v14 = vld [vmem:[#allocation111_spill] sm:$0xff] }
 0x438   :  { %7942 = vmatpush1.bf16.msra.mxu1 %v7941_v13  ;;  %7560 = vmatprep.subr.bf16.mxu0 %v7559_v57  ;;  %v7949_v13 = vpack.c.bf16 %v20934_v37, %v20933_v14  ;;  %v20935_v57 = vld [vmem:[#allocation113_spill] sm:$0xff] }
 0x439   :  { %7944 = vmatprep.subr.bf16.mxu1 %v7943_v48  ;;  %v7567_v59 = vpack.c.bf16 %v20936_v62, %v20935_v57  ;;  %v20939_v48 = vld [vmem:[#allocation106_spill] sm:$0xff] }
 0x43a   :  { %v7569_v26 = vpack.c.bf16 %v20940_v63, %v20939_v48 }
 0x43b   :  { %7562 = vmatpush1.bf16.msra.mxu0 %v7561_v23  ;;  %v20942_v23 = vpack.c.bf16 %v20820_v12, %v20819_v52 }
 0x43c   :  { %7946 = vmatpush1.bf16.msra.mxu1 %v7945_v25  ;;  %7564 = vmatprep.subr.bf16.mxu0 %v7563_v7  ;;  %v20941_v7 = vpack.c.bf16 %v20818_v49, %v20817_v18 }
 0x43d   :  { %7948 = vmatprep.subr.bf16.mxu1 %v7947_v8  ;;  %v20943_v8 = vpack.c.bf16 %v20729_v32, %v20721_v24 }
 0x43f   :  { %7566 = vmatpush1.bf16.msra.mxu0 %v7565_v21  ;;  %v20944_v21 = vpack.c.bf16 %v20736_v29, %v20735_v20 }
 0x440   :  { %7950 = vmatpush1.bf16.msra.mxu1 %v7949_v13  ;;  %7568 = vmatprep.subr.bf16.mxu0 %v7567_v59  ;;  %v20945_v59 = vld [vmem:[#allocation140_spill] sm:$0xff]  ;;  %v20949_v13 = vpack.c.bf16 %v20756_v10, %v20755_v53  ;;  %v20961_v53 = vld [vmem:[#allocation189_spill] sm:$0xff] }
 0x441   :  { %7952 = vmatprep.subr.bf16.mxu1 %v7951_v19  ;;  %v20946_v19 = vpack.c.bf16 %v20746_v56, %v20945_v59  ;;  %v20955_v56 = vld [vmem:[#allocation180_spill] sm:$0xff] }
 0x443   :  { %7570 = vmatpush1.bf16.msra.mxu0 %v7569_v26  ;;  %v20947_v26 = vld [vmem:[#allocation134_spill] sm:$0xff] }
 0x444   :  { %7954 = vmatpush1.bf16.msra.mxu1 %v20941_v7  ;;  %7572 = vmatprep.subr.bf16.mxu0 %v20942_v23  ;;  %v20948_v25 = vpack.c.bf16 %v20754_v60, %v20947_v26  ;;  %v20950_v7 = vpack.c.bf16 %v20758_v11, %v20757_v2  ;;  %v20951_v23 = vld [vmem:[#allocation178_spill] sm:$0xff]  ;;  %v20964_v2 = vld [vmem:[#allocation185_spill] sm:$0xff] }
 0x445   :  { %7956 = vmatprep.subr.bf16.mxu1 %v20943_v8  ;;  %v20952_v8 = vpack.c.bf16 %v20760_v4, %v20951_v23  ;;  %v20958_v26 = vld [vmem:[#allocation182_spill] sm:$0xff]  ;;  %v20967_v23 = vld [vmem:[#allocation188_spill] sm:$0xff] }
 0x447   :  { %7574 = vmatpush1.bf16.msra.mxu0 %v20944_v21  ;;  %v20953_v21 = vpack.c.bf16 %v20763_v16, %v20761_v15  ;;  %v20970_v15 = vld [vmem:[#allocation194_spill] sm:$0xff] }
 0x448   :  { %7958 = vmatpush1.bf16.msra.mxu1 %v20946_v19  ;;  %7576 = vmatprep.subr.bf16.mxu0 %v20948_v25  ;;  %v20954_v19 = vld [vmem:[#allocation181_spill] sm:$0xff]  ;;  %v20957_v25 = vld [vmem:[#allocation187_spill] sm:$0xff] }
 0x449   :  { %7960 = vmatprep.subr.bf16.mxu1 %v20949_v13  ;;  %v20956_v60 = vpack.c.bf16 %v20954_v19, %v20955_v56  ;;  %v20959_v10 = vpack.c.bf16 %v20957_v25, %v20958_v26  ;;  %v20960_v13 = vld [vmem:[#allocation192_spill] sm:$0xff] }
 0x44a   :  { %v20962_v11 = vpack.c.bf16 %v20960_v13, %v20961_v53  ;;  %v20973_v56 = vld [vmem:[#allocation200_spill] sm:$0xff]  ;;  %v20979_v53 = vld [vmem:[#allocation198_spill] sm:$0xff] }
 0x44b   :  { %7578 = vmatpush1.bf16.msra.mxu0 %v20950_v7  ;;  %v20963_v7 = vld [vmem:[#allocation186_spill] sm:$0xff]  ;;  %v20976_v26 = vld [vmem:[#allocation196_spill] sm:$0xff] }
 0x44c   :  { %7962 = vmatpush1.bf16.msra.mxu1 %v20952_v8  ;;  %7580 = vmatprep.subr.bf16.mxu0 %v20953_v21  ;;  %v20965_v4 = vpack.c.bf16 %v20963_v7, %v20964_v2  ;;  %v20966_v8 = vld [vmem:[#allocation191_spill] sm:$0xff]  ;;  %v20982_v2 = vld [vmem:[#allocation205_spill] sm:$0xff] }
 0x44d   :  { %7964 = vmatprep.subr.bf16.mxu1 %v20956_v60  ;;  %v20968_v16 = vpack.c.bf16 %v20966_v8, %v20967_v23  ;;  %v20969_v21 = vld [vmem:[#allocation195_spill] sm:$0xff]  ;;  %v20972_v60 = vld [vmem:[#allocation193_spill] sm:$0xff] }
 0x44e   :  { %v20971_v19 = vpack.c.bf16 %v20969_v21, %v20970_v15  ;;  %v20974_v25 = vpack.c.bf16 %v20972_v60, %v20973_v56 }
 0x44f   :  { %7582 = vmatpush1.bf16.msra.mxu0 %v20959_v10  ;;  %v20975_v10 = vld [vmem:[#allocation197_spill] sm:$0xff] }
 0x450   :  { %7966 = vmatpush1.bf16.msra.mxu1 %v20962_v11  ;;  %7584 = vmatprep.subr.bf16.mxu0 %v20965_v4  ;;  %v20977_v13 = vpack.c.bf16 %v20975_v10, %v20976_v26  ;;  %v20978_v11 = vld [vmem:[#allocation203_spill] sm:$0xff]  ;;  %v20981_v4 = vld [vmem:[#allocation206_spill] sm:$0xff] }
 0x451   :  { %7968 = vmatprep.subr.bf16.mxu1 %v20968_v16  ;;  %v20980_v7 = vpack.c.bf16 %v20978_v11, %v20979_v53  ;;  %v20983_v8 = vpack.c.bf16 %v20981_v4, %v20982_v2  ;;  %v20984_v16 = vpack.c.bf16 %v20826_v17, %v20824_v5 }
 0x453   :  { %7586 = vmatpush1.bf16.msra.mxu0 %v20971_v19  ;;  %v20985_v19 = vpack.c.bf16 %v20828_v38, %v20827_v58 }
 0x454   :  { %7970 = vmatpush1.bf16.msra.mxu1 %v20974_v25  ;;  %7588 = vmatprep.subr.bf16.mxu0 %v20977_v13  ;;  %v20986_v25 = vpack.c.bf16 %v20831_v42, %v20830_v35  ;;  %v20987_v13 = vpack.c.bf16 %v20833_v36, %v20832_v47  ;;  %v21012_v36 = vld [vmem:[#allocation28_spill] sm:$0xff] }
 0x455   :  { %7972 = vmatprep.subr.bf16.mxu1 %v20980_v7  ;;  %v20988_v7 = vld [vmem:[#allocation211_spill] sm:$0xff] }
 0x456   :  { %v20989_v4 = vpack.c.bf16 %v20835_v30, %v20988_v7 }
 0x457   :  { %7590 = vmatpush1.bf16.msra.mxu0 %v20983_v8  ;;  %v20990_v8 = vld [vmem:[#allocation164_spill] sm:$0xff] }
 0x458   :  { %7974 = vmatpush1.bf16.msra.mxu1 %v20984_v16  ;;  %7592 = vmatprep.subr.bf16.mxu0 %v20985_v19  ;;  %v20991_v17 = vpack.c.bf16 %v20837_v39, %v20990_v8  ;;  %v20992_v16 = vld [vmem:[#allocation16_spill] sm:$0xff]  ;;  %v20994_v19 = vpack.c.bf16 %v20843_v51, %v20842_v44 }
 0x459   :  { %7976 = vmatprep.subr.bf16.mxu1 %v20986_v25  ;;  %v20993_v38 = vpack.c.bf16 %v20841_v31, %v20992_v16  ;;  %v20995_v25 = vpack.c.bf16 %v20845_v45, %v20844_v40  ;;  %v21044_v45 = vld [vmem:[#allocation30_spill] sm:$0xff]  ;;  %v21046_v40 = vld [vmem:[#allocation31_spill] sm:$0xff] }
 0x45b   :  { %7594 = vmatpush1.bf16.msra.mxu0 %v20987_v13  ;;  %v20996_v13 = vmov 1.0|1.0  }
 0x45c   :  { %7978 = vmatpush1.bf16.msra.mxu1 %v20989_v4  ;;  %7596 = vmatprep.subr.bf16.mxu0 %v20991_v17  ;;  %v20999_v17 = vld [vmem:[#allocation244_spill] sm:$0xff]  ;;  %v21014_v4 = vld [vmem:[#allocation33_spill] sm:$0xff] }
 0x45d   :  { %7980 = vmatprep.subr.bf16.mxu1 %v20993_v38  ;;  %v21006_v38 = vld [vmem:[#allocation21_spill] sm:$0xff] }
 0x45e   :  { %vm21007_vm6 = vnez %v21006_v38  ;;  %v21018_v38 = vld [vmem:[#allocation37_spill] sm:$0xff] }
 0x45f   :  { %7598 = vmatpush1.bf16.msra.mxu0 %v20994_v19  ;;  %v21001_v19 = vld [vmem:[#allocation246_spill] sm:$0xff] }
 0x460   :  { %7982 = vmatpush1.bf16.msra.mxu1 %v20995_v25  ;;  %7600 = vmatprep.subr.msk.bf16.mxu0 %vm13057_vm7, %v20996_v13  ;;  %v21008_v25 = vld [vmem:[#allocation22_spill] sm:$0xff] }
 0x461   :  { %7984 = vmatprep.subr.msk.bf16.mxu1 %vm13077_vm8, %v20996_v13  ;;  %vm21009_vm10 = vnez %v21008_v25  ;;  %v21020_v25 = vld [vmem:[#allocation40_spill] sm:$0xff] }
 0x462   :  { %3133 = vmatmul.mubr.f32.vlgmr.msra.gmra.mrb[2].mxu0 %v20999_v17 }
 0x463   :  { %4033 = vmatmul.mubr.f32.vlgmr.msra.gmra.mrb[2].mxu1 %v20999_v17  ;;  %7602 = vmatpush1.bf16.msk.msra.mxu0 %vm13104_vm3, %v20996_v13  ;;  %v21016_v17 = vld [vmem:[#allocation34_spill] sm:$0xff] }
 0x464   :  { %3206 = vmatprep.mubr.f32.mxu0 %v21001_v19  ;;  %7986 = vmatpush1.bf16.msk.msra.mxu1 %vm13133_vm12, %v20996_v13 }
 0x465   :  { %4106 = vmatprep.mubr.f32.mxu1 %v21001_v19  ;;  %7604 = vmatprep.subr.msk.bf16.mxu0 %vm13155_vm14, %v20996_v13  ;;  %v21010_v19 = vld [vmem:[#allocation25_spill] sm:$0xff]  ;;  %vm21013_vm14 = vnez %v21012_v36 }
 0x466   :  { %7988 = vmatprep.subr.msk.bf16.mxu1 %vm13174_vm1, %v20996_v13  ;;  %vm21011_vm12 = vnez %v21010_v19  ;;  %vm21015_vm1 = vnez %v21014_v4  ;;  %v21022_v19 = vld [vmem:[#allocation45_spill] sm:$0xff]  ;;  %v21026_v4 = vld [vmem:[#allocation18_spill] sm:$0xff] }
 0x467   :  { %7606 = vmatpush1.bf16.msk.msra.mxu0 %vm13206_vm0, %v20996_v13  ;;  %vm21017_vm0 = vnez %v21016_v17  ;;  %v21024_v36 = vld [vmem:[#allocation17_spill] sm:$0xff]  ;;  %v21028_v17 = vld [vmem:[#allocation19_spill] sm:$0xff] }
 0x468   :  { %7990 = vmatpush1.bf16.msk.msra.mxu1 %vm21007_vm6, %v20996_v13  ;;  %7608 = vmatprep.subr.msk.bf16.mxu0 %vm21009_vm10, %v20996_v13  ;;  %vm21019_vm6 = vnez %v21018_v38  ;;  %vm21021_vm10 = vnez %v21020_v25  ;;  %v21030_v38 = vld [vmem:[#allocation20_spill] sm:$0xff] }
 0x469   :  { %7992 = vmatprep.subr.msk.bf16.mxu1 %vm21011_vm12, %v20996_v13  ;;  %vm21023_vm12 = vnez %v21022_v19  ;;  %v21032_v25 = vld [vmem:[#allocation24_spill] sm:$0xff]  ;;  %v15042_v19 = vpop.f32.mrb[0].mxu0 }
 0x46a   :  { %21034 = vst [vmem:[#allocation152_spill] sm:$0xff] %v15042_v19  ;;  %4704 = vrot.lane.b32.xlu0 %v15042_v19, %s8310_s29  ;;  %4391 = vrot.lane.b32.xlu1 %v15042_v19, %s8311_s30 }
 0x46b   :  { %7610 = vmatpush1.bf16.msk.msra.mxu0 %vm21013_vm14, %v20996_v13  ;;  %vm21025_vm14 = vnez %v21024_v36  ;;  %v21035_v36 = vld [vmem:[#allocation26_spill] sm:$0xff] }
 0x46c   :  { %7994 = vmatpush1.bf16.msk.msra.mxu1 %vm21015_vm1, %v20996_v13  ;;  %7612 = vmatprep.subr.msk.bf16.mxu0 %vm21017_vm0, %v20996_v13  ;;  %vm21027_vm1 = vnez %v21026_v4  ;;  %vm21029_vm0 = vnez %v21028_v17  ;;  %v15047_v4 = vpop.f32.mrb[0].mxu1  ;;  %v21040_v17 = vld [vmem:[#allocation27_spill] sm:$0xff] }
 0x46d   :  { %7996 = vmatprep.subr.msk.bf16.mxu1 %vm21019_vm6, %v20996_v13  ;;  %vm21031_vm6 = vnez %v21030_v38  ;;  %21037 = vst [vmem:[#allocation155_spill] sm:$0xff] %v15047_v4  ;;  %v15053_v38 = vpop.f32.mrb[1].mxu0 }
 0x46e   :  { %21038 = vst [vmem:[#allocation158_spill] sm:$0xff] %v15053_v38  ;;  %4708 = vrot.lane.b32.xlu0 %v15047_v4, %s8310_s29  ;;  %4395 = vrot.lane.b32.xlu1 %v15047_v4, %s8311_s30 }
 0x46f   :  { %7614 = vmatpush1.bf16.msk.msra.mxu0 %vm21021_vm10, %v20996_v13  ;;  %vm21033_vm10 = vnez %v21032_v25  ;;  %v15055_v25 = vpop.f32.mrb[1].mxu1 }
 0x470   :  { %7998 = vmatpush1.bf16.msk.msra.mxu1 %vm21023_vm12, %v20996_v13  ;;  %7616 = vmatprep.subr.msk.bf16.mxu0 %vm21025_vm14, %v20996_v13  ;;  %vm21036_vm14 = vnez %v21035_v36  ;;  %21039 = vst [vmem:[#allocation159_spill] sm:$0xff] %v15055_v25  ;;  %v21042_v36 = vld [vmem:[#allocation29_spill] sm:$0xff] }
 0x471   :  { %8000 = vmatprep.subr.msk.bf16.mxu1 %vm21027_vm1, %v20996_v13 }
 0x472   :  { %4419 = vrot.lane.b32.xlu1 %v15042_v19, %s8312_s12  ;;  %4421 = vrot.lane.b32.xlu0 %v15053_v38, %s8312_s12 }
 0x473   :  { %7618 = vmatpush1.bf16.msk.msra.mxu0 %vm21029_vm0, %v20996_v13  ;;  %vm21047_vm0 = vnez %v21046_v40  ;;  %v21054_v40 = vld [vmem:[#allocation38_spill] sm:$0xff] }
 0x474   :  { %8002 = vmatpush1.bf16.msk.msra.mxu1 %vm21031_vm6, %v20996_v13  ;;  %7620 = vmatprep.subr.msk.bf16.mxu0 %vm21033_vm10, %v20996_v13  ;;  %vm21041_vm10 = vnez %v21040_v17  ;;  %vm21045_vm6 = vnez %v21044_v45  ;;  %v21048_v17 = vld [vmem:[#allocation32_spill] sm:$0xff] }
 0x475   :  { %8004 = vmatprep.subr.msk.bf16.mxu1 %vm21036_vm14, %v20996_v13  ;;  %vm21043_vm14 = vnez %v21042_v36  ;;  %v21050_v36 = vld [vmem:[#allocation35_spill] sm:$0xff]  ;;  %v21052_v45 = vld [vmem:[#allocation36_spill] sm:$0xff] }
 0x476   :  { %4423 = vrot.lane.b32.xlu1 %v15047_v4, %s8312_s12  ;;  %4425 = vrot.lane.b32.xlu0 %v15055_v25, %s8312_s12 }
 0x477   :  { %7622 = vmatpush1.bf16.msk.msra.mxu0 %vm21041_vm10, %v20996_v13  ;;  %vm21049_vm10 = vnez %v21048_v17  ;;  %v21056_v17 = vld [vmem:[#allocation39_spill] sm:$0xff] }
 0x478   :  { %8006 = vmatpush1.bf16.msk.msra.mxu1 %vm21043_vm14, %v20996_v13  ;;  %7624 = vmatprep.subr.msk.bf16.mxu0 %vm21045_vm6, %v20996_v13  ;;  %vm21051_vm14 = vnez %v21050_v36  ;;  %vm21053_vm6 = vnez %v21052_v45  ;;  %v21058_v36 = vld [vmem:[#allocation41_spill] sm:$0xff]  ;;  %v21060_v45 = vld [vmem:[#allocation42_spill] sm:$0xff] }
 0x479   :  { %8008 = vmatprep.subr.msk.bf16.mxu1 %vm21047_vm0, %v20996_v13  ;;  %vm21055_vm0 = vnez %v21054_v40  ;;  %v21062_v40 = vld [vmem:[#allocation43_spill] sm:$0xff] }
 0x47a   :  { %4728 = vrot.lane.b32.xlu1 %v15042_v19, %s8313_s13  ;;  %4397 = vrot.lane.b32.xlu0 %v15055_v25, %s8311_s30  ;;  %v21080_v19 = vld [vmem:[#allocation56_spill] sm:$0xff] }
 0x47b   :  { %7626 = vmatpush1.bf16.msk.msra.mxu0 %vm21049_vm10, %v20996_v13  ;;  %vm21057_vm10 = vnez %v21056_v17  ;;  %v21064_v17 = vld [vmem:[#allocation44_spill] sm:$0xff] }
 0x47c   :  { %8010 = vmatpush1.bf16.msk.msra.mxu1 %vm21051_vm14, %v20996_v13  ;;  %7628 = vmatprep.subr.msk.bf16.mxu0 %vm21053_vm6, %v20996_v13  ;;  %vm21059_vm14 = vnez %v21058_v36  ;;  %vm21061_vm6 = vnez %v21060_v45  ;;  %v21066_v36 = vld [vmem:[#allocation47_spill] sm:$0xff]  ;;  %v21068_v45 = vld [vmem:[#allocation48_spill] sm:$0xff] }
 0x47d   :  { %8012 = vmatprep.subr.msk.bf16.mxu1 %vm21055_vm0, %v20996_v13  ;;  %vm21063_vm0 = vnez %v21062_v40  ;;  %v21070_v40 = vld [vmem:[#allocation50_spill] sm:$0xff] }
 0x47e   :  { %4732 = vrot.lane.b32.xlu1 %v15047_v4, %s8313_s13  ;;  %4730 = vrot.lane.b32.xlu0 %v15053_v38, %s8313_s13  ;;  %v21096_v4 = vld [vmem:[#allocation76_spill] sm:$0xff] }
 0x47f   :  { %7630 = vmatpush1.bf16.msk.msra.mxu0 %vm21057_vm10, %v20996_v13  ;;  %vm21065_vm10 = vnez %v21064_v17  ;;  %v21072_v17 = vld [vmem:[#allocation51_spill] sm:$0xff] }
 0x480   :  { %8014 = vmatpush1.bf16.msk.msra.mxu1 %vm21059_vm14, %v20996_v13  ;;  %7632 = vmatprep.subr.msk.bf16.mxu0 %vm21061_vm6, %v20996_v13  ;;  %vm21067_vm14 = vnez %v21066_v36  ;;  %vm21069_vm6 = vnez %v21068_v45  ;;  %v21074_v36 = vld [vmem:[#allocation53_spill] sm:$0xff]  ;;  %v21076_v45 = vld [vmem:[#allocation54_spill] sm:$0xff] }
 0x481   :  { %8016 = vmatprep.subr.msk.bf16.mxu1 %vm21063_vm0, %v20996_v13  ;;  %vm21071_vm0 = vnez %v21070_v40  ;;  %v21078_v40 = vld [vmem:[#allocation55_spill] sm:$0xff] }
 0x482   :  { %4393 = vrot.lane.b32.xlu1 %v15053_v38, %s8311_s30 }
 0x483   :  { %7634 = vmatpush1.bf16.msk.msra.mxu0 %vm21065_vm10, %v20996_v13  ;;  %vm21073_vm10 = vnez %v21072_v17  ;;  %v21118_v17 = vand.u32 4294901760, %v20872_v43 }
 0x484   :  { %8018 = vmatpush1.bf16.msk.msra.mxu1 %vm21067_vm14, %v20996_v13  ;;  %7636 = vmatprep.subr.msk.bf16.mxu0 %vm21069_vm6, %v20996_v13  ;;  %vm21075_vm14 = vnez %v21074_v36  ;;  %vm21077_vm6 = vnez %v21076_v45  ;;  %v21082_v36 = vld [vmem:[#allocation59_spill] sm:$0xff]  ;;  %v21084_v45 = vld [vmem:[#allocation60_spill] sm:$0xff] }
 0x485   :  { %8020 = vmatprep.subr.msk.bf16.mxu1 %vm21071_vm0, %v20996_v13  ;;  %vm21079_vm0 = vnez %v21078_v40  ;;  %v21086_v40 = vld [vmem:[#allocation63_spill] sm:$0xff] }
 0x486   :  { %4706 = vrot.lane.b32.xlu1 %v15053_v38, %s8310_s29  ;;  %v21102_v38 = vld [vmem:[#allocation109_spill] sm:$0xff] }
 0x487   :  { %7638 = vmatpush1.bf16.msk.msra.mxu0 %vm21073_vm10, %v20996_v13  ;;  %vm21081_vm10 = vnez %v21080_v19  ;;  %v21098_v19 = vld [vmem:[#allocation77_spill] sm:$0xff] }
 0x488   :  { %8022 = vmatpush1.bf16.msk.msra.mxu1 %vm21075_vm14, %v20996_v13  ;;  %7640 = vmatprep.subr.msk.bf16.mxu0 %vm21077_vm6, %v20996_v13  ;;  %vm21083_vm14 = vnez %v21082_v36  ;;  %vm21085_vm6 = vnez %v21084_v45  ;;  %v21090_v36 = vld [vmem:[#allocation68_spill] sm:$0xff]  ;;  %v21092_v45 = vld [vmem:[#allocation69_spill] sm:$0xff] }
 0x489   :  { %8024 = vmatprep.subr.msk.bf16.mxu1 %vm21079_vm0, %v20996_v13  ;;  %vm21087_vm0 = vnez %v21086_v40  ;;  %v21094_v40 = vld [vmem:[#allocation70_spill] sm:$0xff] }
 0x48a   :  { %4734 = vrot.lane.b32.xlu1 %v15055_v25, %s8313_s13 }
 0x48b   :  { %7642 = vmatpush1.bf16.msk.msra.mxu0 %vm21081_vm10, %v20996_v13 }
 0x48c   :  { %8026 = vmatpush1.bf16.msk.msra.mxu1 %vm21083_vm14, %v20996_v13  ;;  %7644 = vmatprep.subr.msk.bf16.mxu0 %vm21085_vm6, %v20996_v13  ;;  %vm21091_vm14 = vnez %v21090_v36  ;;  %vm21093_vm6 = vnez %v21092_v45  ;;  %v21100_v36 = vld [vmem:[#allocation79_spill] sm:$0xff] }
 0x48d   :  { %8028 = vmatprep.subr.msk.bf16.mxu1 %vm21087_vm0, %v20996_v13  ;;  %vm21095_vm0 = vnez %v21094_v40  ;;  %v21114_v40 = vand.u32 4294901760, %v20869_v0  ;;  %v21121_v0 = vand.u32 4294901760, %v20874_v22  ;;  %v21128_v22 = vand.u32 4294901760, %v20880_v54  ;;  %v21139_v54 = vld [vmem:[#allocation245_spill] sm:$0xff] }
 0x48e   :  { %v21140_v25 = vand.u32 4294901760, %v21139_v54 }
 0x48f   :  { %7646 = vmatpush1.bf16.msk.msra.mxu0 %vm14024_vm11, %v20996_v13  ;;  %vm21097_vm11 = vnez %v21096_v4  ;;  %v21105_v4 = vld [vmem:[#allocation88_spill] sm:$0xff] }
 0x490   :  { %8030 = vmatpush1.bf16.msk.msra.mxu1 %vm14048_vm9, %v20996_v13  ;;  %7648 = vmatprep.subr.msk.bf16.mxu0 %vm21091_vm14, %v20996_v13  ;;  %vm21099_vm9 = vnez %v21098_v19  ;;  %vm21101_vm14 = vnez %v21100_v36  ;;  %v21107_v19 = vld [vmem:[#allocation89_spill] sm:$0xff]  ;;  %v21109_v36 = vld [vmem:[#allocation94_spill] sm:$0xff] }
 0x491   :  { %8032 = vmatprep.subr.msk.bf16.mxu1 %vm21093_vm6, %v20996_v13  ;;  %vm21103_vm6 = vnez %v21102_v38  ;;  %v21112_v38 = vld [vmem:[#allocation99_spill] sm:$0xff] }
 0x493   :  { %7650 = vmatpush1.bf16.msk.msra.mxu0 %vm21095_vm0, %v20996_v13 }
 0x494   :  { %8034 = vmatpush1.bf16.msk.msra.mxu1 %vm21097_vm11, %v20996_v13  ;;  %7652 = vmatprep.subr.msk.bf16.mxu0 %vm21099_vm9, %v20996_v13  ;;  %vm21106_vm11 = vnez %v21105_v4  ;;  %vm21108_vm9 = vnez %v21107_v19  ;;  %v21115_v4 = vand.u32 4294901760, %v20870_v46  ;;  %v21123_v46 = vand.u32 4294901760, %v20875_v9 }
 0x495   :  { %8036 = vmatprep.subr.msk.bf16.mxu1 %vm21101_vm14, %v20996_v13  ;;  %vm21110_vm14 = vnez %v21109_v36  ;;  %v21117_v36 = vand.u32 4294901760, %v20871_v33  ;;  %v21124_v33 = vand.u32 4294901760, %v20876_v41  ;;  %v21132_v41 = vld [vmem:[#allocation61_spill] sm:$0xff] }
 0x496   :  { %v7663_v45 = vpack.c.bf16 %v21115_v4, %v21114_v40  ;;  %v21126_v4 = vand.u32 4294901760, %v20878_v1 }
 0x497   :  { %7654 = vmatpush1.bf16.msk.msra.mxu0 %vm21103_vm6, %v20996_v13  ;;  %vm21113_vm6 = vnez %v21112_v38  ;;  %v8047_v51 = vpack.c.bf16 %v21118_v17, %v21117_v36  ;;  %v21120_v38 = vand.u32 4294901760, %v20873_v55  ;;  %v8049_v43 = vpack.c.bf16 %v21124_v33, %v21123_v46  ;;  %v21127_v55 = vld [vmem:[#allocation247_spill] sm:$0xff]  ;;  %v21134_v33 = vld [vmem:[#allocation240_spill] sm:$0xff] }
 0x498   :  { %8038 = vmatpush1.bf16.msk.msra.mxu1 %vm14204_vm5, %v20996_v13  ;;  %7656 = vmatprep.subr.msk.bf16.mxu0 %vm21106_vm11, %v20996_v13  ;;  %v21125_v36 = vand.u32 4294901760, %v20877_v6  ;;  %v21133_v46 = vand.u32 4294901760, %v21132_v41  ;;  %v21135_v6 = vld [vmem:[#allocation62_spill] sm:$0xff] }
 0x499   :  { %8040 = vmatprep.subr.msk.bf16.mxu1 %vm21108_vm9, %v20996_v13  ;;  %v7665_v44 = vpack.c.bf16 %v21121_v0, %v21120_v38  ;;  %v21129_v38 = vand.u32 4294901760, %v20881_v34  ;;  %v21136_v1 = vand.u32 4294901760, %v21135_v6  ;;  %v21141_v34 = vld [vmem:[#allocation80_spill] sm:$0xff]  ;;  %v21149_v6 = vld [vmem:[#allocation73_spill] sm:$0xff] }
 0x49a   :  { %v7667_v17 = vpack.c.bf16 %v21126_v4, %v21125_v36  ;;  %v21137_v36 = vld [vmem:[#allocation242_spill] sm:$0xff] }
 0x49b   :  { %7658 = vmatpush1.bf16.msk.msra.mxu0 %vm21110_vm14, %v20996_v13  ;;  %v8051_v0 = vpack.c.bf16 %v21129_v38, %v21128_v22  ;;  %v21138_v4 = vand.u32 4294901760, %v21137_v36  ;;  %v21142_v22 = vand.u32 4294901760, %v21141_v34  ;;  %v21150_v36 = vand.u32 4294901760, %v21149_v6 }
 0x49c   :  { %8042 = vmatpush1.bf16.msk.msra.mxu1 %vm14281_vm4, %v20996_v13  ;;  %7660 = vmatprep.subr.msk.bf16.mxu0 %vm21113_vm6, %v20996_v13 }
 0x49d   :  { %8044 = vmatprep.subr.msk.bf16.mxu1 %vm14318_vm15, %v20996_v13  ;;  %v8053_v40 = vpack.c.bf16 %v21138_v4, %v21136_v1  ;;  %v7671_v38 = vpack.c.bf16 %v21142_v22, %v21140_v25  ;;  %v21151_v4 = vld [vmem:[#allocation74_spill] sm:$0xff]  ;;  %v21153_v25 = vld [vmem:[#allocation75_spill] sm:$0xff] }
 0x49e   :  { %v21152_v54 = vand.u32 4294901760, %v21151_v4  ;;  %v21154_v34 = vand.u32 4294901760, %v21153_v25  ;;  %v21167_v4 = vld [vmem:[#allocation141_spill] sm:$0xff]  ;;  %v21169_v25 = vld [vmem:[#allocation142_spill] sm:$0xff] }
 0x49f   :  { %7662 = vmatpush1.bf16.msk.msra.mxu0 %vm14359_vm13, %v20996_v13 }
 0x4a0   :  { %8046 = vmatpush1.bf16.msk.msra.mxu1 %vm14379_vm2, %v20996_v13  ;;  %7664 = vmatprep.subr.bf16.mxu0 %v7663_v45  ;;  %v21130_v45 = vld [vmem:[#allocation239_spill] sm:$0xff]  ;;  %v8057_v22 = vpack.c.bf16 %v21154_v34, %v21152_v54  ;;  %v21168_v54 = vand.u32 4294901760, %v21167_v4  ;;  %v21170_v34 = vand.u32 4294901760, %v21169_v25  ;;  %v21183_v4 = vld [vmem:[#allocation166_spill] sm:$0xff] }
 0x4a1   :  { %8048 = vmatprep.subr.bf16.mxu1 %v8047_v51  ;;  %v21131_v9 = vand.u32 4294901760, %v21130_v45  ;;  %v21145_v45 = vld [vmem:[#allocation81_spill] sm:$0xff]  ;;  %v21185_v25 = vld [vmem:[#allocation183_spill] sm:$0xff] }
 0x4a2   :  { %3210 = vmatmul.mubr.f32.vlgmr.msra.gmra.mrb[2].mxu0 %v21127_v55 }
 0x4a3   :  { %4110 = vmatmul.mubr.f32.vlgmr.msra.gmra.mrb[2].mxu1 %v21127_v55  ;;  %7666 = vmatpush1.bf16.msra.mxu0 %v7665_v44  ;;  %v7669_v51 = vpack.c.bf16 %v21133_v46, %v21131_v9  ;;  %v21143_v44 = vld [vmem:[#allocation85_spill] sm:$0xff]  ;;  %v21146_v9 = vand.u32 4294901760, %v21145_v45 }
 0x4a4   :  { %3409 = vmatprep.mubr.f32.mxu0 %v21134_v33  ;;  %8050 = vmatpush1.bf16.msra.mxu1 %v8049_v43  ;;  %v21144_v55 = vand.u32 4294901760, %v21143_v44  ;;  %v21147_v43 = vld [vmem:[#allocation86_spill] sm:$0xff]  ;;  %v21157_v44 = vld [vmem:[#allocation87_spill] sm:$0xff] }
 0x4a5   :  { %4309 = vmatprep.mubr.f32.mxu1 %v21134_v33  ;;  %7668 = vmatprep.subr.bf16.mxu0 %v7667_v17  ;;  %v21148_v46 = vand.u32 4294901760, %v21147_v43  ;;  %v21155_v17 = vld [vmem:[#allocation78_spill] sm:$0xff]  ;;  %v21158_v33 = vand.u32 4294901760, %v21157_v44 }
 0x4a6   :  { %v8055_v41 = vpack.c.bf16 %v21146_v9, %v21144_v55  ;;  %8052 = vmatprep.subr.bf16.mxu1 %v8051_v0  ;;  %v21156_v19 = vand.u32 4294901760, %v21155_v17  ;;  %v21159_v0 = vld [vmem:[#allocation95_spill] sm:$0xff]  ;;  %v21161_v55 = vld [vmem:[#allocation124_spill] sm:$0xff]  ;;  %v8061_v17 = vpack.c.bf16 %v21170_v34, %v21168_v54  ;;  %v21184_v54 = vand.u32 4294901760, %v21183_v4 }
 0x4a7   :  { %7670 = vmatpush1.bf16.msra.mxu0 %v7669_v51  ;;  %v7673_v1 = vpack.c.bf16 %v21150_v36, %v21148_v46  ;;  %v21160_v51 = vand.u32 4294901760, %v21159_v0  ;;  %v21162_v9 = vand.u32 4294901760, %v21161_v55  ;;  %v21163_v46 = vld [vmem:[#allocation128_spill] sm:$0xff]  ;;  %v21177_v55 = vld [vmem:[#allocation150_spill] sm:$0xff]  ;;  %v21186_v34 = vand.u32 4294901760, %v21185_v25  ;;  %v21199_v4 = vld [vmem:[#allocation15_spill] sm:$0xff] }
 0x4a8   :  { %8054 = vmatpush1.bf16.msra.mxu1 %v8053_v40  ;;  %7672 = vmatprep.subr.bf16.mxu0 %v7671_v38  ;;  %v7675_v45 = vpack.c.bf16 %v21158_v33, %v21156_v19  ;;  %v21164_v40 = vand.u32 4294901760, %v21163_v46  ;;  %v21165_v38 = vld [vmem:[#allocation139_spill] sm:$0xff]  ;;  %v21171_v19 = vld [vmem:[#allocation153_spill] sm:$0xff]  ;;  %v21201_v25 = vld [vmem:[#allocation220_spill] sm:$0xff] }
 0x4a9   :  { %8056 = vmatprep.subr.bf16.mxu1 %v8055_v41  ;;  %v8059_v43 = vpack.c.bf16 %v21162_v9, %v21160_v51  ;;  %v21166_v6 = vand.u32 4294901760, %v21165_v38  ;;  %v21172_v33 = vand.u32 4294901760, %v21171_v19  ;;  %v21173_v41 = vld [vmem:[#allocation147_spill] sm:$0xff]  ;;  %v21175_v51 = vld [vmem:[#allocation148_spill] sm:$0xff]  ;;  %v21178_v9 = vand.u32 4294901760, %v21177_v55 }
 0x4aa   :  { %v21174_v44 = vand.u32 4294901760, %v21173_v41  ;;  %v8065_v19 = vpack.c.bf16 %v21186_v34, %v21184_v54  ;;  %v21189_v41 = vld [vmem:[#allocation199_spill] sm:$0xff]  ;;  %v21200_v54 = vand.u32 4294901760, %v21199_v4  ;;  %v21202_v34 = vand.u32 4294901760, %v21201_v25  ;;  %v21215_v4 = vld [vmem:[#allocation230_spill] sm:$0xff]  ;;  %v21217_v25 = vld [vmem:[#allocation229_spill] sm:$0xff] }
 0x4ab   :  { %7674 = vmatpush1.bf16.msra.mxu0 %v7673_v1  ;;  %v7677_v36 = vpack.c.bf16 %v21166_v6, %v21164_v40  ;;  %v21176_v1 = vand.u32 4294901760, %v21175_v51  ;;  %v21179_v40 = vld [vmem:[#allocation151_spill] sm:$0xff] }
 0x4ac   :  { %8058 = vmatpush1.bf16.msra.mxu1 %v8057_v22  ;;  %7676 = vmatprep.subr.bf16.mxu0 %v7675_v45  ;;  %v7679_v0 = vpack.c.bf16 %v21174_v44, %v21172_v33  ;;  %v21180_v22 = vand.u32 4294901760, %v21179_v40  ;;  %v21181_v45 = vld [vmem:[#allocation160_spill] sm:$0xff]  ;;  %v21187_v33 = vld [vmem:[#allocation190_spill] sm:$0xff]  ;;  %v21190_v44 = vand.u32 4294901760, %v21189_v41  ;;  %v21193_v55 = vld [vmem:[#allocation215_spill] sm:$0xff] }
 0x4ad   :  { %8060 = vmatprep.subr.bf16.mxu1 %v8059_v43  ;;  %v8063_v46 = vpack.c.bf16 %v21178_v9, %v21176_v1  ;;  %v21182_v38 = vand.u32 4294901760, %v21181_v45  ;;  %v21188_v43 = vand.u32 4294901760, %v21187_v33  ;;  %v21191_v1 = vld [vmem:[#allocation212_spill] sm:$0xff]  ;;  %v21194_v9 = vand.u32 4294901760, %v21193_v55  ;;  %v21205_v41 = vld [vmem:[#allocation223_spill] sm:$0xff]  ;;  %v21209_v55 = vld [vmem:[#allocation225_spill] sm:$0xff] }
 0x4ae   :  { %v8069_v33 = vpack.c.bf16 %v21202_v34, %v21200_v54  ;;  %v21216_v54 = vand.u32 4294901760, %v21215_v4  ;;  %v21218_v34 = vand.u32 4294901760, %v21217_v25  ;;  %v21235_v25 = vand.u32 4294901760, %v20940_v63 }
 0x4af   :  { %7678 = vmatpush1.bf16.msra.mxu0 %v7677_v36  ;;  %v7681_v6 = vpack.c.bf16 %v21182_v38, %v21180_v22  ;;  %v7683_v51 = vpack.c.bf16 %v21190_v44, %v21188_v43  ;;  %v21192_v36 = vand.u32 4294901760, %v21191_v1  ;;  %v21195_v22 = vld [vmem:[#allocation214_spill] sm:$0xff]  ;;  %v21203_v43 = vld [vmem:[#allocation219_spill] sm:$0xff]  ;;  %v21206_v44 = vand.u32 4294901760, %v21205_v41 }
 0x4b0   :  { %8062 = vmatpush1.bf16.msra.mxu1 %v8061_v17  ;;  %7680 = vmatprep.subr.bf16.mxu0 %v7679_v0  ;;  %v21196_v17 = vand.u32 4294901760, %v21195_v22  ;;  %v21197_v0 = vld [vmem:[#allocation217_spill] sm:$0xff]  ;;  %v21221_v41 = vld [vmem:[#allocation98_spill] sm:$0xff]  ;;  %v21242_v63 = vand.u32 4294901760, %v20735_v20 }
 0x4b1   :  { %8064 = vmatprep.subr.bf16.mxu1 %v8063_v46  ;;  %v8067_v40 = vpack.c.bf16 %v21194_v9, %v21192_v36  ;;  %v21198_v45 = vand.u32 4294901760, %v21197_v0  ;;  %v21204_v46 = vand.u32 4294901760, %v21203_v43  ;;  %v21207_v36 = vld [vmem:[#allocation226_spill] sm:$0xff]  ;;  %v21210_v9 = vand.u32 4294901760, %v21209_v55 }
 0x4b2   :  { %v8073_v43 = vpack.c.bf16 %v21218_v34, %v21216_v54  ;;  %v21238_v34 = vand.u32 4294901760, %v20819_v52  ;;  %v21245_v52 = vld [vmem:[#allocation131_spill] sm:$0xff] }
 0x4b3   :  { %7682 = vmatpush1.bf16.msra.mxu0 %v7681_v6  ;;  %v7685_v38 = vpack.c.bf16 %v21198_v45, %v21196_v17  ;;  %v7687_v1 = vpack.c.bf16 %v21206_v44, %v21204_v46  ;;  %v21208_v6 = vand.u32 4294901760, %v21207_v36  ;;  %v21211_v17 = vld [vmem:[#allocation228_spill] sm:$0xff]  ;;  %v21219_v46 = vld [vmem:[#allocation97_spill] sm:$0xff]  ;;  %v21222_v44 = vand.u32 4294901760, %v21221_v41 }
 0x4b4   :  { %8066 = vmatpush1.bf16.msra.mxu1 %v8065_v19  ;;  %7684 = vmatprep.subr.bf16.mxu0 %v7683_v51  ;;  %v21212_v19 = vand.u32 4294901760, %v21211_v17  ;;  %v21213_v51 = vld [vmem:[#allocation227_spill] sm:$0xff]  ;;  %v21246_v41 = vand.u32 4294901760, %v21245_v52 }
 0x4b5   :  { %8068 = vmatprep.subr.bf16.mxu1 %v8067_v40  ;;  %v8071_v22 = vpack.c.bf16 %v21210_v9, %v21208_v6  ;;  %v21214_v0 = vand.u32 4294901760, %v21213_v51  ;;  %v21220_v40 = vand.u32 4294901760, %v21219_v46  ;;  %v21224_v6 = vld [vmem:[#allocation93_spill] sm:$0xff]  ;;  %v21229_v51 = vand.u32 4294901760, %v20934_v37 }
 0x4b6   :  { %v21225_v55 = vand.u32 4294901760, %v21224_v6  ;;  %v21236_v37 = vand.u32 4294901760, %v20817_v18 }
 0x4b7   :  { %7686 = vmatpush1.bf16.msra.mxu0 %v7685_v38  ;;  %v7689_v45 = vpack.c.bf16 %v21214_v0, %v21212_v19  ;;  %v7691_v36 = vpack.c.bf16 %v21222_v44, %v21220_v40  ;;  %v21223_v38 = vand.u32 4294901760, %v20929_v28  ;;  %v21228_v19 = vand.u32 4294901760, %v20933_v14  ;;  %v21247_v44 = vld [vmem:[#allocation134_spill] sm:$0xff] }
 0x4b8   :  { %8070 = vmatpush1.bf16.msra.mxu1 %v8069_v33  ;;  %7688 = vmatprep.subr.bf16.mxu0 %v7687_v1  ;;  %v21226_v33 = vand.u32 4294901760, %v20931_v27  ;;  %v21227_v1 = vand.u32 4294901760, %v20932_v61  ;;  %v21231_v28 = vand.u32 4294901760, %v20936_v62  ;;  %v21233_v27 = vand.u32 4294901760, %v20938_v50 }
 0x4b9   :  { %8072 = vmatprep.subr.bf16.mxu1 %v8071_v22  ;;  %v8075_v9 = vpack.c.bf16 %v21225_v55, %v21223_v38  ;;  %v8077_v0 = vpack.c.bf16 %v21229_v51, %v21228_v19  ;;  %v21230_v22 = vand.u32 4294901760, %v20935_v57  ;;  %v21234_v61 = vand.u32 4294901760, %v20939_v48  ;;  %v21249_v38 = vld [vmem:[#allocation154_spill] sm:$0xff] }
 0x4ba   :  { %v7693_v17 = vpack.c.bf16 %v21227_v1, %v21226_v33  ;;  %v21237_v57 = vand.u32 4294901760, %v20818_v49  ;;  %v21240_v50 = vand.u32 4294901760, %v20721_v24  ;;  %v21241_v48 = vand.u32 4294901760, %v20729_v32  ;;  %v21251_v32 = vld [vmem:[#allocation157_spill] sm:$0xff]  ;;  %v21259_v51 = vld [vmem:[#allocation178_spill] sm:$0xff] }
 0x4bb   :  { %7690 = vmatpush1.bf16.msra.mxu0 %v7689_v45  ;;  %v7695_v4 = vpack.c.bf16 %v21231_v28, %v21230_v22  ;;  %v21232_v45 = vand.u32 4294901760, %v20937_v3  ;;  %v7697_v14 = vpack.c.bf16 %v21235_v25, %v21234_v61  ;;  %v21239_v3 = vand.u32 4294901760, %v20820_v12  ;;  %v21261_v22 = vld [vmem:[#allocation179_spill] sm:$0xff] }
 0x4bc   :  { %8074 = vmatpush1.bf16.msra.mxu1 %v8073_v43  ;;  %7692 = vmatprep.subr.bf16.mxu0 %v7691_v36  ;;  %v8081_v62 = vpack.c.bf16 %v21237_v57, %v21236_v37  ;;  %v8083_v46 = vpack.c.bf16 %v21241_v48, %v21240_v50  ;;  %v21243_v40 = vand.u32 4294901760, %v20736_v29  ;;  %v21244_v49 = vand.u32 4294901760, %v20945_v59  ;;  %v21255_v29 = vld [vmem:[#allocation171_spill] sm:$0xff]  ;;  %v21269_v57 = vld [vmem:[#allocation181_spill] sm:$0xff] }
 0x4bd   :  { %8076 = vmatprep.subr.bf16.mxu1 %v8075_v9  ;;  %v8079_v54 = vpack.c.bf16 %v21233_v27, %v21232_v45  ;;  %v7699_v43 = vpack.c.bf16 %v21239_v3, %v21238_v34  ;;  %v21248_v36 = vand.u32 4294901760, %v21247_v44  ;;  %v21250_v24 = vand.u32 4294901760, %v21249_v38  ;;  %v21253_v9 = vld [vmem:[#allocation176_spill] sm:$0xff]  ;;  %v21271_v3 = vld [vmem:[#allocation182_spill] sm:$0xff]  ;;  %v21273_v50 = vld [vmem:[#allocation187_spill] sm:$0xff] }
 0x4be   :  { %v7701_v18 = vpack.c.bf16 %v21243_v40, %v21242_v63  ;;  %v8085_v12 = vpack.c.bf16 %v21246_v41, %v21244_v49  ;;  %v21252_v55 = vand.u32 4294901760, %v21251_v32  ;;  %v21254_v20 = vand.u32 4294901760, %v21253_v9  ;;  %v21263_v45 = vld [vmem:[#allocation184_spill] sm:$0xff]  ;;  %v21275_v63 = vld [vmem:[#allocation189_spill] sm:$0xff]  ;;  %v21281_v44 = vld [vmem:[#allocation186_spill] sm:$0xff] }
 0x4bf   :  { %7694 = vmatpush1.bf16.msra.mxu0 %v7693_v17  ;;  %v7703_v6 = vpack.c.bf16 %v21250_v24, %v21248_v36  ;;  %v21256_v1 = vand.u32 4294901760, %v21255_v29  ;;  %v21257_v17 = vld [vmem:[#allocation175_spill] sm:$0xff]  ;;  %v21262_v28 = vand.u32 4294901760, %v21261_v22  ;;  %v21264_v27 = vand.u32 4294901760, %v21263_v45  ;;  %v21279_v41 = vld [vmem:[#allocation185_spill] sm:$0xff]  ;;  %v21295_v22 = vld [vmem:[#allocation206_spill] sm:$0xff] }
 0x4c0   :  { %8078 = vmatpush1.bf16.msra.mxu1 %v8077_v0  ;;  %7696 = vmatprep.subr.bf16.mxu0 %v7695_v4  ;;  %v8087_v33 = vpack.c.bf16 %v21254_v20, %v21252_v55  ;;  %v21258_v19 = vand.u32 4294901760, %v21257_v17  ;;  %v21260_v0 = vand.u32 4294901760, %v21259_v51  ;;  %v21274_v48 = vand.u32 4294901760, %v21273_v50 }
 0x4c1   :  { %8080 = vmatprep.subr.bf16.mxu1 %v8079_v54  ;;  %v21265_v54 = vld [vmem:[#allocation177_spill] sm:$0xff]  ;;  %v21276_v40 = vand.u32 4294901760, %v21275_v63  ;;  %v21282_v36 = vand.u32 4294901760, %v21281_v44  ;;  %v21283_v24 = vand.u32 4294901760, %v20967_v23  ;;  %v21286_v9 = vand.u32 4294901760, %v20970_v15 }
 0x4c2   :  { %v7705_v59 = vpack.c.bf16 %v21258_v19, %v21256_v1  ;;  %v8089_v4 = vpack.c.bf16 %v21262_v28, %v21260_v0  ;;  %v21266_v61 = vand.u32 4294901760, %v21265_v54  ;;  %v21287_v20 = vand.u32 4294901760, %v20969_v21  ;;  %v21324_v44 = vld [vmem:[#allocation241_spill] sm:$0xff] }
 0x4c3   :  { %7698 = vmatpush1.bf16.msra.mxu0 %v7697_v14  ;;  %v21267_v14 = vld [vmem:[#allocation180_spill] sm:$0xff]  ;;  %v21288_v29 = vand.u32 4294901760, %v20973_v56  ;;  %v21289_v1 = vand.u32 4294901760, %v20972_v60  ;;  %v21290_v19 = vand.u32 4294901760, %v20976_v26  ;;  %v21291_v23 = vand.u32 4294901760, %v20975_v10  ;;  %v21298_v26 = vld [vmem:[#allocation201_spill] sm:$0xff] }
 0x4c4   :  { %8082 = vmatpush1.bf16.msra.mxu1 %v8081_v62  ;;  %7700 = vmatprep.subr.bf16.mxu0 %v7699_v43  ;;  %v7707_v25 = vpack.c.bf16 %v21266_v61, %v21264_v27  ;;  %v21268_v37 = vand.u32 4294901760, %v21267_v14  ;;  %v21270_v62 = vand.u32 4294901760, %v21269_v57  ;;  %v21272_v43 = vand.u32 4294901760, %v21271_v3  ;;  %v21301_v27 = vld [vmem:[#allocation204_spill] sm:$0xff]  ;;  %v21306_v14 = vld [vmem:[#allocation209_spill] sm:$0xff]  ;;  %v15449_v57 = vpop.permute.xlu1 %4615 }
 0x4c5   :  { %8084 = vmatprep.subr.bf16.mxu1 %v8083_v46  ;;  %v8097_v17 = vpack.c.bf16 %v21289_v1, %v21288_v29  ;;  %v21292_v51 = vand.u32 4294901760, %v20979_v53  ;;  %v21293_v15 = vand.u32 4294901760, %v20978_v11  ;;  %v21294_v21 = vand.u32 4294901760, %v20982_v2  ;;  %v21337_v1 = vld [vmem:[#allocation22_spill] sm:$0xff] }
 0x4c6   :  { %v8091_v34 = vpack.c.bf16 %v21270_v62, %v21268_v37  ;;  %v7709_v46 = vpack.c.bf16 %v21274_v48, %v21272_v43  ;;  %v21296_v28 = vand.u32 4294901760, %v21295_v22  ;;  %v21297_v60 = vand.u32 4294901760, %v20824_v5  ;;  %v15463_v48 = vpop.permute.xlu0 %4685  ;;  %v21403_v22 = vld [vmem:[#allocation54_spill] sm:$0xff] }
 0x4c7   :  { %7702 = vmatpush1.bf16.msra.mxu0 %v7701_v18  ;;  %v21277_v18 = vld [vmem:[#allocation192_spill] sm:$0xff]  ;;  %v8099_v0 = vpack.c.bf16 %v21293_v15, %v21292_v51  ;;  %v21300_v45 = vand.u32 4294901760, %v20827_v58  ;;  %v21302_v53 = vand.u32 4294901760, %v21301_v27  ;;  %v21303_v11 = vand.u32 4294901760, %v20830_v35  ;;  %v21345_v15 = vld [vmem:[#allocation34_spill] sm:$0xff] }
 0x4c8   :  { %8086 = vmatpush1.bf16.msra.mxu1 %v8085_v12  ;;  %7704 = vmatprep.subr.bf16.mxu0 %v7703_v6  ;;  %v21278_v49 = vand.u32 4294901760, %v21277_v18  ;;  %v21280_v12 = vand.u32 4294901760, %v21279_v41  ;;  %v21284_v6 = vld [vmem:[#allocation191_spill] sm:$0xff]  ;;  %v7717_v56 = vpack.c.bf16 %v21296_v28, %v21294_v21  ;;  %v21304_v2 = vand.u32 4294901760, %v20831_v42  ;;  %v21349_v21 = vld [vmem:[#allocation40_spill] sm:$0xff] }
 0x4c9   :  { %8088 = vmatprep.subr.bf16.mxu1 %v8087_v33  ;;  %v21285_v32 = vand.u32 4294901760, %v21284_v6  ;;  %v7713_v33 = vpack.c.bf16 %v21287_v20, %v21286_v9  ;;  %v7719_v54 = vpack.c.bf16 %v21302_v53, %v21300_v45  ;;  %v21307_v37 = vand.u32 4294901760, %v21306_v14  ;;  %v21327_v6 = vld [vmem:[#allocation224_spill] sm:$0xff]  ;;  %v21331_v9 = vld [vmem:[#allocation173_spill] sm:$0xff]  ;;  %v21333_v20 = vld [vmem:[#allocation174_spill] sm:$0xff] }
 0x4ca   :  { %v8093_v52 = vpack.c.bf16 %v21278_v49, %v21276_v40  ;;  %v7711_v38 = vpack.c.bf16 %v21282_v36, %v21280_v12  ;;  %v8103_v61 = vpack.c.bf16 %v21304_v2, %v21303_v11  ;;  %v21308_v58 = vand.u32 4294901760, %v20988_v7  ;;  %v21316_v7 = vld [vmem:[#allocation169_spill] sm:$0xff]  ;;  %v21357_v45 = vld [vmem:[#allocation20_spill] sm:$0xff]  ;;  %v21363_v11 = vld [vmem:[#allocation27_spill] sm:$0xff] }
 0x4cb   :  { %7706 = vmatpush1.bf16.msra.mxu0 %v7705_v59  ;;  %v8095_v55 = vpack.c.bf16 %v21285_v32, %v21283_v24  ;;  %v7715_v59 = vpack.c.bf16 %v21291_v23, %v21290_v19  ;;  %v21309_v62 = vand.u32 4294901760, %v20835_v30  ;;  %v21310_v35 = vand.u32 4294901760, %v20990_v8  ;;  %v21318_v8 = vld [vmem:[#allocation168_spill] sm:$0xff]  ;;  %v21329_v32 = vld [vmem:[#allocation165_spill] sm:$0xff]  ;;  %v21367_v14 = vld [vmem:[#allocation30_spill] sm:$0xff] }
 0x4cc   :  { %8090 = vmatpush1.bf16.msra.mxu1 %v8089_v4  ;;  %7708 = vmatprep.subr.bf16.mxu0 %v7707_v25  ;;  %v21299_v4 = vand.u32 4294901760, %v21298_v26  ;;  %v21305_v25 = vand.u32 4294901760, %v20832_v47  ;;  %v21311_v42 = vand.u32 4294901760, %v20837_v39  ;;  %v21312_v47 = vand.u32 4294901760, %v20992_v16  ;;  %v21320_v39 = vld [vmem:[#allocation23_spill] sm:$0xff]  ;;  %v15473_v16 = vpop.permute.xlu1 %4761  ;;  %v21326_v24 = vld [vmem:[#allocation240_spill] sm:$0xff] }
 0x4cd   :  { %8092 = vmatprep.subr.bf16.mxu1 %v8091_v34  ;;  %v8105_v34 = vpack.c.bf16 %v21309_v62, %v21308_v58  ;;  %v21313_v43 = vand.u32 4294901760, %v20841_v31  ;;  %v21317_v40 = vand.u32 4294901760, %v21316_v7  ;;  %v21319_v18 = vand.u32 4294901760, %v21318_v8  ;;  %v15475_v31 = vpop.permute.xlu0 %4809  ;;  %v21341_v19 = vld [vmem:[#allocation28_spill] sm:$0xff]  ;;  %v21370_v62 = vld [vmem:[#allocation31_spill] sm:$0xff] }
 0x4ce   :  { %v8101_v10 = vpack.c.bf16 %v21299_v4, %v21297_v60  ;;  %v7721_v5 = vpack.c.bf16 %v21307_v37, %v21305_v25  ;;  %v7723_v3 = vpack.c.bf16 %v21311_v42, %v21310_v35  ;;  %v21321_v49 = vand.u32 4294901760, %v21320_v39  ;;  %v5869_v4 = vld [vmem:[%s17272_s1 + $0x1] ss:$4 sm:$0xff] }
 0x4cf   :  { %7710 = vmatpush1.bf16.msra.mxu0 %v7709_v46  ;;  %v8107_v50 = vpack.c.bf16 %v21313_v43, %v21312_v47  ;;  %v21314_v46 = vld [vmem:[#allocation167_spill] sm:$0xff]  ;;  %vm21328_vm2 = vnez %v21327_v6  ;;  %v21359_v53 = vld [vmem:[#allocation24_spill] sm:$0xff]  ;;  %v21369_v37 = vmov 0   ;;  %v21385_v39 = vld [vmem:[#allocation41_spill] sm:$0xff] }
 0x4d0   :  { %8094 = vmatpush1.bf16.msra.mxu1 %v8093_v52  ;;  %7712 = vmatprep.subr.bf16.mxu0 %v7711_v38  ;;  %v21315_v63 = vand.u32 4294901760, %v21314_v46  ;;  %v8109_v52 = vpack.c.bf16 %v21321_v49, %v21319_v18  ;;  %v15488_v38 = vpop.permute.xlu1 %4781  ;;  %v21374_v35 = vld [vmem:[#allocation7_spill] sm:$0xff]  ;;  %v21375_v47 = vld [vmem:[#allocation8_spill] sm:$0xff] }
 0x4d1   :  { %8096 = vmatprep.subr.bf16.mxu1 %v8095_v55  ;;  %v15498_v55 = vpop.permute.xlu0 %4935  ;;  %v21383_v18 = vld [vmem:[#allocation39_spill] sm:$0xff] }
 0x4d2   :  { %v7725_v30 = vpack.c.bf16 %v21317_v40, %v21315_v63  ;;  %v21377_v63 = vld [vmem:[#allocation35_spill] sm:$0xff]  ;;  %v21379_v40 = vld [vmem:[#allocation36_spill] sm:$0xff] }
 0x4d3   :  { %7714 = vmatpush1.bf16.msra.mxu0 %v7713_v33  ;;  %v21335_v33 = vld [vmem:[#allocation21_spill] sm:$0xff] }
 0x4d4   :  { %8098 = vmatpush1.bf16.msra.mxu1 %v8097_v17  ;;  %7716 = vmatprep.subr.bf16.mxu0 %v7715_v59  ;;  %vm21336_vm13 = vnez %v21335_v33  ;;  %v21339_v17 = vld [vmem:[#allocation25_spill] sm:$0xff] }
 0x4d5   :  { %8100 = vmatprep.subr.bf16.mxu1 %v8099_v0  ;;  %v21343_v59 = vld [vmem:[#allocation33_spill] sm:$0xff] }
 0x4d6   :  { %v21347_v0 = vld [vmem:[#allocation37_spill] sm:$0xff] }
 0x4d7   :  { %7718 = vmatpush1.bf16.msra.mxu0 %v7717_v56  ;;  %v21352_v56 = vld [vmem:[#allocation17_spill] sm:$0xff] }
 0x4d8   :  { %8102 = vmatpush1.bf16.msra.mxu1 %v8101_v10  ;;  %7720 = vmatprep.subr.bf16.mxu0 %v7719_v54  ;;  %v21355_v10 = vld [vmem:[#allocation19_spill] sm:$0xff]  ;;  %v21361_v54 = vld [vmem:[#allocation26_spill] sm:$0xff] }
 0x4d9   :  { %8104 = vmatprep.subr.bf16.mxu1 %v8103_v61  ;;  %v21365_v61 = vld [vmem:[#allocation29_spill] sm:$0xff] }
 0x4db   :  { %7722 = vmatpush1.bf16.msra.mxu0 %v7721_v5 }
 0x4dc   :  { %8106 = vmatpush1.bf16.msra.mxu1 %v8105_v34  ;;  %7724 = vmatprep.subr.bf16.mxu0 %v7723_v3  ;;  %v15509_v29 = vpop.permute.xlu1 %4391  ;;  %v15520_v23 = vpop.permute.xlu0 %4704  ;;  %v21372_v34 = vld [vmem:[#allocation32_spill] sm:$0xff] }
 0x4dd   :  { %8108 = vmatprep.subr.bf16.mxu1 %v8107_v50  ;;  %v21376_v50 = vlaneseq }
 0x4df   :  { %7726 = vmatpush1.bf16.msra.mxu0 %v7725_v30  ;;  %v15596_v46 = vand.u32 127, %v21376_v50  ;;  %v21381_v30 = vld [vmem:[#allocation38_spill] sm:$0xff] }
 0x4e0   :  { %8110 = vmatpush1.bf16.msra.mxu1 %v8109_v52  ;;  %7728 = vmatprep.subr.msk.bf16.mxu0 %vm13057_vm7, %v20996_v13  ;;  %vm21332_vm7 = vnez %v21331_v9  ;;  %v15525_v51 = vpop.permute.xlu1 %4395  ;;  %v15547_v26 = vpop.permute.xlu0 %4708  ;;  %v21387_v52 = vld [vmem:[#allocation42_spill] sm:$0xff] }
 0x4e1   :  { %8112 = vmatprep.subr.msk.bf16.mxu1 %vm13077_vm8, %v20996_v13  ;;  %vm21330_vm8 = vnez %v21329_v32  ;;  %vm4409_vm15 = vcmp.lt.s32.totalorder %v15596_v46, 1  ;;  %v21389_v32 = vld [vmem:[#allocation43_spill] sm:$0xff] }
 0x4e2   :  { %3411 = vmatmul.mubr.f32.vlgmr.msra.gmra.mrb[2].mxu0 %v21324_v44 }
 0x4e3   :  { %4311 = vmatmul.mubr.f32.vlgmr.msra.gmra.mrb[2].mxu1 %v21324_v44  ;;  %7730 = vmatpush1.bf16.msk.msra.mxu0 %vm13104_vm3, %v20996_v13  ;;  %vm21334_vm3 = vnez %v21333_v20 }
 0x4e4   :  { %3482 = vmatprep.mubr.f32.mxu0 %v21326_v24  ;;  %8114 = vmatpush1.bf16.msk.msra.mxu1 %vm21328_vm2, %v20996_v13  ;;  %vm21338_vm2 = vnez %v21337_v1  ;;  %v15539_v28 = vpop.permute.xlu1 %4419  ;;  %v15567_v2 = vpop.permute.xlu0 %4421  ;;  %v21391_v1 = vld [vmem:[#allocation44_spill] sm:$0xff] }
 0x4e5   :  { %4382 = vmatprep.mubr.f32.mxu1 %v21326_v24  ;;  %7732 = vmatprep.subr.msk.bf16.mxu0 %vm21330_vm8, %v20996_v13  ;;  %vm21340_vm8 = vnez %v21339_v17  ;;  %v21393_v17 = vld [vmem:[#allocation47_spill] sm:$0xff] }
 0x4e6   :  { %8116 = vmatprep.subr.msk.bf16.mxu1 %vm21332_vm7, %v20996_v13  ;;  %vm21342_vm7 = vnez %v21341_v19  ;;  %v21395_v19 = vld [vmem:[#allocation48_spill] sm:$0xff] }
 0x4e7   :  { %7734 = vmatpush1.bf16.msk.msra.mxu0 %vm21334_vm3, %v20996_v13  ;;  %vm21344_vm3 = vnez %v21343_v59  ;;  %v21397_v59 = vld [vmem:[#allocation50_spill] sm:$0xff] }
 0x4e8   :  { %8118 = vmatpush1.bf16.msk.msra.mxu1 %vm21336_vm13, %v20996_v13  ;;  %7736 = vmatprep.subr.msk.bf16.mxu0 %vm21338_vm2, %v20996_v13  ;;  %vm21346_vm13 = vnez %v21345_v15  ;;  %vm21348_vm2 = vnez %v21347_v0  ;;  %v4424_v27 = vpop.permute.xlu1 %4423  ;;  %v15609_v8 = vpop.permute.xlu0 %4425  ;;  %v21399_v15 = vld [vmem:[#allocation51_spill] sm:$0xff] }
 0x4e9   :  { %8120 = vmatprep.subr.msk.bf16.mxu1 %vm21340_vm8, %v20996_v13  ;;  %vm21350_vm8 = vnez %v21349_v21  ;;  %v21401_v21 = vld [vmem:[#allocation53_spill] sm:$0xff] }
 0x4eb   :  { %7738 = vmatpush1.bf16.msk.msra.mxu0 %vm21342_vm7, %v20996_v13  ;;  %vm21353_vm7 = vnez %v21352_v56  ;;  %v21405_v56 = vld [vmem:[#allocation55_spill] sm:$0xff] }
 0x4ec   :  { %8122 = vmatpush1.bf16.msk.msra.mxu1 %vm21344_vm3, %v20996_v13  ;;  %7740 = vmatprep.subr.msk.bf16.mxu0 %vm21346_vm13, %v20996_v13  ;;  %vm21356_vm3 = vnez %v21355_v10  ;;  %vm21360_vm13 = vnez %v21359_v53  ;;  %v15572_v25 = vpop.permute.xlu1 %4728  ;;  %v21410_v10 = vld [vmem:[#allocation60_spill] sm:$0xff]  ;;  %v21416_v53 = vld [vmem:[#allocation67_spill] sm:$0xff] }
 0x4ed   :  { %8124 = vmatprep.subr.msk.bf16.mxu1 %vm21348_vm2, %v20996_v13  ;;  %vm4418_vm2 = vcmp.eq.s32.totalorder %v5869_v4, 0 }
 0x4ee   :  { %v15578_v5 = vsel %vm4418_vm2, 1, %v21369_v37  ;;  %vm21378_vm2 = vnez %v21377_v63 }
 0x4ef   :  { %7742 = vmatpush1.bf16.msk.msra.mxu0 %vm21350_vm8, %v20996_v13  ;;  %vm4828_vm8 = vcmp.eq.s32.totalorder %v5869_v4, 31  ;;  %v4452_v42 = vrot.slane %v15578_v5, %v21374_v35  ;;  %v4456_v41 = vrot.slane %v15578_v5, %v21375_v47  ;;  %v21408_v4 = vld [vmem:[#allocation59_spill] sm:$0xff] }
 0x4f0   :  { %8126 = vmatpush1.bf16.msk.msra.mxu1 %vm21023_vm12, %v20996_v13  ;;  %7744 = vmatprep.subr.msk.bf16.mxu0 %vm21353_vm7, %v20996_v13  ;;  %vm21358_vm12 = vnez %v21357_v45  ;;  %vm21364_vm7 = vnez %v21363_v11  ;;  %v15581_v58 = vsel %vm4828_vm8, 1, %v21369_v37  ;;  %v15601_v7 = vpop.permute.xlu1 %4732  ;;  %vm21380_vm8 = vnez %v21379_v40  ;;  %v21412_v45 = vld [vmem:[#allocation63_spill] sm:$0xff]  ;;  %v21420_v11 = vld [vmem:[#allocation69_spill] sm:$0xff]  ;;  %v21452_v40 = vld [vmem:[#allocation12_spill] sm:$0xff] }
 0x4f1   :  { %8128 = vmatprep.subr.msk.bf16.mxu1 %vm21027_vm1, %v20996_v13  ;;  %vm21362_vm1 = vnez %v21361_v54  ;;  %v4837_v3 = vrot.slane %v15581_v58, %v21374_v35  ;;  %v4841_v43 = vrot.slane %v15581_v58, %v21375_v47  ;;  %v21418_v54 = vld [vmem:[#allocation68_spill] sm:$0xff] }
 0x4f3   :  { %7746 = vmatpush1.bf16.msk.msra.mxu0 %vm21356_vm3, %v20996_v13  ;;  %vm21366_vm3 = vnez %v21365_v61 }
 0x4f4   :  { %8130 = vmatpush1.bf16.msk.msra.mxu1 %vm21358_vm12, %v20996_v13  ;;  %7748 = vmatprep.subr.msk.bf16.mxu0 %vm21360_vm13, %v20996_v13  ;;  %vm21368_vm12 = vnez %v21367_v14  ;;  %vm21371_vm13 = vnez %v21370_v62  ;;  %v4394_v49 = vpop.permute.xlu1 %4393  ;;  %v21423_v14 = vld [vmem:[#allocation76_spill] sm:$0xff]  ;;  %v21425_v62 = vld [vmem:[#allocation77_spill] sm:$0xff] }
 0x4f5   :  { %8132 = vmatprep.subr.msk.bf16.mxu1 %vm21362_vm1, %v20996_v13  ;;  %vm21373_vm1 = vnez %v21372_v34  ;;  %v4415_v24 = vsel %vm4409_vm15, %v4394_v49, %v15525_v51  ;;  %v4416_v6 = vsel %vm4409_vm15, %v15509_v29, %v4394_v49  ;;  %v21427_v34 = vld [vmem:[#allocation79_spill] sm:$0xff]  ;;  %v21441_v49 = vld [vmem:[#allocation118_spill] sm:$0xff] }
 0x4f7   :  { %7750 = vmatpush1.bf16.msk.msra.mxu0 %vm21364_vm7, %v20996_v13  ;;  %vm21382_vm7 = vnez %v21381_v30  ;;  %v4857_v30 = vrot.slane %v15581_v58, %v21452_v40 }
 0x4f8   :  { %8134 = vmatpush1.bf16.msk.msra.mxu1 %vm21366_vm3, %v20996_v13  ;;  %7752 = vmatprep.subr.msk.bf16.mxu0 %vm21368_vm12, %v20996_v13  ;;  %vm21384_vm3 = vnez %v21383_v18  ;;  %vm4478_vm12 = vcmp.eq.s32.totalorder %v4452_v42, 1  ;;  %v21429_v42 = vld [vmem:[#allocation109_spill] sm:$0xff]  ;;  %v21437_v18 = vld [vmem:[#allocation102_spill] sm:$0xff] }
 0x4f9   :  { %8136 = vmatprep.subr.msk.bf16.mxu1 %vm21371_vm13, %v20996_v13  ;;  %vm4863_vm13 = vcmp.eq.s32.totalorder %v4837_v3, 1 }
 0x4fb   :  { %7754 = vmatpush1.bf16.msk.msra.mxu0 %vm21373_vm1, %v20996_v13  ;;  %vm4864_vm1 = vcmp.eq.s32.totalorder %v4841_v43, 1 }
 0x4fc   :  { %8138 = vmatpush1.bf16.msk.msra.mxu1 %vm21378_vm2, %v20996_v13  ;;  %7756 = vmatprep.subr.msk.bf16.mxu0 %vm21380_vm8, %v20996_v13  ;;  %vm4435_vm2 = vcmp.lt.s32.totalorder %v15596_v46, 127  ;;  %vm21386_vm8 = vnez %v21385_v39  ;;  %v21439_v39 = vld [vmem:[#allocation117_spill] sm:$0xff] }
 0x4fd   :  { %8140 = vmatprep.subr.msk.bf16.mxu1 %vm21382_vm7, %v20996_v13  ;;  %vm21388_vm7 = vnez %v21387_v52  ;;  %v4441_v12 = vsel %vm4435_vm2, %v15567_v2, %v4424_v27  ;;  %v4440_v36 = vsel %vm4435_vm2, %v4424_v27, %v15609_v8  ;;  %v21414_v27 = vld [vmem:[#allocation66_spill] sm:$0xff]  ;;  %v4442_v43 = vsel %vm4435_vm2, %v15539_v28, %v15567_v2  ;;  %v21454_v2 = vld [vmem:[#allocation11_spill] sm:$0xff] }
 0x4fe   :  { %v15639_v9 = vsel %vm4478_vm12, %v4441_v12, %v4416_v6  ;;  %v15641_v20 = vsel %vm4863_vm13, %v4416_v6, %v4441_v12  ;;  %v15643_v33 = vsel %vm4864_vm1, %v4415_v24, %v4440_v36  ;;  %vm4479_vm12 = vcmp.eq.s32.totalorder %v4456_v41, 1  ;;  %v4398_v6 = vpop.permute.xlu0 %4397 }
 0x4ff   :  { %7758 = vmatpush1.bf16.msk.msra.mxu0 %vm21384_vm3, %v20996_v13  ;;  %vm21390_vm3 = vnez %v21389_v32  ;;  %4521 = vrot.lane.b32.xlu1 %v15639_v9, %s8313_s13  ;;  %vm21396_vm13 = vnez %v21395_v19  ;;  %vm21398_vm1 = vnez %v21397_v59  ;;  %v15664_v0 = vsel %vm4479_vm12, %v4440_v36, %v4415_v24  ;;  %v15801_v32 = vpop.permute.xlu1 %4706 }
 0x500   :  { %8142 = vmatpush1.bf16.msk.msra.mxu1 %vm21386_vm8, %v20996_v13  ;;  %7760 = vmatprep.subr.msk.bf16.mxu0 %vm21388_vm7, %v20996_v13  ;;  %vm21392_vm8 = vnez %v21391_v1  ;;  %vm21394_vm7 = vnez %v21393_v17  ;;  %vm21409_vm12 = vnez %v21408_v4  ;;  %v8314_v24 = vmov 8  }
 0x501   :  { %8144 = vmatprep.subr.msk.bf16.mxu1 %vm21390_vm3, %v20996_v13  ;;  %4495 = vrot.lane.b32.xlu0 %v15639_v9, %s8310_s29  ;;  %vm21400_vm3 = vnez %v21399_v15  ;;  %v21448_v15 = vld [vmem:[#allocation9_spill] sm:$0xff] }
 0x502   :  { %v15803_v1 = vpop.permute.xlu0 %4730 }
 0x503   :  { %7762 = vmatpush1.bf16.msk.msra.mxu0 %vm21392_vm8, %v20996_v13  ;;  %vm21402_vm8 = vnez %v21401_v21  ;;  %v15805_v17 = vpop.permute.xlu1 %4734  ;;  %v4845_v21 = vrot.slane %v15581_v58, %v21448_v15 }
 0x504   :  { %8146 = vmatpush1.bf16.msk.msra.mxu1 %vm21394_vm7, %v20996_v13  ;;  %7764 = vmatprep.subr.msk.bf16.mxu0 %vm21396_vm13, %v20996_v13  ;;  %vm21404_vm7 = vnez %v21403_v22  ;;  %vm21406_vm13 = vnez %v21405_v56  ;;  %v4460_v22 = vrot.slane %v15578_v5, %v21448_v15 }
 0x505   :  { %8148 = vmatprep.subr.msk.bf16.mxu1 %vm21398_vm1, %v20996_v13  ;;  %4523 = vrot.lane.b32.xlu0 %v15664_v0, %s8313_s13  ;;  %vm21411_vm1 = vnez %v21410_v10  ;;  %v4414_v10 = vsel %vm4409_vm15, %v15525_v51, %v4398_v6 }
 0x507   :  { %7766 = vmatpush1.bf16.msk.msra.mxu0 %vm21400_vm3, %v20996_v13  ;;  %vm21413_vm3 = vnez %v21412_v45 }
 0x508   :  { %8150 = vmatpush1.bf16.msk.msra.mxu1 %vm21402_vm8, %v20996_v13  ;;  %7768 = vmatprep.subr.msk.bf16.mxu0 %vm21404_vm7, %v20996_v13  ;;  %vm21415_vm8 = vnez %v21414_v27  ;;  %vm21419_vm7 = vnez %v21418_v54 }
 0x509   :  { %8152 = vmatprep.subr.msk.bf16.mxu1 %vm21406_vm13, %v20996_v13  ;;  %4497 = vrot.lane.b32.xlu0 %v15664_v0, %s8310_s29  ;;  %vm21421_vm13 = vnez %v21420_v11  ;;  %v21450_v11 = vld [vmem:[#allocation6_spill] sm:$0xff] }
 0x50a   :  { %v4448_v61 = vrot.slane %v15578_v5, %v21450_v11 }
 0x50b   :  { %7770 = vmatpush1.bf16.msk.msra.mxu0 %vm21081_vm10, %v20996_v13  ;;  %vm21417_vm10 = vnez %v21416_v53 }
 0x50c   :  { %8154 = vmatpush1.bf16.msk.msra.mxu1 %vm21409_vm12, %v20996_v13  ;;  %7772 = vmatprep.subr.msk.bf16.mxu0 %vm21411_vm1, %v20996_v13  ;;  %vm21424_vm12 = vnez %v21423_v14  ;;  %vm21426_vm1 = vnez %v21425_v62  ;;  %v4833_v62 = vrot.slane %v15581_v58, %v21450_v11 }
 0x50d   :  { %8156 = vmatprep.subr.msk.bf16.mxu1 %vm21413_vm3, %v20996_v13  ;;  %vm21428_vm3 = vnez %v21427_v34 }
 0x50f   :  { %7774 = vmatpush1.bf16.msk.msra.mxu0 %vm21415_vm8, %v20996_v13  ;;  %vm21430_vm8 = vnez %v21429_v42  ;;  %v21451_v42 = vld [vmem:[#allocation13_spill] sm:$0xff] }
 0x510   :  { %8158 = vmatpush1.bf16.msk.msra.mxu1 %vm21417_vm10, %v20996_v13  ;;  %7776 = vmatprep.subr.msk.bf16.mxu0 %vm21419_vm7, %v20996_v13  ;;  %v4861_v3 = vrot.slane %v15581_v58, %v21451_v42  ;;  %v4476_v63 = vrot.slane %v15578_v5, %v21451_v42  ;;  %vm4862_vm7 = vcmp.eq.s32.totalorder %v4833_v62, 1 }
 0x511   :  { %8160 = vmatprep.subr.msk.bf16.mxu1 %vm21421_vm13, %v20996_v13 }
 0x512   :  { %vm15871_vm13 = vcmp.eq.s32.totalorder %v4861_v3, 1 }
 0x513   :  { %7778 = vmatpush1.bf16.msk.msra.mxu0 %vm21095_vm0, %v20996_v13  ;;  %vm21438_vm0 = vnez %v21437_v18 }
 0x514   :  { %8162 = vmatpush1.bf16.msk.msra.mxu1 %vm21424_vm12, %v20996_v13  ;;  %7780 = vmatprep.subr.msk.bf16.mxu0 %vm21426_vm1, %v20996_v13  ;;  %vm15882_vm12 = vcmp.eq.s32.totalorder %v4476_v63, 1  ;;  %vm15886_vm1 = vcmp.eq.s32.totalorder %v4857_v30, 1 }
 0x515   :  { %8164 = vmatprep.subr.msk.bf16.mxu1 %vm21428_vm3, %v20996_v13 }
 0x517   :  { %7782 = vmatpush1.bf16.msk.msra.mxu0 %vm21430_vm8, %v20996_v13 }
 0x518   :  { %8166 = vmatpush1.bf16.msk.msra.mxu1 %vm14204_vm5, %v20996_v13  ;;  %7784 = vmatprep.subr.msk.bf16.mxu0 %vm21106_vm11, %v20996_v13  ;;  %vm21440_vm11 = vnez %v21439_v39  ;;  %vm21442_vm5 = vnez %v21441_v49  ;;  %v21453_v39 = vld [vmem:[#allocation10_spill] sm:$0xff] }
 0x519   :  { %8168 = vmatprep.subr.msk.bf16.mxu1 %vm21108_vm9, %v20996_v13  ;;  %vm4480_vm9 = vcmp.eq.s32.totalorder %v4460_v22, 1  ;;  %v4849_v49 = vrot.slane %v15581_v58, %v21453_v39 }
 0x51b   :  { %7786 = vmatpush1.bf16.msk.msra.mxu0 %vm21110_vm14, %v20996_v13  ;;  %vm4865_vm14 = vcmp.eq.s32.totalorder %v4845_v21, 1  ;;  %vm15894_vm3 = vcmp.eq.s32.totalorder %v4849_v49, 1 }
 0x51c   :  { %8170 = vmatpush1.bf16.msk.msra.mxu1 %vm14281_vm4, %v20996_v13  ;;  %7788 = vmatprep.subr.msk.bf16.mxu0 %vm21113_vm6, %v20996_v13  ;;  %vm4477_vm4 = vcmp.eq.s32.totalorder %v4448_v61, 1 }
 0x51d   :  { %8172 = vmatprep.subr.msk.bf16.mxu1 %vm21438_vm0, %v20996_v13 }
 0x51f   :  { %7790 = vmatpush1.bf16.msk.msra.mxu0 %vm21440_vm11, %v20996_v13  ;;  %vm4509_vm11 = vcmp.lt.s32.totalorder %v15596_v46, 32 }
 0x520   :  { %8174 = vmatpush1.bf16.msk.msra.mxu1 %vm21442_vm5, %v20996_v13  ;;  %v8275_v13 = vld [vmem:[%s17276_s5] sm:$0xff]  ;;  %vm4535_vm5 = vcmp.lt.s32.totalorder %v15596_v46, 96 }
 0x522   :  { %3484 = vmatmul.mubr.f32.vlgmr.msra.gmra.mrb[2].mxu0 %v21324_v44 }
 0x523   :  { %4384 = vmatmul.mubr.f32.vlgmr.msra.gmra.mrb[2].mxu1 %v21324_v44  ;;  %v21447_v44 = vld [vmem:[#allocation159_spill] sm:$0xff] }
 0x571   :  { %v15809_v59 = vpop.permute.xlu1 %4521 }
 0x573   :  { %v15807_v19 = vpop.permute.xlu0 %4495 }
 0x577   :  { %v15815_v56 = vpop.permute.xlu0 %4523 }
 0x57b   :  { %v15823_v27 = vpop.permute.xlu0 %4497 }
 0x5f5   :  { %v15747_v52 = vpop.f32.mrb[2].mxu0 }
 0x5f6   :  { %21443 = vst [vmem:[#allocation162_spill] sm:$0xff] %v15747_v52  ;;  %v15749_v41 = vpop.f32.mrb[2].mxu1  ;;  %v15751_v12 = vpop.f32.mrb[3].mxu0  ;;  %4399 = vrot.lane.b32.xlu0 %v15747_v52, %s8311_s30 }
 0x5f7   :  { %21444 = vst [vmem:[#allocation156_spill] sm:$0xff] %v15749_v41  ;;  %21445 = vst [vmem:[#allocation46_spill] sm:$0xff] %v15751_v12  ;;  %v15755_v36 = vpop.f32.mrb[3].mxu1  ;;  %4403 = vrot.lane.b32.xlu1 %v15749_v41, %s8311_s30 }
 0x5f8   :  { %21446 = vst [vmem:[#allocation49_spill] sm:$0xff] %v15755_v36 }
 0x5fa   :  { %4401 = vrot.lane.b32.xlu0 %v15751_v12, %s8311_s30 }
 0x5fb   :  { %4427 = vrot.lane.b32.xlu1 %v15747_v52, %s8312_s12 }
 0x5fe   :  { %4955 = vperm.xlu0 %8249, %v8275_v13  }
 0x5ff   :  { %4431 = vrot.lane.b32.xlu1 %v15749_v41, %s8312_s12 }
 0x602   :  { %4710 = vrot.lane.b32.xlu0 %v21447_v44, %s8310_s29 }
 0x603   :  { %4405 = vrot.lane.b32.xlu1 %v15755_v36, %s8311_s30  ;;  %8250 = vset.pattern.permute.xlu0 %v8314_v24 }
 0x606   :  { %4983 = vperm.xlu0 %8250, %v8275_v13  }
 0x607   :  { %4433 = vrot.lane.b32.xlu1 %v15755_v36, %s8312_s12 }
 0x60a   :  { %8251 = vset.pattern.permute.xlu0 %v21369_v37 }
 0x60b   :  { %4429 = vrot.lane.b32.xlu1 %v15751_v12, %s8312_s12  ;;  %4595 = vperm.xlu0 %8251, %v8275_v13  }
 0x60f   :  { %4736 = vrot.lane.b32.xlu1 %v15747_v52, %s8313_s13  ;;  %4712 = vrot.lane.b32.xlu0 %v15747_v52, %s8310_s29 }
 0x613   :  { %4880 = vrot.lane.b32.xlu1 %v15641_v20, %s8310_s29  ;;  %4904 = vrot.lane.b32.xlu0 %v15641_v20, %s8313_s13 }
 0x617   :  { %4906 = vrot.lane.b32.xlu1 %v15643_v33, %s8313_s13  ;;  %4882 = vrot.lane.b32.xlu0 %v15643_v33, %s8310_s29 }
 0x61b   :  { %4740 = vrot.lane.b32.xlu1 %v15749_v41, %s8313_s13  ;;  %4716 = vrot.lane.b32.xlu0 %v15749_v41, %s8310_s29 }
 0x61f   :  { %4738 = vrot.lane.b32.xlu1 %v15751_v12, %s8313_s13  ;;  %4718 = vrot.lane.b32.xlu0 %v15755_v36, %s8310_s29 }
 0x623   :  { %4742 = vrot.lane.b32.xlu1 %v15755_v36, %s8313_s13  ;;  %4714 = vrot.lane.b32.xlu0 %v15751_v12, %s8310_s29 }
 0x668   :  { %v4400_v14 = vpop.permute.xlu0 %4399 }
 0x669   :  { %v4404_v60 = vpop.permute.xlu1 %4403 }
 0x66c   :  { %v4402_v21 = vpop.permute.xlu0 %4401 }
 0x66d   :  { %v4428_v4 = vpop.permute.xlu1 %4427  ;;  %v15902_v63 = vsel %vm4409_vm15, %v4402_v21, %v4404_v60  ;;  %v4412_v49 = vsel %vm4409_vm15, %v4400_v14, %v4402_v21 }
 0x66e   :  { %v4439_v45 = vsel %vm4435_vm2, %v15609_v8, %v4428_v4  ;;  %v41_v8 = vld [vmem:[%s17272_s1] ss:$4 sm:$0xff] }
 0x66f   :  { %v15825_v53 = vsel %vm4865_vm14, %v4414_v10, %v4439_v45  ;;  %v15827_v54 = vsel %vm4480_vm9, %v4439_v45, %v4414_v10  ;;  %vm4518_vm6 = vcmp.eq.s32.totalorder %v41_v8, 0  ;;  %vm4634_vm10 = vcmp.eq.s32.totalorder %v41_v8, 31 }
 0x670   :  { %21449 = vst [vmem:[#allocation52_spill] sm:$0xff] %v15825_v53  ;;  %4884 = vrot.lane.b32.xlu0 %v15825_v53, %s8310_s29  ;;  %4525 = vrot.lane.b32.xlu1 %v15827_v54, %s8313_s13  ;;  %v15866_v13 = vsel %vm4518_vm6, 1, %v21369_v37  ;;  %v15869_v24 = vsel %vm4634_vm10, 1, %v21369_v37 }
 0x671   :  { %v4432_v51 = vpop.permute.xlu1 %4431  ;;  %v4560_v3 = vrot.slane %v15866_v13, %v21448_v15  ;;  %v4655_v36 = vrot.slane %v15869_v24, %v21453_v39 }
 0x674   :  { %4499 = vrot.lane.b32.xlu1 %v15827_v54, %s8310_s29 }
 0x675   :  { %v4406_v34 = vpop.permute.xlu1 %4405 }
 0x676   :  { %v4417_v50 = vsel %vm4409_vm15, %v4406_v34, %v15509_v29  ;;  %v4853_v29 = vrot.slane %v15581_v58, %v21454_v2  ;;  %v4410_v30 = vsel %vm4409_vm15, %v4404_v60, %v4406_v34 }
 0x677   :  { %v15855_v18 = vsel %vm4477_vm4, %v4442_v43, %v4417_v50  ;;  %v15890_v62 = vsel %vm4862_vm7, %v4417_v50, %v4442_v43  ;;  %v4651_v43 = vrot.slane %v15869_v24, %v21448_v15  ;;  %v4413_v50 = vsel %vm4409_vm15, %v4398_v6, %v4400_v14 }
 0x678   :  { %4519 = vrot.lane.b32.xlu0 %v15855_v18, %s8313_s13  ;;  %4908 = vrot.lane.b32.xlu1 %v15825_v53, %s8313_s13  ;;  %21461 = vst [vmem:[#allocation57_spill] sm:$0xff] %v15890_v62  ;;  %vm4867_vm8 = vcmp.eq.s32.totalorder %v4853_v29, 1  ;;  %vm16034_vm4 = vcmp.eq.s32.totalorder %v4655_v36, 1 }
 0x679   :  { %v4434_v22 = vpop.permute.xlu1 %4433  ;;  %vm15962_vm0 = vcmp.eq.s32.totalorder %v4651_v43, 1 }
 0x67a   :  { %v15877_v45 = vsel %vm4435_vm2, %v4432_v51, %v4434_v22  ;;  %v4443_v58 = vsel %vm4435_vm2, %v4434_v22, %v15539_v28  ;;  %v4464_v28 = vrot.slane %v15578_v5, %v21453_v39 }
 0x67b   :  { %v15920_v60 = vsel %vm15871_vm13, %v4410_v30, %v4443_v58  ;;  %v15926_v34 = vsel %vm15886_vm1, %v15902_v63, %v15877_v45  ;;  %v15942_v10 = vsel %vm15882_vm12, %v4443_v58, %v4410_v30 }
 0x67c   :  { %4878 = vrot.lane.b32.xlu0 %v15890_v62, %s8310_s29  ;;  %4493 = vrot.lane.b32.xlu1 %v15855_v18, %s8310_s29  ;;  %21466 = vst [vmem:[#allocation65_spill] sm:$0xff] %v15942_v10  ;;  %vm15948_vm15 = vcmp.eq.s32.totalorder %v4464_v28, 1 }
 0x67d   :  { %v4430_v22 = vpop.permute.xlu1 %4429  ;;  %v15916_v53 = vpop.permute.xlu0 %4955 }
 0x67e   :  { %v4437_v29 = vsel %vm4435_vm2, %v4430_v22, %v4432_v51  ;;  %v4438_v6 = vsel %vm4435_vm2, %v4428_v4, %v4430_v22  ;;  %v15934_v14 = vmul.f32 %v15916_v53, %v15920_v60  ;;  %v15938_v21 = vmul.f32 %v15916_v53, %v15926_v34 }
 0x67f   :  { %v15946_v8 = vsel %vm15894_vm3, %v4413_v50, %v4438_v6  ;;  %v15952_v4 = vsel %vm4867_vm8, %v4412_v49, %v4437_v29  ;;  %vm15958_vm2 = vcmp.eq.s32.totalorder %v4560_v3, 1 }
 0x680   :  { %21464 = vst [vmem:[#allocation58_spill] sm:$0xff] %v15934_v14  ;;  %21465 = vst [vmem:[#allocation64_spill] sm:$0xff] %v15938_v21  ;;  %4892 = vrot.lane.b32.xlu0 %v15920_v60, %s8310_s29  ;;  %4507 = vrot.lane.b32.xlu1 %v15942_v10, %s8310_s29  ;;  %v15968_v58 = vmul.f32 %v15916_v53, %v15946_v8  ;;  %v15972_v28 = vmul.f32 %v15916_v53, %v15952_v4 }
 0x681   :  { %v4737_v3 = vpop.permute.xlu1 %4736  ;;  %v4711_v30 = vpop.permute.xlu0 %4710  ;;  %v15996_v21 = vsel %vm15948_vm15, %v4438_v6, %v4413_v50  ;;  %v4564_v14 = vrot.slane %v15866_v13, %v21453_v39 }
 0x682   :  { %21473 = vst [vmem:[#allocation71_spill] sm:$0xff] %v15968_v58  ;;  %21474 = vst [vmem:[#allocation72_spill] sm:$0xff] %v15972_v28  ;;  %v15979_v43 = vsel %vm4535_vm5, %v15805_v17, %v4737_v3  ;;  %v15984_v22 = vsel %vm4509_vm11, %v15547_v26, %v4711_v30  ;;  %v4468_v28 = vrot.slane %v15578_v5, %v21454_v2 }
 0x683   :  { %21475 = vst [vmem:[#allocation83_spill] sm:$0xff] %v15996_v21  ;;  %vm16030_vm9 = vcmp.eq.s32.totalorder %v4564_v14, 1 }
 0x684   :  { %4886 = vrot.lane.b32.xlu0 %v15946_v8, %s8310_s29  ;;  %4527 = vrot.lane.b32.xlu1 %v15996_v21, %s8313_s13  ;;  %vm4482_vm14 = vcmp.eq.s32.totalorder %v4468_v28, 1  ;;  %v4472_v28 = vrot.slane %v15578_v5, %v21452_v40 }
 0x685   :  { %v16004_v58 = vpop.permute.xlu1 %4880  ;;  %v16006_v15 = vpop.permute.xlu0 %4983  ;;  %v16016_v51 = vsel %vm4482_vm14, %v4437_v29, %v4412_v49  ;;  %v21477_v49 = vmov 0  ;;  %v21480_v29 = vmov 0 }
 0x686   :  { %21476 = vst [vmem:[#allocation84_spill] sm:$0xff] %v16016_v51  ;;  %v21478_v49 = vsel %vm16030_vm9, 4294967295, %v21477_v49  ;;  %v21481_v29 = vsel %vm16034_vm4, 4294967295, %v21480_v29  ;;  %vm4483_vm6 = vcmp.eq.s32.totalorder %v4472_v28, 1 }
 0x687   :  { %21479 = vst [vmem:[#allocation90_spill] sm:$0xff] %v21478_v49  ;;  %21482 = vst [vmem:[#allocation91_spill] sm:$0xff] %v21481_v29  ;;  %v16062_v28 = vsel %vm4483_vm6, %v15877_v45, %v15902_v63  ;;  %v4576_v45 = vrot.slane %v15866_v13, %v21451_v42  ;;  %v4667_v63 = vrot.slane %v15869_v24, %v21451_v42 }
 0x688   :  { %4501 = vrot.lane.b32.xlu1 %v15996_v21, %s8310_s29  ;;  %4888 = vrot.lane.b32.xlu0 %v15952_v4, %s8310_s29  ;;  %21485 = vst [vmem:[#allocation125_spill] sm:$0xff] %v16062_v28  ;;  %v4659_v42 = vrot.slane %v15869_v24, %v21454_v2 }
 0x689   :  { %v16012_v50 = vpop.permute.xlu1 %4906  ;;  %vm16085_vm10 = vcmp.eq.s32.totalorder %v4576_v45, 1  ;;  %vm16089_vm7 = vcmp.eq.s32.totalorder %v4667_v63, 1 }
 0x68a   :  { %v16014_v6 = vpop.permute.xlu0 %4595  ;;  %vm16126_vm1 = vcmp.eq.s32.totalorder %v4659_v42, 1  ;;  %v4748_v42 = vsel %vm4535_vm5, %v15601_v7, %v15805_v17  ;;  %v4725_v17 = vsel %vm4509_vm11, %v15801_v32, %v15547_v26  ;;  %v4643_v26 = vrot.slane %v15869_v24, %v21374_v35 }
 0x68c   :  { %4529 = vrot.lane.b32.xlu1 %v16016_v51, %s8313_s13  ;;  %4890 = vrot.lane.b32.xlu0 %v15926_v34, %s8310_s29  ;;  %vm16263_vm6 = vcmp.eq.s32.totalorder %v4643_v26, 1  ;;  %v4639_v26 = vrot.slane %v15869_v24, %v21450_v11 }
 0x68d   :  { %v4741_v41 = vpop.permute.xlu1 %4740 }
 0x68e   :  { %v4713_v12 = vpop.permute.xlu0 %4712 }
 0x68f   :  { %v16040_v39 = vsel %vm4509_vm11, %v4711_v30, %v4713_v12 }
 0x690   :  { %4503 = vrot.lane.b32.xlu1 %v16016_v51, %s8310_s29  ;;  %21483 = vst [vmem:[#allocation137_spill] sm:$0xff] %v16040_v39  ;;  %v4572_v39 = vrot.slane %v15866_v13, %v21452_v40 }
 0x691   :  { %v4739_v52 = vpop.permute.xlu1 %4738 }
 0x692   :  { %v16044_v5 = vsel %vm4535_vm5, %v4739_v52, %v4741_v41  ;;  %v16048_v14 = vsel %vm4535_vm5, %v4737_v3, %v4739_v52  ;;  %v16050_v51 = vpop.permute.xlu0 %4904  ;;  %vm16122_vm12 = vcmp.eq.s32.totalorder %v4572_v39, 1 }
 0x693   :  { %21484 = vst [vmem:[#allocation138_spill] sm:$0xff] %v16048_v14  ;;  %v21501_v14 = vmov 0 }
 0x694   :  { %4531 = vrot.lane.b32.xlu1 %v16062_v28, %s8313_s13 }
 0x695   :  { %v4743_v52 = vpop.permute.xlu1 %4742 }
 0x696   :  { %v16068_v3 = vsel %vm4535_vm5, %v4741_v41, %v4743_v52  ;;  %v16073_v36 = vsel %vm4535_vm5, %v4743_v52, %v15572_v25  ;;  %v16075_v49 = vpop.permute.xlu0 %4882  ;;  %v21488_v41 = vmov 0  ;;  %v21491_v52 = vmov 0 }
 0x697   :  { %21486 = vst [vmem:[#allocation129_spill] sm:$0xff] %v16068_v3  ;;  %21487 = vst [vmem:[#allocation133_spill] sm:$0xff] %v16073_v36  ;;  %v21489_v41 = vsel %vm16085_vm10, 4294967295, %v21488_v41  ;;  %v21492_v52 = vsel %vm16089_vm7, 4294967295, %v21491_v52  ;;  %v4552_v3 = vrot.slane %v15866_v13, %v21374_v35 }
 0x698   :  { %4505 = vrot.lane.b32.xlu1 %v16062_v28, %s8310_s29  ;;  %21490 = vst [vmem:[#allocation136_spill] sm:$0xff] %v21489_v41  ;;  %21493 = vst [vmem:[#allocation248_spill] sm:$0xff] %v21492_v52  ;;  %v4568_v28 = vrot.slane %v15866_v13, %v21454_v2  ;;  %v21513_v52 = vld [vmem:[#allocation155_spill] sm:$0xff] }
 0x699   :  { %vm16240_vm14 = vcmp.eq.s32.totalorder %v4552_v3, 1  ;;  %v4899_v3 = vsel %vm4509_vm11, %v16004_v58, %v16075_v49 }
 0x69a   :  { %v4717_v30 = vpop.permute.xlu0 %4716  ;;  %vm16118_vm13 = vcmp.eq.s32.totalorder %v4568_v28, 1 }
 0x69c   :  { %4533 = vrot.lane.b32.xlu1 %v15942_v10, %s8313_s13  ;;  %v4663_v10 = vrot.slane %v15869_v24, %v21452_v40 }
 0x69e   :  { %v16101_v45 = vpop.permute.xlu0 %4718  ;;  %vm16130_vm3 = vcmp.eq.s32.totalorder %v4663_v10, 1  ;;  %v21521_v10 = vmov 5  }
 0x69f   :  { %v16106_v63 = vsel %vm4509_vm11, %v4717_v30, %v16101_v45  ;;  %v21502_v14 = vsel %vm16130_vm3, 4294967295, %v21501_v14 }
 0x6a0   :  { %21494 = vst [vmem:[#allocation82_spill] sm:$0xff] %v16106_v63  ;;  %4902 = vrot.lane.b32.xlu1 %v15890_v62, %s8313_s13  ;;  %21503 = vst [vmem:[#allocation122_spill] sm:$0xff] %v21502_v14  ;;  %v4786_v14 = vmul.f32 %v15488_v38, %v21513_v52 }
 0x6a2   :  { %v4715_v2 = vpop.permute.xlu0 %4714 }
 0x6a3   :  { %v16136_v62 = vsel %vm4509_vm11, %v4715_v2, %v4717_v30  ;;  %v16140_v28 = vsel %vm4509_vm11, %v4713_v12, %v4715_v2  ;;  %v5003_v2 = vld [vmem:[%s17278_s7] sm:$0xff]  ;;  %v4619_v12 = vmul.f32 %v15449_v57, %v15639_v9 }
 0x6a4   :  { %21504 = vst [vmem:[#allocation123_spill] sm:$0xff] %v16136_v62  ;;  %4910 = vrot.lane.b32.xlu1 %v15946_v8, %s8313_s13  ;;  %v16172_v30 = vld [vmem:[%s17279_s8] sm:$0xff]  ;;  %v16178_v8 = vld [vmem:[%s17279_s8 + $0x8] sm:$0xff] }
 0x6a5   :  { %21505 = vst [vmem:[#allocation127_spill] sm:$0xff] %v16172_v30 }
 0x6a8   :  { %4912 = vrot.lane.b32.xlu1 %v15952_v4, %s8313_s13  ;;  %v4556_v4 = vrot.slane %v15866_v13, %v21375_v47 }
 0x6aa   :  { %vm16190_vm8 = vcmp.eq.s32.totalorder %v4556_v4, 1  ;;  %v4515_v4 = vsel %vm4509_vm11, %v15807_v19, %v15823_v27 }
 0x6ac   :  { %4914 = vrot.lane.b32.xlu1 %v15926_v34, %s8313_s13  ;;  %v21507_v34 = vmov 2  }
 0x6b0   :  { %4916 = vrot.lane.b32.xlu1 %v15920_v60, %s8313_s13  ;;  %v21506_v60 = vmov 1  }
 0x6b4   :  { %5066 = vperm.xlu1 %8252, %v5003_v2   ;;  %v4647_v2 = vrot.slane %v15869_v24, %v21375_v47 }
 0x6b6   :  { %vm16197_vm15 = vcmp.eq.s32.totalorder %v4647_v2, 1 }
 0x6b8   :  { %5097 = vperm.xlu1 %8252, %v16172_v30  }
 0x6bc   :  { %5102 = vperm.xlu1 %8252, %v16178_v8  }
 0x6c0   :  { %8253 = vset.pattern.permute.xlu1 %v21506_v60  ;;  %v21510_v60 = vmov 3  }
 0x6c1   :  { %5170 = vperm.xlu1 %8253, %v16172_v30  }
 0x6c5   :  { %5174 = vperm.xlu1 %8253, %v16178_v8  }
 0x6c9   :  { %8254 = vset.pattern.permute.xlu1 %v21507_v34  ;;  %v4620_v34 = vmul.f32 %v15449_v57, %v15664_v0 }
 0x6ca   :  { %5242 = vperm.xlu1 %8254, %v16172_v30  }
 0x6ce   :  { %8256 = vset.pattern.permute.xlu1 %v21510_v60 }
 0x6cf   :  { %5314 = vperm.xlu1 %8256, %v16172_v30   ;;  %v4754_v30 = vsel %vm16190_vm8, %v4748_v42, %v4725_v17 }
 0x6d0   :  { %v4766_v0 = vmul.f32 %v15473_v16, %v4754_v30  ;;  %v4726_v30 = vsel %vm4509_vm11, %v15520_v23, %v15801_v32  ;;  %v4548_v32 = vrot.slane %v15866_v13, %v21450_v11  ;;  %v16283_v13 = vsel %vm4535_vm5, %v15572_v25, %v15803_v1 }
 0x6d3   :  { %5318 = vperm.xlu1 %8256, %v16178_v8  }
 0x6e2   :  { %v16194_v39 = vpop.permute.xlu1 %4525  ;;  %v16229_v63 = vpop.permute.xlu0 %4884 }
 0x6e3   :  { %v4540_v47 = vsel %vm4535_vm5, %v15815_v56, %v16194_v39  ;;  %v4898_v11 = vsel %vm4509_vm11, %v16075_v49, %v16229_v63 }
 0x6e4   :  { %v4587_v2 = vsel %vm16190_vm8, %v4540_v47, %v4515_v4  ;;  %v4678_v60 = vsel %vm16197_vm15, %v4515_v4, %v4540_v47 }
 0x6e5   :  { %v4600_v62 = vmul.f32 %v16014_v6, %v4587_v2  ;;  %v4690_v4 = vmul.f32 %v15463_v48, %v4678_v60 }
 0x6e6   :  { %v16231_v36 = vpop.permute.xlu1 %4499 }
 0x6e7   :  { %v4628_v47 = vadd.f32 %v4620_v34, %v4600_v62  ;;  %v4802_v62 = vsel %vm16197_vm15, %v4725_v17, %v4748_v42  ;;  %v21516_v17 = vmov 4  }
 0x6e8   :  { %8258 = vset.pattern.permute.xlu1 %v21516_v17 }
 0x6e9   :  { %v4698_v2 = vadd.f32 %v4690_v4, %v4628_v47  ;;  %5390 = vperm.xlu1 %8258, %v16178_v8  }
 0x6ea   :  { %v16246_v34 = vpop.permute.xlu1 %4908  ;;  %v16248_v60 = vpop.permute.xlu0 %4519 }
 0x6eb   :  { %v4774_v52 = vadd.f32 %v4766_v0, %v4698_v2  ;;  %v4922_v42 = vsel %vm4535_vm5, %v16012_v50, %v16246_v34  ;;  %v4749_v0 = vsel %vm4535_vm5, %v15803_v1, %v15601_v7  ;;  %v4814_v2 = vmul.f32 %v15475_v31, %v4802_v62 }
 0x6ec   :  { %v4928_v4 = vsel %vm16190_vm8, %v4922_v42, %v4899_v3  ;;  %v4753_v17 = vsel %vm16240_vm14, %v4749_v0, %v4726_v30  ;;  %v4541_v7 = vsel %vm4535_vm5, %v15809_v59, %v15815_v56  ;;  %v4801_v1 = vsel %vm16263_vm6, %v4726_v30, %v4749_v0 }
 0x6ed   :  { %v4794_v35 = vadd.f32 %v4786_v14, %v4774_v52  ;;  %v4940_v14 = vmul.f32 %v15498_v55, %v4928_v4  ;;  %v4976_v52 = vsel %vm16197_vm15, %v4899_v3, %v4922_v42  ;;  %vm16303_vm8 = vcmp.eq.s32.totalorder %v4548_v32, 1  ;;  %8259 = vset.pattern.permute.xlu1 %v21521_v10 }
 0x6ee   :  { %v4494_v62 = vpop.permute.xlu1 %4493  ;;  %v16299_v9 = vpop.permute.xlu0 %4878  ;;  %vm16312_vm15 = vcmp.eq.s32.totalorder %v4639_v26, 1  ;;  %v4960_v30 = vmul.f32 %v15916_v53, %v15643_v33  ;;  %v4727_v32 = vsel %vm4509_vm11, %v16101_v45, %v15520_v23  ;;  %v4988_v4 = vmul.f32 %v16006_v15, %v4976_v52 }
 0x6ef   :  { %v4822_v24 = vadd.f32 %v4814_v2, %v4794_v35  ;;  %v4516_v25 = vsel %vm4509_vm11, %v4494_v62, %v15807_v19  ;;  %v4542_v0 = vsel %vm4535_vm5, %v16248_v60, %v15809_v59  ;;  %v4900_v2 = vsel %vm4509_vm11, %v16299_v9, %v16004_v58 }
 0x6f0   :  { %v4586_v35 = vsel %vm16240_vm14, %v4541_v7, %v4516_v25  ;;  %v4677_v56 = vsel %vm16263_vm6, %v4516_v25, %v4541_v7  ;;  %v4765_v45 = vmul.f32 %v15473_v16, %v4753_v17  ;;  %v4618_v59 = vmul.f32 %v15449_v57, %v15855_v18  ;;  %v21524_v17 = vld [vmem:[#allocation158_spill] sm:$0xff] }
 0x6f1   :  { %v4948_v19 = vadd.f32 %v4940_v14, %v4822_v24  ;;  %v4599_v42 = vmul.f32 %v16014_v6, %v4586_v35  ;;  %v4689_v24 = vmul.f32 %v15463_v48, %v4677_v56  ;;  %v4785_v35 = vmul.f32 %v15488_v38, %v21524_v17 }
 0x6f2   :  { %v16332_v33 = vpop.permute.xlu1 %4507  ;;  %v4752_v18 = vsel %vm16303_vm8, %v16283_v13, %v4727_v32  ;;  %v4514_v56 = vsel %vm4509_vm11, %v15823_v27, %v16231_v36 }
 0x6f3   :  { %v4968_v26 = vadd.f32 %v4960_v30, %v4948_v19  ;;  %v4627_v7 = vadd.f32 %v4619_v12, %v4599_v42  ;;  %v4517_v23 = vsel %vm4509_vm11, %v16332_v33, %v4494_v62  ;;  %v4923_v12 = vsel %vm4535_vm5, %v16050_v51, %v16012_v50 }
 0x6f4   :  { %v4585_v14 = vsel %vm16303_vm8, %v4542_v0, %v4517_v23  ;;  %v4676_v58 = vsel %vm16312_vm15, %v4517_v23, %v4542_v0  ;;  %v4927_v50 = vsel %vm16240_vm14, %v4923_v12, %v4900_v2 }
 0x6f5   :  { %v16349_v52 = vadd.f32 %v4988_v4, %v4968_v26  ;;  %v4697_v25 = vadd.f32 %v4689_v24, %v4627_v7  ;;  %v4598_v62 = vmul.f32 %v16014_v6, %v4585_v14  ;;  %v4688_v4 = vmul.f32 %v15463_v48, %v4676_v58  ;;  %v21525_v14 = vld [vmem:[#allocation152_spill] sm:$0xff] }
 0x6f6   :  { %v4528_v19 = vpop.permute.xlu1 %4527  ;;  %v4813_v26 = vmul.f32 %v15475_v31, %v4801_v1  ;;  %v4621_v7 = vmul.f32 %v15449_v57, %v15827_v54  ;;  %v4764_v24 = vmul.f32 %v15473_v16, %v4752_v18  ;;  %v4800_v1 = vsel %vm16312_vm15, %v4727_v32, %v16283_v13 }
 0x6f7   :  { %v4773_v30 = vadd.f32 %v4765_v45, %v4697_v25  ;;  %v4626_v42 = vadd.f32 %v4618_v59, %v4598_v62  ;;  %v4539_v0 = vsel %vm4535_vm5, %v16194_v39, %v4528_v19  ;;  %v4784_v39 = vmul.f32 %v15488_v38, %v21525_v14 }
 0x6f8   :  { %v4588_v27 = vsel %vm15958_vm2, %v4539_v0, %v4514_v56  ;;  %v4679_v41 = vsel %vm15962_vm0, %v4514_v56, %v4539_v0  ;;  %v4939_v54 = vmul.f32 %v15498_v55, %v4927_v50  ;;  %v4975_v58 = vsel %vm16263_vm6, %v4900_v2, %v4923_v12 }
 0x6f9   :  { %v4793_v23 = vadd.f32 %v4785_v35, %v4773_v30  ;;  %v4696_v45 = vadd.f32 %v4688_v4, %v4626_v42  ;;  %v4601_v59 = vmul.f32 %v16014_v6, %v4588_v27  ;;  %v4691_v35 = vmul.f32 %v15463_v48, %v4679_v41  ;;  %v21527_v27 = vld [vmem:[#allocation83_spill] sm:$0xff] }
 0x6fa   :  { %v4502_v25 = vpop.permute.xlu1 %4501  ;;  %v4959_v56 = vmul.f32 %v15916_v53, %v15641_v20  ;;  %v21526_v30 = vsel %vm15958_vm2, %v15979_v43, %v15984_v22  ;;  %v4787_v2 = vmul.f32 %v15488_v38, %v21447_v44  ;;  %v4812_v12 = vmul.f32 %v15475_v31, %v4800_v1 }
 0x6fb   :  { %v4821_v62 = vadd.f32 %v4813_v26, %v4793_v23  ;;  %v4772_v17 = vadd.f32 %v4764_v24, %v4696_v45  ;;  %v4629_v18 = vadd.f32 %v4621_v7, %v4601_v59  ;;  %v4767_v13 = vmul.f32 %v15473_v16, %v21526_v30 }
 0x6fc   :  { %v4987_v42 = vmul.f32 %v16006_v15, %v4975_v58  ;;  %v4513_v26 = vsel %vm4509_vm11, %v16231_v36, %v4502_v25  ;;  %v4622_v41 = vmul.f32 %v15449_v57, %v21527_v27  ;;  %v21530_v14 = vsel %vm15962_vm0, %v15984_v22, %v15979_v43 }
 0x6fd   :  { %v4947_v32 = vadd.f32 %v4939_v54, %v4821_v62  ;;  %v4699_v50 = vadd.f32 %v4691_v35, %v4629_v18  ;;  %v4792_v47 = vadd.f32 %v4784_v39, %v4772_v17  ;;  %v4815_v36 = vmul.f32 %v15475_v31, %v21530_v14  ;;  %v21531_v18 = vld [vmem:[#allocation138_spill] sm:$0xff]  ;;  %v21532_v35 = vld [vmem:[#allocation137_spill] sm:$0xff] }
 0x6fe   :  { %v4530_v4 = vpop.permute.xlu1 %4529  ;;  %v21537_v14 = vsel %vm16118_vm13, %v16044_v5, %v16140_v28 }
 0x6ff   :  { %v4967_v0 = vadd.f32 %v4959_v56, %v4947_v32  ;;  %v4775_v20 = vadd.f32 %v4767_v13, %v4699_v50  ;;  %v4538_v7 = vsel %vm4535_vm5, %v4528_v19, %v4530_v4  ;;  %v16408_v59 = vadd.f32 %v4812_v12, %v4792_v47  ;;  %v21534_v13 = vld [vmem:[#allocation162_spill] sm:$0xff] }
 0x700   :  { %v4589_v44 = vsel %vm16030_vm9, %v4538_v7, %v4513_v26  ;;  %v4680_v45 = vsel %vm16034_vm4, %v4513_v26, %v4538_v7  ;;  %v21533_v56 = vsel %vm16030_vm9, %v21531_v18, %v21532_v35  ;;  %v4788_v32 = vmul.f32 %v15488_v38, %v21534_v13 }
 0x701   :  { %v16416_v39 = vadd.f32 %v4987_v42, %v4967_v0  ;;  %v4602_v19 = vmul.f32 %v16014_v6, %v4589_v44  ;;  %v4795_v1 = vadd.f32 %v4787_v2, %v4775_v20  ;;  %v4692_v62 = vmul.f32 %v15463_v48, %v4680_v45  ;;  %v21535_v0 = vld [vmem:[#allocation84_spill] sm:$0xff] }
 0x702   :  { %v4504_v54 = vpop.permute.xlu1 %4503  ;;  %v4768_v43 = vmul.f32 %v15473_v16, %v21533_v56  ;;  %v4623_v20 = vmul.f32 %v15449_v57, %v21535_v0  ;;  %v21536_v26 = vsel %vm16034_vm4, %v21532_v35, %v21531_v18 }
 0x703   :  { %v4630_v58 = vadd.f32 %v4622_v41, %v4602_v19  ;;  %v16420_v17 = vadd.f32 %v4815_v36, %v4795_v1  ;;  %v4512_v47 = vsel %vm4509_vm11, %v4502_v25, %v4504_v54  ;;  %v4816_v7 = vmul.f32 %v15475_v31, %v21536_v26  ;;  %v16456_v19 = vpop.permute.xlu0 %4892 }
 0x704   :  { %v4769_v36 = vmul.f32 %v15473_v16, %v21537_v14 }
 0x705   :  { %v4700_v22 = vadd.f32 %v4692_v62, %v4630_v58  ;;  %v21538_v58 = vld [vmem:[#allocation46_spill] sm:$0xff] }
 0x706   :  { %v4532_v30 = vpop.permute.xlu1 %4531  ;;  %v4789_v62 = vmul.f32 %v15488_v38, %v21538_v58 }
 0x707   :  { %v4776_v50 = vadd.f32 %v4768_v43, %v4700_v22  ;;  %v4537_v2 = vsel %vm4535_vm5, %v4530_v4, %v4532_v30 }
 0x708   :  { %v4590_v12 = vsel %vm16118_vm13, %v4537_v2, %v4512_v47  ;;  %v4681_v42 = vsel %vm16126_vm1, %v4512_v47, %v4537_v2  ;;  %v5002_v2 = vld [vmem:[%s17277_s6] sm:$0xff] }
 0x709   :  { %v4603_v25 = vmul.f32 %v16014_v6, %v4590_v12  ;;  %v4796_v27 = vadd.f32 %v4788_v32, %v4776_v50  ;;  %v4693_v44 = vmul.f32 %v15463_v48, %v4681_v42 }
 0x70a   :  { %v4506_v4 = vpop.permute.xlu1 %4505 }
 0x70b   :  { %v4631_v41 = vadd.f32 %v4623_v20, %v4603_v25  ;;  %v16448_v45 = vadd.f32 %v4816_v7, %v4796_v27  ;;  %v4510_v18 = vsel %vm4509_vm11, %v4506_v4, %v16332_v33  ;;  %v4511_v43 = vsel %vm4509_vm11, %v4504_v54, %v4506_v4  ;;  %v21542_v54 = vld [vmem:[#allocation65_spill] sm:$0xff] }
 0x70c   :  { %v4625_v0 = vmul.f32 %v15449_v57, %v21542_v54  ;;  %v21544_v7 = vsel %vm16126_vm1, %v16140_v28, %v16044_v5  ;;  %v4901_v27 = vsel %vm4509_vm11, %v16456_v19, %v16299_v9  ;;  %v21545_v28 = vld [vmem:[#allocation133_spill] sm:$0xff] }
 0x70d   :  { %v4701_v1 = vadd.f32 %v4693_v44, %v4631_v41  ;;  %v4817_v25 = vmul.f32 %v15475_v31, %v21544_v7  ;;  %v4887_v44 = vpop.permute.xlu0 %4886 }
 0x70e   :  { %v4534_v35 = vpop.permute.xlu1 %4533  ;;  %v4897_v61 = vsel %vm4509_vm11, %v16229_v63, %v4887_v44 }
 0x70f   :  { %v4777_v56 = vadd.f32 %v4769_v36, %v4701_v1  ;;  %v4536_v22 = vsel %vm4535_vm5, %v4532_v30, %v4534_v35  ;;  %v4543_v13 = vsel %vm4535_vm5, %v4534_v35, %v16248_v60  ;;  %v21543_v30 = vld [vmem:[#allocation125_spill] sm:$0xff]  ;;  %v21546_v1 = vld [vmem:[#allocation82_spill] sm:$0xff] }
 0x710   :  { %v4591_v32 = vsel %vm16122_vm12, %v4536_v22, %v4511_v43  ;;  %v4592_v47 = vsel %vm16085_vm10, %v4543_v13, %v4510_v18  ;;  %v4682_v33 = vsel %vm16130_vm3, %v4511_v43, %v4536_v22  ;;  %v4683_v42 = vsel %vm16089_vm7, %v4510_v18, %v4543_v13  ;;  %v21548_v35 = vld [vmem:[#allocation129_spill] sm:$0xff] }
 0x711   :  { %v4624_v20 = vmul.f32 %v15449_v57, %v21543_v30  ;;  %v4604_v60 = vmul.f32 %v16014_v6, %v4591_v32  ;;  %v4605_v26 = vmul.f32 %v16014_v6, %v4592_v47  ;;  %v4694_v4 = vmul.f32 %v15463_v48, %v4682_v33  ;;  %v21551_v32 = vld [vmem:[#allocation156_spill] sm:$0xff]  ;;  %v21552_v33 = vld [vmem:[#allocation57_spill] sm:$0xff] }
 0x712   :  { %v16495_v41 = vpop.permute.xlu1 %4902  ;;  %v4797_v57 = vadd.f32 %v4789_v62, %v4777_v56  ;;  %v4695_v36 = vmul.f32 %v15463_v48, %v4683_v42  ;;  %v21547_v9 = vsel %vm16085_vm10, %v21545_v28, %v21546_v1  ;;  %v21549_v48 = vld [vmem:[#allocation123_spill] sm:$0xff]  ;;  %v4790_v47 = vmul.f32 %v15488_v38, %v21551_v32 }
 0x713   :  { %v4632_v14 = vadd.f32 %v4624_v20, %v4604_v60  ;;  %v4633_v6 = vadd.f32 %v4625_v0, %v4605_v26  ;;  %v4924_v5 = vsel %vm4535_vm5, %v16495_v41, %v16050_v51  ;;  %v4771_v58 = vmul.f32 %v15473_v16, %v21547_v9  ;;  %v21553_v26 = vld [vmem:[#allocation49_spill] sm:$0xff] }
 0x714   :  { %v4926_v62 = vsel %vm16303_vm8, %v4924_v5, %v4901_v27  ;;  %v4825_v18 = vadd.f32 %v4817_v25, %v4797_v57  ;;  %v21550_v56 = vsel %vm16122_vm12, %v21548_v35, %v21549_v48  ;;  %v4958_v42 = vmul.f32 %v15916_v53, %v21552_v33 }
 0x715   :  { %v4770_v43 = vmul.f32 %v15473_v16, %v21550_v56  ;;  %v4702_v22 = vadd.f32 %v4694_v4, %v4632_v14  ;;  %v4703_v51 = vadd.f32 %v4695_v36, %v4633_v6  ;;  %v4938_v13 = vmul.f32 %v15498_v55, %v4926_v62  ;;  %v4889_v4 = vpop.permute.xlu0 %4888 }
 0x716   :  { %v4974_v54 = vsel %vm16312_vm15, %v4901_v27, %v4924_v5  ;;  %v4911_v0 = vpop.permute.xlu1 %4910  ;;  %v4791_v7 = vmul.f32 %v15488_v38, %v21553_v26  ;;  %v21554_v49 = vsel %vm16130_vm3, %v21549_v48, %v21548_v35  ;;  %v21555_v27 = vld [vmem:[#allocation52_spill] sm:$0xff]  ;;  %v21556_v6 = vsel %vm16089_vm7, %v21546_v1, %v21545_v28 }
 0x717   :  { %v4778_v16 = vadd.f32 %v4770_v43, %v4702_v22  ;;  %v4779_v30 = vadd.f32 %v4771_v58, %v4703_v51  ;;  %v4946_v20 = vadd.f32 %v4938_v13, %v16408_v59  ;;  %v4921_v60 = vsel %vm4535_vm5, %v16246_v34, %v4911_v0 }
 0x718   :  { %v4818_v3 = vmul.f32 %v15475_v31, %v21554_v49  ;;  %v4929_v25 = vsel %vm15958_vm2, %v4921_v60, %v4898_v11  ;;  %v4961_v59 = vmul.f32 %v15916_v53, %v21555_v27  ;;  %v4986_v34 = vmul.f32 %v16006_v15, %v4974_v54 }
 0x719   :  { %v4966_v57 = vadd.f32 %v4958_v42, %v4946_v20  ;;  %v4941_v14 = vmul.f32 %v15498_v55, %v4929_v25  ;;  %v4798_v38 = vadd.f32 %v4790_v47, %v4778_v16  ;;  %v4819_v36 = vmul.f32 %v15475_v31, %v21556_v6  ;;  %v4891_v51 = vpop.permute.xlu0 %4890 }
 0x71a   :  { %v4977_v53 = vsel %vm15962_vm0, %v4898_v11, %v4921_v60  ;;  %v4913_v5 = vpop.permute.xlu1 %4912  ;;  %v4799_v9 = vadd.f32 %v4791_v7, %v4779_v30  ;;  %v4896_v22 = vsel %vm4509_vm11, %v4887_v44, %v4889_v4  ;;  %v21557_v11 = vld [vmem:[#allocation71_spill] sm:$0xff]  ;;  %v4894_v44 = vsel %vm4509_vm11, %v4891_v51, %v16456_v19  ;;  %v21558_v7 = vld [vmem:[#allocation72_spill] sm:$0xff] }
 0x71b   :  { %v16556_v58 = vadd.f32 %v4986_v34, %v4966_v57  ;;  %v4949_v62 = vadd.f32 %v4941_v14, %v16420_v17  ;;  %v4920_v35 = vsel %vm4535_vm5, %v4911_v0, %v4913_v5  ;;  %v4826_v48 = vadd.f32 %v4818_v3, %v4798_v38  ;;  %v21560_v34 = vld [vmem:[#allocation58_spill] sm:$0xff] }
 0x71c   :  { %v4930_v31 = vsel %vm16030_vm9, %v4920_v35, %v4897_v61  ;;  %v4827_v28 = vadd.f32 %v4819_v36, %v4799_v9  ;;  %v4989_v63 = vmul.f32 %v16006_v15, %v4977_v53  ;;  %v4978_v43 = vsel %vm16034_vm4, %v4897_v61, %v4920_v35  ;;  %v21563_v9 = vld [vmem:[#allocation127_spill] sm:$0xff] }
 0x71d   :  { %v4969_v1 = vadd.f32 %v4961_v59, %v4949_v62  ;;  %v4942_v37 = vmul.f32 %v15498_v55, %v4930_v31  ;;  %v5004_v56 = vadd.f32 %v16416_v39, %v16556_v58  ;;  %v4990_v42 = vmul.f32 %v16006_v15, %v4978_v43 }
 0x71e   :  { %v4915_v17 = vpop.permute.xlu1 %4914  ;;  %v4895_v54 = vsel %vm4509_vm11, %v4889_v4, %v4891_v51  ;;  %v21559_v4 = vld [vmem:[#allocation64_spill] sm:$0xff]  ;;  %v21564_v62 = vmov 7   ;;  %v21565_v35 = vmov 0  }
 0x71f   :  { %v4997_v13 = vadd.f32 %v4989_v63, %v4969_v1  ;;  %v4950_v24 = vadd.f32 %v4942_v37, %v16448_v45  ;;  %v4919_v32 = vsel %vm4535_vm5, %v4913_v5, %v4915_v17  ;;  %v5005_v45 = vadd.f32 %v5004_v56, %v16349_v52 }
 0x720   :  { %v4931_v47 = vsel %vm16118_vm13, %v4919_v32, %v4896_v22  ;;  %v4979_v0 = vsel %vm16126_vm1, %v4896_v22, %v4919_v32  ;;  %v21561_v5 = vmov 2  }
 0x721   :  { %v4970_v33 = vadd.f32 %v21557_v11, %v4950_v24  ;;  %v4943_v23 = vmul.f32 %v15498_v55, %v4931_v47 }
 0x722   :  { %v4917_v40 = vpop.permute.xlu1 %4916 }
 0x723   :  { %v4998_v16 = vadd.f32 %v4990_v42, %v4970_v33  ;;  %v4951_v30 = vadd.f32 %v4943_v23, %v4825_v18  ;;  %v4918_v20 = vsel %vm4535_vm5, %v4915_v17, %v4917_v40  ;;  %v4925_v60 = vsel %vm4535_vm5, %v4917_v40, %v16495_v41 }
 0x724   :  { %v4932_v19 = vsel %vm16122_vm12, %v4918_v20, %v4895_v54  ;;  %v4933_v26 = vsel %vm16085_vm10, %v4925_v60, %v4894_v44  ;;  %v4981_v21 = vsel %vm16089_vm7, %v4894_v44, %v4925_v60  ;;  %v4991_v18 = vmul.f32 %v16006_v15, %v4979_v0 }
 0x725   :  { %v4971_v49 = vadd.f32 %v21558_v7, %v4951_v30  ;;  %v4944_v3 = vmul.f32 %v15498_v55, %v4932_v19  ;;  %v4945_v25 = vmul.f32 %v15498_v55, %v4933_v26  ;;  %v4980_v46 = vsel %vm16130_vm3, %v4895_v54, %v4918_v20 }
 0x726   :  { %v4993_v29 = vmul.f32 %v16006_v15, %v4981_v21  ;;  %v5006_v41 = vadd.f32 %v5005_v45, %v4997_v13  ;;  %v4992_v12 = vmul.f32 %v16006_v15, %v4980_v46  ;;  %v21562_v15 = vmov 4  }
 0x727   :  { %v4999_v27 = vadd.f32 %v4991_v18, %v4971_v49  ;;  %v4952_v50 = vadd.f32 %v4944_v3, %v4826_v48  ;;  %v4953_v59 = vadd.f32 %v4945_v25, %v4827_v28 }
 0x728   :  { %v5007_v38 = vadd.f32 %v5006_v41, %v4998_v16 }
 0x729   :  { %v4972_v57 = vadd.f32 %v21559_v4, %v4952_v50  ;;  %v4973_v14 = vadd.f32 %v21560_v34, %v4953_v59 }
 0x72a   :  { %v5008_v61 = vadd.f32 %v5007_v38, %v4999_v27 }
 0x72b   :  { %v5000_v6 = vadd.f32 %v4992_v12, %v4972_v57  ;;  %v5001_v36 = vadd.f32 %v4993_v29, %v4973_v14 }
 0x72d   :  { %v5009_v55 = vadd.f32 %v5008_v61, %v5000_v6 }
 0x72f   :  { %v5010_v53 = vadd.f32 %v5009_v55, %v5001_v36 }
 0x731   :  { %5011 = vadd.xlane.f32.xlu0 %v5010_v53 }
 0x733   :  { %v5067_v0 = vpop.permute.xlu1 %5066 }
 0x737   :  { %v16630_v40 = vpop.permute.xlu1 %5097 }
 0x747   :  { %5053 = vperm.xlu0 %8251, %v5002_v2  }
 0x74b   :  { %8255 = vset.pattern.permute.xlu0 %v21561_v5 }
 0x74c   :  { %5246 = vperm.xlu0 %8255, %v16178_v8  }
 0x750   :  { %8257 = vset.pattern.permute.xlu0 %v21562_v15 }
 0x751   :  { %5386 = vperm.xlu0 %8257, %v21563_v9  }
 0x755   :  { %8260 = vset.pattern.permute.xlu0 %v21521_v10 }
 0x756   :  { %5462 = vperm.xlu0 %8260, %v16178_v8  }
 0x75a   :  { %8262 = vset.pattern.permute.xlu0 %v21564_v62 }
 0x75b   :  { %5602 = vperm.xlu0 %8262, %v21563_v9  }
 0x75f   :  { %8264 = vset.pattern.permute.xlu0 %v21565_v35 }
 0x7be   :  { %v5012_v48 = vpop.xlane.xlu0 %5011 }
 0x7bf   :  { %v5014_v31 = vmul.f32 0.0009765625, %v5012_v48 }
 0x7c1   :  { %v5015_v28 = vsub.f32 %v16556_v58, %v5014_v31  ;;  %v5016_v1 = vsub.f32 %v16416_v39, %v5014_v31  ;;  %v5017_v63 = vsub.f32 %v16349_v52, %v5014_v31  ;;  %v5018_v37 = vsub.f32 %v4997_v13, %v5014_v31 }
 0x7c2   :  { %v5019_v10 = vsub.f32 %v4998_v16, %v5014_v31  ;;  %v5020_v51 = vsub.f32 %v4999_v27, %v5014_v31  ;;  %v5021_v47 = vsub.f32 %v5000_v6, %v5014_v31  ;;  %v5022_v42 = vsub.f32 %v5001_v36, %v5014_v31  ;;  %v16632_v16 = vpop.permute.xlu1 %5102 }
 0x7c3   :  { %v5023_v56 = vmul.f32 %v5015_v28, %v5015_v28  ;;  %v5024_v43 = vmul.f32 %v5016_v1, %v5016_v1  ;;  %v5025_v17 = vmul.f32 %v5017_v63, %v5017_v63  ;;  %v5026_v24 = vmul.f32 %v5018_v37, %v5018_v37 }
 0x7c4   :  { %v5027_v11 = vmul.f32 %v5019_v10, %v5019_v10  ;;  %v5028_v23 = vmul.f32 %v5020_v51, %v5020_v51  ;;  %v5029_v58 = vmul.f32 %v5021_v47, %v5021_v47  ;;  %v5030_v39 = vmul.f32 %v5022_v42, %v5022_v42 }
 0x7c5   :  { %v5031_v22 = vadd.f32 %v5024_v43, %v5023_v56  ;;  %v21566_v13 = vmov 6  }
 0x7c6   :  { %v16634_v30 = vpop.permute.xlu1 %5170  ;;  %v5054_v41 = vpop.permute.xlu0 %5053 }
 0x7c7   :  { %v5032_v32 = vadd.f32 %v5031_v22, %v5025_v17 }
 0x7c9   :  { %v5033_v33 = vadd.f32 %v5032_v32, %v5026_v24 }
 0x7ca   :  { %v16636_v20 = vpop.permute.xlu1 %5174 }
 0x7cb   :  { %v5034_v44 = vadd.f32 %v5033_v33, %v5027_v11 }
 0x7cd   :  { %v5035_v54 = vadd.f32 %v5034_v44, %v5028_v23 }
 0x7ce   :  { %v16638_v60 = vpop.permute.xlu1 %5242 }
 0x7cf   :  { %v5036_v45 = vadd.f32 %v5035_v54, %v5029_v58  ;;  %21567 = vst [vmem:[#allocation119_spill] sm:$0xff] %v16638_v60  ;;  %v21571_v54 = vld [vmem:[#allocation11_spill] sm:$0xff] }
 0x7d1   :  { %v5037_v52 = vadd.f32 %v5036_v45, %v5030_v39 }
 0x7d2   :  { %v16640_v19 = vpop.permute.xlu1 %5314 }
 0x7d3   :  { %5038 = vadd.xlane.f32.xlu1 %v5037_v52  ;;  %21568 = vst [vmem:[#allocation103_spill] sm:$0xff] %v16640_v19 }
 0x7d6   :  { %v16642_v26 = vpop.permute.xlu1 %5318 }
 0x7da   :  { %v16644_v21 = vpop.permute.xlu1 %5390 }
 0x7e4   :  { %5458 = vperm.xlu1 %8259, %v21563_v9  }
 0x7e8   :  { %8261 = vset.pattern.permute.xlu1 %v21566_v13 }
 0x7e9   :  { %5530 = vperm.xlu1 %8261, %v21563_v9  }
 0x7ed   :  { %5534 = vperm.xlu1 %8261, %v16178_v8  }
 0x7f1   :  { %8263 = vset.pattern.permute.xlu1 %v21564_v62 }
 0x7f2   :  { %5606 = vperm.xlu1 %8263, %v16178_v8  }
 0x7f6   :  { %8265 = vset.pattern.permute.xlu1 %v21565_v35 }
 0x860   :  { %v5039_v8 = vpop.xlane.xlu1 %5038 }
 0x861   :  { %v5040_v7 = vmul.f32 0.0009765625, %v5039_v8 }
 0x863   :  { %v5041_v49 = vadd.f32 1e-05, %v5040_v7  ;;  %v21572_v7 = vld [vmem:[#allocation8_spill] sm:$0xff] }
 0x865   :  { %8268 = vrsqrt.f32 %v5041_v49 }
 0x86f   :  { %v8269_v18 = vpop.eup %8268 }
 0x870   :  { %v5043_v3 = vmul.f32 %v8269_v18, %v5015_v28  ;;  %v5044_v25 = vmul.f32 %v8269_v18, %v5016_v1  ;;  %v5045_v46 = vmul.f32 %v8269_v18, %v5017_v63  ;;  %v5046_v29 = vmul.f32 %v8269_v18, %v5018_v37 }
 0x871   :  { %v5047_v27 = vmul.f32 %v8269_v18, %v5019_v10  ;;  %v5048_v50 = vmul.f32 %v8269_v18, %v5020_v51  ;;  %v5049_v59 = vmul.f32 %v8269_v18, %v5021_v47  ;;  %v5050_v12 = vmul.f32 %v8269_v18, %v5022_v42  ;;  %v21569_v10 = vld [vmem:[#allocation6_spill] sm:$0xff]  ;;  %v21570_v51 = vld [vmem:[#allocation7_spill] sm:$0xff] }
 0x872   :  { %v5056_v4 = vmul.f32 %v5054_v41, %v5043_v3  ;;  %v5057_v57 = vmul.f32 %v5054_v41, %v5044_v25  ;;  %v5058_v34 = vmul.f32 %v5054_v41, %v5045_v46  ;;  %v5059_v14 = vmul.f32 %v5054_v41, %v5046_v29  ;;  %v16688_v29 = vpop.permute.xlu1 %5458 }
 0x873   :  { %v5060_v38 = vmul.f32 %v5054_v41, %v5047_v27  ;;  %v5061_v53 = vmul.f32 %v5054_v41, %v5048_v50  ;;  %v5062_v2 = vmul.f32 %v5054_v41, %v5049_v59  ;;  %v5063_v5 = vmul.f32 %v5054_v41, %v5050_v12  ;;  %21573 = vst [vmem:[#allocation107_spill] sm:$0xff] %v16688_v29 }
 0x874   :  { %v5069_v6 = vadd.f32 %v5067_v0, %v5056_v4  ;;  %v5070_v36 = vadd.f32 %v5067_v0, %v5057_v57  ;;  %v5071_v61 = vadd.f32 %v5067_v0, %v5058_v34  ;;  %v5072_v55 = vadd.f32 %v5067_v0, %v5059_v14 }
 0x875   :  { %v5073_v35 = vadd.f32 %v5067_v0, %v5060_v38  ;;  %v5074_v1 = vadd.f32 %v5067_v0, %v5061_v53  ;;  %v5075_v56 = vadd.f32 %v5067_v0, %v5062_v2  ;;  %v5076_v43 = vadd.f32 %v5067_v0, %v5063_v5 }
 0x876   :  { %v5077_v15 = vmax.f32 %v5069_v6, 0.0  ;;  %v5078_v9 = vmax.f32 %v5070_v36, 0.0  ;;  %v5079_v62 = vmax.f32 %v5071_v61, 0.0  ;;  %v5080_v63 = vmax.f32 %v5072_v55, 0.0 }
 0x877   :  { %v5081_v37 = vmax.f32 %v5073_v35, 0.0  ;;  %v5082_v33 = vmax.f32 %v5074_v1, 0.0  ;;  %v5083_v44 = vmax.f32 %v5075_v56, 0.0  ;;  %v5084_v58 = vmax.f32 %v5076_v43, 0.0 }
 0x878   :  { %v16646_v48 = vmin.f32 %v5077_v15, 6.0  ;;  %v16648_v31 = vmin.f32 %v5078_v9, 6.0  ;;  %v16650_v28 = vmin.f32 %v5079_v62, 6.0  ;;  %v16664_v42 = vmin.f32 %v5080_v63, 6.0  ;;  %v5247_v9 = vpop.permute.xlu0 %5246 }
 0x879   :  { %v16666_v23 = vmin.f32 %v5081_v37, 6.0  ;;  %v16694_v50 = vmin.f32 %v5082_v33, 6.0  ;;  %v16696_v59 = vmin.f32 %v5083_v44, 6.0  ;;  %v16710_v34 = vmin.f32 %v5084_v58, 6.0 }
 0x87a   :  { %v5108_v17 = vrot.slane %v16646_v48, %v21569_v10  ;;  %v5112_v22 = vrot.slane %v16648_v31, %v21569_v10  ;;  %v5180_v24 = vrot.slane %v16646_v48, %v21570_v51  ;;  %v5184_v32 = vrot.slane %v16648_v31, %v21570_v51 }
 0x87b   :  { %v5116_v47 = vrot.slane %v16650_v28, %v21569_v10  ;;  %v5188_v11 = vrot.slane %v16650_v28, %v21570_v51  ;;  %v16670_v39 = vrot.slane %v16646_v48, %v21571_v54  ;;  %v16674_v45 = vrot.slane %v16648_v31, %v21571_v54 }
 0x87c   :  { %v5145_v52 = vmul.f32 %v5108_v17, %v16632_v16  ;;  %v5146_v13 = vmul.f32 %v5112_v22, %v16632_v16  ;;  %v5217_v0 = vmul.f32 %v5180_v24, %v16636_v20  ;;  %v5218_v8 = vmul.f32 %v5184_v32, %v16636_v20 }
 0x87d   :  { %v5252_v49 = vrot.slane %v16646_v48, %v21572_v7  ;;  %v5256_v18 = vrot.slane %v16648_v31, %v21572_v7  ;;  %v5147_v3 = vmul.f32 %v5116_v47, %v16632_v16  ;;  %v5219_v25 = vmul.f32 %v5188_v11, %v16636_v20 }
 0x87e   :  { %v5260_v46 = vrot.slane %v16650_v28, %v21572_v7  ;;  %v5264_v41 = vrot.slane %v16664_v42, %v21572_v7  ;;  %v5268_v27 = vrot.slane %v16666_v23, %v21572_v7  ;;  %v16700_v12 = vrot.slane %v16650_v28, %v21571_v54 }
 0x87f   :  { %v16704_v4 = vmul.f32 %v16670_v39, %v16688_v29  ;;  %v16708_v57 = vmul.f32 %v16674_v45, %v16688_v29  ;;  %v5233_v14 = vadd.f32 %v5217_v0, %v5145_v52  ;;  %v5234_v38 = vadd.f32 %v5218_v8, %v5146_v13  ;;  %v21579_v52 = vld [vmem:[#allocation12_spill] sm:$0xff] }
 0x880   :  { %v5281_v6 = vmul.f32 %v5252_v49, %v16638_v60  ;;  %v5282_v36 = vmul.f32 %v5256_v18, %v16638_v60  ;;  %v5235_v61 = vadd.f32 %v5219_v25, %v5147_v3  ;;  %v16715_v55 = vmul.f32 %v5260_v46, %v16638_v60  ;;  %v21580_v3 = vld [vmem:[#allocation10_spill] sm:$0xff] }
 0x881   :  { %21574 = vst [vmem:[#allocation208_spill] sm:$0xff] %v16704_v4  ;;  %21575 = vst [vmem:[#allocation115_spill] sm:$0xff] %v16708_v57  ;;  %v5137_v53 = vmul.f32 %v5108_v17, %v16630_v40  ;;  %v5209_v2 = vmul.f32 %v5180_v24, %v16634_v30  ;;  %v16720_v5 = vmul.f32 %v5264_v41, %v16638_v60  ;;  %v21578_v24 = vld [vmem:[#allocation9_spill] sm:$0xff] }
 0x882   :  { %v16723_v15 = vmul.f32 %v5268_v27, %v16638_v60  ;;  %v5138_v62 = vmul.f32 %v5112_v22, %v16630_v40  ;;  %v5210_v35 = vmul.f32 %v5184_v32, %v16634_v30  ;;  %v5289_v1 = vmul.f32 %v5252_v49, %v5247_v9 }
 0x883   :  { %21576 = vst [vmem:[#allocation202_spill] sm:$0xff] %v16720_v5  ;;  %v5290_v63 = vmul.f32 %v5256_v18, %v5247_v9  ;;  %v5139_v37 = vmul.f32 %v5116_v47, %v16630_v40  ;;  %v5211_v56 = vmul.f32 %v5188_v11, %v16634_v30  ;;  %v5291_v43 = vmul.f32 %v5260_v46, %v5247_v9 }
 0x884   :  { %21577 = vst [vmem:[#allocation116_spill] sm:$0xff] %v16723_v15  ;;  %v16729_v17 = vmul.f32 %v5264_v41, %v5247_v9  ;;  %v16733_v33 = vrot.slane %v16646_v48, %v21578_v24  ;;  %v16737_v44 = vrot.slane %v16648_v31, %v21578_v24  ;;  %v16739_v22 = vmul.f32 %v5268_v27, %v5247_v9 }
 0x885   :  { %v16741_v32 = vadd.f32 %v5289_v1, %v5233_v14  ;;  %v5225_v58 = vadd.f32 %v5209_v2, %v5137_v53  ;;  %v16745_v47 = vrot.slane %v16650_v28, %v21578_v24  ;;  %v16747_v11 = vadd.f32 %v5290_v63, %v5234_v38 }
 0x886   :  { %v16751_v13 = vrot.slane %v16646_v48, %v21579_v52  ;;  %v16755_v0 = vrot.slane %v16648_v31, %v21579_v52  ;;  %v5226_v8 = vadd.f32 %v5210_v35, %v5138_v62  ;;  %v16757_v49 = vadd.f32 %v5291_v43, %v5235_v61  ;;  %v16819_v43 = vpop.permute.xlu0 %5386 }
 0x887   :  { %v5227_v18 = vadd.f32 %v5211_v56, %v5139_v37  ;;  %v16761_v25 = vrot.slane %v16646_v48, %v21580_v3  ;;  %v16765_v46 = vrot.slane %v16648_v31, %v21580_v3  ;;  %v16769_v41 = vmul.f32 %v16733_v33, %v16640_v19 }
 0x888   :  { %v16773_v27 = vmul.f32 %v16737_v44, %v16640_v19  ;;  %v16777_v14 = vrot.slane %v16664_v42, %v21569_v10  ;;  %v16781_v38 = vrot.slane %v16666_v23, %v21569_v10  ;;  %v16783_v61 = vadd.f32 %v5281_v6, %v5225_v58 }
 0x889   :  { %21581 = vst [vmem:[#allocation207_spill] sm:$0xff] %v16769_v41  ;;  %v16787_v53 = vmul.f32 %v16745_v47, %v16640_v19  ;;  %v16791_v2 = vrot.slane %v16694_v50, %v21569_v10  ;;  %v16795_v62 = vrot.slane %v16696_v59, %v21569_v10  ;;  %v16797_v35 = vadd.f32 %v5282_v36, %v5226_v8 }
 0x88a   :  { %21582 = vst [vmem:[#allocation210_spill] sm:$0xff] %v16773_v27  ;;  %21583 = vst [vmem:[#allocation213_spill] sm:$0xff] %v16783_v61  ;;  %v16801_v1 = vrot.slane %v16710_v34, %v21569_v10  ;;  %v5148_v6 = vmul.f32 %v16777_v14, %v16632_v16  ;;  %v5149_v63 = vmul.f32 %v16781_v38, %v16632_v16 }
 0x88b   :  { %21584 = vst [vmem:[#allocation163_spill] sm:$0xff] %v16787_v53  ;;  %21585 = vst [vmem:[#allocation5_spill] sm:$0xff] %v16795_v62  ;;  %v5150_v37 = vmul.f32 %v16791_v2, %v16632_v16  ;;  %v5151_v56 = vmul.f32 %v16795_v62, %v16632_v16  ;;  %v16813_v36 = vrot.slane %v16664_v42, %v21570_v51 }
 0x88c   :  { %21586 = vst [vmem:[#allocation120_spill] sm:$0xff] %v16797_v35  ;;  %21587 = vst [vmem:[#allocation121_spill] sm:$0xff] %v16801_v1  ;;  %v16817_v10 = vrot.slane %v16666_v23, %v21570_v51  ;;  %v5152_v58 = vmul.f32 %v16801_v1, %v16632_v16  ;;  %v16825_v8 = vrot.slane %v16694_v50, %v21570_v51 }
 0x88d   :  { %v16829_v57 = vrot.slane %v16696_v59, %v21570_v51  ;;  %v16833_v4 = vrot.slane %v16710_v34, %v21570_v51  ;;  %v5220_v29 = vmul.f32 %v16813_v36, %v16636_v20  ;;  %v16841_v16 = vrot.slane %v16694_v50, %v21572_v7 }
 0x88e   :  { %21588 = vst [vmem:[#allocation161_spill] sm:$0xff] %v16817_v10  ;;  %21589 = vst [vmem:[#allocation126_spill] sm:$0xff] %v16825_v8  ;;  %v5221_v19 = vmul.f32 %v16817_v10, %v16636_v20  ;;  %v16845_v15 = vrot.slane %v16696_v59, %v21572_v7  ;;  %v5222_v53 = vmul.f32 %v16825_v8, %v16636_v20 }
 0x88f   :  { %21590 = vst [vmem:[#allocation130_spill] sm:$0xff] %v16829_v57  ;;  %v5223_v51 = vmul.f32 %v16829_v57, %v16636_v20  ;;  %v5224_v60 = vmul.f32 %v16833_v4, %v16636_v20  ;;  %v16855_v5 = vrot.slane %v16710_v34, %v21572_v7  ;;  %v16859_v27 = vrot.slane %v16650_v28, %v21580_v3 }
 0x890   :  { %v5236_v35 = vadd.f32 %v5220_v29, %v5148_v6  ;;  %v5237_v41 = vadd.f32 %v5221_v19, %v5149_v63  ;;  %v5295_v61 = vmul.f32 %v16845_v15, %v5247_v9  ;;  %v5238_v1 = vadd.f32 %v5222_v53, %v5150_v37  ;;  %v16875_v19 = vpop.permute.xlu0 %5462 }
 0x891   :  { %v5239_v62 = vadd.f32 %v5223_v51, %v5151_v56  ;;  %v5240_v8 = vadd.f32 %v5224_v60, %v5152_v58  ;;  %v5296_v57 = vmul.f32 %v16855_v5, %v5247_v9  ;;  %v16864_v10 = vadd.f32 %v16715_v55, %v5227_v18 }
 0x892   :  { %v16868_v20 = vrot.slane %v16664_v42, %v21580_v3  ;;  %v5294_v7 = vmul.f32 %v16841_v16, %v5247_v9  ;;  %v16873_v29 = vrot.slane %v16664_v42, %v21578_v24  ;;  %v16879_v60 = vrot.slane %v16666_v23, %v21578_v24 }
 0x893   :  { %v5311_v53 = vadd.f32 %v5295_v61, %v5239_v62  ;;  %v5312_v6 = vadd.f32 %v5296_v57, %v5240_v8  ;;  %v16883_v55 = vrot.slane %v16694_v50, %v21578_v24  ;;  %v16887_v18 = vmul.f32 %v16761_v25, %v16819_v43 }
 0x894   :  { %v5505_v9 = vmul.f32 %v16670_v39, %v16875_v19  ;;  %v16893_v63 = vrot.slane %v16696_v59, %v21578_v24  ;;  %v16897_v57 = vrot.slane %v16710_v34, %v21578_v24  ;;  %v5506_v61 = vmul.f32 %v16674_v45, %v16875_v19 }
 0x895   :  { %v5308_v62 = vadd.f32 %v16729_v17, %v5236_v35  ;;  %v5309_v37 = vadd.f32 %v16739_v22, %v5237_v41  ;;  %v5310_v56 = vadd.f32 %v5294_v7, %v5238_v1  ;;  %v5361_v58 = vmul.f32 %v16733_v33, %v16642_v26 }
 0x896   :  { %21591 = vst [vmem:[#allocation146_spill] sm:$0xff] %v16897_v57  ;;  %v5362_v39 = vmul.f32 %v16737_v44, %v16642_v26  ;;  %v5367_v8 = vmul.f32 %v16893_v63, %v16642_v26  ;;  %v5368_v24 = vmul.f32 %v16897_v57, %v16642_v26  ;;  %v5363_v45 = vmul.f32 %v16745_v47, %v16642_v26 }
 0x897   :  { %v5364_v17 = vmul.f32 %v16873_v29, %v16642_v26  ;;  %v5365_v22 = vmul.f32 %v16879_v60, %v16642_v26  ;;  %v5366_v33 = vmul.f32 %v16883_v55, %v16642_v26  ;;  %v5377_v44 = vadd.f32 %v5361_v58, %v16741_v32  ;;  %v16934_v26 = vpop.permute.xlu1 %5530 }
 0x898   :  { %v5383_v41 = vadd.f32 %v5367_v8, %v5311_v53  ;;  %v5384_v35 = vadd.f32 %v5368_v24, %v5312_v6  ;;  %v16922_v1 = vrot.slane %v16666_v23, %v21580_v3  ;;  %v5378_v51 = vadd.f32 %v5362_v39, %v16747_v11 }
 0x899   :  { %v5379_v47 = vadd.f32 %v5363_v45, %v16757_v49  ;;  %v16928_v7 = vrot.slane %v16696_v59, %v21580_v3  ;;  %v16932_v57 = vrot.slane %v16710_v34, %v21580_v3  ;;  %v5380_v32 = vadd.f32 %v5364_v17, %v5308_v62 }
 0x89a   :  { %v5381_v53 = vadd.f32 %v5365_v22, %v5309_v37  ;;  %v16938_v6 = vrot.slane %v16694_v50, %v21580_v3  ;;  %v5433_v11 = vmul.f32 %v16761_v25, %v16644_v21  ;;  %v5382_v49 = vadd.f32 %v5366_v33, %v5310_v56 }
 0x89b   :  { %21592 = vst [vmem:[#allocation132_spill] sm:$0xff] %v16928_v7  ;;  %21593 = vst [vmem:[#allocation135_spill] sm:$0xff] %v16932_v57  ;;  %v5434_v58 = vmul.f32 %v16765_v46, %v16644_v21  ;;  %v5439_v39 = vmul.f32 %v16928_v7, %v16644_v21  ;;  %v5440_v8 = vmul.f32 %v16932_v57, %v16644_v21 }
 0x89c   :  { %v5435_v62 = vmul.f32 %v16859_v27, %v16644_v21  ;;  %v5436_v3 = vmul.f32 %v16868_v20, %v16644_v21  ;;  %v5437_v37 = vmul.f32 %v16922_v1, %v16644_v21  ;;  %v5449_v25 = vadd.f32 %v5433_v11, %v5377_v44 }
 0x89d   :  { %v5455_v56 = vadd.f32 %v5439_v39, %v5383_v41  ;;  %v5456_v24 = vadd.f32 %v5440_v8, %v5384_v35  ;;  %v16956_v45 = vrot.slane %v16664_v42, %v21571_v54  ;;  %v16960_v17 = vrot.slane %v16666_v23, %v21571_v54  ;;  %v5535_v8 = vpop.permute.xlu1 %5534 }
 0x89e   :  { %v5438_v22 = vmul.f32 %v16938_v6, %v16644_v21  ;;  %v5450_v33 = vadd.f32 %v5434_v58, %v5378_v51  ;;  %v16966_v57 = vrot.slane %v16696_v59, %v21571_v54  ;;  %v16970_v44 = vrot.slane %v16710_v34, %v21571_v54 }
 0x89f   :  { %21594 = vst [vmem:[#allocation143_spill] sm:$0xff] %v16956_v45  ;;  %21595 = vst [vmem:[#allocation144_spill] sm:$0xff] %v16960_v17  ;;  %v5451_v41 = vadd.f32 %v5435_v62, %v5379_v47  ;;  %v5452_v35 = vadd.f32 %v5436_v3, %v5380_v32  ;;  %v5453_v11 = vadd.f32 %v5437_v37, %v5381_v53 }
 0x8a0   :  { %21596 = vst [vmem:[#allocation149_spill] sm:$0xff] %v16966_v57  ;;  %21597 = vst [vmem:[#allocation145_spill] sm:$0xff] %v16970_v44  ;;  %v16974_v39 = vrot.slane %v16694_v50, %v21571_v54  ;;  %v5454_v7 = vadd.f32 %v5438_v22, %v5382_v49  ;;  %v5507_v21 = vmul.f32 %v16700_v12, %v16875_v19 }
 0x8a1   :  { %v5511_v51 = vmul.f32 %v16966_v57, %v16875_v19  ;;  %v5512_v58 = vmul.f32 %v16970_v44, %v16875_v19  ;;  %v5508_v47 = vmul.f32 %v16956_v45, %v16875_v19  ;;  %v5509_v32 = vmul.f32 %v16960_v17, %v16875_v19 }
 0x8a2   :  { %21598 = vst [vmem:[#allocation170_spill] sm:$0xff] %v16974_v39  ;;  %v5521_v53 = vadd.f32 %v5505_v9, %v5449_v25  ;;  %v16988_v54 = vrot.slane %v16650_v28, %v21579_v52  ;;  %v16992_v3 = vrot.slane %v16664_v42, %v21579_v52  ;;  %v16996_v37 = vrot.slane %v16666_v23, %v21579_v52 }
 0x8a3   :  { %v5527_v49 = vadd.f32 %v5511_v51, %v5455_v56  ;;  %v5528_v62 = vadd.f32 %v5512_v58, %v5456_v24  ;;  %v5510_v22 = vmul.f32 %v16974_v39, %v16875_v19  ;;  %v5522_v44 = vadd.f32 %v5506_v61, %v5450_v33  ;;  %v5607_v33 = vpop.permute.xlu1 %5606 }
 0x8a4   :  { %v17002_v9 = vrot.slane %v16696_v59, %v21579_v52  ;;  %v17006_v25 = vrot.slane %v16710_v34, %v21579_v52  ;;  %v5523_v56 = vadd.f32 %v5507_v21, %v5451_v41  ;;  %v5524_v24 = vadd.f32 %v5508_v47, %v5452_v35  ;;  %v21601_v47 = vld [vmem:[#allocation13_spill] sm:$0xff] }
 0x8a5   :  { %v5525_v51 = vadd.f32 %v5509_v32, %v5453_v11  ;;  %v17010_v58 = vrot.slane %v16694_v50, %v21579_v52  ;;  %v5526_v57 = vadd.f32 %v5510_v22, %v5454_v7  ;;  %v5577_v17 = vmul.f32 %v16751_v13, %v5535_v8 }
 0x8a6   :  { %21599 = vst [vmem:[#allocation172_spill] sm:$0xff] %v17002_v9  ;;  %21600 = vst [vmem:[#allocation221_spill] sm:$0xff] %v17006_v25  ;;  %v5583_v19 = vmul.f32 %v17002_v9, %v5535_v8  ;;  %v5584_v61 = vmul.f32 %v17006_v25, %v5535_v8  ;;  %v5578_v39 = vmul.f32 %v16755_v0, %v5535_v8 }
 0x8a7   :  { %v5579_v45 = vmul.f32 %v16988_v54, %v5535_v8  ;;  %v5580_v41 = vmul.f32 %v16992_v3, %v5535_v8  ;;  %v5581_v35 = vmul.f32 %v16996_v37, %v5535_v8  ;;  %v5593_v11 = vadd.f32 %v5577_v17, %v5521_v53 }
 0x8a8   :  { %v5599_v21 = vadd.f32 %v5583_v19, %v5527_v49  ;;  %v5600_v52 = vadd.f32 %v5584_v61, %v5528_v62  ;;  %v17021_v7 = vrot.slane %v16646_v48, %v21601_v47  ;;  %v5582_v32 = vmul.f32 %v17010_v58, %v5535_v8 }
 0x8a9   :  { %v5594_v22 = vadd.f32 %v5578_v39, %v5522_v44  ;;  %v17026_v25 = vrot.slane %v16648_v31, %v21601_v47  ;;  %v17030_v9 = vrot.slane %v16650_v28, %v21601_v47  ;;  %v17034_v17 = vrot.slane %v16664_v42, %v21601_v47 }
 0x8aa   :  { %v17038_v53 = vrot.slane %v16696_v59, %v21601_v47  ;;  %v17042_v48 = vrot.slane %v16710_v34, %v21601_v47  ;;  %v5649_v44 = vmul.f32 %v17021_v7, %v5607_v33  ;;  %v5595_v31 = vadd.f32 %v5579_v45, %v5523_v56 }
 0x8ab   :  { %v5596_v39 = vadd.f32 %v5580_v41, %v5524_v24  ;;  %v5597_v8 = vadd.f32 %v5581_v35, %v5525_v51  ;;  %v5650_v28 = vmul.f32 %v17026_v25, %v5607_v33  ;;  %v17048_v49 = vrot.slane %v16666_v23, %v21601_v47 }
 0x8ac   :  { %21602 = vst [vmem:[#allocation14_spill] sm:$0xff] %v17042_v48  ;;  %v5655_v42 = vmul.f32 %v17038_v53, %v5607_v33  ;;  %v5656_v59 = vmul.f32 %v17042_v48, %v5607_v33  ;;  %v17052_v62 = vadd.f32 %v5649_v44, %v5593_v11  ;;  %v5598_v19 = vadd.f32 %v5582_v32, %v5526_v57 }
 0x8ad   :  { %v17056_v34 = vrot.slane %v16694_v50, %v21601_v47  ;;  %v5651_v45 = vmul.f32 %v17030_v9, %v5607_v33  ;;  %v17059_v56 = vadd.f32 %v5650_v28, %v5594_v22  ;;  %v5652_v24 = vmul.f32 %v17034_v17, %v5607_v33 }
 0x8ae   :  { %21603 = vst [vmem:[#allocation231_spill] sm:$0xff] %v17052_v62  ;;  %v17062_v51 = vadd.f32 %v5655_v42, %v5599_v21  ;;  %v17064_v23 = vadd.f32 %v5656_v59, %v5600_v52  ;;  %v5140_v61 = vmul.f32 %v16777_v14, %v16630_v40  ;;  %v5141_v50 = vmul.f32 %v16781_v38, %v16630_v40  ;;  %v21606_v52 = vld [vmem:[#allocation161_spill] sm:$0xff]  ;;  %v21607_v14 = vld [vmem:[#allocation126_spill] sm:$0xff] }
 0x8af   :  { %21604 = vst [vmem:[#allocation232_spill] sm:$0xff] %v17059_v56  ;;  %v17068_v41 = vadd.f32 %v5651_v45, %v5595_v31  ;;  %v5686_v57 = vadd.f32 %v17059_v56, %v17052_v62  ;;  %v5142_v35 = vmul.f32 %v16791_v2, %v16630_v40  ;;  %v5653_v11 = vmul.f32 %v17048_v49, %v5607_v33  ;;  %v21608_v38 = vld [vmem:[#allocation5_spill] sm:$0xff]  ;;  %v21609_v2 = vld [vmem:[#allocation130_spill] sm:$0xff]  ;;  %v21613_v62 = vld [vmem:[#allocation120_spill] sm:$0xff] }
 0x8b0   :  { %v5212_v21 = vmul.f32 %v16813_v36, %v16634_v30  ;;  %v5213_v47 = vmul.f32 %v21606_v52, %v16634_v30  ;;  %v5214_v32 = vmul.f32 %v21607_v14, %v16634_v30  ;;  %v17083_v22 = vadd.f32 %v5652_v24, %v5596_v39  ;;  %v21610_v14 = vld [vmem:[#allocation121_spill] sm:$0xff] }
 0x8b1   :  { %21605 = vst [vmem:[#allocation233_spill] sm:$0xff] %v17068_v41  ;;  %v5687_v44 = vadd.f32 %v5686_v57, %v17068_v41  ;;  %v5143_v31 = vmul.f32 %v21608_v38, %v16630_v40  ;;  %v5215_v28 = vmul.f32 %v21609_v2, %v16634_v30  ;;  %v5654_v42 = vmul.f32 %v17056_v34, %v5607_v33  ;;  %v21611_v41 = vld [vmem:[#allocation213_spill] sm:$0xff]  ;;  %v21612_v38 = vld [vmem:[#allocation207_spill] sm:$0xff]  ;;  %v21614_v2 = vld [vmem:[#allocation210_spill] sm:$0xff] }
 0x8b2   :  { %v17091_v59 = vadd.f32 %v5653_v11, %v5597_v8  ;;  %v5228_v36 = vadd.f32 %v5212_v21, %v5140_v61  ;;  %v5229_v45 = vadd.f32 %v5213_v47, %v5141_v50  ;;  %v5144_v39 = vmul.f32 %v21610_v14, %v16630_v40  ;;  %v21615_v8 = vld [vmem:[#allocation202_spill] sm:$0xff]  ;;  %v21616_v21 = vld [vmem:[#allocation119_spill] sm:$0xff] }
 0x8b3   :  { %v5688_v52 = vadd.f32 %v5687_v44, %v17083_v22  ;;  %v5216_v24 = vmul.f32 %v16833_v4, %v16634_v30  ;;  %v5230_v57 = vadd.f32 %v5214_v32, %v5142_v35  ;;  %v5369_v56 = vadd.f32 %v21612_v38, %v21611_v41  ;;  %v21617_v4 = vld [vmem:[#allocation163_spill] sm:$0xff] }
 0x8b4   :  { %v5370_v48 = vadd.f32 %v21614_v2, %v21613_v62  ;;  %v5426_v33 = vmul.f32 %v16765_v46, %v16819_v43  ;;  %v5300_v61 = vadd.f32 %v21615_v8, %v5228_v36  ;;  %v17105_v50 = vadd.f32 %v5654_v42, %v5598_v19  ;;  %v21618_v62 = vld [vmem:[#allocation116_spill] sm:$0xff]  ;;  %v21619_v32 = vld [vmem:[#allocation103_spill] sm:$0xff]  ;;  %v21623_v8 = vld [vmem:[#allocation146_spill] sm:$0xff] }
 0x8b5   :  { %v5689_v11 = vadd.f32 %v5688_v52, %v17091_v59  ;;  %v5231_v40 = vadd.f32 %v5215_v28, %v5143_v31  ;;  %v5286_v30 = vmul.f32 %v16841_v16, %v21616_v21  ;;  %v5371_v35 = vadd.f32 %v21617_v4, %v16864_v10  ;;  %v21620_v14 = vld [vmem:[#allocation107_spill] sm:$0xff] }
 0x8b6   :  { %v5427_v41 = vmul.f32 %v16859_v27, %v16819_v43  ;;  %v5301_v47 = vadd.f32 %v21618_v62, %v5229_v45  ;;  %v5356_v46 = vmul.f32 %v16873_v29, %v21619_v32  ;;  %v5232_v44 = vadd.f32 %v5216_v24, %v5144_v39 }
 0x8b7   :  { %v5690_v19 = vadd.f32 %v5689_v11, %v17105_v50  ;;  %v5287_v31 = vmul.f32 %v16845_v15, %v21616_v21  ;;  %v5302_v28 = vadd.f32 %v5286_v30, %v5230_v57  ;;  %v5441_v16 = vadd.f32 %v16887_v18, %v5369_v56  ;;  %v21624_v30 = vld [vmem:[#allocation143_spill] sm:$0xff] }
 0x8b8   :  { %v5442_v42 = vadd.f32 %v5426_v33, %v5370_v48  ;;  %v5357_v10 = vmul.f32 %v16879_v60, %v21619_v32  ;;  %v5372_v36 = vadd.f32 %v5356_v46, %v5300_v61  ;;  %v5288_v45 = vmul.f32 %v16855_v5, %v21616_v21  ;;  %v21622_v33 = vld [vmem:[#allocation115_spill] sm:$0xff] }
 0x8b9   :  { %v5691_v27 = vadd.f32 %v5690_v19, %v17062_v51  ;;  %v5303_v29 = vadd.f32 %v5287_v31, %v5231_v40  ;;  %v5358_v52 = vmul.f32 %v16883_v55, %v21619_v32  ;;  %v5499_v15 = vmul.f32 %v16700_v12, %v21620_v14  ;;  %v21621_v55 = vld [vmem:[#allocation208_spill] sm:$0xff]  ;;  %v21627_v31 = vld [vmem:[#allocation135_spill] sm:$0xff] }
 0x8ba   :  { %v5428_v18 = vmul.f32 %v16868_v20, %v16819_v43  ;;  %v5443_v48 = vadd.f32 %v5427_v41, %v5371_v35  ;;  %v5373_v56 = vadd.f32 %v5357_v10, %v5301_v47  ;;  %v5304_v39 = vadd.f32 %v5288_v45, %v5232_v44 }
 0x8bb   :  { %v5692_v60 = vadd.f32 %v5691_v27, %v17064_v23  ;;  %v5359_v24 = vmul.f32 %v16893_v63, %v21619_v32  ;;  %v5374_v57 = vadd.f32 %v5358_v52, %v5302_v28  ;;  %v5429_v5 = vmul.f32 %v16922_v1, %v16819_v43  ;;  %v5603_v1 = vpop.permute.xlu0 %5602 }
 0x8bc   :  { %v5444_v38 = vadd.f32 %v5428_v18, %v5372_v36  ;;  %v5513_v2 = vadd.f32 %v21621_v55, %v5441_v16  ;;  %v5514_v12 = vadd.f32 %v21622_v33, %v5442_v42  ;;  %v5569_v20 = vmul.f32 %v16751_v13, %v16934_v26  ;;  %v21625_v13 = vld [vmem:[#allocation132_spill] sm:$0xff]  ;;  %v21628_v42 = vld [vmem:[#allocation170_spill] sm:$0xff] }
 0x8bd   :  { %5693 = vadd.xlane.f32.xlu0 %v5692_v60  ;;  %v5360_v61 = vmul.f32 %v21623_v8, %v21619_v32  ;;  %v5375_v11 = vadd.f32 %v5359_v24, %v5303_v29  ;;  %v5430_v63 = vmul.f32 %v16938_v6, %v16819_v43  ;;  %v5570_v40 = vmul.f32 %v16755_v0, %v16934_v26  ;;  %v21626_v32 = vld [vmem:[#allocation144_spill] sm:$0xff] }
 0x8be   :  { %v5445_v21 = vadd.f32 %v5429_v5, %v5373_v56  ;;  %v5500_v4 = vmul.f32 %v21624_v30, %v21620_v14  ;;  %v5515_v35 = vadd.f32 %v5499_v15, %v5443_v48  ;;  %v5431_v62 = vmul.f32 %v21625_v13, %v16819_v43  ;;  %v21631_v33 = vld [vmem:[#allocation172_spill] sm:$0xff] }
 0x8bf   :  { %v5376_v41 = vadd.f32 %v5360_v61, %v5304_v39  ;;  %v5446_v47 = vadd.f32 %v5430_v63, %v5374_v57  ;;  %v5585_v46 = vadd.f32 %v5569_v20, %v5513_v2  ;;  %v5501_v19 = vmul.f32 %v21626_v32, %v21620_v14  ;;  %v21632_v61 = vld [vmem:[#allocation221_spill] sm:$0xff] }
 0x8c0   :  { %v5516_v44 = vadd.f32 %v5500_v4, %v5444_v38  ;;  %v5571_v6 = vmul.f32 %v16988_v54, %v16934_v26  ;;  %v5586_v0 = vadd.f32 %v5570_v40, %v5514_v12  ;;  %v5432_v28 = vmul.f32 %v21627_v31, %v16819_v43  ;;  %v21629_v54 = vld [vmem:[#allocation149_spill] sm:$0xff] }
 0x8c1   :  { %v5447_v16 = vadd.f32 %v5431_v62, %v5375_v11  ;;  %v5502_v10 = vmul.f32 %v21628_v42, %v21620_v14  ;;  %v5641_v36 = vmul.f32 %v17021_v7, %v5603_v1  ;;  %v5517_v27 = vadd.f32 %v5501_v19, %v5445_v21  ;;  %v21636_v31 = vld [vmem:[#allocation233_spill] sm:$0xff] }
 0x8c2   :  { %v5572_v45 = vmul.f32 %v16992_v3, %v16934_v26  ;;  %v5587_v29 = vadd.f32 %v5571_v6, %v5515_v35  ;;  %v5642_v52 = vmul.f32 %v17026_v25, %v5603_v1  ;;  %v5448_v15 = vadd.f32 %v5432_v28, %v5376_v41  ;;  %v21630_v3 = vld [vmem:[#allocation145_spill] sm:$0xff]  ;;  %v21633_v41 = vld [vmem:[#allocation14_spill] sm:$0xff]  ;;  %v21635_v6 = vld [vmem:[#allocation232_spill] sm:$0xff] }
 0x8c3   :  { %v5503_v18 = vmul.f32 %v21629_v54, %v21620_v14  ;;  %v5518_v48 = vadd.f32 %v5502_v10, %v5446_v47  ;;  %v17165_v56 = vadd.f32 %v5641_v36, %v5585_v46  ;;  %v5573_v43 = vmul.f32 %v16996_v37, %v16934_v26 }
 0x8c4   :  { %v5588_v60 = vadd.f32 %v5572_v45, %v5516_v44  ;;  %v5643_v7 = vmul.f32 %v17030_v9, %v5603_v1  ;;  %v17170_v39 = vadd.f32 %v5642_v52, %v5586_v0  ;;  %v5504_v24 = vmul.f32 %v21630_v3, %v21620_v14  ;;  %v21634_v44 = vld [vmem:[#allocation231_spill] sm:$0xff] }
 0x8c5   :  { %v5519_v57 = vadd.f32 %v5503_v18, %v5447_v16  ;;  %v5574_v25 = vmul.f32 %v17010_v58, %v16934_v26  ;;  %v5589_v5 = vadd.f32 %v5573_v43, %v5517_v27  ;;  %v5644_v38 = vmul.f32 %v17034_v17, %v5603_v1 }
 0x8c6   :  { %v5659_v55 = vadd.f32 %v5643_v7, %v5587_v29  ;;  %v5677_v2 = vadd.f32 %v17170_v39, %v17165_v56  ;;  %v5520_v37 = vadd.f32 %v5504_v24, %v5448_v15  ;;  %v5575_v9 = vmul.f32 %v21631_v33, %v16934_v26 }
 0x8c7   :  { %v5590_v12 = vadd.f32 %v5574_v25, %v5518_v48  ;;  %v5645_v20 = vmul.f32 %v17048_v49, %v5603_v1  ;;  %v5660_v8 = vadd.f32 %v5644_v38, %v5588_v60  ;;  %v5576_v11 = vmul.f32 %v21632_v61, %v16934_v26  ;;  %v5674_v26 = vld [vmem:[%s17280_s9 + $0x8] sm:$0xff] }
 0x8c8   :  { %v5678_v14 = vadd.f32 %v5677_v2, %v5659_v55  ;;  %v5591_v58 = vadd.f32 %v5575_v9, %v5519_v57  ;;  %v5646_v63 = vmul.f32 %v17056_v34, %v5603_v1  ;;  %v5647_v30 = vmul.f32 %v17038_v53, %v5603_v1  ;;  %v5675_v34 = vld [vmem:[%s17281_s10] sm:$0xff]  ;;  %v5676_v61 = vld [vmem:[%s17281_s10 + $0x8] sm:$0xff] }
 0x8c9   :  { %v5661_v17 = vadd.f32 %v5645_v20, %v5589_v5  ;;  %v5592_v21 = vadd.f32 %v5576_v11, %v5520_v37  ;;  %v5648_v13 = vmul.f32 %v21633_v41, %v5603_v1 }
 0x8ca   :  { %v5679_v40 = vadd.f32 %v5678_v14, %v5660_v8  ;;  %v5662_v4 = vadd.f32 %v5646_v63, %v5590_v12  ;;  %v5663_v62 = vadd.f32 %v5647_v30, %v5591_v58 }
 0x8cb   :  { %v5664_v49 = vadd.f32 %v5648_v13, %v5592_v21 }
 0x8cc   :  { %v5680_v35 = vadd.f32 %v5679_v40, %v5661_v17 }
 0x8ce   :  { %v5681_v47 = vadd.f32 %v5680_v35, %v5662_v4  ;;  %v5673_v35 = vld [vmem:[%s17280_s9] sm:$0xff]  ;;  %s8315_s9 = smov [#allocation2]  }
 0x8cf   :  { %s5858_s10 = sshll.u32 %s8315_s9, 4  ;;  %s5859_s10 = int_to_ptr.vmem [resolvable:$true] %s5858_s10 }
 0x8d0   :  { %v5682_v46 = vadd.f32 %v5681_v47, %v5663_v62  ;;  %s8276_s27 = scalar_lea.vmem %s5859_s10, 2048  ;;  %p8281_p1 = scmp.lt.s32.totalorder %s5859_s10, %s5859_s10 }
 0x8d1   :  { %p8277_p0 = scmp.ne.s32.totalorder %s5859_s10, %s8276_s27  ;;  %p8282_p2 = scmp.lt.s32.totalorder %s8276_s27, %s8276_s27 }
 0x8d2   :  { %v5683_v32 = vadd.f32 %v5682_v46, %v5664_v49 }
 0x8d3   :  { %p8283_p3 = por %p8282_p2, %p8281_p1 }
 0x8d4   :  { %5684 = vadd.xlane.f32.xlu1 %v5683_v32 }
 0x8d5   :  { %p8284_p4 = pnand %p8283_p3, %p8277_p0 }
 0x8e5   :  { %5776 = vperm.xlu1 %8265, %v5674_v26  }
 0x8e9   :  { %5797 = vperm.xlu1 %8265, %v5675_v34  }
 0x94a   :  { %v5694_v53 = vpop.xlane.xlu0 %5693 }
 0x94b   :  { %v5696_v19 = vmul.f32 0.0009765625, %v5694_v53 }
 0x94d   :  { %v5705_v1 = vsub.f32 %v21634_v44, %v5696_v19  ;;  %v5706_v0 = vsub.f32 %v21635_v6, %v5696_v19  ;;  %v5707_v28 = vsub.f32 %v21636_v31, %v5696_v19  ;;  %v5708_v16 = vsub.f32 %v17083_v22, %v5696_v19 }
 0x94e   :  { %v5709_v36 = vsub.f32 %v17091_v59, %v5696_v19  ;;  %v5710_v29 = vsub.f32 %v17105_v50, %v5696_v19  ;;  %v5711_v54 = vsub.f32 %v17062_v51, %v5696_v19  ;;  %v5712_v43 = vsub.f32 %v17064_v23, %v5696_v19 }
 0x94f   :  { %v5721_v42 = vmul.f32 %v5705_v1, %v5705_v1  ;;  %v5722_v10 = vmul.f32 %v5706_v0, %v5706_v0  ;;  %v5723_v27 = vmul.f32 %v5707_v28, %v5707_v28  ;;  %v5724_v52 = vmul.f32 %v5708_v16, %v5708_v16 }
 0x950   :  { %v5725_v18 = vmul.f32 %v5709_v36, %v5709_v36  ;;  %v5726_v60 = vmul.f32 %v5710_v29, %v5710_v29  ;;  %v5727_v3 = vmul.f32 %v5711_v54, %v5711_v54  ;;  %v5728_v24 = vmul.f32 %v5712_v43, %v5712_v43 }
 0x951   :  { %v5738_v45 = vadd.f32 %v5722_v10, %v5721_v42 }
 0x953   :  { %v5739_v15 = vadd.f32 %v5738_v45, %v5723_v27 }
 0x955   :  { %v5740_v48 = vadd.f32 %v5739_v15, %v5724_v52 }
 0x957   :  { %v5741_v7 = vadd.f32 %v5740_v48, %v5725_v18 }
 0x959   :  { %v5742_v22 = vadd.f32 %v5741_v7, %v5726_v60 }
 0x95b   :  { %v5743_v57 = vadd.f32 %v5742_v22, %v5727_v3 }
 0x95d   :  { %v5744_v25 = vadd.f32 %v5743_v57, %v5728_v24 }
 0x95f   :  { %5745 = vadd.xlane.f32.xlu1 %v5744_v25 }
 0x961   :  { %v5685_v59 = vpop.xlane.xlu1 %5684 }
 0x962   :  { %v5695_v5 = vmul.f32 0.0009765625, %v5685_v59 }
 0x964   :  { %v17202_v50 = vsub.f32 %v17165_v56, %v5695_v5  ;;  %v17205_v38 = vsub.f32 %v17170_v39, %v5695_v5  ;;  %v17207_v51 = vsub.f32 %v5659_v55, %v5695_v5  ;;  %v17209_v2 = vsub.f32 %v5660_v8, %v5695_v5 }
 0x965   :  { %v17215_v33 = vsub.f32 %v5661_v17, %v5695_v5  ;;  %v17219_v12 = vsub.f32 %v5662_v4, %v5695_v5  ;;  %v17223_v20 = vsub.f32 %v5663_v62, %v5695_v5  ;;  %v17230_v11 = vsub.f32 %v5664_v49, %v5695_v5  ;;  %v5777_v41 = vpop.permute.xlu1 %5776 }
 0x966   :  { %v5713_v23 = vmul.f32 %v17202_v50, %v17202_v50  ;;  %v5714_v37 = vmul.f32 %v17205_v38, %v17205_v38  ;;  %v5715_v9 = vmul.f32 %v17207_v51, %v17207_v51  ;;  %v5716_v39 = vmul.f32 %v17209_v2, %v17209_v2 }
 0x967   :  { %v5717_v8 = vmul.f32 %v17215_v33, %v17215_v33  ;;  %v5718_v58 = vmul.f32 %v17219_v12, %v17219_v12  ;;  %v5719_v17 = vmul.f32 %v17223_v20, %v17223_v20  ;;  %v5720_v21 = vmul.f32 %v17230_v11, %v17230_v11 }
 0x968   :  { %v5729_v56 = vadd.f32 %v5714_v37, %v5713_v23 }
 0x969   :  { %v17241_v13 = vpop.permute.xlu1 %5797 }
 0x96a   :  { %v5730_v55 = vadd.f32 %v5729_v56, %v5715_v9 }
 0x96c   :  { %v5731_v14 = vadd.f32 %v5730_v55, %v5716_v39 }
 0x96e   :  { %v5732_v63 = vadd.f32 %v5731_v14, %v5717_v8 }
 0x970   :  { %v5733_v40 = vadd.f32 %v5732_v63, %v5718_v58  ;;  %5802 = vperm.xlu1 %8265, %v5676_v61  }
 0x972   :  { %v5734_v30 = vadd.f32 %v5733_v40, %v5719_v17 }
 0x974   :  { %v5735_v4 = vadd.f32 %v5734_v30, %v5720_v21 }
 0x976   :  { %5736 = vadd.xlane.f32.xlu0 %v5735_v4 }
 0x98c   :  { %5771 = vperm.xlu0 %8264, %v5673_v35  }
 0x9ec   :  { %v5746_v62 = vpop.xlane.xlu1 %5745 }
 0x9ed   :  { %v5748_v47 = vmul.f32 0.0009765625, %v5746_v62 }
 0x9ef   :  { %v5750_v49 = vadd.f32 1e-05, %v5748_v47 }
 0x9f0   :  { %v5803_v60 = vpop.permute.xlu1 %5802 }
 0x9f1   :  { %8270 = vrsqrt.f32 %v5750_v49 }
 0x9fb   :  { %v8271_v46 = vpop.eup %8270 }
 0x9fc   :  { %v5761_v32 = vmul.f32 %v8271_v46, %v5705_v1  ;;  %v5762_v26 = vmul.f32 %v8271_v46, %v5706_v0  ;;  %v5763_v34 = vmul.f32 %v8271_v46, %v5707_v28  ;;  %v5764_v53 = vmul.f32 %v8271_v46, %v5708_v16 }
 0x9fd   :  { %v5765_v19 = vmul.f32 %v8271_v46, %v5709_v36  ;;  %v5766_v44 = vmul.f32 %v8271_v46, %v5710_v29  ;;  %v5767_v6 = vmul.f32 %v8271_v46, %v5711_v54  ;;  %v5768_v31 = vmul.f32 %v8271_v46, %v5712_v43 }
 0x9fe   :  { %v5787_v42 = vmul.f32 %v5777_v41, %v5761_v32  ;;  %v5788_v10 = vmul.f32 %v5777_v41, %v5762_v26  ;;  %v5789_v27 = vmul.f32 %v5777_v41, %v5763_v34  ;;  %v5790_v45 = vmul.f32 %v5777_v41, %v5764_v53 }
 0x9ff   :  { %v5791_v52 = vmul.f32 %v5777_v41, %v5765_v19  ;;  %v5792_v15 = vmul.f32 %v5777_v41, %v5766_v44  ;;  %v5793_v18 = vmul.f32 %v5777_v41, %v5767_v6  ;;  %v5794_v48 = vmul.f32 %v5777_v41, %v5768_v31 }
 0xa00   :  { %v5813_v7 = vadd.f32 %v5803_v60, %v5787_v42  ;;  %v5814_v3 = vadd.f32 %v5803_v60, %v5788_v10  ;;  %v5815_v22 = vadd.f32 %v5803_v60, %v5789_v27  ;;  %v5816_v1 = vadd.f32 %v5803_v60, %v5790_v45 }
 0xa01   :  { %v5817_v0 = vadd.f32 %v5803_v60, %v5791_v52  ;;  %v5818_v28 = vadd.f32 %v5803_v60, %v5792_v15  ;;  %v5819_v16 = vadd.f32 %v5803_v60, %v5793_v18  ;;  %v5820_v36 = vadd.f32 %v5803_v60, %v5794_v48 }
 0xa02   :  { %v5829_v29 = vmax.f32 %v5813_v7, 0.0  ;;  %v5830_v54 = vmax.f32 %v5814_v3, 0.0  ;;  %v5831_v43 = vmax.f32 %v5815_v22, 0.0  ;;  %v5832_v24 = vmax.f32 %v5816_v1, 0.0 }
 0xa03   :  { %v5737_v57 = vpop.xlane.xlu0 %5736  ;;  %v5833_v25 = vmax.f32 %v5817_v0, 0.0  ;;  %v5834_v59 = vmax.f32 %v5818_v28, 0.0  ;;  %v5835_v5 = vmax.f32 %v5819_v16, 0.0  ;;  %v5836_v23 = vmax.f32 %v5820_v36, 0.0 }
 0xa04   :  { %v5747_v37 = vmul.f32 0.0009765625, %v5737_v57  ;;  %5845 = vst [vmem:[#allocation2 + $0x40] sm:$0xff] %v5829_v29  ;;  %5846 = vst [vmem:[#allocation2 + $0x48] sm:$0xff] %v5830_v54 }
 0xa05   :  { %5847 = vst [vmem:[#allocation2 + $0x50] sm:$0xff] %v5831_v43  ;;  %5848 = vst [vmem:[#allocation2 + $0x58] sm:$0xff] %v5832_v24 }
 0xa06   :  { %5849 = vst [vmem:[#allocation2 + $0x60] sm:$0xff] %v5833_v25  ;;  %5850 = vst [vmem:[#allocation2 + $0x68] sm:$0xff] %v5834_v59  ;;  %v5749_v9 = vadd.f32 1e-05, %v5747_v37 }
 0xa07   :  { %5851 = vst [vmem:[#allocation2 + $0x70] sm:$0xff] %v5835_v5  ;;  %5852 = vst [vmem:[#allocation2 + $0x78] sm:$0xff] %v5836_v23 }
 0xa08   :  { %8272 = vrsqrt.f32 %v5749_v9 }
 0xa0b   :  { %v5772_v39 = vpop.permute.xlu0 %5771 }
 0xa12   :  { %v8273_v56 = vpop.eup %8272 }
 0xa13   :  { %v5753_v55 = vmul.f32 %v8273_v56, %v17202_v50  ;;  %v5754_v8 = vmul.f32 %v8273_v56, %v17205_v38  ;;  %v5755_v14 = vmul.f32 %v8273_v56, %v17207_v51  ;;  %v5756_v61 = vmul.f32 %v8273_v56, %v17209_v2 }
 0xa14   :  { %v5757_v58 = vmul.f32 %v8273_v56, %v17215_v33  ;;  %v5758_v63 = vmul.f32 %v8273_v56, %v17219_v12  ;;  %v5759_v17 = vmul.f32 %v8273_v56, %v17223_v20  ;;  %v5760_v40 = vmul.f32 %v8273_v56, %v17230_v11 }
 0xa15   :  { %v5779_v21 = vmul.f32 %v5772_v39, %v5753_v55  ;;  %v5780_v30 = vmul.f32 %v5772_v39, %v5754_v8  ;;  %v5781_v4 = vmul.f32 %v5772_v39, %v5755_v14  ;;  %v5782_v35 = vmul.f32 %v5772_v39, %v5756_v61 }
 0xa16   :  { %v5783_v41 = vmul.f32 %v5772_v39, %v5757_v58  ;;  %v5784_v50 = vmul.f32 %v5772_v39, %v5758_v63  ;;  %v5785_v62 = vmul.f32 %v5772_v39, %v5759_v17  ;;  %v5786_v38 = vmul.f32 %v5772_v39, %v5760_v40 }
 0xa17   :  { %v5805_v51 = vadd.f32 %v17241_v13, %v5779_v21  ;;  %v5806_v2 = vadd.f32 %v17241_v13, %v5780_v30  ;;  %v5807_v33 = vadd.f32 %v17241_v13, %v5781_v4  ;;  %v5808_v12 = vadd.f32 %v17241_v13, %v5782_v35 }
 0xa18   :  { %v5809_v20 = vadd.f32 %v17241_v13, %v5783_v41  ;;  %v5810_v11 = vadd.f32 %v17241_v13, %v5784_v50  ;;  %v5811_v47 = vadd.f32 %v17241_v13, %v5785_v62  ;;  %v5812_v49 = vadd.f32 %v17241_v13, %v5786_v38 }
 0xa19   :  { %v5821_v46 = vmax.f32 %v5805_v51, 0.0  ;;  %v5822_v32 = vmax.f32 %v5806_v2, 0.0  ;;  %v5823_v26 = vmax.f32 %v5807_v33, 0.0  ;;  %v5824_v34 = vmax.f32 %v5808_v12, 0.0 }
 0xa1a   :  { %v5825_v53 = vmax.f32 %v5809_v20, 0.0  ;;  %v5826_v19 = vmax.f32 %v5810_v11, 0.0  ;;  %v5827_v44 = vmax.f32 %v5811_v47, 0.0  ;;  %v5828_v6 = vmax.f32 %v5812_v49, 0.0 }
 0xa1b   :  { %5837 = vst [vmem:[#allocation2] sm:$0xff] %v5821_v46  ;;  %5838 = vst [vmem:[#allocation2 + $0x8] sm:$0xff] %v5822_v32 }
 0xa1c   :  { %5839 = vst [vmem:[#allocation2 + $0x10] sm:$0xff] %v5823_v26  ;;  %5840 = vst [vmem:[#allocation2 + $0x18] sm:$0xff] %v5824_v34 }
 0xa1d   :  { %5841 = vst [vmem:[#allocation2 + $0x20] sm:$0xff] %v5825_v53  ;;  %5842 = vst [vmem:[#allocation2 + $0x28] sm:$0xff] %v5826_v19 }
 0xa1e   :  { %5843 = vst [vmem:[#allocation2 + $0x30] sm:$0xff] %v5827_v44  ;;  %5844 = vst [vmem:[#allocation2 + $0x38] sm:$0xff] %v5828_v6 }
 0xa1f   :  { %8287 = shalt.err (!%p8284_p4)
}
 0xa20   :  { %s8288_s30 = scalar_lea.hbm %s17282_s11, 2048 }
 0xa21   :  { %p8289_p5 = scmp.ne.s32.totalorder %s17282_s11, %s8288_s30  ;;  %p8292_p6 = scmp.lt.u32.totalorder %s8288_s30, %s17282_s11 }
 0xa23   :  { %p8294_p7 = pnand %p8292_p6, %p8289_p5 }
 0xa25   :  { %8297 = shalt.err (!%p8294_p7)
}
 0xa26   :  { %s8316_s16 = smov 1024   ;;  %s8317_s17 = smov 64  }
 0xa27   :  { %5864 = dma.vmem_to_hbm [thread:$0]  %s5859_s10, 2048, %s17282_s11, [#allocation3], %s8316_s16, %s8316_s16, %s8317_s17  }
 0xa28   :  { %8298 = dma.done.wait [#allocation3], 2048  }
 0xa29   :  { %8299 = vsyncadd [#allocation3], 4294965248 }
 0xa2a   :  { %5868 = vsyncpa [#allocation3], 1 }

</bundles_post_ra>
